<compile_context>
chip_gen: v7x
topology: tpu7x:2x2x1
jax: 0.10.0
libtpu: 0.0.40
codegen_flags: <defaults>
</compile_context>

<pallas_src>
import functools

import numpy as np
import jax
import jax.numpy as jnp
from jax import lax
from jax.experimental import pallas as pl
from jax.experimental.pallas import tpu as pltpu

F32 = jnp.float32
BF16 = jnp.bfloat16


def _sigmoid(x):
    return 1.0 / (1.0 + jnp.exp(-x))


# ------------------------------ Pallas kernels ------------------------------

def _lstm_rec_kernel(gx_ref, whh_ref, o_ref):
    # One LSTM direction.  gx_ref = x@W_ih + b_ih + b_hh precomputed for all T
    # (input projection hoisted out of the recurrence); only h@W_hh runs here.
    t_len, bsz, four_h = gx_ref.shape
    hid = four_h // 4
    whh = whh_ref[...]                                        # (H, 4H) bf16

    def step(t, carry):
        h, c = carry
        g = gx_ref[t] + jnp.dot(h.astype(BF16), whh,
                                preferred_element_type=jnp.float32)
        i = _sigmoid(g[:, :hid])
        f = _sigmoid(g[:, hid:2 * hid])
        gg = jnp.tanh(g[:, 2 * hid:3 * hid])
        o = _sigmoid(g[:, 3 * hid:])
        c = f * c + i * gg
        h = o * jnp.tanh(c)
        o_ref[t] = h
        return h, c

    z = jnp.zeros((bsz, hid), jnp.float32)
    # TODO(synk): switch to a partial unroll (4-8) once T is realistic.
    lax.fori_loop(0, t_len, step, (z, z), unroll=True)


def _gru_rec_kernel(gx_ref, whh_ref, bhh_ref, o_ref):
    # One GRU direction.  gx_ref = x@W_ih + b_ih precomputed for all T.
    t_len, bsz, three_h = gx_ref.shape
    hid = three_h // 3
    whh = whh_ref[...]                                        # (H, 3H) bf16
    bhh = bhh_ref[...]                                        # (1, 3H) f32

    def step(t, h):
        gx = gx_ref[t]
        gh = jnp.dot(h.astype(BF16), whh,
                     preferred_element_type=jnp.float32) + bhh
        r = _sigmoid(gx[:, :hid] + gh[:, :hid])
        z = _sigmoid(gx[:, hid:2 * hid] + gh[:, hid:2 * hid])
        n = jnp.tanh(gx[:, 2 * hid:] + r * gh[:, 2 * hid:])
        h = (1.0 - z) * n + z * h
        o_ref[t] = h
        return h

    lax.fori_loop(0, t_len, step, jnp.zeros((bsz, hid), jnp.float32),
                  unroll=True)


def _graph_stack_kernel(x_ref, a_ref, wall_ref, wroot_ref, brg_ref,
                        hinc_ref, hinct_ref, dinv_ref, binv_ref, bhy_ref,
                        adjn_ref, gwi_ref, gwj_ref, gb_ref, o_ref):
    # Fused RGCN -> HypergraphConv -> highConv pipeline; outputs only the new
    # node features (the concat with x happens outside, no x round-trip).
    x16 = x_ref[...].astype(BF16)                             # (N, F)
    num_rel = a_ref.shape[0]
    hh = wroot_ref.shape[1]

    # RGCNConv (mean aggregation): out = x@Wroot + b + sum_r A_norm[r]@(x@W[r]).
    h_all = jnp.dot(x16, wall_ref[...], preferred_element_type=jnp.float32)
    out = jnp.dot(x16, wroot_ref[...],
                  preferred_element_type=jnp.float32) + brg_ref[...]
    # TODO(synk): banded/edge-list aggregation for realistic N (window +/-2).
    for r in range(num_rel):                                  # static, R == 3
        out = out + jnp.dot(a_ref[r].astype(BF16),
                            h_all[:, r * hh:(r + 1) * hh].astype(BF16),
                            preferred_element_type=jnp.float32)

    # HypergraphConv (use_attention=False): LeakyReLU(D H B H^T x + bias).
    e = jnp.dot(hinct_ref[...].astype(BF16), out.astype(BF16),
                preferred_element_type=jnp.float32) * binv_ref[...]
    hy = dinv_ref[...] * jnp.dot(hinc_ref[...].astype(BF16), e.astype(BF16),
                                 preferred_element_type=jnp.float32) + bhy_ref[...]
    hy = jnp.where(hy > 0, hy, 0.01 * hy)                     # nn.LeakyReLU()

    # highConv: out_i = sum_j deg_norm(i,j) * tanh(gate([x_i, x_j])) * x_j.
    hy16 = hy.astype(BF16)
    si = jnp.dot(hy16, gwi_ref[...], preferred_element_type=jnp.float32)  # (N,1)
    sj = jnp.einsum('eh,nh->en', gwj_ref[...], hy16,
                    preferred_element_type=jnp.float32)                   # (1,N)
    gate = jnp.tanh(si + sj + gb_ref[...])                                # (N,N)
    o_ref[...] = jnp.dot((adjn_ref[...] * gate).astype(BF16), hy16,
                         preferred_element_type=jnp.float32)


def _matchatt_kernel(m_ref, mc_ref, mr_ref, wt_ref, bt_ref, o_ref):
    # MatchingAttention('general2') for one conversation (grid over batch).
    mb = m_ref[...]                                           # (T, D2) f32
    mkc = mc_ref[...]                                         # (T, 1)
    mkr = mr_ref[...]                                         # (1, T)
    qb = jnp.dot(mb.astype(BF16), wt_ref[...],
                 preferred_element_type=jnp.float32) + bt_ref[...]
    mm = mb * mkc                                             # masked memory
    scores = jnp.einsum('td,sd->ts', qb.astype(BF16), mm.astype(BF16),
                        preferred_element_type=jnp.float32)
    a = jnp.tanh(scores * mkr)
    e = jnp.exp(a - jnp.max(a, axis=-1, keepdims=True))
    p = e * mkr
    # masked softmax + renormalization folded into one; exact division.
    p = p / jnp.sum(p, axis=-1, keepdims=True)
    o_ref[...] = jnp.dot(p.astype(BF16), mb.astype(BF16),
                         preferred_element_type=jnp.float32)


def _head_proj_kernel(att_ref, lw_ref, lb_ref, wcat_ref, bcat_ref,
                      inw_ref, inb_ref, o_ref, *, n_cls):
    # Fused GraphNetwork Linear+ReLU -> [smax_fc | linear_rec] shared matmul
    # -> MultiheadAttention in-projection; single lane-dense slab output.
    h = jnp.maximum(
        jnp.dot(att_ref[...].astype(BF16), lw_ref[...],
                preferred_element_type=jnp.float32) + lb_ref[...], 0.0)
    y = jnp.dot(h.astype(BF16), wcat_ref[...],
                preferred_element_type=jnp.float32) + bcat_ref[...]
    logp = y[:, :n_cls]          # raw smax_fc output (reference has no log_softmax)
    rec = y[:, n_cls:]
    qkv = jnp.dot(rec.astype(BF16), inw_ref[...],
                  preferred_element_type=jnp.float32) + inb_ref[...]
    o_ref[...] = jnp.concatenate([logp, qkv], axis=-1)


def _mha_kernel(q_ref, k_ref, v_ref, o_ref, *, scale):
    # (head x query-timestep) grouped scaled dot-product attention, eval mode.
    q = (q_ref[...] * scale).astype(BF16)
    s = jnp.einsum('gld,gmd->glm', q, k_ref[...].astype(BF16),
                   preferred_element_type=jnp.float32)
    e = jnp.exp(s - jnp.max(s, axis=-1, keepdims=True))
    p = e * pl.reciprocal(jnp.sum(e, axis=-1, keepdims=True), approx=True)
    o_ref[...] = jnp.einsum('glm,gmd->gld', p.astype(BF16),
                            v_ref[...].astype(BF16),
                            preferred_element_type=jnp.float32)


def _mha_out_kernel(a_ref, ow_ref, ob_ref, lw_ref, lb_ref, o_ref):
    # Fused MHA out-projection + final Linear+ReLU; slab output (rows, E + D_h).
    rec = jnp.dot(a_ref[...].astype(BF16), ow_ref[...],
                  preferred_element_type=jnp.float32) + ob_ref[...]
    hid = jnp.maximum(
        jnp.dot(rec.astype(BF16), lw_ref[...],
                preferred_element_type=jnp.float32) + lb_ref[...], 0.0)
    o_ref[...] = jnp.concatenate([rec, hid], axis=-1)


# ------------------------------ RNN wrappers ---------------------------------

def birnn_layer(x, lp, kind):
    """One bidirectional LSTM/GRU layer.  Input projection done as one big
    matmul in XLA; the pallas kernel runs the per-direction recurrence with a
    parallel grid over the two directions."""
    t_len, bsz, _ = x.shape
    hid = lp['whh'].shape[1]
    g = 4 if kind == 'lstm' else 3
    xf = x.reshape(t_len * bsz, -1).astype(BF16)
    gx = (jnp.dot(xf, lp['win'], preferred_element_type=jnp.float32)
          .reshape(t_len, bsz, 2 * g * hid) + lp['bin'])
    # backward direction gets time-reversed inputs so the kernel is direction-agnostic
    gx = jnp.stack([gx[..., :g * hid], gx[::-1, :, g * hid:]], axis=0)

    gx_spec = pl.BlockSpec((None, t_len, bsz, g * hid), lambda d: (d, 0, 0, 0))
    w_spec = pl.BlockSpec((None, hid, g * hid), lambda d: (d, 0, 0))
    out_spec = pl.BlockSpec((None, t_len, bsz, hid), lambda d: (d, 0, 0, 0))
    cparams = pltpu.CompilerParams(dimension_semantics=("parallel",))
    out_shape = jax.ShapeDtypeStruct((2, t_len, bsz, hid), F32)

    if kind == 'lstm':
        out = pl.pallas_call(
            _lstm_rec_kernel, out_shape=out_shape, grid=(2,),
            in_specs=[gx_spec, w_spec], out_specs=out_spec,
            compiler_params=cparams,
        )(gx, lp['whh'])
    else:
        b_spec = pl.BlockSpec((None, 1, g * hid), lambda d: (d, 0, 0))
        out = pl.pallas_call(
            _gru_rec_kernel, out_shape=out_shape, grid=(2,),
            in_specs=[gx_spec, w_spec, b_spec], out_specs=out_spec,
            compiler_params=cparams,
        )(gx, lp['whh'], lp['bhh'])

    return jnp.concatenate([out[0], out[1][::-1]], axis=-1)   # (T, B, 2H)


# --------------------------- host-side graph glue ----------------------------
# (runs once per batch OUTSIDE the jitted forward; data-dependent Python loops)

def batch_graphify_edges(qmask_np, seq_lengths, window_past, window_future, mode):
    src, dst, etype = [], [], []
    type_map = {}
    spk = qmask_np.argmax(-1)                                 # (T, B)
    offset = 0
    for j, length in enumerate(seq_lengths):
        for i in range(length):                               # target node
            lo, hi = max(0, i - window_past), min(length - 1, i + window_future)
            for s in range(lo, hi + 1):                       # source node
                src.append(s + offset)
                dst.append(i + offset)
                if mode == 'temporal':
                    key = 'past' if s < i else ('now' if s == i else 'future')
                else:
                    key = '%d->%d' % (int(spk[s, j]), int(spk[i, j]))
                if key not in type_map:
                    type_map[key] = len(type_map)
                etype.append(type_map[key])
        offset += length
    edge_index = np.stack([np.array(src, np.int32), np.array(dst, np.int32)])
    return edge_index, np.array(etype, np.int32), type_map


def build_graph_arrays(edge_index, edge_type, num_relations, n):
    # RGCN: per-relation mean-normalized dense adjacency (A[r, dst, src]).
    adj = np.zeros((num_relations, n, n), np.float32)
    for s, d, r in zip(edge_index[0], edge_index[1], edge_type):
        adj[r, d, s] += 1.0
    deg = adj.sum(axis=2, keepdims=True)
    adj = adj / np.maximum(deg, 1.0)
    # Hypergraph incidence + D/B normalizations.
    m = int(edge_index[1].max()) + 1
    inc = np.zeros((n, m), np.float32)
    np.add.at(inc, (edge_index[0], edge_index[1]), 1.0)
    dsum = inc.sum(axis=1)
    dinv = np.where(dsum > 0, 1.0 / np.maximum(dsum, 1e-12), 0.0).astype(np.float32)
    bsum = inc.sum(axis=0)
    binv = np.where(bsum > 0, 1.0 / np.maximum(bsum, 1e-12), 0.0).astype(np.float32)
    # highConv symmetric degree-normalized adjacency (adjn[dst, src]).
    adj_t = np.zeros((n, n), np.float32)
    adj_t[edge_index[1], edge_index[0]] = 1.0
    deg2 = np.zeros(n, np.float32)
    np.add.at(deg2, edge_index[0], 1.0)
    dis = np.where(deg2 > 0, deg2 ** -0.5, 0.0)
    adjn = (adj_t * (dis[:, None] * dis[None, :])).astype(np.float32)
    return dict(adj=adj, inc=inc, inct=np.ascontiguousarray(inc.T),
                dinv=dinv.reshape(n, 1), binv=binv.reshape(m, 1), adjn=adjn)


def utterance_to_conversation(flat, seq_lengths):
    max_len = max(seq_lengths)
    d = flat.shape[-1]
    segs, start = [], 0
    for length in seq_lengths:
        seg = flat[start:start + length]
        if length < max_len:
            seg = jnp.concatenate([seg, jnp.zeros((max_len - length, d), F32)], axis=0)
        segs.append(seg)
        start += length
    return jnp.stack(segs, axis=0).transpose(1, 0, 2)          # (max_len, B, D)


# ------------------------------ kernel wrappers -------------------------------

def graph_stack(feats, g, gp):
    n, _ = feats.shape
    hh = gp['wroot'].shape[1]
    hc = pl.pallas_call(
        _graph_stack_kernel,
        out_shape=jax.ShapeDtypeStruct((n, hh), F32),
    )(feats, g['adj'], gp['w_all'], gp['wroot'], gp['brg'],
      g['inc'], g['inct'], g['dinv'], g['binv'], gp['bhy'],
      g['adjn'], gp['gwi'], gp['gwj'], gp['gb'])
    return jnp.concatenate([feats, hc], axis=-1)               # (N, F + H)


def matchatt_block(gru_out, umask, gp):
    t_len, bsz, d2 = gru_out.shape
    m = gru_out.transpose(1, 0, 2)                             # (B, T, D2)
    mc = umask.reshape(bsz, t_len, 1)
    mr = umask.reshape(bsz, 1, t_len)
    att = pl.pallas_call(
        _matchatt_kernel,
        out_shape=jax.ShapeDtypeStruct((bsz, t_len, d2), F32),
        grid=(bsz,),
        in_specs=[
            pl.BlockSpec((None, t_len, d2), lambda b: (b, 0, 0)),
            pl.BlockSpec((None, t_len, 1), lambda b: (b, 0, 0)),
            pl.BlockSpec((None, 1, t_len), lambda b: (b, 0, 0)),
            pl.BlockSpec((d2, d2), lambda b: (0, 0)),
            pl.BlockSpec((1, d2), lambda b: (0, 0)),
        ],
        out_specs=pl.BlockSpec((None, t_len, d2), lambda b: (b, 0, 0)),
        compiler_params=pltpu.CompilerParams(dimension_semantics=("parallel",)),
    )(m, mc, mr, gp['matchatt_wt'], gp['matchatt_bt'])
    return att.transpose(1, 0, 2)                              # (T, B, D2)


# ------------------------------ GraphModel forward ---------------------------

def graph_model_forward(params, x, umask, graphs, *, seq_lengths, mha_heads):
    # base_model == 'LSTM': 2-layer bidirectional LSTM.
    out = x
    for layer in range(2):
        out = birnn_layer(out, params['lstm']['l%d' % layer], 'lstm')  # (T,B,2De)

    # graph_net_speaker branch is dead in the reference forward -> skipped.
    feats = jnp.concatenate([out[:l, j, :] for j, l in enumerate(seq_lengths)],
                            axis=0)
    gp = params['gnet']
    node_out = graph_stack(feats, graphs, gp)                  # (N, F + H)

    conv = utterance_to_conversation(node_out, seq_lengths)    # (T, B, D_h)
    gout = conv
    for layer in range(2):
        gout = birnn_layer(gout, gp['grufusion']['l%d' % layer], 'gru')  # (T,B,2D_h)

    att = matchatt_block(gout, umask, gp)                      # (T, B, 2*D_h)
    t_c, b_c, d2 = att.shape
    e_dim = params['in_w'].shape[0]
    n_cls = params['wcat'].shape[1] - e_dim
    d_h = params['lin_w'].shape[1]

    att_flat = att.reshape(t_c * b_c, d2)
    slab = pl.pallas_call(
        functools.partial(_head_proj_kernel, n_cls=n_cls),
        out_shape=jax.ShapeDtypeStruct((t_c * b_c, n_cls + 3 * e_dim), F32),
    )(att_flat, gp['lw'], gp['lb'], params['wcat'], params['bcat'],
      params['in_w'], params['in_b'])
    log_prob = slab[:, :n_cls].reshape(t_c, b_c, n_cls)
    qkv = slab[:, n_cls:]

    # nn.MultiheadAttention over the batch axis (reference feeds rec.transpose(0,1),
    # so length axis == batch).  Head split/merge is cheap XLA glue.
    dh = e_dim // mha_heads
    q, k, v = jnp.split(qkv, 3, axis=-1)

    def to_heads(t):
        return (t.reshape(t_c, b_c, mha_heads, dh).transpose(0, 2, 1, 3)
                 .reshape(t_c * mha_heads, b_c, dh))

    attn = pl.pallas_call(
        functools.partial(_mha_kernel, scale=dh ** -0.5),
        out_shape=jax.ShapeDtypeStruct((t_c * mha_heads, b_c, dh), F32),
    )(to_heads(q), to_heads(k), to_heads(v))
    attn_flat = (attn.reshape(t_c, mha_heads, b_c, dh).transpose(0, 2, 1, 3)
                     .reshape(t_c * b_c, e_dim))

    slab2 = pl.pallas_call(
        _mha_out_kernel,
        out_shape=jax.ShapeDtypeStruct((t_c * b_c, e_dim + d_h), F32),
    )(attn_flat, params['out_w'], params['out_b'],
      params['lin_w'], params['lin_b'])

    rec = slab2[:, :e_dim].reshape(t_c, b_c, e_dim)
    hidden = slab2[:, e_dim:].reshape(t_c, b_c, d_h)
    return log_prob, [rec], hidden


# ------------------------------ parameter init -------------------------------

class KeyGen:
    def __init__(self, seed):
        self._key = jax.random.PRNGKey(seed)

    def __call__(self):
        self._key, sub = jax.random.split(self._key)
        return sub


def _init(key, shape, scale=0.1):
    return (scale * jax.random.normal(key, shape)).astype(F32)


def init_rnn_params(kg, input_size, hidden, n_gates):
    in_sizes = [input_size, 2 * hidden]
    p = {}
    for layer in range(2):
        for tag in ('f', 'r'):
            p['l%d_%s' % (layer, tag)] = {
                'wih': _init(kg(), (n_gates * hidden, in_sizes[layer])),
                'whh': _init(kg(), (n_gates * hidden, hidden)),
                'bih': _init(kg(), (n_gates * hidden,)),
                'bhh': _init(kg(), (n_gates * hidden,)),
            }
    return p


def init_model_params(cfg):
    kg = KeyGen(0)
    e = cfg['adim'] + cfg['tdim'] + cfg['vdim']
    d_e, gh = cfg['D_e'], cfg['graph_hidden']
    d_h = 2 * d_e + gh
    return {
        'lstm': init_rnn_params(kg, e, d_e, 4),
        'gnet_temporal': {
            'rgcn': {'w': _init(kg(), (3, 2 * d_e, gh)),
                     'wroot': _init(kg(), (2 * d_e, gh)),
                     'b': jnp.zeros((gh,), F32)},
            'hyper': {'bias': jnp.zeros((gh,), F32)},
            'high': {'w': _init(kg(), (1, 2 * gh)), 'b': jnp.zeros((1,), F32)},
            'grufusion': init_rnn_params(kg, d_h, d_h, 3),
            'matchatt_w': _init(kg(), (2 * d_h, 2 * d_h)),
            'matchatt_b': jnp.zeros((2 * d_h,), F32),
            'lin_w': _init(kg(), (d_h, 2 * d_h)),
            'lin_b': jnp.zeros((d_h,), F32),
        },
        # gnet_speaker params omitted: that branch's output is never consumed.
        'smax_w': _init(kg(), (cfg['n_classes'], d_h)),
        'smax_b': jnp.zeros((cfg['n_classes'],), F32),
        'rec_w': _init(kg(), (e, d_h)),
        'rec_b': jnp.zeros((e,), F32),
        # TODO(synk): nn.MultiheadAttention(2560, 256) scaled to (E, E//10 heads)
        # so the hard-coded 2560 embed dim fits synthetic shapes (head_dim=10 kept).
        'mha': {'in_w': _init(kg(), (3 * e, e)), 'in_b': jnp.zeros((3 * e,), F32),
                'out_w': _init(kg(), (e, e)), 'out_b': jnp.zeros((e,), F32)},
        'lin_w': _init(kg(), (d_h, e)),
        'lin_b': jnp.zeros((d_h,), F32),
    }


def prepare_params(raw):
    """One-time prep: transpose / concat / stack weights and cast them to bf16
    so the jitted forward does no per-call weight plumbing."""
    def prep_rnn(rp, g):
        out = {}
        for layer in range(2):
            f, r = rp['l%d_f' % layer], rp['l%d_r' % layer]
            win = jnp.concatenate([f['wih'].T, r['wih'].T], axis=1).astype(BF16)
            if g == 4:        # LSTM: fold b_ih + b_hh into the hoisted projection
                bin_ = jnp.concatenate([f['bih'] + f['bhh'], r['bih'] + r['bhh']])
            else:             # GRU: only b_ih can be folded (b_hh sits inside r*(.))
                bin_ = jnp.concatenate([f['bih'], r['bih']])
            lp = {'win': win,
                  'bin': bin_.reshape(1, 1, -1).astype(F32),
                  'whh': jnp.stack([f['whh'].T, r['whh'].T], 0).astype(BF16)}
            if g == 3:
                lp['bhh'] = jnp.stack([f['bhh'].reshape(1, -1),
                                       r['bhh'].reshape(1, -1)], 0).astype(F32)
            out['l%d' % layer] = lp
        return out

    gt = raw['gnet_temporal']
    num_rel, f_in, hh = gt['rgcn']['w'].shape
    gw = gt['high']['w']
    return {
        'lstm': prep_rnn(raw['lstm'], 4),
        'gnet': {
            'w_all': gt['rgcn']['w'].transpose(1, 0, 2)
                                    .reshape(f_in, num_rel * hh).astype(BF16),
            'wroot': gt['rgcn']['wroot'].astype(BF16),
            'brg': gt['rgcn']['b'].reshape(1, -1),
            'bhy': gt['hyper']['bias'].reshape(1, -1),
            'gwi': gw[:, :hh].T.astype(BF16),                 # (hh, 1)
            'gwj': gw[:, hh:].astype(BF16),                   # (1, hh)
            'gb': gt['high']['b'].reshape(1, 1),
            'grufusion': prep_rnn(gt['grufusion'], 3),
            'matchatt_wt': gt['matchatt_w'].T.astype(BF16),
            'matchatt_bt': gt['matchatt_b'].reshape(1, -1),
            'lw': gt['lin_w'].T.astype(BF16),
            'lb': gt['lin_b'].reshape(1, -1),
        },
        'wcat': jnp.concatenate([raw['smax_w'].T, raw['rec_w'].T],
                                axis=1).astype(BF16),
        'bcat': jnp.concatenate([raw['smax_b'], raw['rec_b']]).reshape(1, -1),
        'in_w': raw['mha']['in_w'].T.astype(BF16),
        'in_b': raw['mha']['in_b'].reshape(1, -1),
        'out_w': raw['mha']['out_w'].T.astype(BF16),
        'out_b': raw['mha']['out_b'].reshape(1, -1),
        'lin_w': raw['lin_w'].T.astype(BF16),
        'lin_b': raw['lin_b'].reshape(1, -1),
    }


# ------------------------------ demo / smoke test ----------------------------

if __name__ == '__main__':
    cfg = dict(adim=32, tdim=32, vdim=16, D_e=16, graph_hidden=16, n_speakers=2,
               window_past=2, window_future=2, n_classes=4, mha_heads=8)
    seq_len, batch = 6, 2
    seq_lengths = (6, 4)
    e_in = cfg['adim'] + cfg['tdim'] + cfg['vdim']

    key = jax.random.PRNGKey(0)
    x = jax.random.normal(key, (seq_len, batch, e_in), dtype=F32)

    spk = np.tile(np.arange(seq_len) % cfg['n_speakers'], (batch, 1)).T   # (T, B)
    qmask = np.eye(cfg['n_speakers'], dtype=np.float32)[spk]              # (T, B, S)
    umask = np.zeros((batch, seq_len), np.float32)
    for b, length in enumerate(seq_lengths):
        umask[b, :length] = 1.0

    # Host-side graph construction runs ONCE outside the traced forward.
    edge_index, edge_type, tmap = batch_graphify_edges(
        qmask, seq_lengths, cfg['window_past'], cfg['window_future'], 'temporal')
    assert len(tmap) == 3
    n_nodes = int(sum(seq_lengths))
    graphs = {k: jnp.asarray(v) for k, v in
              build_graph_arrays(edge_index, edge_type, 3, n_nodes).items()}

    params = prepare_params(init_model_params(cfg))
    fwd = jax.jit(graph_model_forward, static_argnames=('seq_lengths', 'mha_heads'))
    log_prob, rec_outputs, hidden = fwd(params, x, jnp.asarray(umask), graphs,
                                        seq_lengths=seq_lengths,
                                        mha_heads=cfg['mha_heads'])
    jax.block_until_ready((log_prob, rec_outputs[0], hidden))

    d_h = 2 * cfg['D_e'] + cfg['graph_hidden']
    assert log_prob.shape == (seq_len, batch, cfg['n_classes'])
    assert rec_outputs[0].shape == (seq_len, batch, e_in)
    assert hidden.shape == (seq_len, batch, d_h)
    assert bool(jnp.all(jnp.isfinite(log_prob)))
    assert bool(jnp.all(jnp.isfinite(hidden)))
    print("KERNEL_OK")
</pallas_src>

<mosaic_0001>
module attributes {stable_mosaic.version = 11 : i64} {
  func.func @_lstm_rec_kernel(%arg0: i32, %arg1: memref<1x6x2x64xf32, #tpu.memory_space<vmem>>, %arg2: memref<1x16x64xbf16, #tpu.memory_space<vmem>>, %arg3: memref<1x6x2x16xf32, #tpu.memory_space<vmem>>) attributes {dimension_semantics = [#tpu.dimension_semantics<parallel>], iteration_bounds = array<i64: 2>, scalar_prefetch = 0 : i64, scratch_operands = 0 : i64, tpu.core_type = #tpu.core_type<tc>, window_params = [{transform_indices = @transform_0, window_bounds = array<i64: 1, 6, 2, 64>}, {transform_indices = @transform_1, window_bounds = array<i64: 1, 16, 64>}, {transform_indices = @transform_2, window_bounds = array<i64: 1, 6, 2, 16>}]} {
    %c0 = arith.constant 0 : index
    %c0_0 = arith.constant 0 : index
    %c0_1 = arith.constant 0 : index
    %0 = vector.load %arg2[%c0, %c0_0, %c0_1] : memref<1x16x64xbf16, #tpu.memory_space<vmem>>, vector<1x16x64xbf16>
    %1 = vector.shape_cast %0 : vector<1x16x64xbf16> to vector<16x64xbf16>
    %cst = arith.constant 0.000000e+00 : f32
    %2 = vector.broadcast %cst : f32 to vector<2x16xf32>
    %c0_i32 = arith.constant 0 : i32
    %c0_2 = arith.constant 0 : index
    %3 = arith.index_cast %c0_i32 : i32 to index
    %c0_3 = arith.constant 0 : index
    %c0_4 = arith.constant 0 : index
    %4 = vector.load %arg1[%c0_2, %3, %c0_3, %c0_4] : memref<1x6x2x64xf32, #tpu.memory_space<vmem>>, vector<1x1x2x64xf32>
    %5 = vector.shape_cast %4 : vector<1x1x2x64xf32> to vector<2x64xf32>
    %6 = arith.truncf %2 : vector<2x16xf32> to vector<2x16xbf16>
    %cst_5 = arith.constant dense<0.000000e+00> : vector<2x64xf32>
    %7 = tpu.matmul %6, %1, %cst_5 {dimension_numbers = #tpu.dot_dimension_numbers<[1], [0], [0], [1], [0, 0, 1, 1], [], []>} : vector<2x16xbf16>, vector<16x64xbf16>, vector<2x64xf32> -> vector<2x64xf32>
    %8 = arith.addf %5, %7 : vector<2x64xf32>
    %9 = vector.extract_strided_slice %8 {offsets = [0, 0], sizes = [2, 16], strides = [1, 1]} : vector<2x64xf32> to vector<2x16xf32>
    %cst_6 = arith.constant 0.000000e+00 : f32
    %10 = vector.broadcast %cst_6 : f32 to vector<2x16xf32>
    %11 = arith.subf %10, %9 : vector<2x16xf32>
    %12 = math.exp %11 : vector<2x16xf32>
    %cst_7 = arith.constant 1.000000e+00 : f32
    %13 = vector.broadcast %cst_7 : f32 to vector<2x16xf32>
    %14 = arith.addf %13, %12 : vector<2x16xf32>
    %cst_8 = arith.constant 1.000000e+00 : f32
    %15 = vector.broadcast %cst_8 : f32 to vector<2x16xf32>
    %16 = arith.divf %15, %14 : vector<2x16xf32>
    %17 = vector.extract_strided_slice %8 {offsets = [0, 16], sizes = [2, 16], strides = [1, 1]} : vector<2x64xf32> to vector<2x16xf32>
    %cst_9 = arith.constant 0.000000e+00 : f32
    %18 = vector.broadcast %cst_9 : f32 to vector<2x16xf32>
    %19 = arith.subf %18, %17 : vector<2x16xf32>
    %20 = math.exp %19 : vector<2x16xf32>
    %cst_10 = arith.constant 1.000000e+00 : f32
    %21 = vector.broadcast %cst_10 : f32 to vector<2x16xf32>
    %22 = arith.addf %21, %20 : vector<2x16xf32>
    %cst_11 = arith.constant 1.000000e+00 : f32
    %23 = vector.broadcast %cst_11 : f32 to vector<2x16xf32>
    %24 = arith.divf %23, %22 : vector<2x16xf32>
    %25 = vector.extract_strided_slice %8 {offsets = [0, 32], sizes = [2, 16], strides = [1, 1]} : vector<2x64xf32> to vector<2x16xf32>
    %26 = math.tanh %25 : vector<2x16xf32>
    %27 = vector.extract_strided_slice %8 {offsets = [0, 48], sizes = [2, 16], strides = [1, 1]} : vector<2x64xf32> to vector<2x16xf32>
    %cst_12 = arith.constant 0.000000e+00 : f32
    %28 = vector.broadcast %cst_12 : f32 to vector<2x16xf32>
    %29 = arith.subf %28, %27 : vector<2x16xf32>
    %30 = math.exp %29 : vector<2x16xf32>
    %cst_13 = arith.constant 1.000000e+00 : f32
    %31 = vector.broadcast %cst_13 : f32 to vector<2x16xf32>
    %32 = arith.addf %31, %30 : vector<2x16xf32>
    %cst_14 = arith.constant 1.000000e+00 : f32
    %33 = vector.broadcast %cst_14 : f32 to vector<2x16xf32>
    %34 = arith.divf %33, %32 : vector<2x16xf32>
    %35 = arith.mulf %24, %2 : vector<2x16xf32>
    %36 = arith.mulf %16, %26 : vector<2x16xf32>
    %37 = arith.addf %35, %36 : vector<2x16xf32>
    %38 = math.tanh %37 : vector<2x16xf32>
    %39 = arith.mulf %34, %38 : vector<2x16xf32>
    %c0_15 = arith.constant 0 : index
    %40 = arith.index_cast %c0_i32 : i32 to index
    %c0_16 = arith.constant 0 : index
    %c0_17 = arith.constant 0 : index
    %41 = vector.load %arg3[%c0_15, %40, %c0_16, %c0_17] : memref<1x6x2x16xf32, #tpu.memory_space<vmem>>, vector<1x1x2x16xf32>
    %42 = vector.shape_cast %41 : vector<1x1x2x16xf32> to vector<2x16xf32>
    %43 = vector.shape_cast %39 : vector<2x16xf32> to vector<1x1x2x16xf32>
    tpu.vector_store %arg3[%c0_15, %40, %c0_16, %c0_17], %43 {strides = array<i32>} : memref<1x6x2x16xf32, #tpu.memory_space<vmem>>, vector<1x1x2x16xf32>,
    %c1_i32 = arith.constant 1 : i32
    %c0_18 = arith.constant 0 : index
    %44 = arith.index_cast %c1_i32 : i32 to index
    %c0_19 = arith.constant 0 : index
    %c0_20 = arith.constant 0 : index
    %45 = vector.load %arg1[%c0_18, %44, %c0_19, %c0_20] : memref<1x6x2x64xf32, #tpu.memory_space<vmem>>, vector<1x1x2x64xf32>
    %46 = vector.shape_cast %45 : vector<1x1x2x64xf32> to vector<2x64xf32>
    %47 = arith.truncf %39 : vector<2x16xf32> to vector<2x16xbf16>
    %cst_21 = arith.constant dense<0.000000e+00> : vector<2x64xf32>
    %48 = tpu.matmul %47, %1, %cst_21 {dimension_numbers = #tpu.dot_dimension_numbers<[1], [0], [0], [1], [0, 0, 1, 1], [], []>} : vector<2x16xbf16>, vector<16x64xbf16>, vector<2x64xf32> -> vector<2x64xf32>
    %49 = arith.addf %46, %48 : vector<2x64xf32>
    %50 = vector.extract_strided_slice %49 {offsets = [0, 0], sizes = [2, 16], strides = [1, 1]} : vector<2x64xf32> to vector<2x16xf32>
    %cst_22 = arith.constant 0.000000e+00 : f32
    %51 = vector.broadcast %cst_22 : f32 to vector<2x16xf32>
    %52 = arith.subf %51, %50 : vector<2x16xf32>
    %53 = math.exp %52 : vector<2x16xf32>
    %cst_23 = arith.constant 1.000000e+00 : f32
    %54 = vector.broadcast %cst_23 : f32 to vector<2x16xf32>
    %55 = arith.addf %54, %53 : vector<2x16xf32>
    %cst_24 = arith.constant 1.000000e+00 : f32
    %56 = vector.broadcast %cst_24 : f32 to vector<2x16xf32>
    %57 = arith.divf %56, %55 : vector<2x16xf32>
    %58 = vector.extract_strided_slice %49 {offsets = [0, 16], sizes = [2, 16], strides = [1, 1]} : vector<2x64xf32> to vector<2x16xf32>
    %cst_25 = arith.constant 0.000000e+00 : f32
    %59 = vector.broadcast %cst_25 : f32 to vector<2x16xf32>
    %60 = arith.subf %59, %58 : vector<2x16xf32>
    %61 = math.exp %60 : vector<2x16xf32>
    %cst_26 = arith.constant 1.000000e+00 : f32
    %62 = vector.broadcast %cst_26 : f32 to vector<2x16xf32>
    %63 = arith.addf %62, %61 : vector<2x16xf32>
    %cst_27 = arith.constant 1.000000e+00 : f32
    %64 = vector.broadcast %cst_27 : f32 to vector<2x16xf32>
    %65 = arith.divf %64, %63 : vector<2x16xf32>
    %66 = vector.extract_strided_slice %49 {offsets = [0, 32], sizes = [2, 16], strides = [1, 1]} : vector<2x64xf32> to vector<2x16xf32>
    %67 = math.tanh %66 : vector<2x16xf32>
    %68 = vector.extract_strided_slice %49 {offsets = [0, 48], sizes = [2, 16], strides = [1, 1]} : vector<2x64xf32> to vector<2x16xf32>
    %cst_28 = arith.constant 0.000000e+00 : f32
    %69 = vector.broadcast %cst_28 : f32 to vector<2x16xf32>
    %70 = arith.subf %69, %68 : vector<2x16xf32>
    %71 = math.exp %70 : vector<2x16xf32>
    %cst_29 = arith.constant 1.000000e+00 : f32
    %72 = vector.broadcast %cst_29 : f32 to vector<2x16xf32>
    %73 = arith.addf %72, %71 : vector<2x16xf32>
    %cst_30 = arith.constant 1.000000e+00 : f32
    %74 = vector.broadcast %cst_30 : f32 to vector<2x16xf32>
    %75 = arith.divf %74, %73 : vector<2x16xf32>
    %76 = arith.mulf %65, %37 : vector<2x16xf32>
    %77 = arith.mulf %57, %67 : vector<2x16xf32>
    %78 = arith.addf %76, %77 : vector<2x16xf32>
    %79 = math.tanh %78 : vector<2x16xf32>
    %80 = arith.mulf %75, %79 : vector<2x16xf32>
    %c0_31 = arith.constant 0 : index
    %81 = arith.index_cast %c1_i32 : i32 to index
    %c0_32 = arith.constant 0 : index
    %c0_33 = arith.constant 0 : index
    %82 = vector.load %arg3[%c0_31, %81, %c0_32, %c0_33] : memref<1x6x2x16xf32, #tpu.memory_space<vmem>>, vector<1x1x2x16xf32>
    %83 = vector.shape_cast %82 : vector<1x1x2x16xf32> to vector<2x16xf32>
    %84 = vector.shape_cast %80 : vector<2x16xf32> to vector<1x1x2x16xf32>
    tpu.vector_store %arg3[%c0_31, %81, %c0_32, %c0_33], %84 {strides = array<i32>} : memref<1x6x2x16xf32, #tpu.memory_space<vmem>>, vector<1x1x2x16xf32>,
    %c2_i32 = arith.constant 2 : i32
    %c0_34 = arith.constant 0 : index
    %85 = arith.index_cast %c2_i32 : i32 to index
    %c0_35 = arith.constant 0 : index
    %c0_36 = arith.constant 0 : index
    %86 = vector.load %arg1[%c0_34, %85, %c0_35, %c0_36] : memref<1x6x2x64xf32, #tpu.memory_space<vmem>>, vector<1x1x2x64xf32>
    %87 = vector.shape_cast %86 : vector<1x1x2x64xf32> to vector<2x64xf32>
    %88 = arith.truncf %80 : vector<2x16xf32> to vector<2x16xbf16>
    %cst_37 = arith.constant dense<0.000000e+00> : vector<2x64xf32>
    %89 = tpu.matmul %88, %1, %cst_37 {dimension_numbers = #tpu.dot_dimension_numbers<[1], [0], [0], [1], [0, 0, 1, 1], [], []>} : vector<2x16xbf16>, vector<16x64xbf16>, vector<2x64xf32> -> vector<2x64xf32>
    %90 = arith.addf %87, %89 : vector<2x64xf32>
    %91 = vector.extract_strided_slice %90 {offsets = [0, 0], sizes = [2, 16], strides = [1, 1]} : vector<2x64xf32> to vector<2x16xf32>
    %cst_38 = arith.constant 0.000000e+00 : f32
    %92 = vector.broadcast %cst_38 : f32 to vector<2x16xf32>
    %93 = arith.subf %92, %91 : vector<2x16xf32>
    %94 = math.exp %93 : vector<2x16xf32>
    %cst_39 = arith.constant 1.000000e+00 : f32
    %95 = vector.broadcast %cst_39 : f32 to vector<2x16xf32>
    %96 = arith.addf %95, %94 : vector<2x16xf32>
    %cst_40 = arith.constant 1.000000e+00 : f32
    %97 = vector.broadcast %cst_40 : f32 to vector<2x16xf32>
    %98 = arith.divf %97, %96 : vector<2x16xf32>
    %99 = vector.extract_strided_slice %90 {offsets = [0, 16], sizes = [2, 16], strides = [1, 1]} : vector<2x64xf32> to vector<2x16xf32>
    %cst_41 = arith.constant 0.000000e+00 : f32
    %100 = vector.broadcast %cst_41 : f32 to vector<2x16xf32>
    %101 = arith.subf %100, %99 : vector<2x16xf32>
    %102 = math.exp %101 : vector<2x16xf32>
    %cst_42 = arith.constant 1.000000e+00 : f32
    %103 = vector.broadcast %cst_42 : f32 to vector<2x16xf32>
    %104 = arith.addf %103, %102 : vector<2x16xf32>
    %cst_43 = arith.constant 1.000000e+00 : f32
    %105 = vector.broadcast %cst_43 : f32 to vector<2x16xf32>
    %106 = arith.divf %105, %104 : vector<2x16xf32>
    %107 = vector.extract_strided_slice %90 {offsets = [0, 32], sizes = [2, 16], strides = [1, 1]} : vector<2x64xf32> to vector<2x16xf32>
    %108 = math.tanh %107 : vector<2x16xf32>
    %109 = vector.extract_strided_slice %90 {offsets = [0, 48], sizes = [2, 16], strides = [1, 1]} : vector<2x64xf32> to vector<2x16xf32>
    %cst_44 = arith.constant 0.000000e+00 : f32
    %110 = vector.broadcast %cst_44 : f32 to vector<2x16xf32>
    %111 = arith.subf %110, %109 : vector<2x16xf32>
    %112 = math.exp %111 : vector<2x16xf32>
    %cst_45 = arith.constant 1.000000e+00 : f32
    %113 = vector.broadcast %cst_45 : f32 to vector<2x16xf32>
    %114 = arith.addf %113, %112 : vector<2x16xf32>
    %cst_46 = arith.constant 1.000000e+00 : f32
    %115 = vector.broadcast %cst_46 : f32 to vector<2x16xf32>
    %116 = arith.divf %115, %114 : vector<2x16xf32>
    %117 = arith.mulf %106, %78 : vector<2x16xf32>
    %118 = arith.mulf %98, %108 : vector<2x16xf32>
    %119 = arith.addf %117, %118 : vector<2x16xf32>
    %120 = math.tanh %119 : vector<2x16xf32>
    %121 = arith.mulf %116, %120 : vector<2x16xf32>
    %c0_47 = arith.constant 0 : index
    %122 = arith.index_cast %c2_i32 : i32 to index
    %c0_48 = arith.constant 0 : index
    %c0_49 = arith.constant 0 : index
    %123 = vector.load %arg3[%c0_47, %122, %c0_48, %c0_49] : memref<1x6x2x16xf32, #tpu.memory_space<vmem>>, vector<1x1x2x16xf32>
    %124 = vector.shape_cast %123 : vector<1x1x2x16xf32> to vector<2x16xf32>
    %125 = vector.shape_cast %121 : vector<2x16xf32> to vector<1x1x2x16xf32>
    tpu.vector_store %arg3[%c0_47, %122, %c0_48, %c0_49], %125 {strides = array<i32>} : memref<1x6x2x16xf32, #tpu.memory_space<vmem>>, vector<1x1x2x16xf32>,
    %c3_i32 = arith.constant 3 : i32
    %c0_50 = arith.constant 0 : index
    %126 = arith.index_cast %c3_i32 : i32 to index
    %c0_51 = arith.constant 0 : index
    %c0_52 = arith.constant 0 : index
    %127 = vector.load %arg1[%c0_50, %126, %c0_51, %c0_52] : memref<1x6x2x64xf32, #tpu.memory_space<vmem>>, vector<1x1x2x64xf32>
    %128 = vector.shape_cast %127 : vector<1x1x2x64xf32> to vector<2x64xf32>
    %129 = arith.truncf %121 : vector<2x16xf32> to vector<2x16xbf16>
    %cst_53 = arith.constant dense<0.000000e+00> : vector<2x64xf32>
    %130 = tpu.matmul %129, %1, %cst_53 {dimension_numbers = #tpu.dot_dimension_numbers<[1], [0], [0], [1], [0, 0, 1, 1], [], []>} : vector<2x16xbf16>, vector<16x64xbf16>, vector<2x64xf32> -> vector<2x64xf32>
    %131 = arith.addf %128, %130 : vector<2x64xf32>
    %132 = vector.extract_strided_slice %131 {offsets = [0, 0], sizes = [2, 16], strides = [1, 1]} : vector<2x64xf32> to vector<2x16xf32>
    %cst_54 = arith.constant 0.000000e+00 : f32
    %133 = vector.broadcast %cst_54 : f32 to vector<2x16xf32>
    %134 = arith.subf %133, %132 : vector<2x16xf32>
    %135 = math.exp %134 : vector<2x16xf32>
    %cst_55 = arith.constant 1.000000e+00 : f32
    %136 = vector.broadcast %cst_55 : f32 to vector<2x16xf32>
    %137 = arith.addf %136, %135 : vector<2x16xf32>
    %cst_56 = arith.constant 1.000000e+00 : f32
    %138 = vector.broadcast %cst_56 : f32 to vector<2x16xf32>
    %139 = arith.divf %138, %137 : vector<2x16xf32>
    %140 = vector.extract_strided_slice %131 {offsets = [0, 16], sizes = [2, 16], strides = [1, 1]} : vector<2x64xf32> to vector<2x16xf32>
    %cst_57 = arith.constant 0.000000e+00 : f32
    %141 = vector.broadcast %cst_57 : f32 to vector<2x16xf32>
    %142 = arith.subf %141, %140 : vector<2x16xf32>
    %143 = math.exp %142 : vector<2x16xf32>
    %cst_58 = arith.constant 1.000000e+00 : f32
    %144 = vector.broadcast %cst_58 : f32 to vector<2x16xf32>
    %145 = arith.addf %144, %143 : vector<2x16xf32>
    %cst_59 = arith.constant 1.000000e+00 : f32
    %146 = vector.broadcast %cst_59 : f32 to vector<2x16xf32>
    %147 = arith.divf %146, %145 : vector<2x16xf32>
    %148 = vector.extract_strided_slice %131 {offsets = [0, 32], sizes = [2, 16], strides = [1, 1]} : vector<2x64xf32> to vector<2x16xf32>
    %149 = math.tanh %148 : vector<2x16xf32>
    %150 = vector.extract_strided_slice %131 {offsets = [0, 48], sizes = [2, 16], strides = [1, 1]} : vector<2x64xf32> to vector<2x16xf32>
    %cst_60 = arith.constant 0.000000e+00 : f32
    %151 = vector.broadcast %cst_60 : f32 to vector<2x16xf32>
    %152 = arith.subf %151, %150 : vector<2x16xf32>
    %153 = math.exp %152 : vector<2x16xf32>
    %cst_61 = arith.constant 1.000000e+00 : f32
    %154 = vector.broadcast %cst_61 : f32 to vector<2x16xf32>
    %155 = arith.addf %154, %153 : vector<2x16xf32>
    %cst_62 = arith.constant 1.000000e+00 : f32
    %156 = vector.broadcast %cst_62 : f32 to vector<2x16xf32>
    %157 = arith.divf %156, %155 : vector<2x16xf32>
    %158 = arith.mulf %147, %119 : vector<2x16xf32>
    %159 = arith.mulf %139, %149 : vector<2x16xf32>
    %160 = arith.addf %158, %159 : vector<2x16xf32>
    %161 = math.tanh %160 : vector<2x16xf32>
    %162 = arith.mulf %157, %161 : vector<2x16xf32>
    %c0_63 = arith.constant 0 : index
    %163 = arith.index_cast %c3_i32 : i32 to index
    %c0_64 = arith.constant 0 : index
    %c0_65 = arith.constant 0 : index
    %164 = vector.load %arg3[%c0_63, %163, %c0_64, %c0_65] : memref<1x6x2x16xf32, #tpu.memory_space<vmem>>, vector<1x1x2x16xf32>
    %165 = vector.shape_cast %164 : vector<1x1x2x16xf32> to vector<2x16xf32>
    %166 = vector.shape_cast %162 : vector<2x16xf32> to vector<1x1x2x16xf32>
    tpu.vector_store %arg3[%c0_63, %163, %c0_64, %c0_65], %166 {strides = array<i32>} : memref<1x6x2x16xf32, #tpu.memory_space<vmem>>, vector<1x1x2x16xf32>,
    %c4_i32 = arith.constant 4 : i32
    %c0_66 = arith.constant 0 : index
    %167 = arith.index_cast %c4_i32 : i32 to index
    %c0_67 = arith.constant 0 : index
    %c0_68 = arith.constant 0 : index
    %168 = vector.load %arg1[%c0_66, %167, %c0_67, %c0_68] : memref<1x6x2x64xf32, #tpu.memory_space<vmem>>, vector<1x1x2x64xf32>
    %169 = vector.shape_cast %168 : vector<1x1x2x64xf32> to vector<2x64xf32>
    %170 = arith.truncf %162 : vector<2x16xf32> to vector<2x16xbf16>
    %cst_69 = arith.constant dense<0.000000e+00> : vector<2x64xf32>
    %171 = tpu.matmul %170, %1, %cst_69 {dimension_numbers = #tpu.dot_dimension_numbers<[1], [0], [0], [1], [0, 0, 1, 1], [], []>} : vector<2x16xbf16>, vector<16x64xbf16>, vector<2x64xf32> -> vector<2x64xf32>
    %172 = arith.addf %169, %171 : vector<2x64xf32>
    %173 = vector.extract_strided_slice %172 {offsets = [0, 0], sizes = [2, 16], strides = [1, 1]} : vector<2x64xf32> to vector<2x16xf32>
    %cst_70 = arith.constant 0.000000e+00 : f32
    %174 = vector.broadcast %cst_70 : f32 to vector<2x16xf32>
    %175 = arith.subf %174, %173 : vector<2x16xf32>
    %176 = math.exp %175 : vector<2x16xf32>
    %cst_71 = arith.constant 1.000000e+00 : f32
    %177 = vector.broadcast %cst_71 : f32 to vector<2x16xf32>
    %178 = arith.addf %177, %176 : vector<2x16xf32>
    %cst_72 = arith.constant 1.000000e+00 : f32
    %179 = vector.broadcast %cst_72 : f32 to vector<2x16xf32>
    %180 = arith.divf %179, %178 : vector<2x16xf32>
    %181 = vector.extract_strided_slice %172 {offsets = [0, 16], sizes = [2, 16], strides = [1, 1]} : vector<2x64xf32> to vector<2x16xf32>
    %cst_73 = arith.constant 0.000000e+00 : f32
    %182 = vector.broadcast %cst_73 : f32 to vector<2x16xf32>
    %183 = arith.subf %182, %181 : vector<2x16xf32>
    %184 = math.exp %183 : vector<2x16xf32>
    %cst_74 = arith.constant 1.000000e+00 : f32
    %185 = vector.broadcast %cst_74 : f32 to vector<2x16xf32>
    %186 = arith.addf %185, %184 : vector<2x16xf32>
    %cst_75 = arith.constant 1.000000e+00 : f32
    %187 = vector.broadcast %cst_75 : f32 to vector<2x16xf32>
    %188 = arith.divf %187, %186 : vector<2x16xf32>
    %189 = vector.extract_strided_slice %172 {offsets = [0, 32], sizes = [2, 16], strides = [1, 1]} : vector<2x64xf32> to vector<2x16xf32>
    %190 = math.tanh %189 : vector<2x16xf32>
    %191 = vector.extract_strided_slice %172 {offsets = [0, 48], sizes = [2, 16], strides = [1, 1]} : vector<2x64xf32> to vector<2x16xf32>
    %cst_76 = arith.constant 0.000000e+00 : f32
    %192 = vector.broadcast %cst_76 : f32 to vector<2x16xf32>
    %193 = arith.subf %192, %191 : vector<2x16xf32>
    %194 = math.exp %193 : vector<2x16xf32>
    %cst_77 = arith.constant 1.000000e+00 : f32
    %195 = vector.broadcast %cst_77 : f32 to vector<2x16xf32>
    %196 = arith.addf %195, %194 : vector<2x16xf32>
    %cst_78 = arith.constant 1.000000e+00 : f32
    %197 = vector.broadcast %cst_78 : f32 to vector<2x16xf32>
    %198 = arith.divf %197, %196 : vector<2x16xf32>
    %199 = arith.mulf %188, %160 : vector<2x16xf32>
    %200 = arith.mulf %180, %190 : vector<2x16xf32>
    %201 = arith.addf %199, %200 : vector<2x16xf32>
    %202 = math.tanh %201 : vector<2x16xf32>
    %203 = arith.mulf %198, %202 : vector<2x16xf32>
    %c0_79 = arith.constant 0 : index
    %204 = arith.index_cast %c4_i32 : i32 to index
    %c0_80 = arith.constant 0 : index
    %c0_81 = arith.constant 0 : index
    %205 = vector.load %arg3[%c0_79, %204, %c0_80, %c0_81] : memref<1x6x2x16xf32, #tpu.memory_space<vmem>>, vector<1x1x2x16xf32>
    %206 = vector.shape_cast %205 : vector<1x1x2x16xf32> to vector<2x16xf32>
    %207 = vector.shape_cast %203 : vector<2x16xf32> to vector<1x1x2x16xf32>
    tpu.vector_store %arg3[%c0_79, %204, %c0_80, %c0_81], %207 {strides = array<i32>} : memref<1x6x2x16xf32, #tpu.memory_space<vmem>>, vector<1x1x2x16xf32>,
    %c5_i32 = arith.constant 5 : i32
    %c0_82 = arith.constant 0 : index
    %208 = arith.index_cast %c5_i32 : i32 to index
    %c0_83 = arith.constant 0 : index
    %c0_84 = arith.constant 0 : index
    %209 = vector.load %arg1[%c0_82, %208, %c0_83, %c0_84] : memref<1x6x2x64xf32, #tpu.memory_space<vmem>>, vector<1x1x2x64xf32>
    %210 = vector.shape_cast %209 : vector<1x1x2x64xf32> to vector<2x64xf32>
    %211 = arith.truncf %203 : vector<2x16xf32> to vector<2x16xbf16>
    %cst_85 = arith.constant dense<0.000000e+00> : vector<2x64xf32>
    %212 = tpu.matmul %211, %1, %cst_85 {dimension_numbers = #tpu.dot_dimension_numbers<[1], [0], [0], [1], [0, 0, 1, 1], [], []>} : vector<2x16xbf16>, vector<16x64xbf16>, vector<2x64xf32> -> vector<2x64xf32>
    %213 = arith.addf %210, %212 : vector<2x64xf32>
    %214 = vector.extract_strided_slice %213 {offsets = [0, 0], sizes = [2, 16], strides = [1, 1]} : vector<2x64xf32> to vector<2x16xf32>
    %cst_86 = arith.constant 0.000000e+00 : f32
    %215 = vector.broadcast %cst_86 : f32 to vector<2x16xf32>
    %216 = arith.subf %215, %214 : vector<2x16xf32>
    %217 = math.exp %216 : vector<2x16xf32>
    %cst_87 = arith.constant 1.000000e+00 : f32
    %218 = vector.broadcast %cst_87 : f32 to vector<2x16xf32>
    %219 = arith.addf %218, %217 : vector<2x16xf32>
    %cst_88 = arith.constant 1.000000e+00 : f32
    %220 = vector.broadcast %cst_88 : f32 to vector<2x16xf32>
    %221 = arith.divf %220, %219 : vector<2x16xf32>
    %222 = vector.extract_strided_slice %213 {offsets = [0, 16], sizes = [2, 16], strides = [1, 1]} : vector<2x64xf32> to vector<2x16xf32>
    %cst_89 = arith.constant 0.000000e+00 : f32
    %223 = vector.broadcast %cst_89 : f32 to vector<2x16xf32>
    %224 = arith.subf %223, %222 : vector<2x16xf32>
    %225 = math.exp %224 : vector<2x16xf32>
    %cst_90 = arith.constant 1.000000e+00 : f32
    %226 = vector.broadcast %cst_90 : f32 to vector<2x16xf32>
    %227 = arith.addf %226, %225 : vector<2x16xf32>
    %cst_91 = arith.constant 1.000000e+00 : f32
    %228 = vector.broadcast %cst_91 : f32 to vector<2x16xf32>
    %229 = arith.divf %228, %227 : vector<2x16xf32>
    %230 = vector.extract_strided_slice %213 {offsets = [0, 32], sizes = [2, 16], strides = [1, 1]} : vector<2x64xf32> to vector<2x16xf32>
    %231 = math.tanh %230 : vector<2x16xf32>
    %232 = vector.extract_strided_slice %213 {offsets = [0, 48], sizes = [2, 16], strides = [1, 1]} : vector<2x64xf32> to vector<2x16xf32>
    %cst_92 = arith.constant 0.000000e+00 : f32
    %233 = vector.broadcast %cst_92 : f32 to vector<2x16xf32>
    %234 = arith.subf %233, %232 : vector<2x16xf32>
    %235 = math.exp %234 : vector<2x16xf32>
    %cst_93 = arith.constant 1.000000e+00 : f32
    %236 = vector.broadcast %cst_93 : f32 to vector<2x16xf32>
    %237 = arith.addf %236, %235 : vector<2x16xf32>
    %cst_94 = arith.constant 1.000000e+00 : f32
    %238 = vector.broadcast %cst_94 : f32 to vector<2x16xf32>
    %239 = arith.divf %238, %237 : vector<2x16xf32>
    %240 = arith.mulf %229, %201 : vector<2x16xf32>
    %241 = arith.mulf %221, %231 : vector<2x16xf32>
    %242 = arith.addf %240, %241 : vector<2x16xf32>
    %243 = math.tanh %242 : vector<2x16xf32>
    %244 = arith.mulf %239, %243 : vector<2x16xf32>
    %c0_95 = arith.constant 0 : index
    %245 = arith.index_cast %c5_i32 : i32 to index
    %c0_96 = arith.constant 0 : index
    %c0_97 = arith.constant 0 : index
    %246 = vector.load %arg3[%c0_95, %245, %c0_96, %c0_97] : memref<1x6x2x16xf32, #tpu.memory_space<vmem>>, vector<1x1x2x16xf32>
    %247 = vector.shape_cast %246 : vector<1x1x2x16xf32> to vector<2x16xf32>
    %248 = vector.shape_cast %244 : vector<2x16xf32> to vector<1x1x2x16xf32>
    tpu.vector_store %arg3[%c0_95, %245, %c0_96, %c0_97], %248 {strides = array<i32>} : memref<1x6x2x16xf32, #tpu.memory_space<vmem>>, vector<1x1x2x16xf32>,
    %c6_i32 = arith.constant 6 : i32
    return
  }
  func.func @transform_0(%arg0: i32) -> (i32, i32, i32, i32) {
    %c0_i32 = arith.constant 0 : i32
    %c0_i32_0 = arith.constant 0 : i32
    %c0_i32_1 = arith.constant 0 : i32
    %c0_i32_2 = arith.constant 0 : i32
    return %arg0, %c0_i32, %c0_i32_0, %c0_i32_1 : i32, i32, i32, i32
  }
  func.func @transform_1(%arg0: i32) -> (i32, i32, i32) {
    %c0_i32 = arith.constant 0 : i32
    %c0_i32_0 = arith.constant 0 : i32
    %c0_i32_1 = arith.constant 0 : i32
    return %arg0, %c0_i32, %c0_i32_0 : i32, i32, i32
  }
  func.func @transform_2(%arg0: i32) -> (i32, i32, i32, i32) {
    %c0_i32 = arith.constant 0 : i32
    %c0_i32_0 = arith.constant 0 : i32
    %c0_i32_1 = arith.constant 0 : i32
    %c0_i32_2 = arith.constant 0 : i32
    return %arg0, %c0_i32, %c0_i32_0, %c0_i32_1 : i32, i32, i32, i32
  }
}

module attributes {stable_mosaic.version = 11 : i64} {
  func.func @_graph_stack_kernel(%arg0: memref<10x32xf32, #tpu.memory_space<vmem>>, %arg1: memref<3x10x10xf32, #tpu.memory_space<vmem>>, %arg2: memref<32x48xbf16, #tpu.memory_space<vmem>>, %arg3: memref<32x16xbf16, #tpu.memory_space<vmem>>, %arg4: memref<1x16xf32, #tpu.memory_space<vmem>>, %arg5: memref<10x10xf32, #tpu.memory_space<vmem>>, %arg6: memref<10x10xf32, #tpu.memory_space<vmem>>, %arg7: memref<10x1xf32, #tpu.memory_space<vmem>>, %arg8: memref<10x1xf32, #tpu.memory_space<vmem>>, %arg9: memref<1x16xf32, #tpu.memory_space<vmem>>, %arg10: memref<10x10xf32, #tpu.memory_space<vmem>>, %arg11: memref<16x1xbf16, #tpu.memory_space<vmem>>, %arg12: memref<1x16xbf16, #tpu.memory_space<vmem>>, %arg13: memref<1x1xf32, #tpu.memory_space<vmem>>, %arg14: memref<10x16xf32, #tpu.memory_space<vmem>>) attributes {dimension_semantics = [], scalar_prefetch = 0 : i64, scratch_operands = 0 : i64, tpu.core_type = #tpu.core_type<tc>} {
    %c0 = arith.constant 0 : index
    %c0_0 = arith.constant 0 : index
    %0 = vector.load %arg0[%c0, %c0_0] : memref<10x32xf32, #tpu.memory_space<vmem>>, vector<10x32xf32>
    %1 = arith.truncf %0 : vector<10x32xf32> to vector<10x32xbf16>
    %c0_1 = arith.constant 0 : index
    %c0_2 = arith.constant 0 : index
    %2 = vector.load %arg2[%c0_1, %c0_2] : memref<32x48xbf16, #tpu.memory_space<vmem>>, vector<32x48xbf16>
    %cst = arith.constant dense<0.000000e+00> : vector<10x48xf32>
    %3 = tpu.matmul %1, %2, %cst {dimension_numbers = #tpu.dot_dimension_numbers<[1], [0], [0], [1], [0, 0, 1, 1], [], []>} : vector<10x32xbf16>, vector<32x48xbf16>, vector<10x48xf32> -> vector<10x48xf32>
    %c0_3 = arith.constant 0 : index
    %c0_4 = arith.constant 0 : index
    %4 = vector.load %arg3[%c0_3, %c0_4] : memref<32x16xbf16, #tpu.memory_space<vmem>>, vector<32x16xbf16>
    %cst_5 = arith.constant dense<0.000000e+00> : vector<10x16xf32>
    %5 = tpu.matmul %1, %4, %cst_5 {dimension_numbers = #tpu.dot_dimension_numbers<[1], [0], [0], [1], [0, 0, 1, 1], [], []>} : vector<10x32xbf16>, vector<32x16xbf16>, vector<10x16xf32> -> vector<10x16xf32>
    %c0_6 = arith.constant 0 : index
    %c0_7 = arith.constant 0 : index
    %6 = vector.load %arg4[%c0_6, %c0_7] : memref<1x16xf32, #tpu.memory_space<vmem>>, vector<1x16xf32>
    %7 = vector.broadcast %6 : vector<1x16xf32> to vector<10x16xf32>
    %8 = arith.addf %5, %7 : vector<10x16xf32>
    %c0_8 = arith.constant 0 : index
    %c0_9 = arith.constant 0 : index
    %c0_10 = arith.constant 0 : index
    %9 = vector.load %arg1[%c0_8, %c0_9, %c0_10] : memref<3x10x10xf32, #tpu.memory_space<vmem>>, vector<1x10x10xf32>
    %10 = vector.shape_cast %9 : vector<1x10x10xf32> to vector<10x10xf32>
    %11 = arith.truncf %10 : vector<10x10xf32> to vector<10x10xbf16>
    %12 = vector.extract_strided_slice %3 {offsets = [0, 0], sizes = [10, 16], strides = [1, 1]} : vector<10x48xf32> to vector<10x16xf32>
    %13 = arith.truncf %12 : vector<10x16xf32> to vector<10x16xbf16>
    %cst_11 = arith.constant dense<0.000000e+00> : vector<10x16xf32>
    %14 = tpu.matmul %11, %13, %cst_11 {dimension_numbers = #tpu.dot_dimension_numbers<[1], [0], [0], [1], [0, 0, 1, 1], [], []>} : vector<10x10xbf16>, vector<10x16xbf16>, vector<10x16xf32> -> vector<10x16xf32>
    %15 = arith.addf %8, %14 : vector<10x16xf32>
    %c1 = arith.constant 1 : index
    %c0_12 = arith.constant 0 : index
    %c0_13 = arith.constant 0 : index
    %16 = vector.load %arg1[%c1, %c0_12, %c0_13] : memref<3x10x10xf32, #tpu.memory_space<vmem>>, vector<1x10x10xf32>
    %17 = vector.shape_cast %16 : vector<1x10x10xf32> to vector<10x10xf32>
    %18 = arith.truncf %17 : vector<10x10xf32> to vector<10x10xbf16>
    %19 = vector.extract_strided_slice %3 {offsets = [0, 16], sizes = [10, 16], strides = [1, 1]} : vector<10x48xf32> to vector<10x16xf32>
    %20 = arith.truncf %19 : vector<10x16xf32> to vector<10x16xbf16>
    %cst_14 = arith.constant dense<0.000000e+00> : vector<10x16xf32>
    %21 = tpu.matmul %18, %20, %cst_14 {dimension_numbers = #tpu.dot_dimension_numbers<[1], [0], [0], [1], [0, 0, 1, 1], [], []>} : vector<10x10xbf16>, vector<10x16xbf16>, vector<10x16xf32> -> vector<10x16xf32>
    %22 = arith.addf %15, %21 : vector<10x16xf32>
    %c2 = arith.constant 2 : index
    %c0_15 = arith.constant 0 : index
    %c0_16 = arith.constant 0 : index
    %23 = vector.load %arg1[%c2, %c0_15, %c0_16] : memref<3x10x10xf32, #tpu.memory_space<vmem>>, vector<1x10x10xf32>
    %24 = vector.shape_cast %23 : vector<1x10x10xf32> to vector<10x10xf32>
    %25 = arith.truncf %24 : vector<10x10xf32> to vector<10x10xbf16>
    %26 = vector.extract_strided_slice %3 {offsets = [0, 32], sizes = [10, 16], strides = [1, 1]} : vector<10x48xf32> to vector<10x16xf32>
    %27 = arith.truncf %26 : vector<10x16xf32> to vector<10x16xbf16>
    %cst_17 = arith.constant dense<0.000000e+00> : vector<10x16xf32>
    %28 = tpu.matmul %25, %27, %cst_17 {dimension_numbers = #tpu.dot_dimension_numbers<[1], [0], [0], [1], [0, 0, 1, 1], [], []>} : vector<10x10xbf16>, vector<10x16xbf16>, vector<10x16xf32> -> vector<10x16xf32>
    %29 = arith.addf %22, %28 : vector<10x16xf32>
    %c0_18 = arith.constant 0 : index
    %c0_19 = arith.constant 0 : index
    %30 = vector.load %arg6[%c0_18, %c0_19] : memref<10x10xf32, #tpu.memory_space<vmem>>, vector<10x10xf32>
    %31 = arith.truncf %30 : vector<10x10xf32> to vector<10x10xbf16>
    %32 = arith.truncf %29 : vector<10x16xf32> to vector<10x16xbf16>
    %cst_20 = arith.constant dense<0.000000e+00> : vector<10x16xf32>
    %33 = tpu.matmul %31, %32, %cst_20 {dimension_numbers = #tpu.dot_dimension_numbers<[1], [0], [0], [1], [0, 0, 1, 1], [], []>} : vector<10x10xbf16>, vector<10x16xbf16>, vector<10x16xf32> -> vector<10x16xf32>
    %c0_21 = arith.constant 0 : index
    %c0_22 = arith.constant 0 : index
    %34 = vector.load %arg8[%c0_21, %c0_22] : memref<10x1xf32, #tpu.memory_space<vmem>>, vector<10x1xf32>
    %35 = vector.broadcast %34 : vector<10x1xf32> to vector<10x16xf32>
    %36 = arith.mulf %33, %35 : vector<10x16xf32>
    %c0_23 = arith.constant 0 : index
    %c0_24 = arith.constant 0 : index
    %37 = vector.load %arg7[%c0_23, %c0_24] : memref<10x1xf32, #tpu.memory_space<vmem>>, vector<10x1xf32>
    %c0_25 = arith.constant 0 : index
    %c0_26 = arith.constant 0 : index
    %38 = vector.load %arg5[%c0_25, %c0_26] : memref<10x10xf32, #tpu.memory_space<vmem>>, vector<10x10xf32>
    %39 = arith.truncf %38 : vector<10x10xf32> to vector<10x10xbf16>
    %40 = arith.truncf %36 : vector<10x16xf32> to vector<10x16xbf16>
    %cst_27 = arith.constant dense<0.000000e+00> : vector<10x16xf32>
    %41 = tpu.matmul %39, %40, %cst_27 {dimension_numbers = #tpu.dot_dimension_numbers<[1], [0], [0], [1], [0, 0, 1, 1], [], []>} : vector<10x10xbf16>, vector<10x16xbf16>, vector<10x16xf32> -> vector<10x16xf32>
    %42 = vector.broadcast %37 : vector<10x1xf32> to vector<10x16xf32>
    %43 = arith.mulf %42, %41 : vector<10x16xf32>
    %c0_28 = arith.constant 0 : index
    %c0_29 = arith.constant 0 : index
    %44 = vector.load %arg9[%c0_28, %c0_29] : memref<1x16xf32, #tpu.memory_space<vmem>>, vector<1x16xf32>
    %45 = vector.broadcast %44 : vector<1x16xf32> to vector<10x16xf32>
    %46 = arith.addf %43, %45 : vector<10x16xf32>
    %cst_30 = arith.constant 0.000000e+00 : f32
    %47 = vector.broadcast %cst_30 : f32 to vector<10x16xf32>
    %48 = arith.cmpf ogt, %46, %47 : vector<10x16xf32>
    %cst_31 = arith.constant 0.00999999977 : f32
    %49 = vector.broadcast %cst_31 : f32 to vector<10x16xf32>
    %50 = arith.mulf %49, %46 : vector<10x16xf32>
    %51 = arith.select %48, %46, %50 : vector<10x16xi1>, vector<10x16xf32>
    %52 = arith.truncf %51 : vector<10x16xf32> to vector<10x16xbf16>
    %c0_32 = arith.constant 0 : index
    %c0_33 = arith.constant 0 : index
    %53 = vector.load %arg11[%c0_32, %c0_33] : memref<16x1xbf16, #tpu.memory_space<vmem>>, vector<16x1xbf16>
    %cst_34 = arith.constant dense<0.000000e+00> : vector<10x1xf32>
    %54 = tpu.matmul %52, %53, %cst_34 {dimension_numbers = #tpu.dot_dimension_numbers<[1], [0], [0], [1], [0, 0, 1, 1], [], []>} : vector<10x16xbf16>, vector<16x1xbf16>, vector<10x1xf32> -> vector<10x1xf32>
    %c0_35 = arith.constant 0 : index
    %c0_36 = arith.constant 0 : index
    %55 = vector.load %arg12[%c0_35, %c0_36] : memref<1x16xbf16, #tpu.memory_space<vmem>>, vector<1x16xbf16>
    "tpu.trace_start"() <{level = 10 : i32, message = "eh,nh->en"}> : () -> ()
    %cst_37 = arith.constant dense<0.000000e+00> : vector<1x10xf32>
    %56 = tpu.matmul %55, %52, %cst_37 {dimension_numbers = #tpu.dot_dimension_numbers<[1], [1], [0], [0], [0, 0, 1, 0], [], []>} : vector<1x16xbf16>, vector<10x16xbf16>, vector<1x10xf32> -> vector<1x10xf32>
    "tpu.trace_stop"() : () -> ()
    %57 = vector.broadcast %54 : vector<10x1xf32> to vector<10x10xf32>
    %58 = vector.broadcast %56 : vector<1x10xf32> to vector<10x10xf32>
    %59 = arith.addf %57, %58 : vector<10x10xf32>
    %c0_38 = arith.constant 0 : index
    %c0_39 = arith.constant 0 : index
    %60 = vector.load %arg13[%c0_38, %c0_39] : memref<1x1xf32, #tpu.memory_space<vmem>>, vector<1x1xf32>
    %61 = vector.broadcast %60 : vector<1x1xf32> to vector<10x10xf32>
    %62 = arith.addf %59, %61 : vector<10x10xf32>
    %63 = math.tanh %62 : vector<10x10xf32>
    %c0_40 = arith.constant 0 : index
    %c0_41 = arith.constant 0 : index
    %64 = vector.load %arg10[%c0_40, %c0_41] : memref<10x10xf32, #tpu.memory_space<vmem>>, vector<10x10xf32>
    %65 = arith.mulf %64, %63 : vector<10x10xf32>
    %66 = arith.truncf %65 : vector<10x10xf32> to vector<10x10xbf16>
    %cst_42 = arith.constant dense<0.000000e+00> : vector<10x16xf32>
    %67 = tpu.matmul %66, %52, %cst_42 {dimension_numbers = #tpu.dot_dimension_numbers<[1], [0], [0], [1], [0, 0, 1, 1], [], []>} : vector<10x10xbf16>, vector<10x16xbf16>, vector<10x16xf32> -> vector<10x16xf32>
    %c0_43 = arith.constant 0 : index
    %c0_44 = arith.constant 0 : index
    %68 = vector.load %arg14[%c0_43, %c0_44] : memref<10x16xf32, #tpu.memory_space<vmem>>, vector<10x16xf32>
    tpu.vector_store %arg14[%c0_43, %c0_44], %67 {strides = array<i32>} : memref<10x16xf32, #tpu.memory_space<vmem>>, vector<10x16xf32>,
    return
  }
}

module attributes {stable_mosaic.version = 11 : i64} {
  func.func @_gru_rec_kernel(%arg0: i32, %arg1: memref<1x6x2x144xf32, #tpu.memory_space<vmem>>, %arg2: memref<1x48x144xbf16, #tpu.memory_space<vmem>>, %arg3: memref<1x1x144xf32, #tpu.memory_space<vmem>>, %arg4: memref<1x6x2x48xf32, #tpu.memory_space<vmem>>) attributes {dimension_semantics = [#tpu.dimension_semantics<parallel>], iteration_bounds = array<i64: 2>, scalar_prefetch = 0 : i64, scratch_operands = 0 : i64, tpu.core_type = #tpu.core_type<tc>, window_params = [{transform_indices = @transform_0, window_bounds = array<i64: 1, 6, 2, 144>}, {transform_indices = @transform_1, window_bounds = array<i64: 1, 48, 144>}, {transform_indices = @transform_2, window_bounds = array<i64: 1, 1, 144>}, {transform_indices = @transform_3, window_bounds = array<i64: 1, 6, 2, 48>}]} {
    %c0 = arith.constant 0 : index
    %c0_0 = arith.constant 0 : index
    %c0_1 = arith.constant 0 : index
    %0 = vector.load %arg2[%c0, %c0_0, %c0_1] : memref<1x48x144xbf16, #tpu.memory_space<vmem>>, vector<1x48x144xbf16>
    %1 = vector.shape_cast %0 : vector<1x48x144xbf16> to vector<48x144xbf16>
    %c0_2 = arith.constant 0 : index
    %c0_3 = arith.constant 0 : index
    %c0_4 = arith.constant 0 : index
    %2 = vector.load %arg3[%c0_2, %c0_3, %c0_4] : memref<1x1x144xf32, #tpu.memory_space<vmem>>, vector<1x1x144xf32>
    %3 = vector.shape_cast %2 : vector<1x1x144xf32> to vector<1x144xf32>
    %cst = arith.constant 0.000000e+00 : f32
    %4 = vector.broadcast %cst : f32 to vector<2x48xf32>
    %c0_i32 = arith.constant 0 : i32
    %c0_5 = arith.constant 0 : index
    %5 = arith.index_cast %c0_i32 : i32 to index
    %c0_6 = arith.constant 0 : index
    %c0_7 = arith.constant 0 : index
    %6 = vector.load %arg1[%c0_5, %5, %c0_6, %c0_7] : memref<1x6x2x144xf32, #tpu.memory_space<vmem>>, vector<1x1x2x144xf32>
    %7 = vector.shape_cast %6 : vector<1x1x2x144xf32> to vector<2x144xf32>
    %8 = arith.truncf %4 : vector<2x48xf32> to vector<2x48xbf16>
    %cst_8 = arith.constant dense<0.000000e+00> : vector<2x144xf32>
    %9 = tpu.matmul %8, %1, %cst_8 {dimension_numbers = #tpu.dot_dimension_numbers<[1], [0], [0], [1], [0, 0, 1, 1], [], []>} : vector<2x48xbf16>, vector<48x144xbf16>, vector<2x144xf32> -> vector<2x144xf32>
    %10 = vector.broadcast %3 : vector<1x144xf32> to vector<2x144xf32>
    %11 = arith.addf %9, %10 : vector<2x144xf32>
    %12 = vector.extract_strided_slice %7 {offsets = [0, 0], sizes = [2, 48], strides = [1, 1]} : vector<2x144xf32> to vector<2x48xf32>
    %13 = vector.extract_strided_slice %11 {offsets = [0, 0], sizes = [2, 48], strides = [1, 1]} : vector<2x144xf32> to vector<2x48xf32>
    %14 = arith.addf %12, %13 : vector<2x48xf32>
    %cst_9 = arith.constant 0.000000e+00 : f32
    %15 = vector.broadcast %cst_9 : f32 to vector<2x48xf32>
    %16 = arith.subf %15, %14 : vector<2x48xf32>
    %17 = math.exp %16 : vector<2x48xf32>
    %cst_10 = arith.constant 1.000000e+00 : f32
    %18 = vector.broadcast %cst_10 : f32 to vector<2x48xf32>
    %19 = arith.addf %18, %17 : vector<2x48xf32>
    %cst_11 = arith.constant 1.000000e+00 : f32
    %20 = vector.broadcast %cst_11 : f32 to vector<2x48xf32>
    %21 = arith.divf %20, %19 : vector<2x48xf32>
    %22 = vector.extract_strided_slice %7 {offsets = [0, 48], sizes = [2, 48], strides = [1, 1]} : vector<2x144xf32> to vector<2x48xf32>
    %23 = vector.extract_strided_slice %11 {offsets = [0, 48], sizes = [2, 48], strides = [1, 1]} : vector<2x144xf32> to vector<2x48xf32>
    %24 = arith.addf %22, %23 : vector<2x48xf32>
    %cst_12 = arith.constant 0.000000e+00 : f32
    %25 = vector.broadcast %cst_12 : f32 to vector<2x48xf32>
    %26 = arith.subf %25, %24 : vector<2x48xf32>
    %27 = math.exp %26 : vector<2x48xf32>
    %cst_13 = arith.constant 1.000000e+00 : f32
    %28 = vector.broadcast %cst_13 : f32 to vector<2x48xf32>
    %29 = arith.addf %28, %27 : vector<2x48xf32>
    %cst_14 = arith.constant 1.000000e+00 : f32
    %30 = vector.broadcast %cst_14 : f32 to vector<2x48xf32>
    %31 = arith.divf %30, %29 : vector<2x48xf32>
    %32 = vector.extract_strided_slice %7 {offsets = [0, 96], sizes = [2, 48], strides = [1, 1]} : vector<2x144xf32> to vector<2x48xf32>
    %33 = vector.extract_strided_slice %11 {offsets = [0, 96], sizes = [2, 48], strides = [1, 1]} : vector<2x144xf32> to vector<2x48xf32>
    %34 = arith.mulf %21, %33 : vector<2x48xf32>
    %35 = arith.addf %32, %34 : vector<2x48xf32>
    %36 = math.tanh %35 : vector<2x48xf32>
    %cst_15 = arith.constant 1.000000e+00 : f32
    %37 = vector.broadcast %cst_15 : f32 to vector<2x48xf32>
    %38 = arith.subf %37, %31 : vector<2x48xf32>
    %39 = arith.mulf %38, %36 : vector<2x48xf32>
    %40 = arith.mulf %31, %4 : vector<2x48xf32>
    %41 = arith.addf %39, %40 : vector<2x48xf32>
    %c0_16 = arith.constant 0 : index
    %42 = arith.index_cast %c0_i32 : i32 to index
    %c0_17 = arith.constant 0 : index
    %c0_18 = arith.constant 0 : index
    %43 = vector.load %arg4[%c0_16, %42, %c0_17, %c0_18] : memref<1x6x2x48xf32, #tpu.memory_space<vmem>>, vector<1x1x2x48xf32>
    %44 = vector.shape_cast %43 : vector<1x1x2x48xf32> to vector<2x48xf32>
    %45 = vector.shape_cast %41 : vector<2x48xf32> to vector<1x1x2x48xf32>
    tpu.vector_store %arg4[%c0_16, %42, %c0_17, %c0_18], %45 {strides = array<i32>} : memref<1x6x2x48xf32, #tpu.memory_space<vmem>>, vector<1x1x2x48xf32>,
    %c1_i32 = arith.constant 1 : i32
    %c0_19 = arith.constant 0 : index
    %46 = arith.index_cast %c1_i32 : i32 to index
    %c0_20 = arith.constant 0 : index
    %c0_21 = arith.constant 0 : index
    %47 = vector.load %arg1[%c0_19, %46, %c0_20, %c0_21] : memref<1x6x2x144xf32, #tpu.memory_space<vmem>>, vector<1x1x2x144xf32>
    %48 = vector.shape_cast %47 : vector<1x1x2x144xf32> to vector<2x144xf32>
    %49 = arith.truncf %41 : vector<2x48xf32> to vector<2x48xbf16>
    %cst_22 = arith.constant dense<0.000000e+00> : vector<2x144xf32>
    %50 = tpu.matmul %49, %1, %cst_22 {dimension_numbers = #tpu.dot_dimension_numbers<[1], [0], [0], [1], [0, 0, 1, 1], [], []>} : vector<2x48xbf16>, vector<48x144xbf16>, vector<2x144xf32> -> vector<2x144xf32>
    %51 = vector.broadcast %3 : vector<1x144xf32> to vector<2x144xf32>
    %52 = arith.addf %50, %51 : vector<2x144xf32>
    %53 = vector.extract_strided_slice %48 {offsets = [0, 0], sizes = [2, 48], strides = [1, 1]} : vector<2x144xf32> to vector<2x48xf32>
    %54 = vector.extract_strided_slice %52 {offsets = [0, 0], sizes = [2, 48], strides = [1, 1]} : vector<2x144xf32> to vector<2x48xf32>
    %55 = arith.addf %53, %54 : vector<2x48xf32>
    %cst_23 = arith.constant 0.000000e+00 : f32
    %56 = vector.broadcast %cst_23 : f32 to vector<2x48xf32>
    %57 = arith.subf %56, %55 : vector<2x48xf32>
    %58 = math.exp %57 : vector<2x48xf32>
    %cst_24 = arith.constant 1.000000e+00 : f32
    %59 = vector.broadcast %cst_24 : f32 to vector<2x48xf32>
    %60 = arith.addf %59, %58 : vector<2x48xf32>
    %cst_25 = arith.constant 1.000000e+00 : f32
    %61 = vector.broadcast %cst_25 : f32 to vector<2x48xf32>
    %62 = arith.divf %61, %60 : vector<2x48xf32>
    %63 = vector.extract_strided_slice %48 {offsets = [0, 48], sizes = [2, 48], strides = [1, 1]} : vector<2x144xf32> to vector<2x48xf32>
    %64 = vector.extract_strided_slice %52 {offsets = [0, 48], sizes = [2, 48], strides = [1, 1]} : vector<2x144xf32> to vector<2x48xf32>
    %65 = arith.addf %63, %64 : vector<2x48xf32>
    %cst_26 = arith.constant 0.000000e+00 : f32
    %66 = vector.broadcast %cst_26 : f32 to vector<2x48xf32>
    %67 = arith.subf %66, %65 : vector<2x48xf32>
    %68 = math.exp %67 : vector<2x48xf32>
    %cst_27 = arith.constant 1.000000e+00 : f32
    %69 = vector.broadcast %cst_27 : f32 to vector<2x48xf32>
    %70 = arith.addf %69, %68 : vector<2x48xf32>
    %cst_28 = arith.constant 1.000000e+00 : f32
    %71 = vector.broadcast %cst_28 : f32 to vector<2x48xf32>
    %72 = arith.divf %71, %70 : vector<2x48xf32>
    %73 = vector.extract_strided_slice %48 {offsets = [0, 96], sizes = [2, 48], strides = [1, 1]} : vector<2x144xf32> to vector<2x48xf32>
    %74 = vector.extract_strided_slice %52 {offsets = [0, 96], sizes = [2, 48], strides = [1, 1]} : vector<2x144xf32> to vector<2x48xf32>
    %75 = arith.mulf %62, %74 : vector<2x48xf32>
    %76 = arith.addf %73, %75 : vector<2x48xf32>
    %77 = math.tanh %76 : vector<2x48xf32>
    %cst_29 = arith.constant 1.000000e+00 : f32
    %78 = vector.broadcast %cst_29 : f32 to vector<2x48xf32>
    %79 = arith.subf %78, %72 : vector<2x48xf32>
    %80 = arith.mulf %79, %77 : vector<2x48xf32>
    %81 = arith.mulf %72, %41 : vector<2x48xf32>
    %82 = arith.addf %80, %81 : vector<2x48xf32>
    %c0_30 = arith.constant 0 : index
    %83 = arith.index_cast %c1_i32 : i32 to index
    %c0_31 = arith.constant 0 : index
    %c0_32 = arith.constant 0 : index
    %84 = vector.load %arg4[%c0_30, %83, %c0_31, %c0_32] : memref<1x6x2x48xf32, #tpu.memory_space<vmem>>, vector<1x1x2x48xf32>
    %85 = vector.shape_cast %84 : vector<1x1x2x48xf32> to vector<2x48xf32>
    %86 = vector.shape_cast %82 : vector<2x48xf32> to vector<1x1x2x48xf32>
    tpu.vector_store %arg4[%c0_30, %83, %c0_31, %c0_32], %86 {strides = array<i32>} : memref<1x6x2x48xf32, #tpu.memory_space<vmem>>, vector<1x1x2x48xf32>,
    %c2_i32 = arith.constant 2 : i32
    %c0_33 = arith.constant 0 : index
    %87 = arith.index_cast %c2_i32 : i32 to index
    %c0_34 = arith.constant 0 : index
    %c0_35 = arith.constant 0 : index
    %88 = vector.load %arg1[%c0_33, %87, %c0_34, %c0_35] : memref<1x6x2x144xf32, #tpu.memory_space<vmem>>, vector<1x1x2x144xf32>
    %89 = vector.shape_cast %88 : vector<1x1x2x144xf32> to vector<2x144xf32>
    %90 = arith.truncf %82 : vector<2x48xf32> to vector<2x48xbf16>
    %cst_36 = arith.constant dense<0.000000e+00> : vector<2x144xf32>
    %91 = tpu.matmul %90, %1, %cst_36 {dimension_numbers = #tpu.dot_dimension_numbers<[1], [0], [0], [1], [0, 0, 1, 1], [], []>} : vector<2x48xbf16>, vector<48x144xbf16>, vector<2x144xf32> -> vector<2x144xf32>
    %92 = vector.broadcast %3 : vector<1x144xf32> to vector<2x144xf32>
    %93 = arith.addf %91, %92 : vector<2x144xf32>
    %94 = vector.extract_strided_slice %89 {offsets = [0, 0], sizes = [2, 48], strides = [1, 1]} : vector<2x144xf32> to vector<2x48xf32>
    %95 = vector.extract_strided_slice %93 {offsets = [0, 0], sizes = [2, 48], strides = [1, 1]} : vector<2x144xf32> to vector<2x48xf32>
    %96 = arith.addf %94, %95 : vector<2x48xf32>
    %cst_37 = arith.constant 0.000000e+00 : f32
    %97 = vector.broadcast %cst_37 : f32 to vector<2x48xf32>
    %98 = arith.subf %97, %96 : vector<2x48xf32>
    %99 = math.exp %98 : vector<2x48xf32>
    %cst_38 = arith.constant 1.000000e+00 : f32
    %100 = vector.broadcast %cst_38 : f32 to vector<2x48xf32>
    %101 = arith.addf %100, %99 : vector<2x48xf32>
    %cst_39 = arith.constant 1.000000e+00 : f32
    %102 = vector.broadcast %cst_39 : f32 to vector<2x48xf32>
    %103 = arith.divf %102, %101 : vector<2x48xf32>
    %104 = vector.extract_strided_slice %89 {offsets = [0, 48], sizes = [2, 48], strides = [1, 1]} : vector<2x144xf32> to vector<2x48xf32>
    %105 = vector.extract_strided_slice %93 {offsets = [0, 48], sizes = [2, 48], strides = [1, 1]} : vector<2x144xf32> to vector<2x48xf32>
    %106 = arith.addf %104, %105 : vector<2x48xf32>
    %cst_40 = arith.constant 0.000000e+00 : f32
    %107 = vector.broadcast %cst_40 : f32 to vector<2x48xf32>
    %108 = arith.subf %107, %106 : vector<2x48xf32>
    %109 = math.exp %108 : vector<2x48xf32>
    %cst_41 = arith.constant 1.000000e+00 : f32
    %110 = vector.broadcast %cst_41 : f32 to vector<2x48xf32>
    %111 = arith.addf %110, %109 : vector<2x48xf32>
    %cst_42 = arith.constant 1.000000e+00 : f32
    %112 = vector.broadcast %cst_42 : f32 to vector<2x48xf32>
    %113 = arith.divf %112, %111 : vector<2x48xf32>
    %114 = vector.extract_strided_slice %89 {offsets = [0, 96], sizes = [2, 48], strides = [1, 1]} : vector<2x144xf32> to vector<2x48xf32>
    %115 = vector.extract_strided_slice %93 {offsets = [0, 96], sizes = [2, 48], strides = [1, 1]} : vector<2x144xf32> to vector<2x48xf32>
    %116 = arith.mulf %103, %115 : vector<2x48xf32>
    %117 = arith.addf %114, %116 : vector<2x48xf32>
    %118 = math.tanh %117 : vector<2x48xf32>
    %cst_43 = arith.constant 1.000000e+00 : f32
    %119 = vector.broadcast %cst_43 : f32 to vector<2x48xf32>
    %120 = arith.subf %119, %113 : vector<2x48xf32>
    %121 = arith.mulf %120, %118 : vector<2x48xf32>
    %122 = arith.mulf %113, %82 : vector<2x48xf32>
    %123 = arith.addf %121, %122 : vector<2x48xf32>
    %c0_44 = arith.constant 0 : index
    %124 = arith.index_cast %c2_i32 : i32 to index
    %c0_45 = arith.constant 0 : index
    %c0_46 = arith.constant 0 : index
    %125 = vector.load %arg4[%c0_44, %124, %c0_45, %c0_46] : memref<1x6x2x48xf32, #tpu.memory_space<vmem>>, vector<1x1x2x48xf32>
    %126 = vector.shape_cast %125 : vector<1x1x2x48xf32> to vector<2x48xf32>
    %127 = vector.shape_cast %123 : vector<2x48xf32> to vector<1x1x2x48xf32>
    tpu.vector_store %arg4[%c0_44, %124, %c0_45, %c0_46], %127 {strides = array<i32>} : memref<1x6x2x48xf32, #tpu.memory_space<vmem>>, vector<1x1x2x48xf32>,
    %c3_i32 = arith.constant 3 : i32
    %c0_47 = arith.constant 0 : index
    %128 = arith.index_cast %c3_i32 : i32 to index
    %c0_48 = arith.constant 0 : index
    %c0_49 = arith.constant 0 : index
    %129 = vector.load %arg1[%c0_47, %128, %c0_48, %c0_49] : memref<1x6x2x144xf32, #tpu.memory_space<vmem>>, vector<1x1x2x144xf32>
    %130 = vector.shape_cast %129 : vector<1x1x2x144xf32> to vector<2x144xf32>
    %131 = arith.truncf %123 : vector<2x48xf32> to vector<2x48xbf16>
    %cst_50 = arith.constant dense<0.000000e+00> : vector<2x144xf32>
    %132 = tpu.matmul %131, %1, %cst_50 {dimension_numbers = #tpu.dot_dimension_numbers<[1], [0], [0], [1], [0, 0, 1, 1], [], []>} : vector<2x48xbf16>, vector<48x144xbf16>, vector<2x144xf32> -> vector<2x144xf32>
    %133 = vector.broadcast %3 : vector<1x144xf32> to vector<2x144xf32>
    %134 = arith.addf %132, %133 : vector<2x144xf32>
    %135 = vector.extract_strided_slice %130 {offsets = [0, 0], sizes = [2, 48], strides = [1, 1]} : vector<2x144xf32> to vector<2x48xf32>
    %136 = vector.extract_strided_slice %134 {offsets = [0, 0], sizes = [2, 48], strides = [1, 1]} : vector<2x144xf32> to vector<2x48xf32>
    %137 = arith.addf %135, %136 : vector<2x48xf32>
    %cst_51 = arith.constant 0.000000e+00 : f32
    %138 = vector.broadcast %cst_51 : f32 to vector<2x48xf32>
    %139 = arith.subf %138, %137 : vector<2x48xf32>
    %140 = math.exp %139 : vector<2x48xf32>
    %cst_52 = arith.constant 1.000000e+00 : f32
    %141 = vector.broadcast %cst_52 : f32 to vector<2x48xf32>
    %142 = arith.addf %141, %140 : vector<2x48xf32>
    %cst_53 = arith.constant 1.000000e+00 : f32
    %143 = vector.broadcast %cst_53 : f32 to vector<2x48xf32>
    %144 = arith.divf %143, %142 : vector<2x48xf32>
    %145 = vector.extract_strided_slice %130 {offsets = [0, 48], sizes = [2, 48], strides = [1, 1]} : vector<2x144xf32> to vector<2x48xf32>
    %146 = vector.extract_strided_slice %134 {offsets = [0, 48], sizes = [2, 48], strides = [1, 1]} : vector<2x144xf32> to vector<2x48xf32>
    %147 = arith.addf %145, %146 : vector<2x48xf32>
    %cst_54 = arith.constant 0.000000e+00 : f32
    %148 = vector.broadcast %cst_54 : f32 to vector<2x48xf32>
    %149 = arith.subf %148, %147 : vector<2x48xf32>
    %150 = math.exp %149 : vector<2x48xf32>
    %cst_55 = arith.constant 1.000000e+00 : f32
    %151 = vector.broadcast %cst_55 : f32 to vector<2x48xf32>
    %152 = arith.addf %151, %150 : vector<2x48xf32>
    %cst_56 = arith.constant 1.000000e+00 : f32
    %153 = vector.broadcast %cst_56 : f32 to vector<2x48xf32>
    %154 = arith.divf %153, %152 : vector<2x48xf32>
    %155 = vector.extract_strided_slice %130 {offsets = [0, 96], sizes = [2, 48], strides = [1, 1]} : vector<2x144xf32> to vector<2x48xf32>
    %156 = vector.extract_strided_slice %134 {offsets = [0, 96], sizes = [2, 48], strides = [1, 1]} : vector<2x144xf32> to vector<2x48xf32>
    %157 = arith.mulf %144, %156 : vector<2x48xf32>
    %158 = arith.addf %155, %157 : vector<2x48xf32>
    %159 = math.tanh %158 : vector<2x48xf32>
    %cst_57 = arith.constant 1.000000e+00 : f32
    %160 = vector.broadcast %cst_57 : f32 to vector<2x48xf32>
    %161 = arith.subf %160, %154 : vector<2x48xf32>
    %162 = arith.mulf %161, %159 : vector<2x48xf32>
    %163 = arith.mulf %154, %123 : vector<2x48xf32>
    %164 = arith.addf %162, %163 : vector<2x48xf32>
    %c0_58 = arith.constant 0 : index
    %165 = arith.index_cast %c3_i32 : i32 to index
    %c0_59 = arith.constant 0 : index
    %c0_60 = arith.constant 0 : index
    %166 = vector.load %arg4[%c0_58, %165, %c0_59, %c0_60] : memref<1x6x2x48xf32, #tpu.memory_space<vmem>>, vector<1x1x2x48xf32>
    %167 = vector.shape_cast %166 : vector<1x1x2x48xf32> to vector<2x48xf32>
    %168 = vector.shape_cast %164 : vector<2x48xf32> to vector<1x1x2x48xf32>
    tpu.vector_store %arg4[%c0_58, %165, %c0_59, %c0_60], %168 {strides = array<i32>} : memref<1x6x2x48xf32, #tpu.memory_space<vmem>>, vector<1x1x2x48xf32>,
    %c4_i32 = arith.constant 4 : i32
    %c0_61 = arith.constant 0 : index
    %169 = arith.index_cast %c4_i32 : i32 to index
    %c0_62 = arith.constant 0 : index
    %c0_63 = arith.constant 0 : index
    %170 = vector.load %arg1[%c0_61, %169, %c0_62, %c0_63] : memref<1x6x2x144xf32, #tpu.memory_space<vmem>>, vector<1x1x2x144xf32>
    %171 = vector.shape_cast %170 : vector<1x1x2x144xf32> to vector<2x144xf32>
    %172 = arith.truncf %164 : vector<2x48xf32> to vector<2x48xbf16>
    %cst_64 = arith.constant dense<0.000000e+00> : vector<2x144xf32>
    %173 = tpu.matmul %172, %1, %cst_64 {dimension_numbers = #tpu.dot_dimension_numbers<[1], [0], [0], [1], [0, 0, 1, 1], [], []>} : vector<2x48xbf16>, vector<48x144xbf16>, vector<2x144xf32> -> vector<2x144xf32>
    %174 = vector.broadcast %3 : vector<1x144xf32> to vector<2x144xf32>
    %175 = arith.addf %173, %174 : vector<2x144xf32>
    %176 = vector.extract_strided_slice %171 {offsets = [0, 0], sizes = [2, 48], strides = [1, 1]} : vector<2x144xf32> to vector<2x48xf32>
    %177 = vector.extract_strided_slice %175 {offsets = [0, 0], sizes = [2, 48], strides = [1, 1]} : vector<2x144xf32> to vector<2x48xf32>
    %178 = arith.addf %176, %177 : vector<2x48xf32>
    %cst_65 = arith.constant 0.000000e+00 : f32
    %179 = vector.broadcast %cst_65 : f32 to vector<2x48xf32>
    %180 = arith.subf %179, %178 : vector<2x48xf32>
    %181 = math.exp %180 : vector<2x48xf32>
    %cst_66 = arith.constant 1.000000e+00 : f32
    %182 = vector.broadcast %cst_66 : f32 to vector<2x48xf32>
    %183 = arith.addf %182, %181 : vector<2x48xf32>
    %cst_67 = arith.constant 1.000000e+00 : f32
    %184 = vector.broadcast %cst_67 : f32 to vector<2x48xf32>
    %185 = arith.divf %184, %183 : vector<2x48xf32>
    %186 = vector.extract_strided_slice %171 {offsets = [0, 48], sizes = [2, 48], strides = [1, 1]} : vector<2x144xf32> to vector<2x48xf32>
    %187 = vector.extract_strided_slice %175 {offsets = [0, 48], sizes = [2, 48], strides = [1, 1]} : vector<2x144xf32> to vector<2x48xf32>
    %188 = arith.addf %186, %187 : vector<2x48xf32>
    %cst_68 = arith.constant 0.000000e+00 : f32
    %189 = vector.broadcast %cst_68 : f32 to vector<2x48xf32>
    %190 = arith.subf %189, %188 : vector<2x48xf32>
    %191 = math.exp %190 : vector<2x48xf32>
    %cst_69 = arith.constant 1.000000e+00 : f32
    %192 = vector.broadcast %cst_69 : f32 to vector<2x48xf32>
    %193 = arith.addf %192, %191 : vector<2x48xf32>
    %cst_70 = arith.constant 1.000000e+00 : f32
    %194 = vector.broadcast %cst_70 : f32 to vector<2x48xf32>
    %195 = arith.divf %194, %193 : vector<2x48xf32>
    %196 = vector.extract_strided_slice %171 {offsets = [0, 96], sizes = [2, 48], strides = [1, 1]} : vector<2x144xf32> to vector<2x48xf32>
    %197 = vector.extract_strided_slice %175 {offsets = [0, 96], sizes = [2, 48], strides = [1, 1]} : vector<2x144xf32> to vector<2x48xf32>
    %198 = arith.mulf %185, %197 : vector<2x48xf32>
    %199 = arith.addf %196, %198 : vector<2x48xf32>
    %200 = math.tanh %199 : vector<2x48xf32>
    %cst_71 = arith.constant 1.000000e+00 : f32
    %201 = vector.broadcast %cst_71 : f32 to vector<2x48xf32>
    %202 = arith.subf %201, %195 : vector<2x48xf32>
    %203 = arith.mulf %202, %200 : vector<2x48xf32>
    %204 = arith.mulf %195, %164 : vector<2x48xf32>
    %205 = arith.addf %203, %204 : vector<2x48xf32>
    %c0_72 = arith.constant 0 : index
    %206 = arith.index_cast %c4_i32 : i32 to index
    %c0_73 = arith.constant 0 : index
    %c0_74 = arith.constant 0 : index
    %207 = vector.load %arg4[%c0_72, %206, %c0_73, %c0_74] : memref<1x6x2x48xf32, #tpu.memory_space<vmem>>, vector<1x1x2x48xf32>
    %208 = vector.shape_cast %207 : vector<1x1x2x48xf32> to vector<2x48xf32>
    %209 = vector.shape_cast %205 : vector<2x48xf32> to vector<1x1x2x48xf32>
    tpu.vector_store %arg4[%c0_72, %206, %c0_73, %c0_74], %209 {strides = array<i32>} : memref<1x6x2x48xf32, #tpu.memory_space<vmem>>, vector<1x1x2x48xf32>,
    %c5_i32 = arith.constant 5 : i32
    %c0_75 = arith.constant 0 : index
    %210 = arith.index_cast %c5_i32 : i32 to index
    %c0_76 = arith.constant 0 : index
    %c0_77 = arith.constant 0 : index
    %211 = vector.load %arg1[%c0_75, %210, %c0_76, %c0_77] : memref<1x6x2x144xf32, #tpu.memory_space<vmem>>, vector<1x1x2x144xf32>
    %212 = vector.shape_cast %211 : vector<1x1x2x144xf32> to vector<2x144xf32>
    %213 = arith.truncf %205 : vector<2x48xf32> to vector<2x48xbf16>
    %cst_78 = arith.constant dense<0.000000e+00> : vector<2x144xf32>
    %214 = tpu.matmul %213, %1, %cst_78 {dimension_numbers = #tpu.dot_dimension_numbers<[1], [0], [0], [1], [0, 0, 1, 1], [], []>} : vector<2x48xbf16>, vector<48x144xbf16>, vector<2x144xf32> -> vector<2x144xf32>
    %215 = vector.broadcast %3 : vector<1x144xf32> to vector<2x144xf32>
    %216 = arith.addf %214, %215 : vector<2x144xf32>
    %217 = vector.extract_strided_slice %212 {offsets = [0, 0], sizes = [2, 48], strides = [1, 1]} : vector<2x144xf32> to vector<2x48xf32>
    %218 = vector.extract_strided_slice %216 {offsets = [0, 0], sizes = [2, 48], strides = [1, 1]} : vector<2x144xf32> to vector<2x48xf32>
    %219 = arith.addf %217, %218 : vector<2x48xf32>
    %cst_79 = arith.constant 0.000000e+00 : f32
    %220 = vector.broadcast %cst_79 : f32 to vector<2x48xf32>
    %221 = arith.subf %220, %219 : vector<2x48xf32>
    %222 = math.exp %221 : vector<2x48xf32>
    %cst_80 = arith.constant 1.000000e+00 : f32
    %223 = vector.broadcast %cst_80 : f32 to vector<2x48xf32>
    %224 = arith.addf %223, %222 : vector<2x48xf32>
    %cst_81 = arith.constant 1.000000e+00 : f32
    %225 = vector.broadcast %cst_81 : f32 to vector<2x48xf32>
    %226 = arith.divf %225, %224 : vector<2x48xf32>
    %227 = vector.extract_strided_slice %212 {offsets = [0, 48], sizes = [2, 48], strides = [1, 1]} : vector<2x144xf32> to vector<2x48xf32>
    %228 = vector.extract_strided_slice %216 {offsets = [0, 48], sizes = [2, 48], strides = [1, 1]} : vector<2x144xf32> to vector<2x48xf32>
    %229 = arith.addf %227, %228 : vector<2x48xf32>
    %cst_82 = arith.constant 0.000000e+00 : f32
    %230 = vector.broadcast %cst_82 : f32 to vector<2x48xf32>
    %231 = arith.subf %230, %229 : vector<2x48xf32>
    %232 = math.exp %231 : vector<2x48xf32>
    %cst_83 = arith.constant 1.000000e+00 : f32
    %233 = vector.broadcast %cst_83 : f32 to vector<2x48xf32>
    %234 = arith.addf %233, %232 : vector<2x48xf32>
    %cst_84 = arith.constant 1.000000e+00 : f32
    %235 = vector.broadcast %cst_84 : f32 to vector<2x48xf32>
    %236 = arith.divf %235, %234 : vector<2x48xf32>
    %237 = vector.extract_strided_slice %212 {offsets = [0, 96], sizes = [2, 48], strides = [1, 1]} : vector<2x144xf32> to vector<2x48xf32>
    %238 = vector.extract_strided_slice %216 {offsets = [0, 96], sizes = [2, 48], strides = [1, 1]} : vector<2x144xf32> to vector<2x48xf32>
    %239 = arith.mulf %226, %238 : vector<2x48xf32>
    %240 = arith.addf %237, %239 : vector<2x48xf32>
    %241 = math.tanh %240 : vector<2x48xf32>
    %cst_85 = arith.constant 1.000000e+00 : f32
    %242 = vector.broadcast %cst_85 : f32 to vector<2x48xf32>
    %243 = arith.subf %242, %236 : vector<2x48xf32>
    %244 = arith.mulf %243, %241 : vector<2x48xf32>
    %245 = arith.mulf %236, %205 : vector<2x48xf32>
    %246 = arith.addf %244, %245 : vector<2x48xf32>
    %c0_86 = arith.constant 0 : index
    %247 = arith.index_cast %c5_i32 : i32 to index
    %c0_87 = arith.constant 0 : index
    %c0_88 = arith.constant 0 : index
    %248 = vector.load %arg4[%c0_86, %247, %c0_87, %c0_88] : memref<1x6x2x48xf32, #tpu.memory_space<vmem>>, vector<1x1x2x48xf32>
    %249 = vector.shape_cast %248 : vector<1x1x2x48xf32> to vector<2x48xf32>
    %250 = vector.shape_cast %246 : vector<2x48xf32> to vector<1x1x2x48xf32>
    tpu.vector_store %arg4[%c0_86, %247, %c0_87, %c0_88], %250 {strides = array<i32>} : memref<1x6x2x48xf32, #tpu.memory_space<vmem>>, vector<1x1x2x48xf32>,
    %c6_i32 = arith.constant 6 : i32
    return
  }
  func.func @transform_0(%arg0: i32) -> (i32, i32, i32, i32) {
    %c0_i32 = arith.constant 0 : i32
    %c0_i32_0 = arith.constant 0 : i32
    %c0_i32_1 = arith.constant 0 : i32
    %c0_i32_2 = arith.constant 0 : i32
    return %arg0, %c0_i32, %c0_i32_0, %c0_i32_1 : i32, i32, i32, i32
  }
  func.func @transform_1(%arg0: i32) -> (i32, i32, i32) {
    %c0_i32 = arith.constant 0 : i32
    %c0_i32_0 = arith.constant 0 : i32
    %c0_i32_1 = arith.constant 0 : i32
    return %arg0, %c0_i32, %c0_i32_0 : i32, i32, i32
  }
  func.func @transform_2(%arg0: i32) -> (i32, i32, i32) {
    %c0_i32 = arith.constant 0 : i32
    %c0_i32_0 = arith.constant 0 : i32
    %c0_i32_1 = arith.constant 0 : i32
    return %arg0, %c0_i32, %c0_i32_0 : i32, i32, i32
  }
  func.func @transform_3(%arg0: i32) -> (i32, i32, i32, i32) {
    %c0_i32 = arith.constant 0 : i32
    %c0_i32_0 = arith.constant 0 : i32
    %c0_i32_1 = arith.constant 0 : i32
    %c0_i32_2 = arith.constant 0 : i32
    return %arg0, %c0_i32, %c0_i32_0, %c0_i32_1 : i32, i32, i32, i32
  }
}

module attributes {stable_mosaic.version = 11 : i64} {
  func.func @_head_proj_kernel(%arg0: memref<12x96xf32, #tpu.memory_space<vmem>>, %arg1: memref<96x48xbf16, #tpu.memory_space<vmem>>, %arg2: memref<1x48xf32, #tpu.memory_space<vmem>>, %arg3: memref<48x84xbf16, #tpu.memory_space<vmem>>, %arg4: memref<1x84xf32, #tpu.memory_space<vmem>>, %arg5: memref<80x240xbf16, #tpu.memory_space<vmem>>, %arg6: memref<1x240xf32, #tpu.memory_space<vmem>>, %arg7: memref<12x244xf32, #tpu.memory_space<vmem>>) attributes {dimension_semantics = [], scalar_prefetch = 0 : i64, scratch_operands = 0 : i64, tpu.core_type = #tpu.core_type<tc>} {
    %c0 = arith.constant 0 : index
    %c0_0 = arith.constant 0 : index
    %0 = vector.load %arg0[%c0, %c0_0] : memref<12x96xf32, #tpu.memory_space<vmem>>, vector<12x96xf32>
    %1 = arith.truncf %0 : vector<12x96xf32> to vector<12x96xbf16>
    %c0_1 = arith.constant 0 : index
    %c0_2 = arith.constant 0 : index
    %2 = vector.load %arg1[%c0_1, %c0_2] : memref<96x48xbf16, #tpu.memory_space<vmem>>, vector<96x48xbf16>
    %cst = arith.constant dense<0.000000e+00> : vector<12x48xf32>
    %3 = tpu.matmul %1, %2, %cst {dimension_numbers = #tpu.dot_dimension_numbers<[1], [0], [0], [1], [0, 0, 1, 1], [], []>} : vector<12x96xbf16>, vector<96x48xbf16>, vector<12x48xf32> -> vector<12x48xf32>
    %c0_3 = arith.constant 0 : index
    %c0_4 = arith.constant 0 : index
    %4 = vector.load %arg2[%c0_3, %c0_4] : memref<1x48xf32, #tpu.memory_space<vmem>>, vector<1x48xf32>
    %5 = vector.broadcast %4 : vector<1x48xf32> to vector<12x48xf32>
    %6 = arith.addf %3, %5 : vector<12x48xf32>
    %cst_5 = arith.constant 0.000000e+00 : f32
    %7 = vector.broadcast %cst_5 : f32 to vector<12x48xf32>
    %8 = arith.maximumf %6, %7 : vector<12x48xf32>
    %9 = arith.truncf %8 : vector<12x48xf32> to vector<12x48xbf16>
    %c0_6 = arith.constant 0 : index
    %c0_7 = arith.constant 0 : index
    %10 = vector.load %arg3[%c0_6, %c0_7] : memref<48x84xbf16, #tpu.memory_space<vmem>>, vector<48x84xbf16>
    %cst_8 = arith.constant dense<0.000000e+00> : vector<12x84xf32>
    %11 = tpu.matmul %9, %10, %cst_8 {dimension_numbers = #tpu.dot_dimension_numbers<[1], [0], [0], [1], [0, 0, 1, 1], [], []>} : vector<12x48xbf16>, vector<48x84xbf16>, vector<12x84xf32> -> vector<12x84xf32>
    %c0_9 = arith.constant 0 : index
    %c0_10 = arith.constant 0 : index
    %12 = vector.load %arg4[%c0_9, %c0_10] : memref<1x84xf32, #tpu.memory_space<vmem>>, vector<1x84xf32>
    %13 = vector.broadcast %12 : vector<1x84xf32> to vector<12x84xf32>
    %14 = arith.addf %11, %13 : vector<12x84xf32>
    %15 = vector.extract_strided_slice %14 {offsets = [0, 0], sizes = [12, 4], strides = [1, 1]} : vector<12x84xf32> to vector<12x4xf32>
    %16 = vector.extract_strided_slice %14 {offsets = [0, 4], sizes = [12, 80], strides = [1, 1]} : vector<12x84xf32> to vector<12x80xf32>
    %17 = arith.truncf %16 : vector<12x80xf32> to vector<12x80xbf16>
    %c0_11 = arith.constant 0 : index
    %c0_12 = arith.constant 0 : index
    %18 = vector.load %arg5[%c0_11, %c0_12] : memref<80x240xbf16, #tpu.memory_space<vmem>>, vector<80x240xbf16>
    %cst_13 = arith.constant dense<0.000000e+00> : vector<12x240xf32>
    %19 = tpu.matmul %17, %18, %cst_13 {dimension_numbers = #tpu.dot_dimension_numbers<[1], [0], [0], [1], [0, 0, 1, 1], [], []>} : vector<12x80xbf16>, vector<80x240xbf16>, vector<12x240xf32> -> vector<12x240xf32>
    %c0_14 = arith.constant 0 : index
    %c0_15 = arith.constant 0 : index
    %20 = vector.load %arg6[%c0_14, %c0_15] : memref<1x240xf32, #tpu.memory_space<vmem>>, vector<1x240xf32>
    %21 = vector.broadcast %20 : vector<1x240xf32> to vector<12x240xf32>
    %22 = arith.addf %19, %21 : vector<12x240xf32>
    %23 = tpu.concatenate %15, %22 in 1 : vector<12x4xf32>, vector<12x240xf32> -> vector<12x244xf32>
    %c0_16 = arith.constant 0 : index
    %c0_17 = arith.constant 0 : index
    %24 = vector.load %arg7[%c0_16, %c0_17] : memref<12x244xf32, #tpu.memory_space<vmem>>, vector<12x244xf32>
    tpu.vector_store %arg7[%c0_16, %c0_17], %23 {strides = array<i32>} : memref<12x244xf32, #tpu.memory_space<vmem>>, vector<12x244xf32>,
    return
  }
}

module attributes {stable_mosaic.version = 11 : i64} {
  func.func @_matchatt_kernel(%arg0: i32, %arg1: memref<1x6x96xf32, #tpu.memory_space<vmem>>, %arg2: memref<1x6x1xf32, #tpu.memory_space<vmem>>, %arg3: memref<1x1x6xf32, #tpu.memory_space<vmem>>, %arg4: memref<96x96xbf16, #tpu.memory_space<vmem>>, %arg5: memref<1x96xf32, #tpu.memory_space<vmem>>, %arg6: memref<1x6x96xf32, #tpu.memory_space<vmem>>) attributes {dimension_semantics = [#tpu.dimension_semantics<parallel>], iteration_bounds = array<i64: 2>, scalar_prefetch = 0 : i64, scratch_operands = 0 : i64, tpu.core_type = #tpu.core_type<tc>, window_params = [{transform_indices = @transform_0, window_bounds = array<i64: 1, 6, 96>}, {transform_indices = @transform_1, window_bounds = array<i64: 1, 6, 1>}, {transform_indices = @transform_2, window_bounds = array<i64: 1, 1, 6>}, {pipeline_mode = #tpu.pipeline_mode<synchronous>, transform_indices = @transform_3, window_bounds = array<i64: 96, 96>}, {pipeline_mode = #tpu.pipeline_mode<synchronous>, transform_indices = @transform_4, window_bounds = array<i64: 1, 96>}, {transform_indices = @transform_5, window_bounds = array<i64: 1, 6, 96>}]} {
    %c0 = arith.constant 0 : index
    %c0_0 = arith.constant 0 : index
    %c0_1 = arith.constant 0 : index
    %0 = vector.load %arg1[%c0, %c0_0, %c0_1] : memref<1x6x96xf32, #tpu.memory_space<vmem>>, vector<1x6x96xf32>
    %1 = vector.shape_cast %0 : vector<1x6x96xf32> to vector<6x96xf32>
    %c0_2 = arith.constant 0 : index
    %c0_3 = arith.constant 0 : index
    %c0_4 = arith.constant 0 : index
    %2 = vector.load %arg2[%c0_2, %c0_3, %c0_4] : memref<1x6x1xf32, #tpu.memory_space<vmem>>, vector<1x6x1xf32>
    %3 = vector.shape_cast %2 : vector<1x6x1xf32> to vector<6x1xf32>
    %c0_5 = arith.constant 0 : index
    %c0_6 = arith.constant 0 : index
    %c0_7 = arith.constant 0 : index
    %4 = vector.load %arg3[%c0_5, %c0_6, %c0_7] : memref<1x1x6xf32, #tpu.memory_space<vmem>>, vector<1x1x6xf32>
    %5 = vector.shape_cast %4 : vector<1x1x6xf32> to vector<1x6xf32>
    %6 = arith.truncf %1 : vector<6x96xf32> to vector<6x96xbf16>
    %c0_8 = arith.constant 0 : index
    %c0_9 = arith.constant 0 : index
    %7 = vector.load %arg4[%c0_8, %c0_9] : memref<96x96xbf16, #tpu.memory_space<vmem>>, vector<96x96xbf16>
    %cst = arith.constant dense<0.000000e+00> : vector<6x96xf32>
    %8 = tpu.matmul %6, %7, %cst {dimension_numbers = #tpu.dot_dimension_numbers<[1], [0], [0], [1], [0, 0, 1, 1], [], []>} : vector<6x96xbf16>, vector<96x96xbf16>, vector<6x96xf32> -> vector<6x96xf32>
    %c0_10 = arith.constant 0 : index
    %c0_11 = arith.constant 0 : index
    %9 = vector.load %arg5[%c0_10, %c0_11] : memref<1x96xf32, #tpu.memory_space<vmem>>, vector<1x96xf32>
    %10 = vector.broadcast %9 : vector<1x96xf32> to vector<6x96xf32>
    %11 = arith.addf %8, %10 : vector<6x96xf32>
    %12 = vector.broadcast %3 : vector<6x1xf32> to vector<6x96xf32>
    %13 = arith.mulf %1, %12 : vector<6x96xf32>
    %14 = arith.truncf %11 : vector<6x96xf32> to vector<6x96xbf16>
    %15 = arith.truncf %13 : vector<6x96xf32> to vector<6x96xbf16>
    "tpu.trace_start"() <{level = 10 : i32, message = "td,sd->ts"}> : () -> ()
    %cst_12 = arith.constant dense<0.000000e+00> : vector<6x6xf32>
    %16 = tpu.matmul %14, %15, %cst_12 {dimension_numbers = #tpu.dot_dimension_numbers<[1], [1], [0], [0], [0, 0, 1, 0], [], []>} : vector<6x96xbf16>, vector<6x96xbf16>, vector<6x6xf32> -> vector<6x6xf32>
    "tpu.trace_stop"() : () -> ()
    %17 = vector.broadcast %5 : vector<1x6xf32> to vector<6x6xf32>
    %18 = arith.mulf %16, %17 : vector<6x6xf32>
    %19 = math.tanh %18 : vector<6x6xf32>
    %cst_13 = arith.constant dense<0xFF800000> : vector<6xf32>
    %20 = vector.multi_reduction <maximumf>, %19, %cst_13 [1] : vector<6x6xf32> to vector<6xf32>
    %21 = vector.shape_cast %20 : vector<6xf32> to vector<6x1xf32>
    %22 = vector.broadcast %21 : vector<6x1xf32> to vector<6x6xf32>
    %23 = arith.subf %19, %22 : vector<6x6xf32>
    %24 = math.exp %23 : vector<6x6xf32>
    %25 = vector.broadcast %5 : vector<1x6xf32> to vector<6x6xf32>
    %26 = arith.mulf %24, %25 : vector<6x6xf32>
    %cst_14 = arith.constant dense<0.000000e+00> : vector<6xf32>
    %27 = vector.multi_reduction <add>, %26, %cst_14 [1] : vector<6x6xf32> to vector<6xf32>
    %28 = vector.shape_cast %27 : vector<6xf32> to vector<6x1xf32>
    %29 = vector.broadcast %28 : vector<6x1xf32> to vector<6x6xf32>
    %30 = arith.divf %26, %29 : vector<6x6xf32>
    %31 = arith.truncf %30 : vector<6x6xf32> to vector<6x6xbf16>
    %32 = arith.truncf %1 : vector<6x96xf32> to vector<6x96xbf16>
    %cst_15 = arith.constant dense<0.000000e+00> : vector<6x96xf32>
    %33 = tpu.matmul %31, %32, %cst_15 {dimension_numbers = #tpu.dot_dimension_numbers<[1], [0], [0], [1], [0, 0, 1, 1], [], []>} : vector<6x6xbf16>, vector<6x96xbf16>, vector<6x96xf32> -> vector<6x96xf32>
    %c0_16 = arith.constant 0 : index
    %c0_17 = arith.constant 0 : index
    %c0_18 = arith.constant 0 : index
    %34 = vector.load %arg6[%c0_16, %c0_17, %c0_18] : memref<1x6x96xf32, #tpu.memory_space<vmem>>, vector<1x6x96xf32>
    %35 = vector.shape_cast %34 : vector<1x6x96xf32> to vector<6x96xf32>
    %36 = vector.shape_cast %33 : vector<6x96xf32> to vector<1x6x96xf32>
    tpu.vector_store %arg6[%c0_16, %c0_17, %c0_18], %36 {strides = array<i32>} : memref<1x6x96xf32, #tpu.memory_space<vmem>>, vector<1x6x96xf32>,
    return
  }
  func.func @transform_0(%arg0: i32) -> (i32, i32, i32) {
    %c0_i32 = arith.constant 0 : i32
    %c0_i32_0 = arith.constant 0 : i32
    %c0_i32_1 = arith.constant 0 : i32
    return %arg0, %c0_i32, %c0_i32_0 : i32, i32, i32
  }
  func.func @transform_1(%arg0: i32) -> (i32, i32, i32) {
    %c0_i32 = arith.constant 0 : i32
    %c0_i32_0 = arith.constant 0 : i32
    %c0_i32_1 = arith.constant 0 : i32
    return %arg0, %c0_i32, %c0_i32_0 : i32, i32, i32
  }
  func.func @transform_2(%arg0: i32) -> (i32, i32, i32) {
    %c0_i32 = arith.constant 0 : i32
    %c0_i32_0 = arith.constant 0 : i32
    %c0_i32_1 = arith.constant 0 : i32
    return %arg0, %c0_i32, %c0_i32_0 : i32, i32, i32
  }
  func.func @transform_3(%arg0: i32) -> (i32, i32) {
    %c0_i32 = arith.constant 0 : i32
    %c0_i32_0 = arith.constant 0 : i32
    %c0_i32_1 = arith.constant 0 : i32
    return %c0_i32, %c0_i32_0 : i32, i32
  }
  func.func @transform_4(%arg0: i32) -> (i32, i32) {
    %c0_i32 = arith.constant 0 : i32
    %c0_i32_0 = arith.constant 0 : i32
    %c0_i32_1 = arith.constant 0 : i32
    return %c0_i32, %c0_i32_0 : i32, i32
  }
  func.func @transform_5(%arg0: i32) -> (i32, i32, i32) {
    %c0_i32 = arith.constant 0 : i32
    %c0_i32_0 = arith.constant 0 : i32
    %c0_i32_1 = arith.constant 0 : i32
    return %arg0, %c0_i32, %c0_i32_0 : i32, i32, i32
  }
}

module attributes {stable_mosaic.version = 11 : i64} {
  func.func @_mha_kernel(%arg0: memref<48x2x10xf32, #tpu.memory_space<vmem>>, %arg1: memref<48x2x10xf32, #tpu.memory_space<vmem>>, %arg2: memref<48x2x10xf32, #tpu.memory_space<vmem>>, %arg3: memref<48x2x10xf32, #tpu.memory_space<vmem>>) attributes {dimension_semantics = [], scalar_prefetch = 0 : i64, scratch_operands = 0 : i64, tpu.core_type = #tpu.core_type<tc>} {
    %c0 = arith.constant 0 : index
    %c0_0 = arith.constant 0 : index
    %c0_1 = arith.constant 0 : index
    %0 = vector.load %arg0[%c0, %c0_0, %c0_1] : memref<48x2x10xf32, #tpu.memory_space<vmem>>, vector<48x2x10xf32>
    %cst = arith.constant 0.316227764 : f32
    %1 = vector.broadcast %cst : f32 to vector<48x2x10xf32>
    %2 = arith.mulf %0, %1 : vector<48x2x10xf32>
    %3 = arith.truncf %2 : vector<48x2x10xf32> to vector<48x2x10xbf16>
    %c0_2 = arith.constant 0 : index
    %c0_3 = arith.constant 0 : index
    %c0_4 = arith.constant 0 : index
    %4 = vector.load %arg1[%c0_2, %c0_3, %c0_4] : memref<48x2x10xf32, #tpu.memory_space<vmem>>, vector<48x2x10xf32>
    %5 = arith.truncf %4 : vector<48x2x10xf32> to vector<48x2x10xbf16>
    "tpu.trace_start"() <{level = 10 : i32, message = "gld,gmd->glm"}> : () -> ()
    %cst_5 = arith.constant dense<0.000000e+00> : vector<48x2x2xf32>
    %6 = tpu.matmul %3, %5, %cst_5 {dimension_numbers = #tpu.dot_dimension_numbers<[2], [2], [1], [1], [0, 0, 0, 1, 1, 1], [0], [0]>} : vector<48x2x10xbf16>, vector<48x2x10xbf16>, vector<48x2x2xf32> -> vector<48x2x2xf32>
    "tpu.trace_stop"() : () -> ()
    %cst_6 = arith.constant dense<0xFF800000> : vector<48x2xf32>
    %7 = vector.multi_reduction <maximumf>, %6, %cst_6 [2] : vector<48x2x2xf32> to vector<48x2xf32>
    %8 = vector.shape_cast %7 : vector<48x2xf32> to vector<48x2x1xf32>
    %9 = vector.broadcast %8 : vector<48x2x1xf32> to vector<48x2x2xf32>
    %10 = arith.subf %6, %9 : vector<48x2x2xf32>
    %11 = math.exp %10 : vector<48x2x2xf32>
    %cst_7 = arith.constant dense<0.000000e+00> : vector<48x2xf32>
    %12 = vector.multi_reduction <add>, %11, %cst_7 [2] : vector<48x2x2xf32> to vector<48x2xf32>
    %13 = vector.shape_cast %12 : vector<48x2xf32> to vector<48x2x1xf32>
    %14 = tpu.reciprocal %13 {approx = true} : vector<48x2x1xf32> -> vector<48x2x1xf32>
    %15 = vector.broadcast %14 : vector<48x2x1xf32> to vector<48x2x2xf32>
    %16 = arith.mulf %11, %15 : vector<48x2x2xf32>
    %17 = arith.truncf %16 : vector<48x2x2xf32> to vector<48x2x2xbf16>
    %c0_8 = arith.constant 0 : index
    %c0_9 = arith.constant 0 : index
    %c0_10 = arith.constant 0 : index
    %18 = vector.load %arg2[%c0_8, %c0_9, %c0_10] : memref<48x2x10xf32, #tpu.memory_space<vmem>>, vector<48x2x10xf32>
    %19 = arith.truncf %18 : vector<48x2x10xf32> to vector<48x2x10xbf16>
    "tpu.trace_start"() <{level = 10 : i32, message = "glm,gmd->gld"}> : () -> ()
    %cst_11 = arith.constant dense<0.000000e+00> : vector<48x2x10xf32>
    %20 = tpu.matmul %17, %19, %cst_11 {dimension_numbers = #tpu.dot_dimension_numbers<[2], [1], [1], [2], [0, 0, 0, 1, 1, 2], [0], [0]>} : vector<48x2x2xbf16>, vector<48x2x10xbf16>, vector<48x2x10xf32> -> vector<48x2x10xf32>
    "tpu.trace_stop"() : () -> ()
    %c0_12 = arith.constant 0 : index
    %c0_13 = arith.constant 0 : index
    %c0_14 = arith.constant 0 : index
    %21 = vector.load %arg3[%c0_12, %c0_13, %c0_14] : memref<48x2x10xf32, #tpu.memory_space<vmem>>, vector<48x2x10xf32>
    tpu.vector_store %arg3[%c0_12, %c0_13, %c0_14], %20 {strides = array<i32>} : memref<48x2x10xf32, #tpu.memory_space<vmem>>, vector<48x2x10xf32>,
    return
  }
}

module attributes {stable_mosaic.version = 11 : i64} {
  func.func @_mha_out_kernel(%arg0: memref<12x80xf32, #tpu.memory_space<vmem>>, %arg1: memref<80x80xbf16, #tpu.memory_space<vmem>>, %arg2: memref<1x80xf32, #tpu.memory_space<vmem>>, %arg3: memref<80x48xbf16, #tpu.memory_space<vmem>>, %arg4: memref<1x48xf32, #tpu.memory_space<vmem>>, %arg5: memref<12x128xf32, #tpu.memory_space<vmem>>) attributes {dimension_semantics = [], scalar_prefetch = 0 : i64, scratch_operands = 0 : i64, tpu.core_type = #tpu.core_type<tc>} {
    %c0 = arith.constant 0 : index
    %c0_0 = arith.constant 0 : index
    %0 = vector.load %arg0[%c0, %c0_0] : memref<12x80xf32, #tpu.memory_space<vmem>>, vector<12x80xf32>
    %1 = arith.truncf %0 : vector<12x80xf32> to vector<12x80xbf16>
    %c0_1 = arith.constant 0 : index
    %c0_2 = arith.constant 0 : index
    %2 = vector.load %arg1[%c0_1, %c0_2] : memref<80x80xbf16, #tpu.memory_space<vmem>>, vector<80x80xbf16>
    %cst = arith.constant dense<0.000000e+00> : vector<12x80xf32>
    %3 = tpu.matmul %1, %2, %cst {dimension_numbers = #tpu.dot_dimension_numbers<[1], [0], [0], [1], [0, 0, 1, 1], [], []>} : vector<12x80xbf16>, vector<80x80xbf16>, vector<12x80xf32> -> vector<12x80xf32>
    %c0_3 = arith.constant 0 : index
    %c0_4 = arith.constant 0 : index
    %4 = vector.load %arg2[%c0_3, %c0_4] : memref<1x80xf32, #tpu.memory_space<vmem>>, vector<1x80xf32>
    %5 = vector.broadcast %4 : vector<1x80xf32> to vector<12x80xf32>
    %6 = arith.addf %3, %5 : vector<12x80xf32>
    %7 = arith.truncf %6 : vector<12x80xf32> to vector<12x80xbf16>
    %c0_5 = arith.constant 0 : index
    %c0_6 = arith.constant 0 : index
    %8 = vector.load %arg3[%c0_5, %c0_6] : memref<80x48xbf16, #tpu.memory_space<vmem>>, vector<80x48xbf16>
    %cst_7 = arith.constant dense<0.000000e+00> : vector<12x48xf32>
    %9 = tpu.matmul %7, %8, %cst_7 {dimension_numbers = #tpu.dot_dimension_numbers<[1], [0], [0], [1], [0, 0, 1, 1], [], []>} : vector<12x80xbf16>, vector<80x48xbf16>, vector<12x48xf32> -> vector<12x48xf32>
    %c0_8 = arith.constant 0 : index
    %c0_9 = arith.constant 0 : index
    %10 = vector.load %arg4[%c0_8, %c0_9] : memref<1x48xf32, #tpu.memory_space<vmem>>, vector<1x48xf32>
    %11 = vector.broadcast %10 : vector<1x48xf32> to vector<12x48xf32>
    %12 = arith.addf %9, %11 : vector<12x48xf32>
    %cst_10 = arith.constant 0.000000e+00 : f32
    %13 = vector.broadcast %cst_10 : f32 to vector<12x48xf32>
    %14 = arith.maximumf %12, %13 : vector<12x48xf32>
    %15 = tpu.concatenate %6, %14 in 1 : vector<12x80xf32>, vector<12x48xf32> -> vector<12x128xf32>
    %c0_11 = arith.constant 0 : index
    %c0_12 = arith.constant 0 : index
    %16 = vector.load %arg5[%c0_11, %c0_12] : memref<12x128xf32, #tpu.memory_space<vmem>>, vector<12x128xf32>
    tpu.vector_store %arg5[%c0_11, %c0_12], %15 {strides = array<i32>} : memref<12x128xf32, #tpu.memory_space<vmem>>, vector<12x128xf32>,
    return
  }
}

</mosaic_0001>

<bundles_post_ra>
// kernel: graph_model_forward.9
= control target key start
LH: loop header
LB: loop body
LE: loop exit
PB: predicated region body
PF: predicated region fallthrough
CT: control target
= control target key end

     0   :  { %s887_s9 = smov 0   ;;  %s1009_s0 = inlined_call_operand.vmem [shape: f32[2,6,2,64], index: 0, kind: input, shape index: {}]   ;;  %s1010_s1 = inlined_call_operand.vmem [shape: bf16[2,16,64], index: 1, kind: input, shape index: {}]   ;;  %s1011_s2 = inlined_call_operand.vmem [shape: f32[2,6,2,16], index: 2, kind: output, shape index: {}]  }
   0x1 LB: > { %s716_s10 = sadd.s32 4294967295, %s863_s9   ;;  %p720_p0 = scmp.ge.s32.totalorder %s863_s9, 1  ;;  %s863_s9 = sphi %s887_s9, %s12_s9  }
   0x2   : > { %p122_p1 = scmp.lt.s32.totalorder %s863_s9, 3 }
   0x4   : > { %p123_p2 = pnand %p720_p0, %p122_p1 }
   0x5   : > { %p149_p3 = scmp.lt.s32.totalorder (!%p123_p2), %s716_s10, 1  ;;  %v865_v0 = vmov (!%p123_p2), 0.0   ;;  %vm866_vm0 = vmmov (!%p123_p2), 0   ;;  %v867_v2 = vmov (!%p123_p2), 0   ;;  %s868_s19 = smov (!%p123_p2), 96   ;;  %vm174_vm1 = vcmask (!%p123_p2), 130048  }
   0x6   : > { %126 = sbr.rel (%p123_p2) target bundleno = 4243 (0x1093), region = 28  ;;  %756 = vmatprep.subr.bf16.mxu0 (!%p123_p2), %v865_v0  ;;  %758 = vmatprep.mubr.msk.bf16.mxu0 (!%p123_p2), %vm866_vm0, %v865_v0  ;;  %s869_s20 = smov (!%p123_p2), 16   ;;  %vm247_vm2 = vcmask (!%p123_p2), 123904  }
   0x7   : > { %762 = vmatprep.subr.bf16.mxu1 (!%p123_p2), %v865_v0  ;;  %764 = vmatprep.mubr.msk.bf16.mxu1 (!%p123_p2), %vm866_vm0, %v865_v0  ;;  %s870_s21 = smov (!%p123_p2), 32   ;;  %s871_s22 = smov (!%p123_p2), 80  }
   0xd   : > { %s1013_s10 = smov (!%p149_p3, %s716_s10), 1 }
   0xe   : > { %s743_s11 = sshll.u32 %s1013_s10, 3  ;;  %s792_s15 = smul.u32 12, %s1013_s10 }
   0xf   : > { %s158_s14 = scalar_lea.vmem %s1010_s1, %s743_s11 }
  0x10   : > { %v907_v1 = vld [vmem:[%s158_s14] sm:$0xff]   ;;  %s923_s18 = scalar_lea.vmem %s1009_s0, %s792_s15  ;;  %s163_s25 = scalar_lea.vmem %s1011_s2, %s792_s15 }
  0x11   : > { %757 = vmatpush3.bf16.msra.mxu0 %v907_v1  ;;  %763 = vmatpush3.bf16.msra.mxu1 %v907_v1  ;;  %v167_v3 = vld [vmem:[%s923_s18] sm:$0x3]  ;;  %v726_v25 = vld [vmem:[%s923_s18 + $0x2] sm:$0x3]  ;;  %v729_v47 = vld [vmem:[%s923_s18 + $0x4] sm:$0x3] }
  0x12   : > { %768 = vmatprep.subr.bf16.mxu0 %v865_v0  ;;  %774 = vmatprep.subr.bf16.mxu1 %v865_v0 }
  0x14   : > { %759 = vmatmul.mubr.bf16.vlgmr.msra.gmra.mrb[0].mxu0 %v867_v2 }
  0x15   : > { %769 = vmatpush3.bf16.msra.mxu0 %v907_v1  ;;  %770 = vmatprep.mubr.msk.bf16.mxu0 %vm866_vm0, %v865_v0 }
  0x16   : > { %780 = vmatprep.subr.bf16.mxu0 %v865_v0 }
  0xe7   : > { %v212_v4 = vpop.f32.mrb[0].mxu0 }
  0xe8   : > { %v218_v5 = vadd.f32 %v212_v4, %v167_v3  ;;  %v760_v6 = vpop.f32.mrb[1].mxu0 }
  0xe9   : > { %v215_v7 = vpop.f32.mrb[2].mxu0 }
  0xea   : > { %809 = vtanh.f32 %v218_v5  ;;  %v761_v8 = vpop.f32.mrb[3].mxu0  ;;  %v219_v10 = vsub.f32 0.0, %v218_v5  ;;  %v732_v7 = vld [vmem:[%s923_s18 + $0x6] sm:$0x3] }
  0xec   : > { %v220_v11 = vmul.f32 1.442695, %v219_v10 }
  0xee   : > { %811 = vpow2.f32 %v220_v11 }
  0xf4   : > { %v810_v9 = vpop.eup %809 }
  0xf5   : > { %228 = vrot.lane.b32.xlu0 %v810_v9, %s868_s19 }
  0xf8   : > { %v812_v12 = vpop.eup %811 }
  0xf9   : > { %v222_v13 = vadd.f32 1.0, %v812_v12 }
  0xfb   : > { %813 = vrcp.f32 %v222_v13 }
 0x105   : > { %v814_v14 = vpop.eup %813 }
 0x106   : > { %v226_v17 = vmul.f32 0.0, %v814_v14 }
 0x167   : > { %v229_v15 = vpop.permute.xlu0 %228 }
 0x168   : > { %v231_v16 = vmul.f32 %v814_v14, %v229_v15 }
 0x16a   : > { %233 = vrot.lane.b32.xlu0 %v231_v16, %s869_s20 }
 0x1dc   : > { %v234_v18 = vpop.permute.xlu0 %233 }
 0x1dd   : > { %v236_v19 = vadd.f32 %v234_v18, %v226_v17 }
 0x1df   : > { %815 = vtanh.f32 %v236_v19 }
 0x1e9   : > { %v816_v20 = vpop.eup %815 }
 0x1ea   : > { %239 = vrot.lane.b32.xlu1 %v816_v20, %s870_s21 }
 0x25c   : > { %v240_v21 = vpop.permute.xlu1 %239 }
 0x25d   : > { %v929_v22 = vmul.f32 %v814_v14, %v240_v21 }
 0x25f   : > { %v251_v23 = vpack.c.bf16 %v929_v22, %v929_v22 }
 0x261   : > { %253 = vrot.lane.b32.xlu1 %v251_v23, %s871_s22 }
 0x2d3   : > { %v254_v24 = vpop.permute.xlu1 %253 }
 0x2d4   : > { %765 = vmatmul.mubr.msk.bf16.vlgmr.msra.gmra.mrb[0].mxu1 %vm174_vm1, %v254_v24 }
 0x2d5   : > { %775 = vmatpush3.bf16.msra.mxu1 %v907_v1  ;;  %776 = vmatprep.mubr.msk.bf16.mxu1 %vm866_vm0, %v865_v0 }
 0x2d6   : > { %786 = vmatprep.subr.bf16.mxu1 %v865_v0 }
 0x3a7   : > { %v292_v26 = vpop.f32.mrb[0].mxu1 }
 0x3a8   : > { %v298_v27 = vadd.f32 %v726_v25, %v292_v26  ;;  %v766_v28 = vpop.f32.mrb[1].mxu1 }
 0x3a9   : > { %v295_v29 = vpop.f32.mrb[2].mxu1  ;;  %v735_v28 = vld [vmem:[%s923_s18 + $0x8] sm:$0x3] }
 0x3aa   : > { %817 = vtanh.f32 %v298_v27  ;;  %v767_v30 = vpop.f32.mrb[3].mxu1  ;;  %v299_v32 = vsub.f32 0.0, %v298_v27 }
 0x3ac   : > { %v300_v33 = vmul.f32 1.442695, %v299_v32 }
 0x3ae   : > { %819 = vpow2.f32 %v300_v33 }
 0x3b4   : > { %v818_v31 = vpop.eup %817 }
 0x3b5   : > { %308 = vrot.lane.b32.xlu0 %v818_v31, %s868_s19 }
 0x3b8   : > { %v820_v34 = vpop.eup %819 }
 0x3b9   : > { %v302_v35 = vadd.f32 1.0, %v820_v34 }
 0x3bb   : > { %821 = vrcp.f32 %v302_v35 }
 0x3c5   : > { %v822_v36 = vpop.eup %821 }
 0x3c6   : > { %v306_v39 = vmul.f32 %v822_v36, %v236_v19 }
 0x427   : > { %v309_v37 = vpop.permute.xlu0 %308 }
 0x428   : > { %v311_v38 = vmul.f32 %v822_v36, %v309_v37 }
 0x42a   : > { %313 = vrot.lane.b32.xlu1 %v311_v38, %s869_s20 }
 0x49c   : > { %v314_v40 = vpop.permute.xlu1 %313 }
 0x49d   : > { %v316_v41 = vadd.f32 %v314_v40, %v306_v39 }
 0x49f   : > { %823 = vtanh.f32 %v316_v41 }
 0x4a9   : > { %v824_v42 = vpop.eup %823 }
 0x4aa   : > { %319 = vrot.lane.b32.xlu0 %v824_v42, %s870_s21 }
 0x51c   : > { %v320_v43 = vpop.permute.xlu0 %319 }
 0x51d   : > { %v943_v44 = vmul.f32 %v822_v36, %v320_v43 }
 0x51f   : > { %v331_v45 = vpack.c.bf16 %v943_v44, %v943_v44 }
 0x521   : > { %333 = vrot.lane.b32.xlu1 %v331_v45, %s871_s22 }
 0x593   : > { %v334_v46 = vpop.permute.xlu1 %333 }
 0x594   : > { %771 = vmatmul.mubr.msk.bf16.vlgmr.msra.gmra.mrb[4].mxu0 %vm174_vm1, %v334_v46 }
 0x595   : > { %781 = vmatpush3.bf16.msra.mxu0 %v907_v1  ;;  %782 = vmatprep.mubr.msk.bf16.mxu0 %vm866_vm0, %v865_v0 }
 0x667   : > { %v372_v48 = vpop.f32.mrb[4].mxu0 }
 0x668   : > { %v378_v49 = vadd.f32 %v729_v47, %v372_v48  ;;  %v772_v50 = vpop.f32.mrb[5].mxu0 }
 0x669   : > { %v375_v51 = vpop.f32.mrb[6].mxu0 }
 0x66a   : > { %825 = vtanh.f32 %v378_v49  ;;  %v773_v52 = vpop.f32.mrb[7].mxu0  ;;  %v379_v54 = vsub.f32 0.0, %v378_v49  ;;  %v738_v51 = vld [vmem:[%s923_s18 + $0xa] sm:$0x3] }
 0x66c   : > { %v380_v55 = vmul.f32 1.442695, %v379_v54 }
 0x66e   : > { %827 = vpow2.f32 %v380_v55 }
 0x674   : > { %v826_v53 = vpop.eup %825 }
 0x675   : > { %388 = vrot.lane.b32.xlu0 %v826_v53, %s868_s19 }
 0x678   : > { %v828_v56 = vpop.eup %827 }
 0x679   : > { %v382_v57 = vadd.f32 1.0, %v828_v56 }
 0x67b   : > { %829 = vrcp.f32 %v382_v57 }
 0x685   : > { %v830_v58 = vpop.eup %829 }
 0x686   : > { %v386_v61 = vmul.f32 %v830_v58, %v316_v41 }
 0x6e7   : > { %v389_v59 = vpop.permute.xlu0 %388 }
 0x6e8   : > { %v391_v60 = vmul.f32 %v830_v58, %v389_v59 }
 0x6ea   : > { %393 = vrot.lane.b32.xlu1 %v391_v60, %s869_s20 }
 0x75c   : > { %v394_v62 = vpop.permute.xlu1 %393 }
 0x75d   : > { %v396_v63 = vadd.f32 %v394_v62, %v386_v61 }
 0x75f   : > { %831 = vtanh.f32 %v396_v63 }
 0x769   : > { %v832_v2 = vpop.eup %831 }
 0x76a   : > { %399 = vrot.lane.b32.xlu0 %v832_v2, %s870_s21 }
 0x7dc   : > { %v400_v3 = vpop.permute.xlu0 %399 }
 0x7dd   : > { %v956_v4 = vmul.f32 %v830_v58, %v400_v3 }
 0x7df   : > { %v411_v5 = vpack.c.bf16 %v956_v4, %v956_v4 }
 0x7e1   : > { %413 = vrot.lane.b32.xlu1 %v411_v5, %s871_s22 }
 0x853   : > { %v414_v6 = vpop.permute.xlu1 %413 }
 0x854   : > { %777 = vmatmul.mubr.msk.bf16.vlgmr.msra.gmra.mrb[4].mxu1 %vm174_vm1, %v414_v6 }
 0x855   : > { %787 = vmatpush3.bf16.msra.mxu1 %v907_v1  ;;  %788 = vmatprep.mubr.msk.bf16.mxu1 %vm866_vm0, %v865_v0 }
 0x927   : > { %v452_v8 = vpop.f32.mrb[4].mxu1 }
 0x928   : > { %v458_v9 = vadd.f32 %v732_v7, %v452_v8  ;;  %v778_v10 = vpop.f32.mrb[5].mxu1 }
 0x929   : > { %v455_v11 = vpop.f32.mrb[6].mxu1 }
 0x92a   : > { %833 = vtanh.f32 %v458_v9  ;;  %v779_v12 = vpop.f32.mrb[7].mxu1  ;;  %v459_v14 = vsub.f32 0.0, %v458_v9 }
 0x92c   : > { %v460_v15 = vmul.f32 1.442695, %v459_v14 }
 0x92e   : > { %835 = vpow2.f32 %v460_v15 }
 0x934   : > { %v834_v13 = vpop.eup %833 }
 0x935   : > { %468 = vrot.lane.b32.xlu0 %v834_v13, %s868_s19 }
 0x938   : > { %v836_v16 = vpop.eup %835 }
 0x939   : > { %v462_v17 = vadd.f32 1.0, %v836_v16 }
 0x93b   : > { %837 = vrcp.f32 %v462_v17 }
 0x945   : > { %v838_v1 = vpop.eup %837 }
 0x946   : > { %v466_v19 = vmul.f32 %v838_v1, %v396_v63 }
 0x9a7   : > { %v469_v18 = vpop.permute.xlu0 %468 }
 0x9a8   : > { %v471_v0 = vmul.f32 %v838_v1, %v469_v18 }
 0x9aa   : > { %473 = vrot.lane.b32.xlu1 %v471_v0, %s869_s20 }
 0xa1c   : > { %v474_v20 = vpop.permute.xlu1 %473 }
 0xa1d   : > { %v476_v21 = vadd.f32 %v474_v20, %v466_v19 }
 0xa1f   : > { %839 = vtanh.f32 %v476_v21 }
 0xa29   : > { %v840_v23 = vpop.eup %839 }
 0xa2a   : > { %479 = vrot.lane.b32.xlu0 %v840_v23, %s870_s21 }
 0xa9c   : > { %v480_v24 = vpop.permute.xlu0 %479 }
 0xa9d   : > { %v969_v25 = vmul.f32 %v838_v1, %v480_v24 }
 0xa9f   : > { %v491_v26 = vpack.c.bf16 %v969_v25, %v969_v25 }
 0xaa1   : > { %493 = vrot.lane.b32.xlu1 %v491_v26, %s871_s22 }
 0xb13   : > { %v494_v27 = vpop.permute.xlu1 %493 }
 0xb14   : > { %783 = vmatmul.mubr.msk.bf16.vlgmr.msra.gmra.mrb[8].mxu0 %vm174_vm1, %v494_v27 }
 0xbe7   : > { %v532_v29 = vpop.f32.mrb[8].mxu0 }
 0xbe8   : > { %v538_v30 = vadd.f32 %v735_v28, %v532_v29  ;;  %v784_v31 = vpop.f32.mrb[9].mxu0 }
 0xbe9   : > { %v535_v32 = vpop.f32.mrb[10].mxu0 }
 0xbea   : > { %841 = vtanh.f32 %v538_v30  ;;  %v785_v33 = vpop.f32.mrb[11].mxu0  ;;  %v539_v35 = vsub.f32 0.0, %v538_v30 }
 0xbec   : > { %v540_v36 = vmul.f32 1.442695, %v539_v35 }
 0xbee   : > { %843 = vpow2.f32 %v540_v36 }
 0xbf4   : > { %v842_v34 = vpop.eup %841 }
 0xbf5   : > { %548 = vrot.lane.b32.xlu0 %v842_v34, %s868_s19 }
 0xbf8   : > { %v844_v37 = vpop.eup %843 }
 0xbf9   : > { %v542_v38 = vadd.f32 1.0, %v844_v37 }
 0xbfb   : > { %845 = vrcp.f32 %v542_v38 }
 0xc05   : > { %v846_v39 = vpop.eup %845 }
 0xc06   : > { %v546_v42 = vmul.f32 %v846_v39, %v476_v21 }
 0xc67   : > { %v549_v40 = vpop.permute.xlu0 %548 }
 0xc68   : > { %v551_v41 = vmul.f32 %v846_v39, %v549_v40 }
 0xc6a   : > { %553 = vrot.lane.b32.xlu1 %v551_v41, %s869_s20 }
 0xcdc   : > { %v554_v43 = vpop.permute.xlu1 %553 }
 0xcdd   : > { %v556_v45 = vadd.f32 %v554_v43, %v546_v42 }
 0xcdf   : > { %847 = vtanh.f32 %v556_v45 }
 0xce9   : > { %v848_v46 = vpop.eup %847 }
 0xcea   : > { %559 = vrot.lane.b32.xlu0 %v848_v46, %s870_s21 }
 0xd5c   : > { %v560_v47 = vpop.permute.xlu0 %559 }
 0xd5d   : > { %v562_v48 = vmul.f32 %v846_v39, %v560_v47 }
 0xd5f   : > { %v571_v49 = vpack.c.bf16 %v562_v48, %v562_v48 }
 0xd61   : > { %573 = vrot.lane.b32.xlu1 %v571_v49, %s871_s22 }
 0xdd3   : > { %v574_v50 = vpop.permute.xlu1 %573 }
 0xdd4   : > { %789 = vmatmul.mubr.msk.bf16.vlgmr.msra.gmra.mrb[8].mxu1 %vm174_vm1, %v574_v50 }
 0xea7   : > { %v612_v52 = vpop.f32.mrb[8].mxu1 }
 0xea8   : > { %v618_v53 = vadd.f32 %v738_v51, %v612_v52  ;;  %v790_v54 = vpop.f32.mrb[9].mxu1 }
 0xea9   : > { %v615_v55 = vpop.f32.mrb[10].mxu1 }
 0xeaa   : > { %849 = vtanh.f32 %v618_v53  ;;  %v791_v56 = vpop.f32.mrb[11].mxu1  ;;  %v619_v58 = vsub.f32 0.0, %v618_v53 }
 0xeac   : > { %v620_v59 = vmul.f32 1.442695, %v619_v58 }
 0xeae   : > { %851 = vpow2.f32 %v620_v59 }
 0xeb4   : > { %v850_v57 = vpop.eup %849 }
 0xeb5   : > { %628 = vrot.lane.b32.xlu0 %v850_v57, %s868_s19 }
 0xeb8   : > { %v852_v60 = vpop.eup %851 }
 0xeb9   : > { %v622_v61 = vadd.f32 1.0, %v852_v60 }
 0xebb   : > { %853 = vrcp.f32 %v622_v61 }
 0xec5   : > { %v854_v62 = vpop.eup %853 }
 0xec6   : > { %v626_v3 = vmul.f32 %v854_v62, %v556_v45 }
 0xf27   : > { %v629_v63 = vpop.permute.xlu0 %628 }
 0xf28   : > { %v631_v2 = vmul.f32 %v854_v62, %v629_v63 }
 0xf2a   : > { %633 = vrot.lane.b32.xlu1 %v631_v2, %s869_s20 }
 0xf2e   : > { %244 = vrot.lane.b32.xlu1 %v929_v22, %s871_s22 }
 0xf32   : > { %404 = vrot.lane.b32.xlu1 %v956_v4, %s871_s22 }
 0xf36   : > { %564 = vrot.lane.b32.xlu1 %v562_v48, %s871_s22 }
 0xf9c   : > { %v634_v5 = vpop.permute.xlu1 %633 }
 0xf9d   : > { %v636_v6 = vadd.f32 %v634_v5, %v626_v3 }
 0xf9f   : > { %855 = vtanh.f32 %v636_v6 }
 0xfa0   : > { %v245_v7 = vpop.permute.xlu1 %244 }
 0xfa1   : > { %248 = vst.msk [vmem:[%s163_s25] sm:$0x3] %vm247_vm2, %v245_v7 }
 0xfa4   : > { %v405_v8 = vpop.permute.xlu1 %404 }
 0xfa5   : > { %731 = vst.msk [vmem:[%s163_s25 + $0x4] sm:$0x3] %vm247_vm2, %v405_v8 }
 0xfa8   : > { %v565_v22 = vpop.permute.xlu1 %564 }
 0xfa9   : > { %v856_v4 = vpop.eup %855  ;;  %737 = vst.msk [vmem:[%s163_s25 + $0x8] sm:$0x3] %vm247_vm2, %v565_v22 }
 0xfaa   : > { %639 = vrot.lane.b32.xlu0 %v856_v4, %s870_s21 }
 0xfae   : > { %324 = vrot.lane.b32.xlu0 %v943_v44, %s871_s22 }
 0xfb2   : > { %484 = vrot.lane.b32.xlu0 %v969_v25, %s871_s22 }
0x101c   : > { %v640_v9 = vpop.permute.xlu0 %639 }
0x101d   : > { %v642_v10 = vmul.f32 %v854_v62, %v640_v9 }
0x101f   : > { %644 = vrot.lane.b32.xlu0 %v642_v10, %s871_s22 }
0x1020   : > { %v325_v11 = vpop.permute.xlu0 %324 }
0x1021   : > { %728 = vst.msk [vmem:[%s163_s25 + $0x2] sm:$0x3] %vm247_vm2, %v325_v11 }
0x1024   : > { %v485_v12 = vpop.permute.xlu0 %484 }
0x1025   : > { %734 = vst.msk [vmem:[%s163_s25 + $0x6] sm:$0x3] %vm247_vm2, %v485_v12 }
0x1091   : > { %v645_v13 = vpop.permute.xlu0 %644 }
0x1092   : > { %740 = vst.msk [vmem:[%s163_s25 + $0xa] sm:$0x3] %vm247_vm2, %v645_v13 }
0x1093 PF: > { %s12_s9 = sadd.s32 1, %s863_s9  }
0x1094   : > { %p9_p4 = scmp.ge.s32.totalorder %s12_s9, 4  }
0x1096   :  { %11 = sbr.rel (!%p9_p4) target bundleno = 1 (0x1), region = 71 }

// kernel: graph_model_forward.11
= control target key start
LH: loop header
LB: loop body
LE: loop exit
PB: predicated region body
PF: predicated region fallthrough
CT: control target
= control target key end

     0   :  { %v813_v0 = vmov 0.0   ;;  %vm814_vm0 = vmmov 0   ;;  %vm69_vm1 = vcmask 261120   ;;  %vm186_vm2 = vcmask 1044480   ;;  %s816_s27 = smov 96   ;;  %s1028_s2 = inlined_call_operand.vmem [shape: bf16[32,48], index: 2, kind: input, shape index: {}]   ;;  %s1029_s0 = inlined_call_operand.vmem [shape: f32[10,32], index: 0, kind: input, shape index: {}]   ;;  %s1030_s3 = inlined_call_operand.vmem [shape: bf16[32,16], index: 3, kind: input, shape index: {}]   ;;  %s1031_s1 = inlined_call_operand.vmem [shape: f32[3,10,10], index: 1, kind: input, shape index: {}]   ;;  %s1032_s8 = inlined_call_operand.vmem [shape: f32[10,1], index: 8, kind: input, shape index: {}]   ;;  %s1033_s7 = inlined_call_operand.vmem [shape: f32[10,1], index: 7, kind: input, shape index: {}]   ;;  %s1034_s4 = inlined_call_operand.vmem [shape: f32[1,16], index: 4, kind: input, shape index: {}]   ;;  %s1035_s6 = inlined_call_operand.vmem [shape: f32[10,10], index: 6, kind: input, shape index: {}]   ;;  %s1036_s5 = inlined_call_operand.vmem [shape: f32[10,10], index: 5, kind: input, shape index: {}]   ;;  %s1037_s11 = inlined_call_operand.vmem [shape: bf16[16,1], index: 11, kind: input, shape index: {}]   ;;  %s1038_s9 = inlined_call_operand.vmem [shape: f32[1,16], index: 9, kind: input, shape index: {}]   ;;  %s1039_s12 = inlined_call_operand.vmem [shape: bf16[1,16], index: 12, kind: input, shape index: {}]   ;;  %s1040_s13 = inlined_call_operand.<no memory space> [shape: f32[1,1], index: 13, kind: input, shape index: {}]   ;;  %s1041_s10 = inlined_call_operand.vmem [shape: f32[10,10], index: 10, kind: input, shape index: {}]   ;;  %s1042_s14 = inlined_call_operand.vmem [shape: f32[10,16], index: 14, kind: output, shape index: {}]  }
   0x1   :  { %719 = vmatprep.subr.bf16.mxu0 %v813_v0  ;;  %v804_v1 = vld [vmem:[%s1028_s2] sm:$0xff]   ;;  %723 = vmatprep.mubr.msk.bf16.mxu0 %vm814_vm0, %v813_v0  ;;  %v805_v2 = vld [vmem:[%s1028_s2 + $0x8] sm:$0xff]   ;;  %vm182_vm3 = vcmask 80896   ;;  %v683_v17 = vld [vmem:[%s1031_s1 + $0x10] sm:$0xff]  ;;  %v817_v27 = vmov 0   ;;  %vm498_vm6 = vcmask 130048  }
   0x2   :  { %727 = vmatprep.subr.bf16.mxu1 %v813_v0  ;;  %731 = vmatprep.mubr.msk.bf16.mxu1 %vm814_vm0, %v813_v0  ;;  %v50_v3 = vld [vmem:[%s1029_s0] sm:$0xff]  ;;  %v51_v4 = vld [vmem:[%s1029_s0 + $0x8] sm:$0x3]  ;;  %v684_v18 = vld [vmem:[%s1031_s1 + $0x18] sm:$0x3]  ;;  %vm669_vm7 = vcmask 123904  }
   0x3   :  { %720 = vmatpush3.bf16.msra.mxu0 %v804_v1  ;;  %v806_v5 = vld [vmem:[%s1030_s3] sm:$0xff]   ;;  %v52_v6 = vpack.c.bf16 %v51_v4, %v50_v3  ;;  %v807_v7 = vld [vmem:[%s1030_s3 + $0x8] sm:$0xff]   ;;  %s815_s3 = smov 112   ;;  %v236_v21 = vpack.c.bf16 %v684_v18, %v683_v17  ;;  %802 = vset.pattern.permute.xlu1 %v817_v27 }
   0x4   :  { %721 = vmatprep.subr.bf16.mxu0 %v813_v0  ;;  %728 = vmatpush3.bf16.msra.mxu1 %v806_v5  ;;  %v178_v11 = vld [vmem:[%s1031_s1] sm:$0xff]  ;;  %v179_v12 = vld [vmem:[%s1031_s1 + $0x8] sm:$0x3] }
   0x5   :  { %729 = vmatprep.subr.bf16.mxu1 %v813_v0  ;;  %v180_v16 = vpack.c.bf16 %v179_v12, %v178_v11  ;;  %v686_v24 = vld [vmem:[%s1031_s1 + $0x20] sm:$0xff]  ;;  %v687_v25 = vld [vmem:[%s1031_s1 + $0x28] sm:$0x3]  ;;  %803 = vset.pattern.permute.xlu0 %v817_v27 }
   0x6   :  { %v292_v26 = vpack.c.bf16 %v687_v25, %v686_v24  ;;  %v395_v28 = vld [vmem:[%s1032_s8] sm:$0xff]  ;;  %v396_v29 = vld [vmem:[%s1032_s8 + $0x8] sm:$0x3] }
   0x7   :  { %722 = vmatpush3.bf16.msra.mxu0 %v805_v2  ;;  %399 = vperm.xlu1 %802, %v395_v28   ;;  %v410_v30 = vld [vmem:[%s1033_s7 + $0x8] sm:$0x3]  ;;  %v678_v31 = vld [vmem:[%s1034_s4] ss:$0 sm:$0xff] }
   0x8   :  { %753 = vmatprep.subr.bf16.mxu0 %v813_v0  ;;  %730 = vmatpush3.bf16.msra.mxu1 %v807_v7  ;;  %v344_v38 = vld [vmem:[%s1035_s6] sm:$0xff]  ;;  %v345_v39 = vld [vmem:[%s1035_s6 + $0x8] sm:$0x3] }
   0x9   :  { %735 = vmatprep.subr.bf16.mxu1 %v813_v0  ;;  %v346_v42 = vpack.c.bf16 %v345_v39, %v344_v38  ;;  %v409_v43 = vld [vmem:[%s1033_s7] sm:$0xff]  ;;  %v412_v53 = vld [vmem:[%s1036_s5 + $0x8] sm:$0x3] }
   0xa   :  { %724 = vmatmul.mubr.msk.bf16.vlgmr.msra.gmra.mrb[0].mxu0 %vm69_vm1, %v52_v6  ;;  %v411_v52 = vld [vmem:[%s1036_s5] sm:$0xff] }
   0xb   :  { %755 = vmatprep.mubr.msk.bf16.mxu0 %vm814_vm0, %v813_v0  ;;  %732 = vmatmul.mubr.msk.bf16.vlgmr.msra.gmra.mrb[0].mxu1 %vm69_vm1, %v52_v6  ;;  %v413_v56 = vpack.c.bf16 %v412_v53, %v411_v52  ;;  %v808_v57 = vld [vmem:[%s1037_s11] sm:$0xff]  }
   0xc   :  { %737 = vmatprep.mubr.msk.bf16.mxu1 %vm814_vm0, %v813_v0  ;;  %404 = vperm.xlu1 %802, %v396_v29   ;;  %v691_v60 = vld [vmem:[%s1038_s9] ss:$0 sm:$0xff] }
  0x10   :  { %469 = vperm.xlu1 %802, %v410_v30  }
  0x86   :  { %v400_v44 = vpop.permute.xlu1 %399 }
  0x8b   :  { %v405_v47 = vpop.permute.xlu1 %404 }
  0x8f   :  { %v470_v63 = vpop.permute.xlu1 %469 }
  0xdd   :  { %v107_v8 = vpop.f32.mrb[0].mxu0 }
  0xde   :  { %v725_v9 = vpop.f32.mrb[1].mxu0 }
  0xdf   :  { %v110_v10 = vpop.f32.mrb[2].mxu0 }
  0xe0   :  { %v181_v13 = vpack.c.bf16 %v110_v10, %v107_v8  ;;  %v726_v14 = vpop.f32.mrb[3].mxu0 }
  0xe1   :  { %v19_v14 = vstv %s1040_s13 }
  0xe2   :  { %238 = vrot.lane.b32.xlu0 %v181_v13, %s815_s3  ;;  %v188_v15 = vsel %vm186_vm2, %v181_v13, 0  ;;  %20 = vst [vmem:[#allocation2] sm:$0x1] %v19_v14 }
  0xe3   :  { %736 = vmatpush3.bf16.msra.mxu1 %v188_v15 }
  0xe4   :  { %741 = vmatprep.subr.bf16.mxu1 %v813_v0 }
  0xe6   :  { %293 = vrot.lane.b32.xlu0 %v181_v13, %s816_s27  ;;  %738 = vmatmul.mubr.msk.bf16.vlgmr.msra.gmra.mrb[0].mxu1 %vm182_vm3, %v180_v16  ;;  %v543_v13 = vld [vmem:[%s1039_s12] sm:$0x1] }
  0xe7   :  { %743 = vmatprep.mubr.msk.bf16.mxu1 %vm814_vm0, %v813_v0 }
  0xe9   :  { %v695_v18 = vld [vmem:[#allocation2] ss:$0 sm:$0xff] }
  0xea   :  { %464 = vperm.xlu0 %803, %v409_v43  }
 0x154   :  { %v239_v19 = vpop.permute.xlu0 %238 }
 0x155   :  { %v244_v20 = vsel %vm186_vm2, %v239_v19, 0 }
 0x156   :  { %742 = vmatpush3.bf16.msra.mxu1 %v244_v20 }
 0x157   :  { %747 = vmatprep.subr.bf16.mxu1 %v813_v0 }
 0x158   :  { %v294_v22 = vpop.permute.xlu0 %293 }
 0x159   :  { %v299_v23 = vsel %vm186_vm2, %v294_v22, 0  ;;  %744 = vmatmul.mubr.msk.bf16.vlgmr.msra.gmra.mrb[0].mxu1 %vm182_vm3, %v236_v21 }
 0x15a   :  { %748 = vmatpush3.bf16.msra.mxu1 %v299_v23  ;;  %749 = vmatprep.mubr.msk.bf16.mxu1 %vm814_vm0, %v813_v0  ;;  %v597_v23 = vlaneseq }
 0x15b   :  { %777 = vmatprep.subr.bf16.mxu1 %v813_v0 }
 0x15c   :  { %v598_v24 = vshrl.u32 %v597_v23, 7 }
 0x15e   :  { %v599_v25 = vsub.s32 0, %v598_v24 }
 0x165   :  { %750 = vmatmul.mubr.msk.bf16.vlgmr.msra.gmra.mrb[0].mxu1 %vm182_vm3, %v292_v26 }
 0x166   :  { %779 = vmatprep.mubr.msk.bf16.mxu1 %vm814_vm0, %v813_v0 }
 0x169   :  { %v465_v58 = vpop.permute.xlu0 %464 }
 0x238   :  { %v335_v32 = vpop.f32.mrb[0].mxu1 }
 0x239   :  { %v751_v33 = vpop.f32.mrb[1].mxu1  ;;  %v783_v35 = vadd.f32 %v678_v31, %v335_v32 }
 0x23a   :  { %v338_v34 = vpop.f32.mrb[2].mxu1 }
 0x23b   :  { %v784_v36 = vadd.f32 %v678_v31, %v338_v34  ;;  %v752_v37 = vpop.f32.mrb[3].mxu1  ;;  %v617_v34 = vld [vmem:[%s1041_s10] sm:$0xff] }
 0x23d   :  { %v347_v40 = vpack.c.bf16 %v784_v36, %v783_v35  ;;  %v618_v35 = vld [vmem:[%s1041_s10 + $0x8] sm:$0x3] }
 0x23f   :  { %v352_v41 = vsel %vm186_vm2, %v347_v40, 0 }
 0x240   :  { %754 = vmatpush3.bf16.msra.mxu0 %v352_v41 }
 0x241   :  { %759 = vmatprep.subr.bf16.mxu0 %v813_v0 }
 0x243   :  { %756 = vmatmul.mubr.msk.bf16.vlgmr.msra.gmra.mrb[4].mxu0 %vm182_vm3, %v346_v42 }
 0x244   :  { %761 = vmatprep.mubr.msk.bf16.mxu0 %vm814_vm0, %v813_v0 }
 0x316   :  { %v388_v45 = vpop.f32.mrb[4].mxu0 }
 0x317   :  { %v757_v46 = vpop.f32.mrb[5].mxu0  ;;  %v407_v49 = vmul.f32 %v400_v44, %v388_v45 }
 0x318   :  { %v391_v48 = vpop.f32.mrb[6].mxu0 }
 0x319   :  { %v408_v50 = vmul.f32 %v405_v47, %v391_v48  ;;  %v758_v51 = vpop.f32.mrb[7].mxu0 }
 0x31b   :  { %v414_v54 = vpack.c.bf16 %v408_v50, %v407_v49 }
 0x31d   :  { %v419_v55 = vsel %vm186_vm2, %v414_v54, 0 }
 0x31e   :  { %760 = vmatpush3.bf16.msra.mxu0 %v419_v55 }
 0x31f   :  { %765 = vmatprep.subr.bf16.mxu0 %v813_v0 }
 0x321   :  { %762 = vmatmul.mubr.msk.bf16.vlgmr.msra.gmra.mrb[8].mxu0 %vm182_vm3, %v413_v56 }
 0x322   :  { %767 = vmatprep.mubr.msk.bf16.mxu0 %vm814_vm0, %v813_v0  ;;  %766 = vmatpush3.bf16.msra.mxu0 %v808_v57 }
 0x323   :  { %771 = vmatprep.subr.bf16.mxu0 %v813_v0 }
 0x3f4   :  { %v455_v59 = vpop.f32.mrb[8].mxu0 }
 0x3f5   :  { %v763_v61 = vpop.f32.mrb[9].mxu0  ;;  %v472_v62 = vmul.f32 %v465_v58, %v455_v59 }
 0x3f6   :  { %v458_v1 = vpop.f32.mrb[10].mxu0 }
 0x3f7   :  { %v481_v2 = vadd.f32 %v691_v60, %v472_v62  ;;  %v473_v3 = vmul.f32 %v470_v63, %v458_v1  ;;  %v764_v4 = vpop.f32.mrb[11].mxu0 }
 0x3f9   :  { %v485_v5 = vmul.f32 0.01, %v481_v2  ;;  %v482_v6 = vadd.f32 %v691_v60, %v473_v3  ;;  %vm483_vm4 = vcmp.gt.f32.partialorder %v481_v2, 0.0 }
 0x3fb   :  { %vm484_vm5 = vcmp.gt.f32.partialorder %v482_v6, 0.0  ;;  %v486_v7 = vmul.f32 0.01, %v482_v6  ;;  %v487_v8 = vsel %vm483_vm4, %v481_v2, %v485_v5 }
 0x3fd   :  { %v488_v9 = vsel %vm484_vm5, %v482_v6, %v486_v7 }
 0x3fe   :  { %v489_v10 = vpack.c.bf16 %v488_v9, %v487_v8 }
 0x400   :  { %768 = vmatmul.mubr.msk.bf16.vlgmr.msra.gmra.mrb[12].mxu0 %vm498_vm6, %v489_v10  ;;  %v500_v11 = vsel %vm498_vm6, %v489_v10, 0  ;;  %v625_v12 = vsel %vm186_vm2, %v489_v10, 0 }
 0x401   :  { %772 = vmatpush3.bf16.xpose.msra.mxu0 %v500_v11  ;;  %778 = vmatpush3.bf16.msra.mxu1 %v625_v12 }
 0x402   :  { %773 = vmatprep.mubr.msk.bf16.mxu0 %vm814_vm0, %v813_v0 }
 0x408   :  { %774 = vmatmul.mubr.msk.bf16.vlgmr.msra.gmra.mrb[16].mxu0 %vm498_vm6, %v543_v13 }
 0x4d3   :  { %v536_v15 = vpop.f32.mrb[12].mxu0 }
 0x4d4   :  { %589 = vperm.xlu1 %802, %v536_v15   ;;  %v769_v16 = vpop.f32.mrb[13].mxu0 }
 0x4d5   :  { %v539_v17 = vpop.f32.mrb[14].mxu0 }
 0x4d6   :  { %594 = vperm.xlu0 %803, %v539_v17   ;;  %v770_v19 = vpop.f32.mrb[15].mxu0 }
 0x4d8   :  { %610 = vperm.xlu1 %802, %v695_v18  }
 0x4db   :  { %v581_v0 = vpop.f32.mrb[16].mxu0 }
 0x4dc   :  { %v775_v20 = vpop.f32.mrb[17].mxu0  ;;  %v600_v26 = vrot.slane %v581_v0, %v599_v25 }
 0x4dd   :  { %v584_v21 = vpop.f32.mrb[18].mxu0 }
 0x4de   :  { %v776_v22 = vpop.f32.mrb[19].mxu0 }
 0x553   :  { %v590_v27 = vpop.permute.xlu1 %589 }
 0x554   :  { %v601_v29 = vadd.f32 %v600_v26, %v590_v27 }
 0x555   :  { %v595_v28 = vpop.permute.xlu0 %594 }
 0x556   :  { %v602_v30 = vadd.f32 %v600_v26, %v595_v28 }
 0x557   :  { %v611_v31 = vpop.permute.xlu1 %610 }
 0x558   :  { %v613_v32 = vadd.f32 %v611_v31, %v601_v29  ;;  %v614_v33 = vadd.f32 %v611_v31, %v602_v30 }
 0x55a   :  { %809 = vtanh.f32 %v613_v32 }
 0x55b   :  { %811 = vtanh.f32 %v614_v33 }
 0x564   :  { %v810_v36 = vpop.eup %809 }
 0x565   :  { %v812_v37 = vpop.eup %811  ;;  %v619_v38 = vmul.f32 %v810_v36, %v617_v34 }
 0x566   :  { %v620_v39 = vmul.f32 %v812_v37, %v618_v35 }
 0x568   :  { %v621_v40 = vpack.c.bf16 %v620_v39, %v619_v38 }
 0x56a   :  { %780 = vmatmul.mubr.msk.bf16.vlgmr.msra.gmra.mrb[4].mxu1 %vm182_vm3, %v621_v40 }
 0x63d   :  { %v661_v41 = vpop.f32.mrb[4].mxu1 }
 0x63e   :  { %668 = vst.msk [vmem:[%s1042_s14] sm:$0xff] %vm498_vm6, %v661_v41  ;;  %v781_v42 = vpop.f32.mrb[5].mxu1 }
 0x63f   :  { %v664_v43 = vpop.f32.mrb[6].mxu1 }
 0x640   :  { %670 = vst.msk [vmem:[%s1042_s14 + $0x8] sm:$0x3] %vm669_vm7, %v664_v43  ;;  %v782_v44 = vpop.f32.mrb[7].mxu1 }

// kernel: graph_model_forward.12
= control target key start
LH: loop header
LB: loop body
LE: loop exit
PB: predicated region body
PF: predicated region fallthrough
CT: control target
= control target key end

     0   :  { %s1085_s12 = smov 0   ;;  %s1297_s0 = inlined_call_operand.vmem [shape: f32[2,6,2,144], index: 0, kind: input, shape index: {}]   ;;  %s1298_s1 = inlined_call_operand.vmem [shape: bf16[2,48,144], index: 1, kind: input, shape index: {}]   ;;  %s1299_s2 = inlined_call_operand.vmem [shape: f32[2,1,144], index: 2, kind: input, shape index: {}]   ;;  %s1300_s3 = inlined_call_operand.vmem [shape: f32[2,6,2,48], index: 3, kind: output, shape index: {}]  }
   0x1 LB: > { %s959_s13 = sadd.s32 4294967295, %s1058_s12   ;;  %p963_p0 = scmp.ge.s32.totalorder %s1058_s12, 1  ;;  %s1058_s12 = sphi %s1085_s12, %s13_s12  }
   0x2   : > { %p156_p1 = scmp.lt.s32.totalorder %s1058_s12, 3 }
   0x4   : > { %p157_p2 = pnand %p963_p0, %p156_p1 }
   0x5   : > { %p189_p3 = scmp.lt.s32.totalorder (!%p157_p2), %s959_s13, 1  ;;  %v1060_v0 = vmov (!%p157_p2), 0   ;;  %v218_v7 = vlaneseq (!%p157_p2)  ;;  %v1061_v11 = vmov (!%p157_p2), 1983009808   ;;  %s1062_s22 = smov (!%p157_p2), 32   ;;  %vm323_vm0 = vcmask (!%p157_p2), 261120  }
   0x6   : > { %160 = sbr.rel (%p157_p2) target bundleno = 4285 (0x10bd), region = 32  ;;  %294 = vmatprep.mubr.bf16.mxu0 (!%p157_p2), %v1060_v0  ;;  %401 = vmatprep.mubr.bf16.mxu1 (!%p157_p2), %v1060_v0  ;;  %v314_v12 = vunpack.c.l.s4 (!%p157_p2), %v1061_v11  ;;  %s1063_s27 = smov (!%p157_p2), 96   ;;  %vm331_vm1 = vcmask (!%p157_p2), 785408   ;;  %vm341_vm2 = vcmask (!%p157_p2), 654336   ;;  %vm258_vm3 = vcmask (!%p157_p2), 392192  }
   0x7   : > { %v219_v8 = vshrl.u32 (!%p157_p2), %v218_v7, 7  ;;  %s1064_s28 = smov (!%p157_p2), 80   ;;  %vm358_vm4 = vcmask (!%p157_p2), 386048  }
   0x8   : > { %v315_v15 = vunpack.c.0.s8 (!%p157_p2), %v314_v12 }
   0x9   : > { %v220_v9 = vsub.s32 (!%p157_p2), 0, %v219_v8  ;;  %v224_v13 = vsub.s32 (!%p157_p2), 1, %v219_v8 }
   0xa   : > { %v1144_v20 = vsub.s32 (!%p157_p2), %v315_v15, %v219_v8 }
   0xd   : > { %s1302_s13 = smov (!%p189_p3, %s959_s13), 1 }
   0xe   : > { %s992_s14 = smul.u32 48, %s1302_s13  ;;  %s966_s18 = sshll.u32 %s1302_s13, 1 }
   0xf   : > { %s202_s21 = scalar_lea.vmem %s1299_s2, %s966_s18  ;;  %s991_s23 = smul.u32 24, %s1302_s13 }
  0x10   : > { %s198_s17 = scalar_lea.vmem %s1298_s1, %s992_s14  ;;  %v215_v10 = vld [vmem:[%s202_s21] sm:$0x3]  ;;  %s993_s29 = smul.u32 12, %s1302_s13 }
  0x11   : > { %v1101_v1 = vld [vmem:[%s198_s17 + $0x4] ss:$8 sps:$4 sm:$0xff]   ;;  %v1103_v2 = vld [vmem:[%s198_s17] ss:$8 sps:$4 sm:$0xff]   ;;  %v1106_v3 = vld [vmem:[%s198_s17 + $0x14] ss:$8 sps:$4 sm:$0xff]   ;;  %v1139_v14 = vrot.slane %v215_v10, %v220_v9  ;;  %v1141_v16 = vrot.slane %v215_v10, %v224_v13  ;;  %s1153_s26 = scalar_lea.vmem %s1297_s0, %s991_s23 }
  0x12   : > { %262 = vmatprep.subr.bf16.mxu0 %v1101_v1  ;;  %369 = vmatprep.subr.bf16.mxu1 %v1101_v1  ;;  %v1110_v4 = vld [vmem:[%s198_s17 + $0x10] ss:$8 sps:$4 sm:$0xff]   ;;  %v1114_v5 = vld [vmem:[%s198_s17 + $0x24] ss:$8 sps:$4 sm:$0xff]   ;;  %v1118_v6 = vld [vmem:[%s198_s17 + $0x20] ss:$8 sps:$4 sm:$0xff]   ;;  %s1269_s5 = scalar_lea.vmem %s1300_s3, %s993_s29 }
  0x13   : > { %263 = vmatpush1.bf16.msra.mxu0 %v1103_v2  ;;  %370 = vmatpush1.bf16.msra.mxu1 %v1103_v2  ;;  %v216_v26 = vld [vmem:[%s1153_s26] sm:$0xf]  ;;  %v974_v59 = vld [vmem:[%s1153_s26 + $0x4] sm:$0xf] }
  0x14   : > { %264 = vmatprep.subr.bf16.mxu0 %v1106_v3  ;;  %371 = vmatprep.subr.bf16.mxu1 %v1106_v3 }
  0x17   : > { %265 = vmatpush1.bf16.msra.mxu0 %v1110_v4  ;;  %372 = vmatpush1.bf16.msra.mxu1 %v1110_v4 }
  0x18   : > { %266 = vmatprep.subr.bf16.mxu0 %v1114_v5  ;;  %373 = vmatprep.subr.bf16.mxu1 %v1114_v5 }
  0x1b   : > { %267 = vmatpush1.bf16.msra.mxu0 %v1118_v6  ;;  %374 = vmatpush1.bf16.msra.mxu1 %v1118_v6 }
  0x1c   : > { %473 = vmatprep.subr.bf16.mxu0 %v1101_v1  ;;  %577 = vmatprep.subr.bf16.mxu1 %v1101_v1 }
  0x1e   : > { %295 = vmatmul.mubr.bf16.vlgmr.msra.gmra.mrb[0].mxu0 %v1060_v0 }
  0x1f   : > { %474 = vmatpush1.bf16.msra.mxu0 %v1103_v2  ;;  %505 = vmatprep.mubr.bf16.mxu0 %v1060_v0 }
  0x20   : > { %475 = vmatprep.subr.bf16.mxu0 %v1106_v3 }
  0x23   : > { %476 = vmatpush1.bf16.msra.mxu0 %v1110_v4 }
  0x24   : > { %477 = vmatprep.subr.bf16.mxu0 %v1114_v5 }
  0x27   : > { %478 = vmatpush1.bf16.msra.mxu0 %v1118_v6 }
  0x28   : > { %681 = vmatprep.subr.bf16.mxu0 %v1101_v1 }
  0xf1   : > { %v296_v17 = vpop.f32.mrb[0].mxu0 }
  0xf2   : > { %v297_v18 = vadd.f32 %v296_v17, %v1139_v14  ;;  %v298_v19 = vpop.f32.mrb[1].mxu0 }
  0xf3   : > { %v299_v21 = vadd.f32 %v298_v19, %v1141_v16  ;;  %v300_v22 = vpop.f32.mrb[2].mxu0 }
  0xf4   : > { %v301_v23 = vpop.f32.mrb[3].mxu0  ;;  %v303_v27 = vadd.f32 %v297_v18, %v216_v26 }
  0xf5   : > { %v312_v24 = vcombine.low %v297_v18, %v299_v21 }
  0xf6   : > { %v304_v28 = vsub.f32 0.0, %v303_v27 }
  0xf7   : > { %v319_v25 = vrot.slane %v312_v24, %v1144_v20 }
  0xf8   : > { %v305_v29 = vmul.f32 1.442695, %v304_v28 }
  0xf9   : > { %320 = vrot.lane.b32.xlu0 %v319_v25, %s1062_s22 }
  0xfa   : > { %1016 = vpow2.f32 %v305_v29 }
 0x104   : > { %v1017_v30 = vpop.eup %1016 }
 0x105   : > { %v307_v31 = vadd.f32 1.0, %v1017_v30 }
 0x107   : > { %1018 = vrcp.f32 %v307_v31 }
 0x111   : > { %v1019_v34 = vpop.eup %1018 }
 0x112   : > { %v336_v44 = vsub.f32 1.0, %v1019_v34  ;;  %v345_v46 = vmul.f32 0.0, %v1019_v34 }
 0x16b   : > { %v321_v32 = vpop.permute.xlu0 %320 }
 0x16c   : > { %v322_v33 = vrot.slane %v321_v32, 2 }
 0x16e   : > { %v324_v35 = vsel %vm323_vm0, %v321_v32, %v322_v33 }
 0x16f   : > { %v326_v36 = vmul.f32 %v1019_v34, %v324_v35 }
 0x171   : > { %328 = vrot.lane.b32.xlu0 %v326_v36, %s1063_s27 }
 0x1e3   : > { %v329_v37 = vpop.permute.xlu0 %328 }
 0x1e4   : > { %v330_v38 = vrot.slane %v329_v37, 6 }
 0x1e6   : > { %v332_v39 = vsel %vm331_vm1, %v330_v38, %v329_v37  ;;  %v977_v37 = vld [vmem:[%s1153_s26 + $0x8] sm:$0xf] }
 0x1e7   : > { %v334_v40 = vadd.f32 %v332_v39, %v216_v26 }
 0x1e9   : > { %1020 = vtanh.f32 %v334_v40 }
 0x1f3   : > { %v1021_v41 = vpop.eup %1020 }
 0x1f4   : > { %338 = vrot.lane.b32.xlu1 %v1021_v41, %s1064_s28 }
 0x266   : > { %v339_v42 = vpop.permute.xlu1 %338 }
 0x267   : > { %v340_v43 = vrot.slane %v339_v42, 2 }
 0x269   : > { %v342_v45 = vsel %vm341_vm2, %v339_v42, %v340_v43 }
 0x26a   : > { %v344_v47 = vmul.f32 %v342_v45, %v336_v44 }
 0x26c   : > { %v1161_v48 = vadd.f32 %v345_v46, %v344_v47 }
 0x26e   : > { %v362_v49 = vpack.c.bf16 %v1161_v48, %v1161_v48 }
 0x270   : > { %364 = vrot.lane.b32.xlu1 %v362_v49, %s1064_s28 }
 0x2e2   : > { %v365_v50 = vpop.permute.xlu1 %364 }
 0x2e3   : > { %975 = vmatmul.mubr.msk.bf16.vlgmr.msra.gmra.mrb[0].mxu1 %vm258_vm3, %v365_v50 }
 0x2e4   : > { %578 = vmatpush1.bf16.msra.mxu1 %v1103_v2  ;;  %609 = vmatprep.mubr.bf16.mxu1 %v1060_v0 }
 0x2e5   : > { %579 = vmatprep.subr.bf16.mxu1 %v1106_v3 }
 0x2e8   : > { %580 = vmatpush1.bf16.msra.mxu1 %v1110_v4 }
 0x2e9   : > { %581 = vmatprep.subr.bf16.mxu1 %v1114_v5 }
 0x2ec   : > { %582 = vmatpush1.bf16.msra.mxu1 %v1118_v6 }
 0x2ed   : > { %785 = vmatprep.subr.bf16.mxu1 %v1101_v1 }
 0x3b6   : > { %v403_v51 = vpop.f32.mrb[0].mxu1 }
 0x3b7   : > { %v404_v52 = vadd.f32 %v403_v51, %v1139_v14  ;;  %v405_v53 = vpop.f32.mrb[1].mxu1 }
 0x3b8   : > { %v406_v54 = vadd.f32 %v405_v53, %v1141_v16  ;;  %v407_v55 = vpop.f32.mrb[2].mxu1 }
 0x3b9   : > { %v408_v56 = vpop.f32.mrb[3].mxu1  ;;  %v410_v60 = vadd.f32 %v974_v59, %v404_v52 }
 0x3ba   : > { %v419_v57 = vcombine.low %v404_v52, %v406_v54 }
 0x3bb   : > { %v411_v61 = vsub.f32 0.0, %v410_v60 }
 0x3bc   : > { %v426_v58 = vrot.slane %v419_v57, %v1144_v20 }
 0x3bd   : > { %v412_v62 = vmul.f32 1.442695, %v411_v61 }
 0x3be   : > { %427 = vrot.lane.b32.xlu0 %v426_v58, %s1062_s22 }
 0x3bf   : > { %1022 = vpow2.f32 %v412_v62 }
 0x3c9   : > { %v1023_v63 = vpop.eup %1022 }
 0x3ca   : > { %v414_v1 = vadd.f32 1.0, %v1023_v63 }
 0x3cc   : > { %1024 = vrcp.f32 %v414_v1 }
 0x3d6   : > { %v1025_v9 = vpop.eup %1024 }
 0x3d7   : > { %v441_v22 = vsub.f32 1.0, %v1025_v9  ;;  %v449_v24 = vmul.f32 %v1025_v9, %v1161_v48 }
 0x430   : > { %v428_v7 = vpop.permute.xlu0 %427 }
 0x431   : > { %v429_v8 = vrot.slane %v428_v7, 2 }
 0x433   : > { %v430_v10 = vsel %vm323_vm0, %v428_v7, %v429_v8 }
 0x434   : > { %v432_v11 = vmul.f32 %v1025_v9, %v430_v10 }
 0x436   : > { %434 = vrot.lane.b32.xlu1 %v432_v11, %s1063_s27 }
 0x4a8   : > { %v435_v12 = vpop.permute.xlu1 %434 }
 0x4a9   : > { %v436_v13 = vrot.slane %v435_v12, 6 }
 0x4ab   : > { %v437_v15 = vsel %vm331_vm1, %v436_v13, %v435_v12 }
 0x4ac   : > { %v439_v17 = vadd.f32 %v974_v59, %v437_v15 }
 0x4ae   : > { %1026 = vtanh.f32 %v439_v17 }
 0x4b8   : > { %v1027_v18 = vpop.eup %1026 }
 0x4b9   : > { %443 = vrot.lane.b32.xlu0 %v1027_v18, %s1064_s28 }
 0x52b   : > { %v444_v19 = vpop.permute.xlu0 %443 }
 0x52c   : > { %v445_v21 = vrot.slane %v444_v19, 2 }
 0x52e   : > { %v446_v23 = vsel %vm341_vm2, %v444_v19, %v445_v21 }
 0x52f   : > { %v448_v25 = vmul.f32 %v446_v23, %v441_v22 }
 0x531   : > { %v1185_v26 = vadd.f32 %v449_v24, %v448_v25 }
 0x533   : > { %v466_v27 = vpack.c.bf16 %v1185_v26, %v1185_v26 }
 0x535   : > { %468 = vrot.lane.b32.xlu1 %v466_v27, %s1064_s28 }
 0x5a7   : > { %v469_v28 = vpop.permute.xlu1 %468 }
 0x5a8   : > { %978 = vmatmul.mubr.msk.bf16.vlgmr.msra.gmra.mrb[4].mxu0 %vm258_vm3, %v469_v28 }
 0x5a9   : > { %682 = vmatpush1.bf16.msra.mxu0 %v1103_v2  ;;  %713 = vmatprep.mubr.bf16.mxu0 %v1060_v0 }
 0x5aa   : > { %683 = vmatprep.subr.bf16.mxu0 %v1106_v3 }
 0x5ad   : > { %684 = vmatpush1.bf16.msra.mxu0 %v1110_v4 }
 0x5ae   : > { %685 = vmatprep.subr.bf16.mxu0 %v1114_v5 }
 0x5b1   : > { %686 = vmatpush1.bf16.msra.mxu0 %v1118_v6 }
 0x67b   : > { %v507_v29 = vpop.f32.mrb[4].mxu0 }
 0x67c   : > { %v508_v30 = vadd.f32 %v507_v29, %v1139_v14  ;;  %v509_v31 = vpop.f32.mrb[5].mxu0 }
 0x67d   : > { %v510_v32 = vadd.f32 %v509_v31, %v1141_v16  ;;  %v511_v33 = vpop.f32.mrb[6].mxu0 }
 0x67e   : > { %v512_v34 = vpop.f32.mrb[7].mxu0  ;;  %v514_v38 = vadd.f32 %v977_v37, %v508_v30 }
 0x67f   : > { %v523_v35 = vcombine.low %v508_v30, %v510_v32 }
 0x680   : > { %v515_v39 = vsub.f32 0.0, %v514_v38 }
 0x681   : > { %v530_v36 = vrot.slane %v523_v35, %v1144_v20 }
 0x682   : > { %v516_v40 = vmul.f32 1.442695, %v515_v39 }
 0x683   : > { %531 = vrot.lane.b32.xlu0 %v530_v36, %s1062_s22 }
 0x684   : > { %1028 = vpow2.f32 %v516_v40 }
 0x68e   : > { %v1029_v41 = vpop.eup %1028 }
 0x68f   : > { %v518_v42 = vadd.f32 1.0, %v1029_v41 }
 0x691   : > { %1030 = vrcp.f32 %v518_v42 }
 0x69b   : > { %v1031_v45 = vpop.eup %1030 }
 0x69c   : > { %v545_v56 = vsub.f32 1.0, %v1031_v45  ;;  %v553_v58 = vmul.f32 %v1031_v45, %v1185_v26 }
 0x6f5   : > { %v532_v43 = vpop.permute.xlu0 %531 }
 0x6f6   : > { %v533_v44 = vrot.slane %v532_v43, 2 }
 0x6f8   : > { %v534_v46 = vsel %vm323_vm0, %v532_v43, %v533_v44  ;;  %v983_v44 = vld [vmem:[%s1153_s26 + $0x10] sm:$0xf] }
 0x6f9   : > { %v536_v47 = vmul.f32 %v1031_v45, %v534_v46 }
 0x6fb   : > { %538 = vrot.lane.b32.xlu1 %v536_v47, %s1063_s27 }
 0x76d   : > { %v539_v49 = vpop.permute.xlu1 %538 }
 0x76e   : > { %v540_v50 = vrot.slane %v539_v49, 6 }
 0x770   : > { %v541_v51 = vsel %vm331_vm1, %v540_v50, %v539_v49 }
 0x771   : > { %v543_v52 = vadd.f32 %v977_v37, %v541_v51 }
 0x773   : > { %1032 = vtanh.f32 %v543_v52 }
 0x77d   : > { %v1033_v53 = vpop.eup %1032 }
 0x77e   : > { %547 = vrot.lane.b32.xlu0 %v1033_v53, %s1064_s28 }
 0x7f0   : > { %v548_v54 = vpop.permute.xlu0 %547 }
 0x7f1   : > { %v549_v55 = vrot.slane %v548_v54, 2 }
 0x7f3   : > { %v550_v57 = vsel %vm341_vm2, %v548_v54, %v549_v55 }
 0x7f4   : > { %v552_v59 = vmul.f32 %v550_v57, %v545_v56 }
 0x7f6   : > { %v1208_v60 = vadd.f32 %v553_v58, %v552_v59 }
 0x7f8   : > { %v570_v61 = vpack.c.bf16 %v1208_v60, %v1208_v60 }
 0x7fa   : > { %572 = vrot.lane.b32.xlu1 %v570_v61, %s1064_s28 }
 0x86c   : > { %v573_v62 = vpop.permute.xlu1 %572 }
 0x86d   : > { %981 = vmatmul.mubr.msk.bf16.vlgmr.msra.gmra.mrb[4].mxu1 %vm258_vm3, %v573_v62 }
 0x86e   : > { %786 = vmatpush1.bf16.msra.mxu1 %v1103_v2  ;;  %817 = vmatprep.mubr.bf16.mxu1 %v1060_v0  ;;  %v980_v0 = vld [vmem:[%s1153_s26 + $0xc] sm:$0xf] }
 0x86f   : > { %787 = vmatprep.subr.bf16.mxu1 %v1106_v3 }
 0x872   : > { %788 = vmatpush1.bf16.msra.mxu1 %v1110_v4 }
 0x873   : > { %789 = vmatprep.subr.bf16.mxu1 %v1114_v5 }
 0x876   : > { %790 = vmatpush1.bf16.msra.mxu1 %v1118_v6 }
 0x940   : > { %v611_v63 = vpop.f32.mrb[4].mxu1 }
 0x941   : > { %v612_v1 = vadd.f32 %v611_v63, %v1139_v14  ;;  %v613_v7 = vpop.f32.mrb[5].mxu1 }
 0x942   : > { %v614_v8 = vadd.f32 %v613_v7, %v1141_v16  ;;  %v615_v9 = vpop.f32.mrb[6].mxu1 }
 0x943   : > { %v616_v10 = vpop.f32.mrb[7].mxu1  ;;  %v618_v3 = vadd.f32 %v980_v0, %v612_v1 }
 0x944   : > { %v627_v11 = vcombine.low %v612_v1, %v614_v8 }
 0x945   : > { %v619_v4 = vsub.f32 0.0, %v618_v3 }
 0x946   : > { %v634_v2 = vrot.slane %v627_v11, %v1144_v20 }
 0x947   : > { %v620_v12 = vmul.f32 1.442695, %v619_v4 }
 0x948   : > { %635 = vrot.lane.b32.xlu0 %v634_v2, %s1062_s22 }
 0x949   : > { %1034 = vpow2.f32 %v620_v12 }
 0x953   : > { %v1035_v5 = vpop.eup %1034 }
 0x954   : > { %v622_v6 = vadd.f32 1.0, %v1035_v5 }
 0x956   : > { %1036 = vrcp.f32 %v622_v6 }
 0x960   : > { %v1037_v17 = vpop.eup %1036 }
 0x961   : > { %v649_v29 = vsub.f32 1.0, %v1037_v17  ;;  %v657_v31 = vmul.f32 %v1037_v17, %v1208_v60 }
 0x9ba   : > { %v636_v13 = vpop.permute.xlu0 %635 }
 0x9bb   : > { %v637_v15 = vrot.slane %v636_v13, 2 }
 0x9bd   : > { %v638_v18 = vsel %vm323_vm0, %v636_v13, %v637_v15 }
 0x9be   : > { %v640_v19 = vmul.f32 %v1037_v17, %v638_v18  ;;  %v986_v17 = vld [vmem:[%s1153_s26 + $0x14] sm:$0xf] }
 0x9c0   : > { %642 = vrot.lane.b32.xlu1 %v640_v19, %s1063_s27 }
 0xa32   : > { %v643_v21 = vpop.permute.xlu1 %642 }
 0xa33   : > { %v644_v22 = vrot.slane %v643_v21, 6 }
 0xa35   : > { %v645_v23 = vsel %vm331_vm1, %v644_v22, %v643_v21 }
 0xa36   : > { %v647_v24 = vadd.f32 %v980_v0, %v645_v23 }
 0xa38   : > { %1038 = vtanh.f32 %v647_v24 }
 0xa42   : > { %v1039_v25 = vpop.eup %1038 }
 0xa43   : > { %651 = vrot.lane.b32.xlu0 %v1039_v25, %s1064_s28 }
 0xab5   : > { %v652_v27 = vpop.permute.xlu0 %651 }
 0xab6   : > { %v653_v28 = vrot.slane %v652_v27, 2 }
 0xab8   : > { %v654_v30 = vsel %vm341_vm2, %v652_v27, %v653_v28  ;;  %v354_v28 = vrot.slane %v1161_v48, %v1144_v20 }
 0xab9   : > { %v656_v32 = vmul.f32 %v654_v30, %v649_v29  ;;  %v562_v29 = vrot.slane %v1208_v60, %v1144_v20 }
 0xabb   : > { %v1231_v33 = vadd.f32 %v657_v31, %v656_v32 }
 0xabd   : > { %v674_v34 = vpack.c.bf16 %v1231_v33, %v1231_v33 }
 0xabf   : > { %676 = vrot.lane.b32.xlu1 %v674_v34, %s1064_s28 }
 0xb31   : > { %v677_v35 = vpop.permute.xlu1 %676 }
 0xb32   : > { %984 = vmatmul.mubr.msk.bf16.vlgmr.msra.gmra.mrb[8].mxu0 %vm258_vm3, %v677_v35 }
 0xc05   : > { %v715_v36 = vpop.f32.mrb[8].mxu0 }
 0xc06   : > { %v716_v37 = vadd.f32 %v715_v36, %v1139_v14  ;;  %v717_v38 = vpop.f32.mrb[9].mxu0 }
 0xc07   : > { %v718_v39 = vadd.f32 %v717_v38, %v1141_v16  ;;  %v719_v40 = vpop.f32.mrb[10].mxu0  ;;  %v458_v38 = vrot.slane %v1185_v26, %v1144_v20 }
 0xc08   : > { %v720_v41 = vpop.f32.mrb[11].mxu0  ;;  %v722_v45 = vadd.f32 %v983_v44, %v716_v37 }
 0xc09   : > { %v731_v42 = vcombine.low %v716_v37, %v718_v39  ;;  %v666_v39 = vrot.slane %v1231_v33, %v1144_v20 }
 0xc0a   : > { %v723_v46 = vsub.f32 0.0, %v722_v45 }
 0xc0b   : > { %v738_v43 = vrot.slane %v731_v42, %v1144_v20 }
 0xc0c   : > { %v724_v47 = vmul.f32 1.442695, %v723_v46 }
 0xc0d   : > { %739 = vrot.lane.b32.xlu0 %v738_v43, %s1062_s22 }
 0xc0e   : > { %1040 = vpow2.f32 %v724_v47 }
 0xc18   : > { %v1041_v49 = vpop.eup %1040 }
 0xc19   : > { %v726_v50 = vadd.f32 1.0, %v1041_v49 }
 0xc1b   : > { %1042 = vrcp.f32 %v726_v50 }
 0xc25   : > { %v1043_v53 = vpop.eup %1042 }
 0xc26   : > { %v753_v1 = vsub.f32 1.0, %v1043_v53  ;;  %v761_v8 = vmul.f32 %v1043_v53, %v1231_v33 }
 0xc7f   : > { %v740_v51 = vpop.permute.xlu0 %739 }
 0xc80   : > { %v741_v52 = vrot.slane %v740_v51, 2 }
 0xc82   : > { %v742_v54 = vsel %vm323_vm0, %v740_v51, %v741_v52 }
 0xc83   : > { %v744_v55 = vmul.f32 %v1043_v53, %v742_v54 }
 0xc85   : > { %746 = vrot.lane.b32.xlu1 %v744_v55, %s1063_s27 }
 0xcf7   : > { %v747_v56 = vpop.permute.xlu1 %746 }
 0xcf8   : > { %v748_v57 = vrot.slane %v747_v56, 6 }
 0xcfa   : > { %v749_v58 = vsel %vm331_vm1, %v748_v57, %v747_v56 }
 0xcfb   : > { %v751_v59 = vadd.f32 %v983_v44, %v749_v58 }
 0xcfd   : > { %1044 = vtanh.f32 %v751_v59 }
 0xd07   : > { %v1045_v61 = vpop.eup %1044 }
 0xd08   : > { %755 = vrot.lane.b32.xlu0 %v1045_v61, %s1064_s28 }
 0xd7a   : > { %v756_v62 = vpop.permute.xlu0 %755 }
 0xd7b   : > { %v757_v63 = vrot.slane %v756_v62, 2 }
 0xd7d   : > { %v758_v7 = vsel %vm341_vm2, %v756_v62, %v757_v63 }
 0xd7e   : > { %v760_v9 = vmul.f32 %v758_v7, %v753_v1 }
 0xd80   : > { %v762_v10 = vadd.f32 %v761_v8, %v760_v9 }
 0xd82   : > { %v778_v11 = vpack.c.bf16 %v762_v10, %v762_v10  ;;  %v770_v30 = vrot.slane %v762_v10, %v1144_v20 }
 0xd84   : > { %780 = vrot.lane.b32.xlu1 %v778_v11, %s1064_s28 }
 0xdf6   : > { %v781_v2 = vpop.permute.xlu1 %780 }
 0xdf7   : > { %987 = vmatmul.mubr.msk.bf16.vlgmr.msra.gmra.mrb[8].mxu1 %vm258_vm3, %v781_v2 }
 0xeca   : > { %v819_v0 = vpop.f32.mrb[8].mxu1 }
 0xecb   : > { %v820_v3 = vadd.f32 %v819_v0, %v1139_v14  ;;  %v821_v4 = vpop.f32.mrb[9].mxu1 }
 0xecc   : > { %v822_v12 = vadd.f32 %v821_v4, %v1141_v16  ;;  %v823_v5 = vpop.f32.mrb[10].mxu1 }
 0xecd   : > { %v824_v6 = vpop.f32.mrb[11].mxu1  ;;  %v826_v18 = vadd.f32 %v986_v17, %v820_v3 }
 0xece   : > { %v835_v13 = vcombine.low %v820_v3, %v822_v12 }
 0xecf   : > { %v827_v19 = vsub.f32 0.0, %v826_v18 }
 0xed0   : > { %v842_v15 = vrot.slane %v835_v13, %v1144_v20 }
 0xed1   : > { %v828_v21 = vmul.f32 1.442695, %v827_v19 }
 0xed2   : > { %843 = vrot.lane.b32.xlu0 %v842_v15, %s1062_s22 }
 0xed3   : > { %1046 = vpow2.f32 %v828_v21 }
 0xedd   : > { %v1047_v22 = vpop.eup %1046 }
 0xede   : > { %v830_v23 = vadd.f32 1.0, %v1047_v22 }
 0xee0   : > { %1048 = vrcp.f32 %v830_v23 }
 0xeea   : > { %v1049_v25 = vpop.eup %1048 }
 0xeeb   : > { %v857_v42 = vsub.f32 1.0, %v1049_v25  ;;  %v865_v44 = vmul.f32 %v1049_v25, %v762_v10 }
 0xf44   : > { %v844_v14 = vpop.permute.xlu0 %843 }
 0xf45   : > { %v845_v24 = vrot.slane %v844_v14, 2 }
 0xf47   : > { %v846_v16 = vsel %vm323_vm0, %v844_v14, %v845_v24 }
 0xf48   : > { %v848_v27 = vmul.f32 %v1049_v25, %v846_v16 }
 0xf4a   : > { %850 = vrot.lane.b32.xlu1 %v848_v27, %s1063_s27 }
 0xf4e   : > { %355 = vrot.lane.b32.xlu1 %v354_v28, %s1064_s28 }
 0xf52   : > { %563 = vrot.lane.b32.xlu1 %v562_v29, %s1064_s28 }
 0xf56   : > { %771 = vrot.lane.b32.xlu1 %v770_v30, %s1064_s28 }
 0xfbc   : > { %v851_v31 = vpop.permute.xlu1 %850 }
 0xfbd   : > { %v852_v32 = vrot.slane %v851_v31, 6 }
 0xfbf   : > { %v853_v48 = vsel %vm331_vm1, %v852_v32, %v851_v31 }
 0xfc0   : > { %v855_v60 = vadd.f32 %v986_v17, %v853_v48  ;;  %v356_v34 = vpop.permute.xlu1 %355 }
 0xfc1   : > { %359 = vst.msk [vmem:[%s1269_s5] sm:$0x3] %vm358_vm4, %v356_v34 }
 0xfc2   : > { %1050 = vtanh.f32 %v855_v60 }
 0xfc4   : > { %v564_v35 = vpop.permute.xlu1 %563 }
 0xfc5   : > { %979 = vst.msk [vmem:[%s1269_s5 + $0x4] sm:$0x3] %vm358_vm4, %v564_v35 }
 0xfc8   : > { %v772_v36 = vpop.permute.xlu1 %771 }
 0xfc9   : > { %985 = vst.msk [vmem:[%s1269_s5 + $0x8] sm:$0x3] %vm358_vm4, %v772_v36 }
 0xfcc   : > { %v1051_v37 = vpop.eup %1050 }
 0xfcd   : > { %859 = vrot.lane.b32.xlu0 %v1051_v37, %s1064_s28 }
 0xfd1   : > { %459 = vrot.lane.b32.xlu0 %v458_v38, %s1064_s28 }
 0xfd5   : > { %667 = vrot.lane.b32.xlu0 %v666_v39, %s1064_s28 }
0x103f   : > { %v860_v40 = vpop.permute.xlu0 %859 }
0x1040   : > { %v861_v41 = vrot.slane %v860_v40, 2 }
0x1042   : > { %v862_v43 = vsel %vm341_vm2, %v860_v40, %v861_v41 }
0x1043   : > { %v864_v45 = vmul.f32 %v862_v43, %v857_v42  ;;  %v460_v46 = vpop.permute.xlu0 %459 }
0x1044   : > { %976 = vst.msk [vmem:[%s1269_s5 + $0x2] sm:$0x3] %vm358_vm4, %v460_v46 }
0x1045   : > { %v866_v47 = vadd.f32 %v865_v44, %v864_v45 }
0x1047   : > { %v668_v26 = vpop.permute.xlu0 %667  ;;  %v874_v49 = vrot.slane %v866_v47, %v1144_v20 }
0x1048   : > { %982 = vst.msk [vmem:[%s1269_s5 + $0x6] sm:$0x3] %vm358_vm4, %v668_v26 }
0x1049   : > { %875 = vrot.lane.b32.xlu0 %v874_v49, %s1064_s28 }
0x10bb   : > { %v876_v33 = vpop.permute.xlu0 %875 }
0x10bc   : > { %988 = vst.msk [vmem:[%s1269_s5 + $0xa] sm:$0x3] %vm358_vm4, %v876_v33 }
0x10bd PF: > { %s13_s12 = sadd.s32 1, %s1058_s12  }
0x10be   : > { %p10_p4 = scmp.ge.s32.totalorder %s13_s12, 4  }
0x10c0   :  { %12 = sbr.rel (!%p10_p4) target bundleno = 1 (0x1), region = 78 }

// kernel: graph_model_forward.15
= control target key start
LH: loop header
LB: loop body
LE: loop exit
PB: predicated region body
PF: predicated region fallthrough
CT: control target
= control target key end

     0   :  { %v453_v0 = vmov 0.0   ;;  %vm454_vm0 = vmmov 0   ;;  %vm85_vm1 = vcmask 785408   ;;  %vm164_vm2 = vcmask 392192   ;;  %s456_s20 = smov 124   ;;  %s582_s1 = inlined_call_operand.vmem [shape: bf16[96,48], index: 1, kind: input, shape index: {}]   ;;  %s583_s3 = inlined_call_operand.vmem [shape: bf16[48,84], index: 3, kind: input, shape index: {}]   ;;  %s584_s0 = inlined_call_operand.vmem [shape: f32[12,96], index: 0, kind: input, shape index: {}]   ;;  %s585_s2 = inlined_call_operand.vmem [shape: f32[1,48], index: 2, kind: input, shape index: {}]   ;;  %s586_s5 = inlined_call_operand.vmem [shape: bf16[80,240], index: 5, kind: input, shape index: {}]   ;;  %s587_s4 = inlined_call_operand.vmem [shape: f32[1,84], index: 4, kind: input, shape index: {}]   ;;  %s588_s6 = inlined_call_operand.vmem [shape: f32[1,240], index: 6, kind: input, shape index: {}]   ;;  %s589_s7 = inlined_call_operand.vmem [shape: f32[12,244], index: 7, kind: output, shape index: {}]  }
   0x1   :  { %398 = vmatprep.subr.bf16.mxu0 %v453_v0  ;;  %v429_v1 = vld [vmem:[%s582_s1] sm:$0xff]   ;;  %410 = vmatprep.mubr.msk.bf16.mxu0 %vm454_vm0, %v453_v0  ;;  %v430_v2 = vld [vmem:[%s582_s1 + $0x8] sm:$0xff]   ;;  %v431_v3 = vld [vmem:[%s582_s1 + $0x10] sm:$0xff]   ;;  %v455_v24 = vmov 0   ;;  %vm285_vm3 = vcmask 654336   ;;  %v222_v43 = vlaneseq  ;;  %vm344_vm4 = vcmask 31744  }
   0x2   :  { %414 = vmatprep.subr.bf16.mxu1 %v453_v0  ;;  %420 = vmatprep.mubr.msk.bf16.mxu1 %vm454_vm0, %v453_v0  ;;  %v435_v4 = vld [vmem:[%s583_s3] sm:$0xff]   ;;  %v432_v5 = vld [vmem:[%s582_s1 + $0x18] sm:$0xff]   ;;  %v434_v7 = vld [vmem:[%s582_s1 + $0x28] sm:$0xff]   ;;  %vm354_vm5 = vcmask 949248   ;;  %vm357_vm6 = vcmask 945152  }
   0x3   :  { %399 = vmatpush3.bf16.msra.mxu0 %v429_v1  ;;  %415 = vmatpush3.bf16.msra.mxu1 %v435_v4  ;;  %v433_v6 = vld [vmem:[%s582_s1 + $0x20] sm:$0xff]   ;;  %v28_v9 = vld [vmem:[%s584_s0 + $0x8] sm:$0xf]  ;;  %v437_v12 = vld [vmem:[%s583_s3 + $0x10] sm:$0xff]   ;;  %v223_v44 = vshrl.u32 %v222_v43, 7 }
   0x4   :  { %400 = vmatprep.subr.bf16.mxu0 %v453_v0  ;;  %416 = vmatprep.subr.bf16.mxu1 %v453_v0  ;;  %v27_v8 = vld [vmem:[%s584_s0] sm:$0xff]  ;;  %v436_v11 = vld [vmem:[%s583_s3 + $0x8] sm:$0xff]   ;;  %v443_v26 = vld [vmem:[%s586_s5 + $0x14] ss:$8 sps:$4 sm:$0xff]  }
   0x5   :  { %v29_v10 = vpack.c.bf16 %v28_v9, %v27_v8  ;;  %v363_v13 = vld [vmem:[%s585_s2] ss:$0 sm:$0xff]  ;;  %v440_v25 = vld [vmem:[%s586_s5 + $0x4] ss:$8 sps:$4 sm:$0xff]   ;;  %v441_v27 = vld [vmem:[%s586_s5 + $0x10] ss:$8 sps:$4 sm:$0xff]  }
   0x6   :  { %v438_v23 = vld [vmem:[%s586_s5] ss:$8 sps:$4 sm:$0xff]   ;;  %v446_v28 = vld [vmem:[%s586_s5 + $0x24] ss:$8 sps:$4 sm:$0xff]   ;;  %v449_v30 = vld [vmem:[%s586_s5 + $0x34] ss:$8 sps:$4 sm:$0xff]  }
   0x7   :  { %401 = vmatpush3.bf16.msra.mxu0 %v430_v2  ;;  %417 = vmatpush3.bf16.msra.mxu1 %v436_v11  ;;  %v444_v29 = vld [vmem:[%s586_s5 + $0x20] ss:$8 sps:$4 sm:$0xff]   ;;  %v447_v31 = vld [vmem:[%s586_s5 + $0x30] ss:$8 sps:$4 sm:$0xff]   ;;  %v452_v32 = vld [vmem:[%s586_s5 + $0x44] ss:$8 sps:$4 sm:$0xff]  }
   0x8   :  { %402 = vmatprep.subr.bf16.mxu0 %v453_v0  ;;  %418 = vmatprep.subr.bf16.mxu1 %v453_v0  ;;  %v450_v33 = vld [vmem:[%s586_s5 + $0x40] ss:$8 sps:$4 sm:$0xff]   ;;  %v224_v45 = vsub.s32 0, %v223_v44  ;;  %v228_v47 = vsub.s32 1, %v223_v44 }
   0x9   :  { %v371_v34 = vld [vmem:[%s587_s4] ss:$0 sm:$0xff]  ;;  %s457_s4 = smov 4  }
   0xa   :  { %v220_v46 = vld [vmem:[%s588_s6] sm:$0x3] }
   0xb   :  { %403 = vmatpush3.bf16.msra.mxu0 %v431_v3  ;;  %419 = vmatpush3.bf16.msra.mxu1 %v437_v12  ;;  %v225_v48 = vrot.slane %v220_v46, %v224_v45  ;;  %v229_v49 = vrot.slane %v220_v46, %v228_v47 }
   0xc   :  { %404 = vmatprep.subr.bf16.mxu0 %v453_v0  ;;  %289 = vmatprep.subr.bf16.mxu1 %v440_v25 }
   0xf   :  { %405 = vmatpush3.bf16.msra.mxu0 %v432_v5 }
  0x10   :  { %406 = vmatprep.subr.bf16.mxu0 %v453_v0 }
  0x13   :  { %407 = vmatpush3.bf16.msra.mxu0 %v433_v6 }
  0x14   :  { %408 = vmatprep.subr.bf16.mxu0 %v453_v0 }
  0x17   :  { %409 = vmatpush3.bf16.msra.mxu0 %v434_v7 }
  0x1a   :  { %411 = vmatmul.mubr.msk.bf16.vlgmr.msra.gmra.mrb[0].mxu0 %vm85_vm1, %v29_v10 }
  0xed   :  { %v123_v14 = vpop.f32.mrb[0].mxu0 }
  0xee   :  { %v124_v15 = vadd.f32 %v363_v13, %v123_v14  ;;  %v412_v16 = vpop.f32.mrb[1].mxu0 }
  0xef   :  { %v126_v17 = vpop.f32.mrb[2].mxu0 }
  0xf0   :  { %v127_v18 = vadd.f32 %v363_v13, %v126_v17  ;;  %v413_v19 = vpop.f32.mrb[3].mxu0  ;;  %v130_v20 = vmax.f32 %v124_v15, 0.0 }
  0xf2   :  { %v131_v21 = vmax.f32 %v127_v18, 0.0 }
  0xf4   :  { %v132_v22 = vpack.c.bf16 %v131_v21, %v130_v20 }
  0xf6   :  { %421 = vmatmul.mubr.msk.bf16.vlgmr.msra.gmra.mrb[0].mxu1 %vm164_vm2, %v132_v22 }
  0xf7   :  { %321 = vmatprep.mubr.bf16.mxu1 %v455_v24  ;;  %290 = vmatpush1.bf16.msra.mxu1 %v438_v23 }
  0xf8   :  { %291 = vmatprep.subr.bf16.mxu1 %v443_v26 }
  0xfb   :  { %292 = vmatpush1.bf16.msra.mxu1 %v441_v27 }
  0xfc   :  { %293 = vmatprep.subr.bf16.mxu1 %v446_v28 }
  0xff   :  { %294 = vmatpush1.bf16.msra.mxu1 %v444_v29 }
 0x100   :  { %295 = vmatprep.subr.bf16.mxu1 %v449_v30 }
 0x103   :  { %296 = vmatpush1.bf16.msra.mxu1 %v447_v31 }
 0x104   :  { %297 = vmatprep.subr.bf16.mxu1 %v452_v32 }
 0x107   :  { %298 = vmatpush1.bf16.msra.mxu1 %v450_v33 }
 0x1c9   :  { %v202_v35 = vpop.f32.mrb[0].mxu1 }
 0x1ca   :  { %v422_v36 = vpop.f32.mrb[1].mxu1  ;;  %v203_v38 = vadd.f32 %v371_v34, %v202_v35 }
 0x1cb   :  { %v205_v37 = vpop.f32.mrb[2].mxu1 }
 0x1cc   :  { %v206_v39 = vadd.f32 %v371_v34, %v205_v37  ;;  %v423_v40 = vpop.f32.mrb[3].mxu1 }
 0x1ce   :  { %v209_v41 = vpack.c.bf16 %v206_v39, %v203_v38 }
 0x1d0   :  { %233 = vrot.lane.b32.xlu0 %v209_v41, %s456_s20 }
 0x242   :  { %v234_v42 = vpop.permute.xlu0 %233 }
 0x243   :  { %386 = vmatmul.mubr.msk.bf16.vlgmr.msra.gmra.mrb[4].mxu1 %vm285_vm3, %v234_v42 }
 0x316   :  { %v323_v50 = vpop.f32.mrb[4].mxu1 }
 0x317   :  { %v324_v51 = vadd.f32 %v323_v50, %v225_v48  ;;  %v325_v52 = vpop.f32.mrb[5].mxu1 }
 0x318   :  { %v326_v53 = vadd.f32 %v325_v52, %v229_v49  ;;  %v327_v54 = vpop.f32.mrb[6].mxu1 }
 0x319   :  { %v329_v55 = vpop.f32.mrb[7].mxu1  ;;  %336 = vrot.lane.b32.xlu0 %v324_v51, %s457_s4  ;;  %v328_v57 = vadd.f32 %v327_v54, %v225_v48 }
 0x31a   :  { %v330_v56 = vadd.f32 %v329_v55, %v229_v49  ;;  %338 = vrot.lane.b32.xlu1 %v326_v53, %s457_s4 }
 0x31d   :  { %342 = vrot.lane.b32.xlu0 %v330_v56, %s457_s4 }
 0x31e   :  { %340 = vrot.lane.b32.xlu1 %v328_v57, %s457_s4 }
 0x38b   :  { %v337_v58 = vpop.permute.xlu0 %336 }
 0x38c   :  { %v351_v59 = vsel %vm344_vm4, %v203_v38, %v337_v58  ;;  %v339_v60 = vpop.permute.xlu1 %338 }
 0x38d   :  { %353 = vst [vmem:[%s589_s7] sm:$0xff] %v351_v59  ;;  %v345_v61 = vsel %vm344_vm4, %v337_v58, %v339_v60 }
 0x38e   :  { %355 = vst.msk [vmem:[%s589_s7 + $0x8] sm:$0xff] %vm354_vm5, %v345_v61 }
 0x38f   :  { %v343_v62 = vpop.permute.xlu0 %342 }
 0x390   :  { %v341_v63 = vpop.permute.xlu1 %340 }
 0x391   :  { %v346_v0 = vsel %vm344_vm4, %v341_v63, %v343_v62  ;;  %v352_v1 = vsel %vm344_vm4, %v206_v39, %v341_v63 }
 0x392   :  { %356 = vst [vmem:[%s589_s7 + $0x10] sm:$0xf] %v352_v1  ;;  %358 = vst.msk [vmem:[%s589_s7 + $0x18] sm:$0xf] %vm357_vm6, %v346_v0 }

// kernel: graph_model_forward.14
= control target key start
LH: loop header
LB: loop body
LE: loop exit
PB: predicated region body
PF: predicated region fallthrough
CT: control target
= control target key end

     0   :  { %s679_s18 = smov 0   ;;  %s735_s0 = inlined_call_operand.vmem [shape: f32[2,6,96], index: 0, kind: input, shape index: {}]   ;;  %s736_s1 = inlined_call_operand.vmem [shape: f32[2,6,1], index: 1, kind: input, shape index: {}]   ;;  %s737_s2 = inlined_call_operand.vmem [shape: f32[2,1,6], index: 2, kind: input, shape index: {}]   ;;  %s738_s3 = inlined_call_operand.vmem [shape: bf16[96,96], index: 3, kind: input, shape index: {}]   ;;  %s739_s4 = inlined_call_operand.vmem [shape: f32[1,96], index: 4, kind: input, shape index: {}]   ;;  %s740_s5 = inlined_call_operand.vmem [shape: f32[2,6,96], index: 5, kind: output, shape index: {}]  }
   0x1 LB: > { %s554_s19 = sadd.s32 4294967295, %s644_s18   ;;  %p558_p0 = scmp.ge.s32.totalorder %s644_s18, 1  ;;  %s644_s18 = sphi %s679_s18, %s15_s18  }
   0x2   : > { %p203_p1 = scmp.lt.s32.totalorder %s644_s18, 3 }
   0x4   : > { %p204_p2 = pnand %p558_p0, %p203_p1 }
   0x5   : > { %v626_v0 = vld [vmem:[%s738_s3] sm:$0xff] (!%p204_p2)   ;;  %v646_v1 = vmov (!%p204_p2), 0.0   ;;  %v627_v2 = vld [vmem:[%s738_s3 + $0x8] sm:$0xff] (!%p204_p2)   ;;  %vm647_vm0 = vmmov (!%p204_p2), 0   ;;  %p236_p3 = scmp.lt.s32.totalorder (!%p204_p2), %s554_s19, 1  ;;  %v628_v3 = vld [vmem:[%s738_s3 + $0x10] sm:$0xff] (!%p204_p2)  }
   0x6   : > { %207 = sbr.rel (%p204_p2) target bundleno = 1004 (0x3ec), region = 40  ;;  %586 = vmatprep.subr.bf16.mxu0 (!%p204_p2), %v646_v1  ;;  %602 = vmatprep.subr.bf16.mxu1 (!%p204_p2), %v646_v1  ;;  %v648_v4 = vmov (!%p204_p2), 0   ;;  %v629_v6 = vld [vmem:[%s738_s3 + $0x18] sm:$0xff] (!%p204_p2)   ;;  %v630_v7 = vld [vmem:[%s738_s3 + $0x20] sm:$0xff] (!%p204_p2)   ;;  %v631_v8 = vld [vmem:[%s738_s3 + $0x28] sm:$0xff] (!%p204_p2)   ;;  %vm311_vm1 = vcmask (!%p204_p2), 785408  }
   0x7   : > { %587 = vmatpush3.bf16.msra.mxu0 (!%p204_p2), %v626_v0  ;;  %598 = vmatprep.mubr.msk.bf16.mxu0 (!%p204_p2), %vm647_vm0, %v646_v1  ;;  %v562_v15 = vld [vmem:[%s739_s4] ss:$0 sm:$0xff] (!%p204_p2)  ;;  %vm417_vm2 = vcmask (!%p204_p2), 46080   ;;  %vm435_vm3 = vcmask (!%p204_p2), 1042432   ;;  %vm431_vm4 = vcmask (!%p204_p2), 48128   ;;  %vm478_vm5 = vcmask (!%p204_p2), 783360  }
   0x8   : > { %588 = vmatprep.subr.bf16.mxu0 (!%p204_p2), %v646_v1  ;;  %604 = vmatprep.mubr.msk.bf16.mxu1 (!%p204_p2), %vm647_vm0, %v646_v1 }
   0x9   : > { %625 = vset.pattern.permute.xlu0 (!%p204_p2), %v648_v4 }
   0xb   : > { %589 = vmatpush3.bf16.msra.mxu0 (!%p204_p2), %v627_v2 }
   0xc   : > { %590 = vmatprep.subr.bf16.mxu0 (!%p204_p2), %v646_v1 }
   0xd   : > { %s742_s19 = smov (!%p236_p3, %s554_s19), 1 }
   0xe   : > { %s701_s26 = sshll.u32 %s742_s19, 3  ;;  %s246_s20 = scalar_lea.vmem %s737_s2, %s742_s19 }
   0xf   : > { %s243_s29 = scalar_lea.vmem %s736_s1, %s701_s26  ;;  %591 = vmatpush3.bf16.msra.mxu0 %v628_v3  ;;  %s239_s11 = scalar_lea.vmem %s735_s0, %s701_s26  ;;  %v571_v22 = vld [vmem:[%s246_s20] ss:$0 sm:$0xff] }
  0x10   : > { %v253_v5 = vld [vmem:[%s243_s29] sm:$0x3f]  ;;  %592 = vmatprep.subr.bf16.mxu0 %v646_v1  ;;  %s250_s22 = scalar_lea.vmem %s740_s5, %s701_s26 }
  0x11   : > { %357 = vperm.xlu0 %625, %v253_v5   ;;  %v252_v9 = vld [vmem:[%s239_s11] sm:$0x3f] }
  0x12   : > { %v255_v10 = vpack.c.bf16 %v252_v9, %v252_v9 }
  0x13   : > { %593 = vmatpush3.bf16.msra.mxu0 %v629_v6 }
  0x14   : > { %594 = vmatprep.subr.bf16.mxu0 %v646_v1  ;;  %v436_v36 = vsel %vm435_vm3, %v255_v10, 0 }
  0x17   : > { %595 = vmatpush3.bf16.msra.mxu0 %v630_v7 }
  0x18   : > { %596 = vmatprep.subr.bf16.mxu0 %v646_v1 }
  0x1b   : > { %597 = vmatpush3.bf16.msra.mxu0 %v631_v8 }
  0x1e   : > { %599 = vmatmul.mubr.msk.bf16.vlgmr.msra.gmra.mrb[0].mxu0 %vm311_vm1, %v255_v10 }
  0x90   : > { %v358_v11 = vpop.permute.xlu0 %357 }
  0x91   : > { %v360_v12 = vmul.f32 %v358_v11, %v252_v9 }
  0x93   : > { %v362_v13 = vpack.c.bf16 %v360_v12, %v360_v12 }
  0x95   : > { %v367_v14 = vsel %vm311_vm1, %v362_v13, 0 }
  0x96   : > { %603 = vmatpush3.bf16.xpose.msra.mxu1 %v367_v14 }
  0x97   : > { %608 = vmatprep.subr.bf16.mxu1 %v646_v1 }
  0xf1   : > { %v349_v16 = vpop.f32.mrb[0].mxu0 }
  0xf2   : > { %v350_v17 = vadd.f32 %v562_v15, %v349_v16  ;;  %v600_v18 = vpop.f32.mrb[1].mxu0 }
  0xf3   : > { %v352_v19 = vpop.f32.mrb[2].mxu0 }
  0xf4   : > { %v361_v20 = vpack.c.bf16 %v350_v17, %v350_v17  ;;  %v601_v21 = vpop.f32.mrb[3].mxu0 }
  0xf6   : > { %605 = vmatmul.mubr.msk.bf16.vlgmr.msra.gmra.mrb[0].mxu1 %vm311_vm1, %v361_v20 }
  0xf7   : > { %610 = vmatprep.mubr.msk.bf16.mxu1 %vm647_vm0, %v646_v1  ;;  %609 = vmatpush3.bf16.msra.mxu1 %v436_v36 }
 0x1c9   : > { %v403_v23 = vpop.f32.mrb[0].mxu1 }
 0x1ca   : > { %v415_v24 = vmul.f32 %v571_v22, %v403_v23  ;;  %v606_v25 = vpop.f32.mrb[1].mxu1 }
 0x1cb   : > { %v406_v26 = vpop.f32.mrb[2].mxu1 }
 0x1cc   : > { %632 = vtanh.f32 %v415_v24  ;;  %v607_v27 = vpop.f32.mrb[3].mxu1 }
 0x1d6   : > { %v633_v28 = vpop.eup %632 }
 0x1d7   : > { %v418_v29 = vsel %vm417_vm2, %v633_v28, -inf }
 0x1d8   : > { %419 = vmax.xlane.f32.xlu0 %v418_v29 }
 0x265   : > { %v420_v30 = vpop.xlane.xlu0 %419 }
 0x266   : > { %v421_v31 = vsub.f32 %v633_v28, %v420_v30 }
 0x268   : > { %v422_v32 = vmul.f32 1.442695, %v421_v31 }
 0x26a   : > { %634 = vpow2.f32 %v422_v32 }
 0x274   : > { %v635_v33 = vpop.eup %634 }
 0x275   : > { %v424_v34 = vmul.f32 %v635_v33, %v571_v22 }
 0x277   : > { %v425_v35 = vsel %vm417_vm2, %v424_v34, 0.0 }
 0x278   : > { %426 = vadd.xlane.f32.xlu1 %v425_v35 }
 0x305   : > { %v427_v37 = vpop.xlane.xlu1 %426 }
 0x306   : > { %636 = vrcp.f32 %v427_v37 }
 0x310   : > { %v637_v38 = vpop.eup %636 }
 0x311   : > { %v429_v39 = vmul.f32 %v637_v38, %v424_v34 }
 0x313   : > { %v430_v40 = vpack.c.bf16 %v429_v39, %v429_v39 }
 0x315   : > { %611 = vmatmul.mubr.msk.bf16.vlgmr.msra.gmra.mrb[4].mxu1 %vm431_vm4, %v430_v40 }
 0x3e8   : > { %v472_v41 = vpop.f32.mrb[4].mxu1 }
 0x3e9   : > { %479 = vst.msk [vmem:[%s250_s22] sm:$0x3f] %vm478_vm5, %v472_v41  ;;  %v612_v42 = vpop.f32.mrb[5].mxu1 }
 0x3ea   : > { %v475_v43 = vpop.f32.mrb[6].mxu1 }
 0x3eb   : > { %v613_v44 = vpop.f32.mrb[7].mxu1 }
 0x3ec PF: > { %s15_s18 = sadd.s32 1, %s644_s18  }
 0x3ed   : > { %p12_p4 = scmp.ge.s32.totalorder %s15_s18, 4  }
 0x3ef   :  { %14 = sbr.rel (!%p12_p4) target bundleno = 1 (0x1), region = 76 }

// kernel: graph_model_forward.17
= control target key start
LH: loop header
LB: loop body
LE: loop exit
PB: predicated region body
PF: predicated region fallthrough
CT: control target
= control target key end

     0   :  { %v293_v0 = vmov 0.0   ;;  %vm294_vm0 = vmmov 0   ;;  %vm71_vm1 = vcmask 654336   ;;  %s378_s1 = inlined_call_operand.vmem [shape: bf16[80,80], index: 1, kind: input, shape index: {}]   ;;  %s379_s3 = inlined_call_operand.vmem [shape: bf16[80,48], index: 3, kind: input, shape index: {}]   ;;  %s380_s0 = inlined_call_operand.vmem [shape: f32[12,80], index: 0, kind: input, shape index: {}]   ;;  %s381_s2 = inlined_call_operand.vmem [shape: f32[1,80], index: 2, kind: input, shape index: {}]   ;;  %s382_s4 = inlined_call_operand.vmem [shape: f32[1,48], index: 4, kind: input, shape index: {}]   ;;  %s383_s5 = inlined_call_operand.vmem [shape: f32[12,128], index: 5, kind: output, shape index: {}]  }
   0x1   :  { %252 = vmatprep.subr.bf16.mxu0 %v293_v0  ;;  %v283_v1 = vld [vmem:[%s378_s1] sm:$0xff]   ;;  %262 = vmatprep.mubr.msk.bf16.mxu0 %vm294_vm0, %v293_v0  ;;  %v284_v2 = vld [vmem:[%s378_s1 + $0x8] sm:$0xff]   ;;  %v285_v3 = vld [vmem:[%s378_s1 + $0x10] sm:$0xff]  }
   0x2   :  { %266 = vmatprep.subr.bf16.mxu1 %v293_v0  ;;  %276 = vmatprep.mubr.msk.bf16.mxu1 %vm294_vm0, %v293_v0  ;;  %v288_v4 = vld [vmem:[%s379_s3] sm:$0xff]   ;;  %v289_v5 = vld [vmem:[%s379_s3 + $0x8] sm:$0xff]   ;;  %v286_v6 = vld [vmem:[%s378_s1 + $0x18] sm:$0xff]  }
   0x3   :  { %253 = vmatpush3.bf16.msra.mxu0 %v283_v1  ;;  %267 = vmatpush3.bf16.msra.mxu1 %v288_v4  ;;  %v290_v7 = vld [vmem:[%s379_s3 + $0x10] sm:$0xff]   ;;  %v287_v8 = vld [vmem:[%s378_s1 + $0x20] sm:$0xff]   ;;  %v22_v10 = vld [vmem:[%s380_s0 + $0x8] sm:$0xf] }
   0x4   :  { %254 = vmatprep.subr.bf16.mxu0 %v293_v0  ;;  %268 = vmatprep.subr.bf16.mxu1 %v293_v0  ;;  %v21_v9 = vld [vmem:[%s380_s0] sm:$0xff]  ;;  %v291_v12 = vld [vmem:[%s379_s3 + $0x18] sm:$0xff]  }
   0x5   :  { %v23_v11 = vpack.c.bf16 %v22_v10, %v21_v9  ;;  %v292_v13 = vld [vmem:[%s379_s3 + $0x20] sm:$0xff]  }
   0x6   :  { %v226_v14 = vld [vmem:[%s381_s2] ss:$0 sm:$0xff]  ;;  %s295_s2 = smov 80  }
   0x7   :  { %255 = vmatpush3.bf16.msra.mxu0 %v284_v2  ;;  %269 = vmatpush3.bf16.msra.mxu1 %v289_v5  ;;  %v233_v22 = vld [vmem:[%s382_s4] ss:$0 sm:$0xff] }
   0x8   :  { %256 = vmatprep.subr.bf16.mxu0 %v293_v0  ;;  %270 = vmatprep.subr.bf16.mxu1 %v293_v0 }
   0xb   :  { %257 = vmatpush3.bf16.msra.mxu0 %v285_v3  ;;  %271 = vmatpush3.bf16.msra.mxu1 %v290_v7 }
   0xc   :  { %258 = vmatprep.subr.bf16.mxu0 %v293_v0  ;;  %272 = vmatprep.subr.bf16.mxu1 %v293_v0 }
   0xf   :  { %259 = vmatpush3.bf16.msra.mxu0 %v286_v6  ;;  %273 = vmatpush3.bf16.msra.mxu1 %v291_v12 }
  0x10   :  { %260 = vmatprep.subr.bf16.mxu0 %v293_v0  ;;  %274 = vmatprep.subr.bf16.mxu1 %v293_v0 }
  0x13   :  { %261 = vmatpush3.bf16.msra.mxu0 %v287_v8  ;;  %275 = vmatpush3.bf16.msra.mxu1 %v292_v13 }
  0x16   :  { %263 = vmatmul.mubr.msk.bf16.vlgmr.msra.gmra.mrb[0].mxu0 %vm71_vm1, %v23_v11 }
  0xe9   :  { %v109_v15 = vpop.f32.mrb[0].mxu0 }
  0xea   :  { %v264_v16 = vpop.f32.mrb[1].mxu0  ;;  %v110_v18 = vadd.f32 %v226_v14, %v109_v15 }
  0xeb   :  { %v112_v17 = vpop.f32.mrb[2].mxu0 }
  0xec   :  { %v113_v19 = vadd.f32 %v226_v14, %v112_v17  ;;  %v265_v20 = vpop.f32.mrb[3].mxu0 }
  0xee   :  { %v116_v21 = vpack.c.bf16 %v113_v19, %v110_v18 }
  0xf0   :  { %277 = vmatmul.mubr.msk.bf16.vlgmr.msra.gmra.mrb[0].mxu1 %vm71_vm1, %v116_v21 }
 0x1c3   :  { %v201_v23 = vpop.f32.mrb[0].mxu1 }
 0x1c4   :  { %v202_v24 = vadd.f32 %v233_v22, %v201_v23  ;;  %v278_v25 = vpop.f32.mrb[1].mxu1 }
 0x1c5   :  { %v204_v26 = vpop.f32.mrb[2].mxu1 }
 0x1c6   :  { %v208_v27 = vmax.f32 %v202_v24, 0.0  ;;  %v205_v28 = vadd.f32 %v233_v22, %v204_v26  ;;  %v279_v29 = vpop.f32.mrb[3].mxu1 }
 0x1c8   :  { %212 = vrot.lane.b32.xlu0 %v208_v27, %s295_s2  ;;  %v209_v30 = vmax.f32 %v205_v28, 0.0 }
 0x1cc   :  { %214 = vrot.lane.b32.xlu0 %v209_v30, %s295_s2 }
 0x23a   :  { %v213_v31 = vpop.permute.xlu0 %212 }
 0x23b   :  { %v218_v32 = vsel %vm71_vm1, %v110_v18, %v213_v31 }
 0x23c   :  { %220 = vst [vmem:[%s383_s5] sm:$0xff] %v218_v32 }
 0x23e   :  { %v215_v33 = vpop.permute.xlu0 %214 }
 0x23f   :  { %v219_v34 = vsel %vm71_vm1, %v113_v19, %v215_v33 }
 0x240   :  { %221 = vst [vmem:[%s383_s5 + $0x8] sm:$0xf] %v219_v34 }

// kernel: graph_model_forward.16
= control target key start
LH: loop header
LB: loop body
LE: loop exit
PB: predicated region body
PF: predicated region fallthrough
CT: control target
= control target key end

     0   :  { %vm255_vm0 = vcmask 80896   ;;  %v6458_v0 = vmov 0.0   ;;  %vm6459_vm1 = vmmov 0   ;;  %vm2464_vm2 = vcmask 9216   ;;  %s8064_s1 = inlined_call_operand.vmem [shape: f32[48,2,10], index: 1, kind: input, shape index: {}]   ;;  %s8065_s0 = inlined_call_operand.vmem [shape: f32[48,2,10], index: 0, kind: input, shape index: {}]   ;;  %s8066_s2 = inlined_call_operand.vmem [shape: f32[48,2,10], index: 2, kind: input, shape index: {}]   ;;  %s8067_s3 = inlined_call_operand.vmem [shape: f32[48,2,10], index: 3, kind: output, shape index: {}]  }
   0x1   :  { %5688 = vmatprep.subr.bf16.mxu0 %v6458_v0  ;;  %5694 = vmatprep.subr.bf16.mxu1 %v6458_v0  ;;  %v159_v1 = vld [vmem:[%s8064_s1] sm:$0x3]  ;;  %v160_v2 = vld [vmem:[%s8064_s1 + $0x2] sm:$0x3]  ;;  %v161_v7 = vld [vmem:[%s8064_s1 + $0x4] sm:$0x3] }
   0x2   :  { %v15_v3 = vld [vmem:[%s8065_s0] sm:$0x3]  ;;  %v207_v4 = vpack.c.bf16 %v159_v1, %v159_v1  ;;  %v208_v5 = vpack.c.bf16 %v160_v2, %v160_v2  ;;  %5690 = vmatprep.mubr.msk.bf16.mxu0 %vm6459_vm1, %v6458_v0  ;;  %5696 = vmatprep.mubr.msk.bf16.mxu1 %vm6459_vm1, %v6458_v0  ;;  %v16_v6 = vld [vmem:[%s8065_s0 + $0x2] sm:$0x3]  ;;  %v162_v8 = vld [vmem:[%s8064_s1 + $0x6] sm:$0x3]  ;;  %v209_v13 = vpack.c.bf16 %v161_v7, %v161_v7 }
   0x3   :  { %v63_v11 = vmul.f32 0.31622776, %v15_v3  ;;  %v64_v12 = vmul.f32 0.31622776, %v16_v6  ;;  %v210_v14 = vpack.c.bf16 %v162_v8, %v162_v8  ;;  %v17_v17 = vld [vmem:[%s8065_s0 + $0x4] sm:$0x3] }
   0x4   :  { %v260_v9 = vsel %vm255_vm0, %v207_v4, 0  ;;  %v306_v10 = vsel %vm255_vm0, %v208_v5, 0  ;;  %v18_v18 = vld [vmem:[%s8065_s0 + $0x6] sm:$0x3]  ;;  %v352_v19 = vsel %vm255_vm0, %v209_v13, 0  ;;  %vm3141_vm3 = vcmask 1040384  }
   0x5   :  { %5689 = vmatpush3.bf16.xpose.msra.mxu0 %v260_v9  ;;  %5695 = vmatpush3.bf16.xpose.msra.mxu1 %v306_v10  ;;  %v111_v15 = vpack.c.bf16 %v63_v11, %v63_v11  ;;  %v112_v16 = vpack.c.bf16 %v64_v12, %v64_v12  ;;  %v398_v20 = vsel %vm255_vm0, %v210_v14, 0  ;;  %v163_v21 = vld [vmem:[%s8064_s1 + $0x8] sm:$0x3]  ;;  %v164_v22 = vld [vmem:[%s8064_s1 + $0xa] sm:$0x3]  ;;  %vm3137_vm4 = vcmask 15360  }
   0x6   :  { %5700 = vmatprep.subr.bf16.mxu0 %v6458_v0  ;;  %5706 = vmatprep.subr.bf16.mxu1 %v6458_v0  ;;  %v65_v23 = vmul.f32 0.31622776, %v17_v17  ;;  %v66_v24 = vmul.f32 0.31622776, %v18_v18  ;;  %v211_v25 = vpack.c.bf16 %v163_v21, %v163_v21  ;;  %v212_v26 = vpack.c.bf16 %v164_v22, %v164_v22  ;;  %v19_v29 = vld [vmem:[%s8065_s0 + $0x8] sm:$0x3] }
   0x7   :  { %v20_v30 = vld [vmem:[%s8065_s0 + $0xa] sm:$0x3]  ;;  %v165_v33 = vld [vmem:[%s8064_s1 + $0xc] sm:$0x3]  ;;  %v166_v34 = vld [vmem:[%s8064_s1 + $0xe] sm:$0x3] }
   0x8   :  { %v113_v27 = vpack.c.bf16 %v65_v23, %v65_v23  ;;  %v114_v28 = vpack.c.bf16 %v66_v24, %v66_v24  ;;  %v444_v31 = vsel %vm255_vm0, %v211_v25, 0  ;;  %v490_v32 = vsel %vm255_vm0, %v212_v26, 0  ;;  %v21_v41 = vld [vmem:[%s8065_s0 + $0xc] sm:$0x3]  ;;  %v22_v42 = vld [vmem:[%s8065_s0 + $0xe] sm:$0x3] }
   0x9   :  { %v67_v35 = vmul.f32 0.31622776, %v19_v29  ;;  %v68_v36 = vmul.f32 0.31622776, %v20_v30  ;;  %v213_v37 = vpack.c.bf16 %v165_v33, %v165_v33  ;;  %v214_v38 = vpack.c.bf16 %v166_v34, %v166_v34  ;;  %v167_v45 = vld [vmem:[%s8064_s1 + $0x10] sm:$0x3] }
   0xa   :  { %v168_v46 = vld [vmem:[%s8064_s1 + $0x12] sm:$0x3]  ;;  %v69_v47 = vmul.f32 0.31622776, %v21_v41  ;;  %v70_v48 = vmul.f32 0.31622776, %v22_v42  ;;  %v215_v49 = vpack.c.bf16 %v167_v45, %v167_v45 }
   0xb   :  { %v115_v39 = vpack.c.bf16 %v67_v35, %v67_v35  ;;  %v116_v40 = vpack.c.bf16 %v68_v36, %v68_v36  ;;  %v536_v43 = vsel %vm255_vm0, %v213_v37, 0  ;;  %v582_v44 = vsel %vm255_vm0, %v214_v38, 0  ;;  %v23_v53 = vld [vmem:[%s8065_s0 + $0x10] sm:$0x3]  ;;  %v24_v54 = vld [vmem:[%s8065_s0 + $0x12] sm:$0x3] }
   0xc   :  { %5691 = vmatmul.mubr.msk.bf16.vlgmr.msra.gmra.mrb[0].mxu0 %vm255_vm0, %v111_v15  ;;  %5697 = vmatmul.mubr.msk.bf16.vlgmr.msra.gmra.mrb[0].mxu1 %vm255_vm0, %v112_v16  ;;  %v216_v50 = vpack.c.bf16 %v168_v46, %v168_v46  ;;  %v117_v51 = vpack.c.bf16 %v69_v47, %v69_v47  ;;  %v118_v52 = vpack.c.bf16 %v70_v48, %v70_v48  ;;  %v628_v55 = vsel %vm255_vm0, %v215_v49, 0  ;;  %v169_v57 = vld [vmem:[%s8064_s1 + $0x14] sm:$0x3]  ;;  %v170_v58 = vld [vmem:[%s8064_s1 + $0x16] sm:$0x3] }
   0xd   :  { %5701 = vmatpush3.bf16.xpose.msra.mxu0 %v352_v19  ;;  %5707 = vmatpush3.bf16.xpose.msra.mxu1 %v398_v20  ;;  %v71_v59 = vmul.f32 0.31622776, %v23_v53  ;;  %v72_v60 = vmul.f32 0.31622776, %v24_v54  ;;  %v217_v61 = vpack.c.bf16 %v169_v57, %v169_v57  ;;  %v218_v62 = vpack.c.bf16 %v170_v58, %v170_v58  ;;  %v25_v2 = vld [vmem:[%s8065_s0 + $0x14] sm:$0x3] }
   0xe   :  { %5702 = vmatprep.mubr.msk.bf16.mxu0 %vm6459_vm1, %v6458_v0  ;;  %5708 = vmatprep.mubr.msk.bf16.mxu1 %vm6459_vm1, %v6458_v0  ;;  %v674_v56 = vsel %vm255_vm0, %v216_v50, 0  ;;  %v26_v3 = vld [vmem:[%s8065_s0 + $0x16] sm:$0x3]  ;;  %v171_v6 = vld [vmem:[%s8064_s1 + $0x18] sm:$0x3]  ;;  %vm5347_vm5 = vcmask 74752  }
   0xf   :  { %5712 = vmatprep.subr.bf16.mxu0 %v6458_v0  ;;  %5718 = vmatprep.subr.bf16.mxu1 %v6458_v0  ;;  %v119_v63 = vpack.c.bf16 %v71_v59, %v71_v59  ;;  %v120_v1 = vpack.c.bf16 %v72_v60, %v72_v60  ;;  %v720_v4 = vsel %vm255_vm0, %v217_v61, 0  ;;  %v766_v5 = vsel %vm255_vm0, %v218_v62, 0  ;;  %v172_v7 = vld [vmem:[%s8064_s1 + $0x1a] sm:$0x3]  ;;  %v27_v14 = vld [vmem:[%s8065_s0 + $0x18] sm:$0x3] }
  0x10   :  { %v73_v8 = vmul.f32 0.31622776, %v25_v2  ;;  %v74_v9 = vmul.f32 0.31622776, %v26_v3  ;;  %v219_v10 = vpack.c.bf16 %v171_v6, %v171_v6  ;;  %v220_v11 = vpack.c.bf16 %v172_v7, %v172_v7  ;;  %v28_v15 = vld [vmem:[%s8065_s0 + $0x1a] sm:$0x3] }
  0x11   :  { %v173_v18 = vld [vmem:[%s8064_s1 + $0x1c] sm:$0x3]  ;;  %v174_v19 = vld [vmem:[%s8064_s1 + $0x1e] sm:$0x3]  ;;  %v75_v20 = vmul.f32 0.31622776, %v27_v14 }
  0x12   :  { %v121_v12 = vpack.c.bf16 %v73_v8, %v73_v8  ;;  %v122_v13 = vpack.c.bf16 %v74_v9, %v74_v9  ;;  %v812_v16 = vsel %vm255_vm0, %v219_v10, 0  ;;  %v858_v17 = vsel %vm255_vm0, %v220_v11, 0  ;;  %v29_v26 = vld [vmem:[%s8065_s0 + $0x1c] sm:$0x3]  ;;  %v175_v30 = vld [vmem:[%s8064_s1 + $0x20] sm:$0x3] }
  0x13   :  { %v76_v21 = vmul.f32 0.31622776, %v28_v15  ;;  %v221_v22 = vpack.c.bf16 %v173_v18, %v173_v18  ;;  %v222_v23 = vpack.c.bf16 %v174_v19, %v174_v19  ;;  %v123_v24 = vpack.c.bf16 %v75_v20, %v75_v20  ;;  %v31_v38 = vld [vmem:[%s8065_s0 + $0x20] sm:$0x3]  ;;  %v177_v42 = vld [vmem:[%s8064_s1 + $0x24] sm:$0x3] }
  0x14   :  { %5703 = vmatmul.mubr.msk.bf16.vlgmr.msra.gmra.mrb[4].mxu0 %vm255_vm0, %v113_v27  ;;  %5709 = vmatmul.mubr.msk.bf16.vlgmr.msra.gmra.mrb[4].mxu1 %vm255_vm0, %v114_v28  ;;  %v30_v27 = vld [vmem:[%s8065_s0 + $0x1e] sm:$0x3]  ;;  %v223_v34 = vpack.c.bf16 %v175_v30, %v175_v30  ;;  %v225_v46 = vpack.c.bf16 %v177_v42, %v177_v42  ;;  %v33_v50 = vld [vmem:[%s8065_s0 + $0x24] sm:$0x3]  ;;  %v179_v54 = vld [vmem:[%s8064_s1 + $0x28] sm:$0x3] }
  0x15   :  { %5713 = vmatpush3.bf16.xpose.msra.mxu0 %v444_v31  ;;  %5719 = vmatpush3.bf16.xpose.msra.mxu1 %v490_v32  ;;  %v124_v25 = vpack.c.bf16 %v76_v21, %v76_v21  ;;  %v904_v28 = vsel %vm255_vm0, %v221_v22, 0  ;;  %v950_v29 = vsel %vm255_vm0, %v222_v23, 0  ;;  %v176_v31 = vld [vmem:[%s8064_s1 + $0x22] sm:$0x3]  ;;  %v77_v32 = vmul.f32 0.31622776, %v29_v26 }
  0x16   :  { %5714 = vmatprep.mubr.msk.bf16.mxu0 %vm6459_vm1, %v6458_v0  ;;  %5720 = vmatprep.mubr.msk.bf16.mxu1 %vm6459_vm1, %v6458_v0  ;;  %v78_v33 = vmul.f32 0.31622776, %v30_v27  ;;  %v224_v35 = vpack.c.bf16 %v176_v31, %v176_v31  ;;  %v227_v58 = vpack.c.bf16 %v179_v54, %v179_v54  ;;  %v35_v62 = vld [vmem:[%s8065_s0 + $0x28] sm:$0x3]  ;;  %v181_v3 = vld [vmem:[%s8064_s1 + $0x2c] sm:$0x3] }
  0x17   :  { %5724 = vmatprep.subr.bf16.mxu0 %v6458_v0  ;;  %5730 = vmatprep.subr.bf16.mxu1 %v6458_v0  ;;  %v125_v36 = vpack.c.bf16 %v77_v32, %v77_v32  ;;  %v229_v7 = vpack.c.bf16 %v181_v3, %v181_v3  ;;  %v37_v11 = vld [vmem:[%s8065_s0 + $0x2c] sm:$0x3]  ;;  %v183_v15 = vld [vmem:[%s8064_s1 + $0x30] sm:$0x3]  ;;  %v185_v27 = vld [vmem:[%s8064_s1 + $0x34] sm:$0x3] }
  0x18   :  { %v126_v37 = vpack.c.bf16 %v78_v33, %v78_v33  ;;  %v1042_v41 = vsel %vm255_vm0, %v224_v35, 0  ;;  %v231_v19 = vpack.c.bf16 %v183_v15, %v183_v15  ;;  %v39_v23 = vld [vmem:[%s8065_s0 + $0x30] sm:$0x3]  ;;  %v233_v31 = vpack.c.bf16 %v185_v27, %v185_v27  ;;  %v41_v35 = vld [vmem:[%s8065_s0 + $0x34] sm:$0x3] }
  0x1c   :  { %5715 = vmatmul.mubr.msk.bf16.vlgmr.msra.gmra.mrb[8].mxu0 %vm255_vm0, %v115_v39  ;;  %5721 = vmatmul.mubr.msk.bf16.vlgmr.msra.gmra.mrb[8].mxu1 %vm255_vm0, %v116_v40  ;;  %v32_v39 = vld [vmem:[%s8065_s0 + $0x22] sm:$0x3]  ;;  %v996_v40 = vsel %vm255_vm0, %v223_v34, 0 }
  0x1d   :  { %5725 = vmatpush3.bf16.xpose.msra.mxu0 %v536_v43  ;;  %5731 = vmatpush3.bf16.xpose.msra.mxu1 %v582_v44  ;;  %v178_v43 = vld [vmem:[%s8064_s1 + $0x26] sm:$0x3]  ;;  %v79_v44 = vmul.f32 0.31622776, %v31_v38  ;;  %v80_v45 = vmul.f32 0.31622776, %v32_v39 }
  0x1e   :  { %5726 = vmatprep.mubr.msk.bf16.mxu0 %vm6459_vm1, %v6458_v0  ;;  %5732 = vmatprep.mubr.msk.bf16.mxu1 %vm6459_vm1, %v6458_v0  ;;  %v226_v47 = vpack.c.bf16 %v178_v43, %v178_v43  ;;  %v187_v39 = vld [vmem:[%s8064_s1 + $0x38] sm:$0x3] }
  0x1f   :  { %5736 = vmatprep.subr.bf16.mxu0 %v6458_v0  ;;  %5742 = vmatprep.subr.bf16.mxu1 %v6458_v0  ;;  %v127_v48 = vpack.c.bf16 %v79_v44, %v79_v44  ;;  %v128_v49 = vpack.c.bf16 %v80_v45, %v80_v45  ;;  %v235_v43 = vpack.c.bf16 %v187_v39, %v187_v39 }
  0x20   :  { %v1134_v53 = vsel %vm255_vm0, %v226_v47, 0  ;;  %v43_v47 = vld [vmem:[%s8065_s0 + $0x38] sm:$0x3] }
  0x24   :  { %5727 = vmatmul.mubr.msk.bf16.vlgmr.msra.gmra.mrb[12].mxu0 %vm255_vm0, %v117_v51  ;;  %5733 = vmatmul.mubr.msk.bf16.vlgmr.msra.gmra.mrb[12].mxu1 %vm255_vm0, %v118_v52  ;;  %v34_v51 = vld [vmem:[%s8065_s0 + $0x26] sm:$0x3]  ;;  %v1088_v52 = vsel %vm255_vm0, %v225_v46, 0 }
  0x25   :  { %5737 = vmatpush3.bf16.xpose.msra.mxu0 %v628_v55  ;;  %5743 = vmatpush3.bf16.xpose.msra.mxu1 %v674_v56  ;;  %v180_v55 = vld [vmem:[%s8064_s1 + $0x2a] sm:$0x3]  ;;  %v81_v56 = vmul.f32 0.31622776, %v33_v50  ;;  %v82_v57 = vmul.f32 0.31622776, %v34_v51 }
  0x26   :  { %5738 = vmatprep.mubr.msk.bf16.mxu0 %vm6459_vm1, %v6458_v0  ;;  %5744 = vmatprep.mubr.msk.bf16.mxu1 %vm6459_vm1, %v6458_v0  ;;  %v228_v59 = vpack.c.bf16 %v180_v55, %v180_v55  ;;  %v189_v51 = vld [vmem:[%s8064_s1 + $0x3c] sm:$0x3] }
  0x27   :  { %5748 = vmatprep.subr.bf16.mxu0 %v6458_v0  ;;  %5754 = vmatprep.subr.bf16.mxu1 %v6458_v0  ;;  %v129_v60 = vpack.c.bf16 %v81_v56, %v81_v56  ;;  %v130_v61 = vpack.c.bf16 %v82_v57, %v82_v57  ;;  %v237_v55 = vpack.c.bf16 %v189_v51, %v189_v51 }
  0x28   :  { %v1226_v2 = vsel %vm255_vm0, %v228_v59, 0  ;;  %v45_v59 = vld [vmem:[%s8065_s0 + $0x3c] sm:$0x3] }
  0x2c   :  { %5739 = vmatmul.mubr.msk.bf16.vlgmr.msra.gmra.mrb[16].mxu0 %vm255_vm0, %v119_v63  ;;  %5745 = vmatmul.mubr.msk.bf16.vlgmr.msra.gmra.mrb[16].mxu1 %vm255_vm0, %v120_v1  ;;  %v36_v63 = vld [vmem:[%s8065_s0 + $0x2a] sm:$0x3]  ;;  %v1180_v1 = vsel %vm255_vm0, %v227_v58, 0 }
  0x2d   :  { %5749 = vmatpush3.bf16.xpose.msra.mxu0 %v720_v4  ;;  %5755 = vmatpush3.bf16.xpose.msra.mxu1 %v766_v5  ;;  %v182_v4 = vld [vmem:[%s8064_s1 + $0x2e] sm:$0x3]  ;;  %v83_v5 = vmul.f32 0.31622776, %v35_v62  ;;  %v84_v6 = vmul.f32 0.31622776, %v36_v63 }
  0x2e   :  { %5750 = vmatprep.mubr.msk.bf16.mxu0 %vm6459_vm1, %v6458_v0  ;;  %5756 = vmatprep.mubr.msk.bf16.mxu1 %vm6459_vm1, %v6458_v0  ;;  %v230_v8 = vpack.c.bf16 %v182_v4, %v182_v4  ;;  %v191_v63 = vld [vmem:[%s8064_s1 + $0x40] sm:$0x3] }
  0x2f   :  { %5760 = vmatprep.subr.bf16.mxu0 %v6458_v0  ;;  %5766 = vmatprep.subr.bf16.mxu1 %v6458_v0  ;;  %v131_v9 = vpack.c.bf16 %v83_v5, %v83_v5  ;;  %v132_v10 = vpack.c.bf16 %v84_v6, %v84_v6  ;;  %v239_v4 = vpack.c.bf16 %v191_v63, %v191_v63 }
  0x30   :  { %v1318_v14 = vsel %vm255_vm0, %v230_v8, 0  ;;  %v47_v8 = vld [vmem:[%s8065_s0 + $0x40] sm:$0x3] }
  0x34   :  { %5751 = vmatmul.mubr.msk.bf16.vlgmr.msra.gmra.mrb[20].mxu0 %vm255_vm0, %v121_v12  ;;  %5757 = vmatmul.mubr.msk.bf16.vlgmr.msra.gmra.mrb[20].mxu1 %vm255_vm0, %v122_v13  ;;  %v38_v12 = vld [vmem:[%s8065_s0 + $0x2e] sm:$0x3]  ;;  %v1272_v13 = vsel %vm255_vm0, %v229_v7, 0 }
  0x35   :  { %5761 = vmatpush3.bf16.xpose.msra.mxu0 %v812_v16  ;;  %5767 = vmatpush3.bf16.xpose.msra.mxu1 %v858_v17  ;;  %v184_v16 = vld [vmem:[%s8064_s1 + $0x32] sm:$0x3]  ;;  %v85_v17 = vmul.f32 0.31622776, %v37_v11  ;;  %v86_v18 = vmul.f32 0.31622776, %v38_v12 }
  0x36   :  { %5762 = vmatprep.mubr.msk.bf16.mxu0 %vm6459_vm1, %v6458_v0  ;;  %5768 = vmatprep.mubr.msk.bf16.mxu1 %vm6459_vm1, %v6458_v0  ;;  %v232_v20 = vpack.c.bf16 %v184_v16, %v184_v16  ;;  %v193_v12 = vld [vmem:[%s8064_s1 + $0x44] sm:$0x3] }
  0x37   :  { %5772 = vmatprep.subr.bf16.mxu0 %v6458_v0  ;;  %5778 = vmatprep.subr.bf16.mxu1 %v6458_v0  ;;  %v133_v21 = vpack.c.bf16 %v85_v17, %v85_v17  ;;  %v134_v22 = vpack.c.bf16 %v86_v18, %v86_v18  ;;  %v241_v16 = vpack.c.bf16 %v193_v12, %v193_v12 }
  0x38   :  { %v1410_v26 = vsel %vm255_vm0, %v232_v20, 0  ;;  %v49_v20 = vld [vmem:[%s8065_s0 + $0x44] sm:$0x3] }
  0x3c   :  { %5763 = vmatmul.mubr.msk.bf16.vlgmr.msra.gmra.mrb[24].mxu0 %vm255_vm0, %v123_v24  ;;  %5769 = vmatmul.mubr.msk.bf16.vlgmr.msra.gmra.mrb[24].mxu1 %vm255_vm0, %v124_v25  ;;  %v40_v24 = vld [vmem:[%s8065_s0 + $0x32] sm:$0x3]  ;;  %v1364_v25 = vsel %vm255_vm0, %v231_v19, 0 }
  0x3d   :  { %5773 = vmatpush3.bf16.xpose.msra.mxu0 %v904_v28  ;;  %5779 = vmatpush3.bf16.xpose.msra.mxu1 %v950_v29  ;;  %v186_v28 = vld [vmem:[%s8064_s1 + $0x36] sm:$0x3]  ;;  %v87_v29 = vmul.f32 0.31622776, %v39_v23  ;;  %v88_v30 = vmul.f32 0.31622776, %v40_v24 }
  0x3e   :  { %5774 = vmatprep.mubr.msk.bf16.mxu0 %vm6459_vm1, %v6458_v0  ;;  %5780 = vmatprep.mubr.msk.bf16.mxu1 %vm6459_vm1, %v6458_v0  ;;  %v234_v32 = vpack.c.bf16 %v186_v28, %v186_v28  ;;  %v195_v24 = vld [vmem:[%s8064_s1 + $0x48] sm:$0x3] }
  0x3f   :  { %5784 = vmatprep.subr.bf16.mxu0 %v6458_v0  ;;  %5790 = vmatprep.subr.bf16.mxu1 %v6458_v0  ;;  %v135_v33 = vpack.c.bf16 %v87_v29, %v87_v29  ;;  %v136_v34 = vpack.c.bf16 %v88_v30, %v88_v30  ;;  %v243_v28 = vpack.c.bf16 %v195_v24, %v195_v24 }
  0x40   :  { %v1502_v38 = vsel %vm255_vm0, %v234_v32, 0  ;;  %v51_v32 = vld [vmem:[%s8065_s0 + $0x48] sm:$0x3] }
  0x44   :  { %5775 = vmatmul.mubr.msk.bf16.vlgmr.msra.gmra.mrb[28].mxu0 %vm255_vm0, %v125_v36  ;;  %5781 = vmatmul.mubr.msk.bf16.vlgmr.msra.gmra.mrb[28].mxu1 %vm255_vm0, %v126_v37  ;;  %v42_v36 = vld [vmem:[%s8065_s0 + $0x36] sm:$0x3]  ;;  %v1456_v37 = vsel %vm255_vm0, %v233_v31, 0 }
  0x45   :  { %5785 = vmatpush3.bf16.xpose.msra.mxu0 %v996_v40  ;;  %5791 = vmatpush3.bf16.xpose.msra.mxu1 %v1042_v41  ;;  %v188_v40 = vld [vmem:[%s8064_s1 + $0x3a] sm:$0x3]  ;;  %v89_v41 = vmul.f32 0.31622776, %v41_v35  ;;  %v90_v42 = vmul.f32 0.31622776, %v42_v36 }
  0x46   :  { %5786 = vmatprep.mubr.msk.bf16.mxu0 %vm6459_vm1, %v6458_v0  ;;  %5792 = vmatprep.mubr.msk.bf16.mxu1 %vm6459_vm1, %v6458_v0  ;;  %v236_v44 = vpack.c.bf16 %v188_v40, %v188_v40  ;;  %v197_v36 = vld [vmem:[%s8064_s1 + $0x4c] sm:$0x3] }
  0x47   :  { %5796 = vmatprep.subr.bf16.mxu0 %v6458_v0  ;;  %5802 = vmatprep.subr.bf16.mxu1 %v6458_v0  ;;  %v137_v45 = vpack.c.bf16 %v89_v41, %v89_v41  ;;  %v138_v46 = vpack.c.bf16 %v90_v42, %v90_v42  ;;  %v245_v40 = vpack.c.bf16 %v197_v36, %v197_v36 }
  0x48   :  { %v1594_v50 = vsel %vm255_vm0, %v236_v44, 0  ;;  %v53_v44 = vld [vmem:[%s8065_s0 + $0x4c] sm:$0x3] }
  0x4c   :  { %5787 = vmatmul.mubr.msk.bf16.vlgmr.msra.gmra.mrb[32].mxu0 %vm255_vm0, %v127_v48  ;;  %5793 = vmatmul.mubr.msk.bf16.vlgmr.msra.gmra.mrb[32].mxu1 %vm255_vm0, %v128_v49  ;;  %v44_v48 = vld [vmem:[%s8065_s0 + $0x3a] sm:$0x3]  ;;  %v1548_v49 = vsel %vm255_vm0, %v235_v43, 0 }
  0x4d   :  { %5797 = vmatpush3.bf16.xpose.msra.mxu0 %v1088_v52  ;;  %5803 = vmatpush3.bf16.xpose.msra.mxu1 %v1134_v53  ;;  %v190_v52 = vld [vmem:[%s8064_s1 + $0x3e] sm:$0x3]  ;;  %v91_v53 = vmul.f32 0.31622776, %v43_v47  ;;  %v92_v54 = vmul.f32 0.31622776, %v44_v48 }
  0x4e   :  { %5798 = vmatprep.mubr.msk.bf16.mxu0 %vm6459_vm1, %v6458_v0  ;;  %5804 = vmatprep.mubr.msk.bf16.mxu1 %vm6459_vm1, %v6458_v0  ;;  %v238_v56 = vpack.c.bf16 %v190_v52, %v190_v52  ;;  %v199_v48 = vld [vmem:[%s8064_s1 + $0x50] sm:$0x3] }
  0x4f   :  { %5808 = vmatprep.subr.bf16.mxu0 %v6458_v0  ;;  %5814 = vmatprep.subr.bf16.mxu1 %v6458_v0  ;;  %v139_v57 = vpack.c.bf16 %v91_v53, %v91_v53  ;;  %v140_v58 = vpack.c.bf16 %v92_v54, %v92_v54  ;;  %v247_v52 = vpack.c.bf16 %v199_v48, %v199_v48 }
  0x50   :  { %v1686_v62 = vsel %vm255_vm0, %v238_v56, 0  ;;  %v55_v56 = vld [vmem:[%s8065_s0 + $0x50] sm:$0x3] }
  0x54   :  { %5799 = vmatmul.mubr.msk.bf16.vlgmr.msra.gmra.mrb[36].mxu0 %vm255_vm0, %v129_v60  ;;  %5805 = vmatmul.mubr.msk.bf16.vlgmr.msra.gmra.mrb[36].mxu1 %vm255_vm0, %v130_v61  ;;  %v46_v60 = vld [vmem:[%s8065_s0 + $0x3e] sm:$0x3]  ;;  %v1640_v61 = vsel %vm255_vm0, %v237_v55, 0 }
  0x55   :  { %5809 = vmatpush3.bf16.xpose.msra.mxu0 %v1180_v1  ;;  %5815 = vmatpush3.bf16.xpose.msra.mxu1 %v1226_v2  ;;  %v192_v1 = vld [vmem:[%s8064_s1 + $0x42] sm:$0x3]  ;;  %v93_v2 = vmul.f32 0.31622776, %v45_v59  ;;  %v94_v3 = vmul.f32 0.31622776, %v46_v60 }
  0x56   :  { %5810 = vmatprep.mubr.msk.bf16.mxu0 %vm6459_vm1, %v6458_v0  ;;  %5816 = vmatprep.mubr.msk.bf16.mxu1 %vm6459_vm1, %v6458_v0  ;;  %v240_v5 = vpack.c.bf16 %v192_v1, %v192_v1  ;;  %v201_v60 = vld [vmem:[%s8064_s1 + $0x54] sm:$0x3] }
  0x57   :  { %5820 = vmatprep.subr.bf16.mxu0 %v6458_v0  ;;  %5826 = vmatprep.subr.bf16.mxu1 %v6458_v0  ;;  %v141_v6 = vpack.c.bf16 %v93_v2, %v93_v2  ;;  %v142_v7 = vpack.c.bf16 %v94_v3, %v94_v3  ;;  %v249_v1 = vpack.c.bf16 %v201_v60, %v201_v60 }
  0x58   :  { %v1778_v11 = vsel %vm255_vm0, %v240_v5, 0  ;;  %v57_v5 = vld [vmem:[%s8065_s0 + $0x54] sm:$0x3] }
  0x5c   :  { %5811 = vmatmul.mubr.msk.bf16.vlgmr.msra.gmra.mrb[40].mxu0 %vm255_vm0, %v131_v9  ;;  %5817 = vmatmul.mubr.msk.bf16.vlgmr.msra.gmra.mrb[40].mxu1 %vm255_vm0, %v132_v10  ;;  %v48_v9 = vld [vmem:[%s8065_s0 + $0x42] sm:$0x3]  ;;  %v1732_v10 = vsel %vm255_vm0, %v239_v4, 0 }
  0x5d   :  { %5821 = vmatpush3.bf16.xpose.msra.mxu0 %v1272_v13  ;;  %5827 = vmatpush3.bf16.xpose.msra.mxu1 %v1318_v14  ;;  %v194_v13 = vld [vmem:[%s8064_s1 + $0x46] sm:$0x3]  ;;  %v95_v14 = vmul.f32 0.31622776, %v47_v8  ;;  %v96_v15 = vmul.f32 0.31622776, %v48_v9 }
  0x5e   :  { %5822 = vmatprep.mubr.msk.bf16.mxu0 %vm6459_vm1, %v6458_v0  ;;  %5828 = vmatprep.mubr.msk.bf16.mxu1 %vm6459_vm1, %v6458_v0  ;;  %v242_v17 = vpack.c.bf16 %v194_v13, %v194_v13  ;;  %v203_v9 = vld [vmem:[%s8064_s1 + $0x58] sm:$0x3] }
  0x5f   :  { %5832 = vmatprep.subr.bf16.mxu0 %v6458_v0  ;;  %5838 = vmatprep.subr.bf16.mxu1 %v6458_v0  ;;  %v143_v18 = vpack.c.bf16 %v95_v14, %v95_v14  ;;  %v144_v19 = vpack.c.bf16 %v96_v15, %v96_v15  ;;  %v251_v13 = vpack.c.bf16 %v203_v9, %v203_v9 }
  0x60   :  { %v1870_v23 = vsel %vm255_vm0, %v242_v17, 0  ;;  %v59_v17 = vld [vmem:[%s8065_s0 + $0x58] sm:$0x3] }
  0x64   :  { %5823 = vmatmul.mubr.msk.bf16.vlgmr.msra.gmra.mrb[44].mxu0 %vm255_vm0, %v133_v21  ;;  %5829 = vmatmul.mubr.msk.bf16.vlgmr.msra.gmra.mrb[44].mxu1 %vm255_vm0, %v134_v22  ;;  %v50_v21 = vld [vmem:[%s8065_s0 + $0x46] sm:$0x3]  ;;  %v1824_v22 = vsel %vm255_vm0, %v241_v16, 0 }
  0x65   :  { %5833 = vmatpush3.bf16.xpose.msra.mxu0 %v1364_v25  ;;  %5839 = vmatpush3.bf16.xpose.msra.mxu1 %v1410_v26  ;;  %v196_v25 = vld [vmem:[%s8064_s1 + $0x4a] sm:$0x3]  ;;  %v97_v26 = vmul.f32 0.31622776, %v49_v20  ;;  %v98_v27 = vmul.f32 0.31622776, %v50_v21 }
  0x66   :  { %5834 = vmatprep.mubr.msk.bf16.mxu0 %vm6459_vm1, %v6458_v0  ;;  %5844 = vmatprep.subr.bf16.mxu0 %v6458_v0  ;;  %v244_v29 = vpack.c.bf16 %v196_v25, %v196_v25  ;;  %v205_v21 = vld [vmem:[%s8064_s1 + $0x5c] sm:$0x3] }
  0x67   :  { %5840 = vmatprep.mubr.msk.bf16.mxu1 %vm6459_vm1, %v6458_v0  ;;  %5850 = vmatprep.subr.bf16.mxu1 %v6458_v0  ;;  %v145_v30 = vpack.c.bf16 %v97_v26, %v97_v26  ;;  %v146_v31 = vpack.c.bf16 %v98_v27, %v98_v27  ;;  %v253_v25 = vpack.c.bf16 %v205_v21, %v205_v21 }
  0x68   :  { %v1962_v35 = vsel %vm255_vm0, %v244_v29, 0  ;;  %v61_v29 = vld [vmem:[%s8065_s0 + $0x5c] sm:$0x3] }
  0x6c   :  { %5835 = vmatmul.mubr.msk.bf16.vlgmr.msra.gmra.mrb[48].mxu0 %vm255_vm0, %v135_v33  ;;  %5841 = vmatmul.mubr.msk.bf16.vlgmr.msra.gmra.mrb[48].mxu1 %vm255_vm0, %v136_v34  ;;  %v52_v33 = vld [vmem:[%s8065_s0 + $0x4a] sm:$0x3]  ;;  %v1916_v34 = vsel %vm255_vm0, %v243_v28, 0 }
  0x6d   :  { %5845 = vmatpush3.bf16.xpose.msra.mxu0 %v1456_v37  ;;  %5851 = vmatpush3.bf16.xpose.msra.mxu1 %v1502_v38  ;;  %v198_v37 = vld [vmem:[%s8064_s1 + $0x4e] sm:$0x3]  ;;  %v99_v38 = vmul.f32 0.31622776, %v51_v32  ;;  %v100_v39 = vmul.f32 0.31622776, %v52_v33 }
  0x6e   :  { %5846 = vmatprep.mubr.msk.bf16.mxu0 %vm6459_vm1, %v6458_v0  ;;  %5856 = vmatprep.subr.bf16.mxu0 %v6458_v0  ;;  %v246_v41 = vpack.c.bf16 %v198_v37, %v198_v37  ;;  %v109_v33 = vmul.f32 0.31622776, %v61_v29 }
  0x6f   :  { %5852 = vmatprep.mubr.msk.bf16.mxu1 %vm6459_vm1, %v6458_v0  ;;  %5862 = vmatprep.subr.bf16.mxu1 %v6458_v0  ;;  %v147_v42 = vpack.c.bf16 %v99_v38, %v99_v38  ;;  %v148_v43 = vpack.c.bf16 %v100_v39, %v100_v39 }
  0x70   :  { %v2054_v47 = vsel %vm255_vm0, %v246_v41, 0 }
  0x74   :  { %5847 = vmatmul.mubr.msk.bf16.vlgmr.msra.gmra.mrb[52].mxu0 %vm255_vm0, %v137_v45  ;;  %5853 = vmatmul.mubr.msk.bf16.vlgmr.msra.gmra.mrb[52].mxu1 %vm255_vm0, %v138_v46  ;;  %v54_v45 = vld [vmem:[%s8065_s0 + $0x4e] sm:$0x3]  ;;  %v2008_v46 = vsel %vm255_vm0, %v245_v40, 0 }
  0x75   :  { %5857 = vmatpush3.bf16.xpose.msra.mxu0 %v1548_v49  ;;  %5863 = vmatpush3.bf16.xpose.msra.mxu1 %v1594_v50  ;;  %v200_v49 = vld [vmem:[%s8064_s1 + $0x52] sm:$0x3]  ;;  %v101_v50 = vmul.f32 0.31622776, %v53_v44  ;;  %v102_v51 = vmul.f32 0.31622776, %v54_v45 }
  0x76   :  { %5858 = vmatprep.mubr.msk.bf16.mxu0 %vm6459_vm1, %v6458_v0  ;;  %5868 = vmatprep.subr.bf16.mxu0 %v6458_v0  ;;  %v248_v53 = vpack.c.bf16 %v200_v49, %v200_v49 }
  0x77   :  { %5864 = vmatprep.mubr.msk.bf16.mxu1 %vm6459_vm1, %v6458_v0  ;;  %5874 = vmatprep.subr.bf16.mxu1 %v6458_v0  ;;  %v149_v54 = vpack.c.bf16 %v101_v50, %v101_v50  ;;  %v150_v55 = vpack.c.bf16 %v102_v51, %v102_v51 }
  0x78   :  { %v2146_v59 = vsel %vm255_vm0, %v248_v53, 0 }
  0x7c   :  { %5859 = vmatmul.mubr.msk.bf16.vlgmr.msra.gmra.mrb[56].mxu0 %vm255_vm0, %v139_v57  ;;  %5865 = vmatmul.mubr.msk.bf16.vlgmr.msra.gmra.mrb[56].mxu1 %vm255_vm0, %v140_v58  ;;  %v56_v57 = vld [vmem:[%s8065_s0 + $0x52] sm:$0x3]  ;;  %v2100_v58 = vsel %vm255_vm0, %v247_v52, 0 }
  0x7d   :  { %5869 = vmatpush3.bf16.xpose.msra.mxu0 %v1640_v61  ;;  %5875 = vmatpush3.bf16.xpose.msra.mxu1 %v1686_v62  ;;  %v202_v61 = vld [vmem:[%s8064_s1 + $0x56] sm:$0x3]  ;;  %v103_v62 = vmul.f32 0.31622776, %v55_v56  ;;  %v104_v63 = vmul.f32 0.31622776, %v56_v57 }
  0x7e   :  { %5870 = vmatprep.mubr.msk.bf16.mxu0 %vm6459_vm1, %v6458_v0  ;;  %5880 = vmatprep.subr.bf16.mxu0 %v6458_v0  ;;  %v250_v2 = vpack.c.bf16 %v202_v61, %v202_v61 }
  0x7f   :  { %5876 = vmatprep.mubr.msk.bf16.mxu1 %vm6459_vm1, %v6458_v0  ;;  %5886 = vmatprep.subr.bf16.mxu1 %v6458_v0  ;;  %v151_v3 = vpack.c.bf16 %v103_v62, %v103_v62  ;;  %v152_v4 = vpack.c.bf16 %v104_v63, %v104_v63 }
  0x80   :  { %v2238_v8 = vsel %vm255_vm0, %v250_v2, 0 }
  0x84   :  { %5871 = vmatmul.mubr.msk.bf16.vlgmr.msra.gmra.mrb[60].mxu0 %vm255_vm0, %v141_v6  ;;  %5877 = vmatmul.mubr.msk.bf16.vlgmr.msra.gmra.mrb[60].mxu1 %vm255_vm0, %v142_v7  ;;  %v58_v6 = vld [vmem:[%s8065_s0 + $0x56] sm:$0x3]  ;;  %v2192_v7 = vsel %vm255_vm0, %v249_v1, 0 }
  0x85   :  { %5881 = vmatpush3.bf16.xpose.msra.mxu0 %v1732_v10  ;;  %5887 = vmatpush3.bf16.xpose.msra.mxu1 %v1778_v11  ;;  %v204_v10 = vld [vmem:[%s8064_s1 + $0x5a] sm:$0x3]  ;;  %v105_v11 = vmul.f32 0.31622776, %v57_v5  ;;  %v106_v12 = vmul.f32 0.31622776, %v58_v6 }
  0x86   :  { %5882 = vmatprep.mubr.msk.bf16.mxu0 %vm6459_vm1, %v6458_v0  ;;  %5892 = vmatprep.subr.bf16.mxu0 %v6458_v0  ;;  %v252_v14 = vpack.c.bf16 %v204_v10, %v204_v10 }
  0x87   :  { %5888 = vmatprep.mubr.msk.bf16.mxu1 %vm6459_vm1, %v6458_v0  ;;  %5898 = vmatprep.subr.bf16.mxu1 %v6458_v0  ;;  %v153_v15 = vpack.c.bf16 %v105_v11, %v105_v11  ;;  %v154_v16 = vpack.c.bf16 %v106_v12, %v106_v12 }
  0x88   :  { %v2330_v20 = vsel %vm255_vm0, %v252_v14, 0 }
  0x8c   :  { %5883 = vmatmul.mubr.msk.bf16.vlgmr.msra.gmra.mrb[64].mxu0 %vm255_vm0, %v143_v18  ;;  %5889 = vmatmul.mubr.msk.bf16.vlgmr.msra.gmra.mrb[64].mxu1 %vm255_vm0, %v144_v19  ;;  %v60_v18 = vld [vmem:[%s8065_s0 + $0x5a] sm:$0x3]  ;;  %v2284_v19 = vsel %vm255_vm0, %v251_v13, 0 }
  0x8d   :  { %5893 = vmatpush3.bf16.xpose.msra.mxu0 %v1824_v22  ;;  %5899 = vmatpush3.bf16.xpose.msra.mxu1 %v1870_v23  ;;  %v206_v22 = vld [vmem:[%s8064_s1 + $0x5e] sm:$0x3]  ;;  %v107_v23 = vmul.f32 0.31622776, %v59_v17  ;;  %v108_v24 = vmul.f32 0.31622776, %v60_v18 }
  0x8e   :  { %5894 = vmatprep.mubr.msk.bf16.mxu0 %vm6459_vm1, %v6458_v0  ;;  %5904 = vmatprep.subr.bf16.mxu0 %v6458_v0  ;;  %v254_v26 = vpack.c.bf16 %v206_v22, %v206_v22 }
  0x8f   :  { %5900 = vmatprep.mubr.msk.bf16.mxu1 %vm6459_vm1, %v6458_v0  ;;  %5910 = vmatprep.subr.bf16.mxu1 %v6458_v0  ;;  %v155_v27 = vpack.c.bf16 %v107_v23, %v107_v23  ;;  %v156_v28 = vpack.c.bf16 %v108_v24, %v108_v24 }
  0x90   :  { %v2422_v32 = vsel %vm255_vm0, %v254_v26, 0 }
  0x94   :  { %5895 = vmatmul.mubr.msk.bf16.vlgmr.msra.gmra.mrb[68].mxu0 %vm255_vm0, %v145_v30  ;;  %5901 = vmatmul.mubr.msk.bf16.vlgmr.msra.gmra.mrb[68].mxu1 %vm255_vm0, %v146_v31  ;;  %v62_v30 = vld [vmem:[%s8065_s0 + $0x5e] sm:$0x3]  ;;  %v2376_v31 = vsel %vm255_vm0, %v253_v25, 0 }
  0x95   :  { %5905 = vmatpush3.bf16.xpose.msra.mxu0 %v1916_v34  ;;  %5911 = vmatpush3.bf16.xpose.msra.mxu1 %v1962_v35  ;;  %v110_v34 = vmul.f32 0.31622776, %v62_v30  ;;  %v157_v35 = vpack.c.bf16 %v109_v33, %v109_v33 }
  0x96   :  { %5906 = vmatprep.mubr.msk.bf16.mxu0 %vm6459_vm1, %v6458_v0  ;;  %5916 = vmatprep.subr.bf16.mxu0 %v6458_v0 }
  0x97   :  { %5912 = vmatprep.mubr.msk.bf16.mxu1 %vm6459_vm1, %v6458_v0  ;;  %5922 = vmatprep.subr.bf16.mxu1 %v6458_v0  ;;  %v158_v36 = vpack.c.bf16 %v110_v34, %v110_v34 }
  0x9c   :  { %5907 = vmatmul.mubr.msk.bf16.vlgmr.msra.gmra.mrb[72].mxu0 %vm255_vm0, %v147_v42  ;;  %5913 = vmatmul.mubr.msk.bf16.vlgmr.msra.gmra.mrb[72].mxu1 %vm255_vm0, %v148_v43 }
  0x9d   :  { %5917 = vmatpush3.bf16.xpose.msra.mxu0 %v2008_v46  ;;  %5923 = vmatpush3.bf16.xpose.msra.mxu1 %v2054_v47 }
  0x9e   :  { %5918 = vmatprep.mubr.msk.bf16.mxu0 %vm6459_vm1, %v6458_v0  ;;  %5928 = vmatprep.subr.bf16.mxu0 %v6458_v0 }
  0x9f   :  { %5924 = vmatprep.mubr.msk.bf16.mxu1 %vm6459_vm1, %v6458_v0  ;;  %5934 = vmatprep.subr.bf16.mxu1 %v6458_v0 }
  0xa4   :  { %5919 = vmatmul.mubr.msk.bf16.vlgmr.msra.gmra.mrb[76].mxu0 %vm255_vm0, %v149_v54  ;;  %5925 = vmatmul.mubr.msk.bf16.vlgmr.msra.gmra.mrb[76].mxu1 %vm255_vm0, %v150_v55 }
  0xa5   :  { %5929 = vmatpush3.bf16.xpose.msra.mxu0 %v2100_v58  ;;  %5935 = vmatpush3.bf16.xpose.msra.mxu1 %v2146_v59 }
  0xa6   :  { %5930 = vmatprep.mubr.msk.bf16.mxu0 %vm6459_vm1, %v6458_v0  ;;  %5940 = vmatprep.subr.bf16.mxu0 %v6458_v0 }
  0xa7   :  { %5936 = vmatprep.mubr.msk.bf16.mxu1 %vm6459_vm1, %v6458_v0  ;;  %5946 = vmatprep.subr.bf16.mxu1 %v6458_v0 }
  0xac   :  { %5931 = vmatmul.mubr.msk.bf16.vlgmr.msra.gmra.mrb[80].mxu0 %vm255_vm0, %v151_v3  ;;  %5937 = vmatmul.mubr.msk.bf16.vlgmr.msra.gmra.mrb[80].mxu1 %vm255_vm0, %v152_v4 }
  0xad   :  { %5941 = vmatpush3.bf16.xpose.msra.mxu0 %v2192_v7  ;;  %5947 = vmatpush3.bf16.xpose.msra.mxu1 %v2238_v8 }
  0xae   :  { %5942 = vmatprep.mubr.msk.bf16.mxu0 %vm6459_vm1, %v6458_v0  ;;  %5952 = vmatprep.subr.bf16.mxu0 %v6458_v0 }
  0xaf   :  { %5948 = vmatprep.mubr.msk.bf16.mxu1 %vm6459_vm1, %v6458_v0  ;;  %5958 = vmatprep.subr.bf16.mxu1 %v6458_v0 }
  0xb4   :  { %5943 = vmatmul.mubr.msk.bf16.vlgmr.msra.gmra.mrb[84].mxu0 %vm255_vm0, %v153_v15  ;;  %5949 = vmatmul.mubr.msk.bf16.vlgmr.msra.gmra.mrb[84].mxu1 %vm255_vm0, %v154_v16 }
  0xb5   :  { %5953 = vmatpush3.bf16.xpose.msra.mxu0 %v2284_v19  ;;  %5959 = vmatpush3.bf16.xpose.msra.mxu1 %v2330_v20 }
  0xb6   :  { %5954 = vmatprep.mubr.msk.bf16.mxu0 %vm6459_vm1, %v6458_v0  ;;  %5964 = vmatprep.subr.bf16.mxu0 %v6458_v0 }
  0xb7   :  { %5960 = vmatprep.mubr.msk.bf16.mxu1 %vm6459_vm1, %v6458_v0  ;;  %5970 = vmatprep.subr.bf16.mxu1 %v6458_v0 }
  0xbc   :  { %5955 = vmatmul.mubr.msk.bf16.vlgmr.msra.gmra.mrb[88].mxu0 %vm255_vm0, %v155_v27  ;;  %5961 = vmatmul.mubr.msk.bf16.vlgmr.msra.gmra.mrb[88].mxu1 %vm255_vm0, %v156_v28 }
  0xbd   :  { %5965 = vmatpush3.bf16.xpose.msra.mxu0 %v2376_v31  ;;  %5971 = vmatpush3.bf16.xpose.msra.mxu1 %v2422_v32 }
  0xbe   :  { %5966 = vmatprep.mubr.msk.bf16.mxu0 %vm6459_vm1, %v6458_v0  ;;  %5972 = vmatprep.mubr.msk.bf16.mxu1 %vm6459_vm1, %v6458_v0 }
  0xbf   :  { %5976 = vmatprep.subr.bf16.mxu0 %v6458_v0  ;;  %5982 = vmatprep.subr.bf16.mxu1 %v6458_v0 }
  0xc4   :  { %5967 = vmatmul.mubr.msk.bf16.vlgmr.msra.gmra.mrb[92].mxu0 %vm255_vm0, %v157_v35  ;;  %5973 = vmatmul.mubr.msk.bf16.vlgmr.msra.gmra.mrb[92].mxu1 %vm255_vm0, %v158_v36 }
  0xc5   :  { %5978 = vmatprep.mubr.msk.bf16.mxu0 %vm6459_vm1, %v6458_v0  ;;  %5984 = vmatprep.mubr.msk.bf16.mxu1 %vm6459_vm1, %v6458_v0 }
  0xdf   :  { %v7014_v37 = vpop.f32.mrb[0].mxu0  ;;  %v7016_v38 = vpop.f32.mrb[0].mxu1 }
  0xe0   :  { %v5692_v39 = vpop.f32.mrb[1].mxu0  ;;  %v2465_v40 = vsel %vm2464_vm2, %v7014_v37, -inf  ;;  %v5698_v41 = vpop.f32.mrb[1].mxu1  ;;  %v2468_v46 = vsel %vm2464_vm2, %v7016_v38, -inf }
  0xe1   :  { %2466 = vmax.xlane.f32.xlu0 %v2465_v40  ;;  %v299_v42 = vpop.f32.mrb[2].mxu0  ;;  %v345_v43 = vpop.f32.mrb[2].mxu1 }
  0xe2   :  { %v5693_v44 = vpop.f32.mrb[3].mxu0  ;;  %v5699_v45 = vpop.f32.mrb[3].mxu1 }
  0xe5   :  { %2469 = vmax.xlane.f32.xlu0 %v2468_v46 }
  0xe7   :  { %v7022_v47 = vpop.f32.mrb[4].mxu0  ;;  %v7024_v48 = vpop.f32.mrb[4].mxu1 }
  0xe8   :  { %v5704_v49 = vpop.f32.mrb[5].mxu0  ;;  %v2471_v50 = vsel %vm2464_vm2, %v7022_v47, -inf  ;;  %v5710_v51 = vpop.f32.mrb[5].mxu1  ;;  %v2474_v56 = vsel %vm2464_vm2, %v7024_v48, -inf }
  0xe9   :  { %2472 = vmax.xlane.f32.xlu1 %v2471_v50  ;;  %v391_v52 = vpop.f32.mrb[6].mxu0  ;;  %v437_v53 = vpop.f32.mrb[6].mxu1 }
  0xea   :  { %v5705_v54 = vpop.f32.mrb[7].mxu0  ;;  %v5711_v55 = vpop.f32.mrb[7].mxu1 }
  0xed   :  { %2475 = vmax.xlane.f32.xlu1 %v2474_v56 }
  0xef   :  { %v7030_v57 = vpop.f32.mrb[8].mxu0  ;;  %v7032_v58 = vpop.f32.mrb[8].mxu1 }
  0xf0   :  { %v2480_v59 = vsel %vm2464_vm2, %v7032_v58, -inf  ;;  %v2477_v60 = vsel %vm2464_vm2, %v7030_v57, -inf  ;;  %v5716_v61 = vpop.f32.mrb[9].mxu0  ;;  %v5722_v62 = vpop.f32.mrb[9].mxu1 }
  0xf1   :  { %2481 = vmax.xlane.f32.xlu1 %v2480_v59  ;;  %2478 = vmax.xlane.f32.xlu0 %v2477_v60  ;;  %v483_v63 = vpop.f32.mrb[10].mxu0  ;;  %v529_v1 = vpop.f32.mrb[10].mxu1 }
  0xf2   :  { %v5717_v2 = vpop.f32.mrb[11].mxu0  ;;  %v5723_v3 = vpop.f32.mrb[11].mxu1 }
  0xf7   :  { %v7038_v4 = vpop.f32.mrb[12].mxu0  ;;  %v7040_v5 = vpop.f32.mrb[12].mxu1 }
  0xf8   :  { %v2486_v6 = vsel %vm2464_vm2, %v7040_v5, -inf  ;;  %v2483_v7 = vsel %vm2464_vm2, %v7038_v4, -inf  ;;  %v5728_v8 = vpop.f32.mrb[13].mxu0  ;;  %v5734_v9 = vpop.f32.mrb[13].mxu1 }
  0xf9   :  { %2487 = vmax.xlane.f32.xlu1 %v2486_v6  ;;  %2484 = vmax.xlane.f32.xlu0 %v2483_v7  ;;  %v575_v10 = vpop.f32.mrb[14].mxu0  ;;  %v621_v11 = vpop.f32.mrb[14].mxu1 }
  0xfa   :  { %v5729_v12 = vpop.f32.mrb[15].mxu0  ;;  %v5735_v13 = vpop.f32.mrb[15].mxu1 }
  0xff   :  { %v7046_v14 = vpop.f32.mrb[16].mxu0  ;;  %v7048_v15 = vpop.f32.mrb[16].mxu1 }
 0x100   :  { %v2492_v16 = vsel %vm2464_vm2, %v7048_v15, -inf  ;;  %v2489_v17 = vsel %vm2464_vm2, %v7046_v14, -inf  ;;  %v5740_v18 = vpop.f32.mrb[17].mxu0  ;;  %v5746_v19 = vpop.f32.mrb[17].mxu1 }
 0x101   :  { %2493 = vmax.xlane.f32.xlu1 %v2492_v16  ;;  %2490 = vmax.xlane.f32.xlu0 %v2489_v17  ;;  %v667_v20 = vpop.f32.mrb[18].mxu0  ;;  %v713_v21 = vpop.f32.mrb[18].mxu1 }
 0x102   :  { %v5741_v22 = vpop.f32.mrb[19].mxu0  ;;  %v5747_v23 = vpop.f32.mrb[19].mxu1 }
 0x107   :  { %v7054_v24 = vpop.f32.mrb[20].mxu0  ;;  %v7056_v25 = vpop.f32.mrb[20].mxu1 }
 0x108   :  { %v2498_v26 = vsel %vm2464_vm2, %v7056_v25, -inf  ;;  %v2495_v27 = vsel %vm2464_vm2, %v7054_v24, -inf  ;;  %v5752_v28 = vpop.f32.mrb[21].mxu0  ;;  %v5758_v29 = vpop.f32.mrb[21].mxu1 }
 0x109   :  { %2499 = vmax.xlane.f32.xlu1 %v2498_v26  ;;  %2496 = vmax.xlane.f32.xlu0 %v2495_v27  ;;  %v759_v30 = vpop.f32.mrb[22].mxu0  ;;  %v805_v31 = vpop.f32.mrb[22].mxu1 }
 0x10a   :  { %v5753_v32 = vpop.f32.mrb[23].mxu0  ;;  %v5759_v33 = vpop.f32.mrb[23].mxu1 }
 0x10f   :  { %v7062_v34 = vpop.f32.mrb[24].mxu0  ;;  %v7064_v35 = vpop.f32.mrb[24].mxu1 }
 0x110   :  { %v2504_v36 = vsel %vm2464_vm2, %v7064_v35, -inf  ;;  %v2501_v39 = vsel %vm2464_vm2, %v7062_v34, -inf  ;;  %v5764_v40 = vpop.f32.mrb[25].mxu0  ;;  %v5770_v41 = vpop.f32.mrb[25].mxu1 }
 0x111   :  { %2505 = vmax.xlane.f32.xlu1 %v2504_v36  ;;  %2502 = vmax.xlane.f32.xlu0 %v2501_v39  ;;  %v851_v42 = vpop.f32.mrb[26].mxu0  ;;  %v897_v43 = vpop.f32.mrb[26].mxu1 }
 0x112   :  { %v5765_v44 = vpop.f32.mrb[27].mxu0  ;;  %v5771_v45 = vpop.f32.mrb[27].mxu1 }
 0x117   :  { %v7070_v46 = vpop.f32.mrb[28].mxu0  ;;  %v7072_v49 = vpop.f32.mrb[28].mxu1 }
 0x118   :  { %v2510_v50 = vsel %vm2464_vm2, %v7072_v49, -inf  ;;  %v2507_v51 = vsel %vm2464_vm2, %v7070_v46, -inf  ;;  %v5776_v52 = vpop.f32.mrb[29].mxu0  ;;  %v5782_v53 = vpop.f32.mrb[29].mxu1 }
 0x119   :  { %2511 = vmax.xlane.f32.xlu1 %v2510_v50  ;;  %2508 = vmax.xlane.f32.xlu0 %v2507_v51  ;;  %v943_v54 = vpop.f32.mrb[30].mxu0  ;;  %v989_v55 = vpop.f32.mrb[30].mxu1 }
 0x11a   :  { %v5777_v56 = vpop.f32.mrb[31].mxu0  ;;  %v5783_v59 = vpop.f32.mrb[31].mxu1 }
 0x11f   :  { %v7078_v60 = vpop.f32.mrb[32].mxu0  ;;  %v7080_v61 = vpop.f32.mrb[32].mxu1 }
 0x120   :  { %v2516_v62 = vsel %vm2464_vm2, %v7080_v61, -inf  ;;  %v2513_v63 = vsel %vm2464_vm2, %v7078_v60, -inf  ;;  %v5788_v1 = vpop.f32.mrb[33].mxu0  ;;  %v5794_v2 = vpop.f32.mrb[33].mxu1 }
 0x121   :  { %2517 = vmax.xlane.f32.xlu1 %v2516_v62  ;;  %2514 = vmax.xlane.f32.xlu0 %v2513_v63  ;;  %v1035_v3 = vpop.f32.mrb[34].mxu0  ;;  %v1081_v6 = vpop.f32.mrb[34].mxu1 }
 0x122   :  { %v5789_v7 = vpop.f32.mrb[35].mxu0  ;;  %v5795_v8 = vpop.f32.mrb[35].mxu1 }
 0x127   :  { %v7086_v9 = vpop.f32.mrb[36].mxu0  ;;  %v7088_v10 = vpop.f32.mrb[36].mxu1 }
 0x128   :  { %v2522_v11 = vsel %vm2464_vm2, %v7088_v10, -inf  ;;  %v2519_v12 = vsel %vm2464_vm2, %v7086_v9, -inf  ;;  %v5800_v13 = vpop.f32.mrb[37].mxu0  ;;  %v5806_v16 = vpop.f32.mrb[37].mxu1 }
 0x129   :  { %2523 = vmax.xlane.f32.xlu1 %v2522_v11  ;;  %2520 = vmax.xlane.f32.xlu0 %v2519_v12  ;;  %v1127_v17 = vpop.f32.mrb[38].mxu0  ;;  %v1173_v18 = vpop.f32.mrb[38].mxu1 }
 0x12a   :  { %v5801_v19 = vpop.f32.mrb[39].mxu0  ;;  %v5807_v20 = vpop.f32.mrb[39].mxu1 }
 0x12f   :  { %v7094_v21 = vpop.f32.mrb[40].mxu0  ;;  %v7096_v22 = vpop.f32.mrb[40].mxu1 }
 0x130   :  { %v2528_v23 = vsel %vm2464_vm2, %v7096_v22, -inf  ;;  %v2525_v26 = vsel %vm2464_vm2, %v7094_v21, -inf  ;;  %v5812_v27 = vpop.f32.mrb[41].mxu0  ;;  %v5818_v28 = vpop.f32.mrb[41].mxu1 }
 0x131   :  { %2529 = vmax.xlane.f32.xlu1 %v2528_v23  ;;  %2526 = vmax.xlane.f32.xlu0 %v2525_v26  ;;  %v1219_v29 = vpop.f32.mrb[42].mxu0  ;;  %v1265_v30 = vpop.f32.mrb[42].mxu1 }
 0x132   :  { %v5813_v31 = vpop.f32.mrb[43].mxu0  ;;  %v5819_v32 = vpop.f32.mrb[43].mxu1 }
 0x137   :  { %v7102_v33 = vpop.f32.mrb[44].mxu0  ;;  %v7104_v36 = vpop.f32.mrb[44].mxu1 }
 0x138   :  { %v2534_v39 = vsel %vm2464_vm2, %v7104_v36, -inf  ;;  %v2531_v40 = vsel %vm2464_vm2, %v7102_v33, -inf  ;;  %v5824_v41 = vpop.f32.mrb[45].mxu0  ;;  %v5830_v42 = vpop.f32.mrb[45].mxu1 }
 0x139   :  { %2535 = vmax.xlane.f32.xlu1 %v2534_v39  ;;  %2532 = vmax.xlane.f32.xlu0 %v2531_v40  ;;  %v1311_v43 = vpop.f32.mrb[46].mxu0  ;;  %v1357_v44 = vpop.f32.mrb[46].mxu1 }
 0x13a   :  { %v5825_v45 = vpop.f32.mrb[47].mxu0  ;;  %v5831_v50 = vpop.f32.mrb[47].mxu1 }
 0x13f   :  { %v7110_v51 = vpop.f32.mrb[48].mxu0  ;;  %v7112_v52 = vpop.f32.mrb[48].mxu1 }
 0x140   :  { %v5836_v53 = vpop.f32.mrb[49].mxu0  ;;  %v5842_v54 = vpop.f32.mrb[49].mxu1 }
 0x141   :  { %v1403_v55 = vpop.f32.mrb[50].mxu0  ;;  %v1449_v56 = vpop.f32.mrb[50].mxu1 }
 0x142   :  { %v5843_v59 = vpop.f32.mrb[51].mxu1  ;;  %v5837_v62 = vpop.f32.mrb[51].mxu0 }
 0x147   :  { %v7114_v63 = vpop.f32.mrb[52].mxu0  ;;  %v7116_v1 = vpop.f32.mrb[52].mxu1 }
 0x148   :  { %v5848_v2 = vpop.f32.mrb[53].mxu0  ;;  %v5854_v3 = vpop.f32.mrb[53].mxu1 }
 0x149   :  { %v1495_v6 = vpop.f32.mrb[54].mxu0  ;;  %v1541_v7 = vpop.f32.mrb[54].mxu1 }
 0x14a   :  { %v5855_v8 = vpop.f32.mrb[55].mxu1  ;;  %v5849_v11 = vpop.f32.mrb[55].mxu0 }
 0x14f   :  { %v7118_v12 = vpop.f32.mrb[56].mxu0  ;;  %v7120_v13 = vpop.f32.mrb[56].mxu1 }
 0x150   :  { %v5860_v16 = vpop.f32.mrb[57].mxu0  ;;  %v5866_v17 = vpop.f32.mrb[57].mxu1 }
 0x151   :  { %v1587_v18 = vpop.f32.mrb[58].mxu0  ;;  %v1633_v19 = vpop.f32.mrb[58].mxu1 }
 0x152   :  { %v5867_v20 = vpop.f32.mrb[59].mxu1  ;;  %v5861_v23 = vpop.f32.mrb[59].mxu0 }
 0x157   :  { %v7122_v26 = vpop.f32.mrb[60].mxu0  ;;  %v7124_v27 = vpop.f32.mrb[60].mxu1 }
 0x158   :  { %v5872_v28 = vpop.f32.mrb[61].mxu0  ;;  %v5878_v29 = vpop.f32.mrb[61].mxu1 }
 0x159   :  { %v1679_v30 = vpop.f32.mrb[62].mxu0  ;;  %v1725_v31 = vpop.f32.mrb[62].mxu1 }
 0x15a   :  { %v5879_v32 = vpop.f32.mrb[63].mxu1  ;;  %v5873_v39 = vpop.f32.mrb[63].mxu0 }
 0x15f   :  { %v7126_v40 = vpop.f32.mrb[64].mxu0  ;;  %v7128_v41 = vpop.f32.mrb[64].mxu1 }
 0x160   :  { %v5884_v42 = vpop.f32.mrb[65].mxu0  ;;  %v5890_v43 = vpop.f32.mrb[65].mxu1 }
 0x161   :  { %v1771_v44 = vpop.f32.mrb[66].mxu0  ;;  %v1817_v45 = vpop.f32.mrb[66].mxu1 }
 0x162   :  { %v5891_v50 = vpop.f32.mrb[67].mxu1  ;;  %v5885_v53 = vpop.f32.mrb[67].mxu0 }
 0x167   :  { %v7130_v54 = vpop.f32.mrb[68].mxu0  ;;  %v7132_v55 = vpop.f32.mrb[68].mxu1 }
 0x168   :  { %v5896_v56 = vpop.f32.mrb[69].mxu0  ;;  %v5902_v59 = vpop.f32.mrb[69].mxu1 }
 0x169   :  { %v1863_v62 = vpop.f32.mrb[70].mxu0  ;;  %v1909_v2 = vpop.f32.mrb[70].mxu1 }
 0x16a   :  { %v5903_v3 = vpop.f32.mrb[71].mxu1  ;;  %v5897_v6 = vpop.f32.mrb[71].mxu0 }
 0x16e   :  { %v2467_v7 = vpop.xlane.xlu0 %2466 }
 0x16f   :  { %v2609_v8 = vsub.f32 %v7014_v37, %v2467_v7  ;;  %v7135_v11 = vpop.f32.mrb[72].mxu0  ;;  %v7137_v16 = vpop.f32.mrb[72].mxu1 }
 0x170   :  { %v5908_v17 = vpop.f32.mrb[73].mxu0  ;;  %v5914_v18 = vpop.f32.mrb[73].mxu1 }
 0x171   :  { %v2657_v19 = vmul.f32 1.442695, %v2609_v8  ;;  %v1955_v20 = vpop.f32.mrb[74].mxu0  ;;  %v2001_v23 = vpop.f32.mrb[74].mxu1 }
 0x172   :  { %v2470_v28 = vpop.xlane.xlu0 %2469  ;;  %v5915_v29 = vpop.f32.mrb[75].mxu1 }
 0x173   :  { %6266 = vpow2.f32 %v2657_v19  ;;  %v2610_v30 = vsub.f32 %v7016_v38, %v2470_v28  ;;  %v5909_v31 = vpop.f32.mrb[75].mxu0 }
 0x175   :  { %v2659_v32 = vmul.f32 1.442695, %v2610_v30 }
 0x176   :  { %v2473_v39 = vpop.xlane.xlu1 %2472 }
 0x177   :  { %6268 = vpow2.f32 %v2659_v32  ;;  %v2611_v37 = vsub.f32 %v7022_v47, %v2473_v39  ;;  %v7141_v42 = vpop.f32.mrb[76].mxu0  ;;  %v7143_v43 = vpop.f32.mrb[76].mxu1 }
 0x178   :  { %v5920_v44 = vpop.f32.mrb[77].mxu0  ;;  %v5926_v45 = vpop.f32.mrb[77].mxu1 }
 0x179   :  { %v2661_v50 = vmul.f32 1.442695, %v2611_v37  ;;  %v2047_v53 = vpop.f32.mrb[78].mxu0  ;;  %v2093_v56 = vpop.f32.mrb[78].mxu1  ;;  %v2540_v44 = vsel %vm2464_vm2, %v7112_v52, -inf }
 0x17a   :  { %v2476_v59 = vpop.xlane.xlu1 %2475  ;;  %v5927_v62 = vpop.f32.mrb[79].mxu1 }
 0x17b   :  { %6270 = vpow2.f32 %v2661_v50  ;;  %v2612_v38 = vsub.f32 %v7024_v48, %v2476_v59  ;;  %v5921_v2 = vpop.f32.mrb[79].mxu0  ;;  %v2537_v48 = vsel %vm2464_vm2, %v7110_v51, -inf }
 0x17d   :  { %v7146_v3 = vpop.eup %6266  ;;  %v2663_v6 = vmul.f32 1.442695, %v2612_v38 }
 0x17e   :  { %v2482_v7 = vpop.xlane.xlu1 %2481  ;;  %v2479_v47 = vpop.xlane.xlu0 %2478  ;;  %v2753_v8 = vsel %vm2464_vm2, %v7146_v3, 0.0 }
 0x17f   :  { %6272 = vpow2.f32 %v2663_v6  ;;  %v2614_v17 = vsub.f32 %v7032_v58, %v2482_v7  ;;  %v2613_v18 = vsub.f32 %v7030_v57, %v2479_v47  ;;  %2754 = vadd.xlane.f32.xlu0 %v2753_v8  ;;  %v7152_v19 = vpop.f32.mrb[80].mxu0  ;;  %v7154_v20 = vpop.f32.mrb[80].mxu1  ;;  %v2543_v6 = vsel %vm2464_vm2, %v7114_v63, -inf }
 0x180   :  { %v5932_v23 = vpop.f32.mrb[81].mxu0  ;;  %v5938_v28 = vpop.f32.mrb[81].mxu1 }
 0x181   :  { %v7158_v29 = vpop.eup %6268  ;;  %v2667_v30 = vmul.f32 1.442695, %v2614_v17  ;;  %v2665_v31 = vmul.f32 1.442695, %v2613_v18  ;;  %v2139_v32 = vpop.f32.mrb[82].mxu0 }
 0x182   :  { %v2185_v39 = vpop.f32.mrb[82].mxu1  ;;  %v2756_v58 = vsel %vm2464_vm2, %v7158_v29, 0.0  ;;  %v5933_v37 = vpop.f32.mrb[83].mxu0 }
 0x183   :  { %v5939_v57 = vpop.f32.mrb[83].mxu1  ;;  %2757 = vadd.xlane.f32.xlu1 %v2756_v58  ;;  %2538 = vmax.xlane.f32.xlu0 %v2537_v48  ;;  %6274 = vpow2.f32 %v2665_v31 }
 0x184   :  { %6276 = vpow2.f32 %v2667_v30  ;;  %v2546_v30 = vsel %vm2464_vm2, %v7116_v1, -inf }
 0x185   :  { %v7164_v45 = vpop.eup %6270 }
 0x186   :  { %v2488_v50 = vpop.xlane.xlu1 %2487  ;;  %v2485_v53 = vpop.xlane.xlu0 %2484  ;;  %v2759_v56 = vsel %vm2464_vm2, %v7164_v45, 0.0 }
 0x187   :  { %v2616_v59 = vsub.f32 %v7040_v5, %v2488_v50  ;;  %v2615_v62 = vsub.f32 %v7038_v4, %v2485_v53  ;;  %2541 = vmax.xlane.f32.xlu1 %v2540_v44  ;;  %2760 = vadd.xlane.f32.xlu0 %v2759_v56  ;;  %v7170_v38 = vpop.f32.mrb[84].mxu0  ;;  %v7172_v2 = vpop.f32.mrb[84].mxu1  ;;  %v2549_v56 = vsel %vm2464_vm2, %v7118_v12, -inf }
 0x188   :  { %v5944_v7 = vpop.f32.mrb[85].mxu0  ;;  %v5950_v47 = vpop.f32.mrb[85].mxu1 }
 0x189   :  { %v7176_v8 = vpop.eup %6272  ;;  %v2671_v17 = vmul.f32 1.442695, %v2616_v59  ;;  %v2669_v18 = vmul.f32 1.442695, %v2615_v62  ;;  %v2231_v48 = vpop.f32.mrb[86].mxu0 }
 0x18a   :  { %v2277_v23 = vpop.f32.mrb[86].mxu1  ;;  %v2762_v4 = vsel %vm2464_vm2, %v7176_v8, 0.0  ;;  %v5945_v5 = vpop.f32.mrb[87].mxu0  ;;  %v2552_v48 = vsel %vm2464_vm2, %v7120_v13, -inf }
 0x18b   :  { %v5951_v28 = vpop.f32.mrb[87].mxu1  ;;  %2763 = vadd.xlane.f32.xlu1 %v2762_v4  ;;  %2544 = vmax.xlane.f32.xlu0 %v2543_v6  ;;  %6278 = vpow2.f32 %v2669_v18 }
 0x18c   :  { %6280 = vpow2.f32 %v2671_v17  ;;  %v3041_v28 = vld [vmem:[%s8066_s2] sm:$0x3] }
 0x18d   :  { %v7182_v31 = vpop.eup %6274 }
 0x18e   :  { %v2494_v32 = vpop.xlane.xlu1 %2493  ;;  %v2491_v39 = vpop.xlane.xlu0 %2490  ;;  %v2765_v44 = vsel %vm2464_vm2, %v7182_v31, 0.0 }
 0x18f   :  { %v7184_v58 = vpop.eup %6276  ;;  %v2618_v57 = vsub.f32 %v7048_v15, %v2494_v32  ;;  %v2617_v37 = vsub.f32 %v7046_v14, %v2491_v39  ;;  %2547 = vmax.xlane.f32.xlu1 %v2546_v30  ;;  %v7190_v50 = vpop.f32.mrb[88].mxu0  ;;  %2766 = vadd.xlane.f32.xlu0 %v2765_v44 }
 0x190   :  { %v7192_v53 = vpop.f32.mrb[88].mxu1  ;;  %v5956_v59 = vpop.f32.mrb[89].mxu0  ;;  %v2768_v14 = vsel %vm2464_vm2, %v7184_v58, 0.0 }
 0x191   :  { %v5962_v62 = vpop.f32.mrb[89].mxu1  ;;  %v2675_v6 = vmul.f32 1.442695, %v2618_v57  ;;  %v2673_v7 = vmul.f32 1.442695, %v2617_v37  ;;  %v2323_v47 = vpop.f32.mrb[90].mxu0 }
 0x192   :  { %v2369_v15 = vpop.f32.mrb[90].mxu1  ;;  %v5957_v17 = vpop.f32.mrb[91].mxu0  ;;  %v2555_v59 = vsel %vm2464_vm2, %v7122_v26, -inf }
 0x193   :  { %v5963_v18 = vpop.f32.mrb[91].mxu1  ;;  %2769 = vadd.xlane.f32.xlu1 %v2768_v14  ;;  %6282 = vpow2.f32 %v2673_v7  ;;  %2550 = vmax.xlane.f32.xlu0 %v2549_v56  ;;  %v3089_v56 = vpack.c.bf16 %v3041_v28, %v3041_v28 }
 0x194   :  { %6284 = vpow2.f32 %v2675_v6 }
 0x195   :  { %v7200_v23 = vpop.eup %6278  ;;  %v3143_v18 = vsel %vm3141_vm3, %v3089_v56, 0 }
 0x196   :  { %v2500_v4 = vpop.xlane.xlu1 %2499  ;;  %v2497_v5 = vpop.xlane.xlu0 %2496  ;;  %v2771_v57 = vsel %vm2464_vm2, %v7200_v23, 0.0  ;;  %5977 = vmatpush3.bf16.msra.mxu0 %v3143_v18 }
 0x197   :  { %v7205_v30 = vpop.eup %6280  ;;  %v2620_v32 = vsub.f32 %v7056_v25, %v2500_v4  ;;  %v2619_v39 = vsub.f32 %v7054_v24, %v2497_v5  ;;  %2553 = vmax.xlane.f32.xlu1 %v2552_v48  ;;  %v7211_v37 = vpop.f32.mrb[92].mxu0  ;;  %2772 = vadd.xlane.f32.xlu0 %v2771_v57  ;;  %v3042_v48 = vld [vmem:[%s8066_s2 + $0x2] sm:$0x3]  ;;  %v2558_v5 = vsel %vm2464_vm2, %v7124_v27, -inf }
 0x198   :  { %v7213_v44 = vpop.f32.mrb[92].mxu1  ;;  %v5968_v62 = vpop.f32.mrb[93].mxu0  ;;  %v2774_v15 = vsel %vm2464_vm2, %v7205_v30, 0.0  ;;  %v3090_v4 = vpack.c.bf16 %v3042_v48, %v3042_v48  ;;  %5988 = vmatprep.subr.bf16.mxu0 %v6458_v0 }
 0x199   :  { %v5974_v6 = vpop.f32.mrb[93].mxu1  ;;  %v2679_v7 = vmul.f32 1.442695, %v2620_v32  ;;  %v2677_v25 = vmul.f32 1.442695, %v2619_v39  ;;  %v2415_v47 = vpop.f32.mrb[94].mxu0 }
 0x19a   :  { %v2461_v24 = vpop.f32.mrb[94].mxu1  ;;  %v5969_v14 = vpop.f32.mrb[95].mxu0  ;;  %v3189_v28 = vsel %vm3141_vm3, %v3090_v4, 0  ;;  %v2561_v47 = vsel %vm2464_vm2, %v7126_v40, -inf }
 0x19b   :  { %v5975_v17 = vpop.f32.mrb[95].mxu1  ;;  %2775 = vadd.xlane.f32.xlu1 %v2774_v15  ;;  %6286 = vpow2.f32 %v2677_v25  ;;  %2556 = vmax.xlane.f32.xlu0 %v2555_v59 }
 0x19c   :  { %6288 = vpow2.f32 %v2679_v7  ;;  %5983 = vmatpush3.bf16.msra.mxu1 %v3189_v28 }
 0x19d   :  { %v7227_v32 = vpop.eup %6282  ;;  %5994 = vmatprep.subr.bf16.mxu1 %v6458_v0 }
 0x19e   :  { %v2506_v39 = vpop.xlane.xlu1 %2505  ;;  %v2503_v57 = vpop.xlane.xlu0 %2502  ;;  %v2777_v59 = vsel %vm2464_vm2, %v7227_v32, 0.0 }
 0x19f   :  { %v7229_v56 = vpop.eup %6284  ;;  %v2622_v62 = vsub.f32 %v7064_v35, %v2506_v39  ;;  %v2621_v6 = vsub.f32 %v7062_v34, %v2503_v57  ;;  %2559 = vmax.xlane.f32.xlu1 %v2558_v5  ;;  %2778 = vadd.xlane.f32.xlu0 %v2777_v59  ;;  %v2564_v34 = vsel %vm2464_vm2, %v7128_v41, -inf  ;;  %v2567_v39 = vsel %vm2464_vm2, %v7130_v54, -inf }
 0x1a0   :  { %v2780_v24 = vsel %vm2464_vm2, %v7229_v56, 0.0 }
 0x1a1   :  { %v2683_v7 = vmul.f32 1.442695, %v2622_v62  ;;  %v2681_v25 = vmul.f32 1.442695, %v2621_v6 }
 0x1a3   :  { %2781 = vadd.xlane.f32.xlu1 %v2780_v24  ;;  %6290 = vpow2.f32 %v2681_v25  ;;  %2562 = vmax.xlane.f32.xlu0 %v2561_v47 }
 0x1a4   :  { %6292 = vpow2.f32 %v2683_v7 }
 0x1a5   :  { %v7242_v35 = vpop.eup %6286 }
 0x1a6   :  { %v2512_v15 = vpop.xlane.xlu1 %2511  ;;  %v2509_v14 = vpop.xlane.xlu0 %2508  ;;  %v2783_v4 = vsel %vm2464_vm2, %v7242_v35, 0.0 }
 0x1a7   :  { %v7244_v17 = vpop.eup %6288  ;;  %v2624_v18 = vsub.f32 %v7072_v49, %v2512_v15  ;;  %v2623_v48 = vsub.f32 %v7070_v46, %v2509_v14  ;;  %2565 = vmax.xlane.f32.xlu1 %v2564_v34  ;;  %2784 = vadd.xlane.f32.xlu0 %v2783_v4  ;;  %v2570_v49 = vsel %vm2464_vm2, %v7132_v55, -inf  ;;  %v2573_v15 = vsel %vm2464_vm2, %v7135_v11, -inf }
 0x1a8   :  { %v2786_v57 = vsel %vm2464_vm2, %v7244_v17, 0.0 }
 0x1a9   :  { %v2687_v5 = vmul.f32 1.442695, %v2624_v18  ;;  %v2685_v28 = vmul.f32 1.442695, %v2623_v48 }
 0x1ab   :  { %2787 = vadd.xlane.f32.xlu1 %v2786_v57  ;;  %6294 = vpow2.f32 %v2685_v28  ;;  %2568 = vmax.xlane.f32.xlu0 %v2567_v39 }
 0x1ac   :  { %6296 = vpow2.f32 %v2687_v5 }
 0x1ad   :  { %v7256_v46 = vpop.eup %6290 }
 0x1ae   :  { %v2518_v62 = vpop.xlane.xlu1 %2517  ;;  %v2515_v6 = vpop.xlane.xlu0 %2514  ;;  %v2789_v47 = vsel %vm2464_vm2, %v7256_v46, 0.0 }
 0x1af   :  { %v7258_v59 = vpop.eup %6292  ;;  %v2626_v7 = vsub.f32 %v7080_v61, %v2518_v62  ;;  %v2625_v25 = vsub.f32 %v7078_v60, %v2515_v6  ;;  %2571 = vmax.xlane.f32.xlu1 %v2570_v49  ;;  %2790 = vadd.xlane.f32.xlu0 %v2789_v47  ;;  %v2576_v61 = vsel %vm2464_vm2, %v7137_v16, -inf  ;;  %v2579_v62 = vsel %vm2464_vm2, %v7141_v42, -inf }
 0x1b0   :  { %v2792_v14 = vsel %vm2464_vm2, %v7258_v59, 0.0 }
 0x1b1   :  { %v2691_v24 = vmul.f32 1.442695, %v2626_v7  ;;  %v2689_v34 = vmul.f32 1.442695, %v2625_v25 }
 0x1b3   :  { %2793 = vadd.xlane.f32.xlu1 %v2792_v14  ;;  %6298 = vpow2.f32 %v2689_v34  ;;  %2574 = vmax.xlane.f32.xlu0 %v2573_v15 }
 0x1b4   :  { %6300 = vpow2.f32 %v2691_v24 }
 0x1b5   :  { %v7270_v60 = vpop.eup %6294 }
 0x1b6   :  { %v2524_v18 = vpop.xlane.xlu1 %2523  ;;  %v2521_v48 = vpop.xlane.xlu0 %2520  ;;  %v2795_v39 = vsel %vm2464_vm2, %v7270_v60, 0.0 }
 0x1b7   :  { %v7272_v4 = vpop.eup %6296  ;;  %v2628_v5 = vsub.f32 %v7088_v10, %v2524_v18  ;;  %v2627_v28 = vsub.f32 %v7086_v9, %v2521_v48  ;;  %2577 = vmax.xlane.f32.xlu1 %v2576_v61  ;;  %2796 = vadd.xlane.f32.xlu0 %v2795_v39  ;;  %v2582_v10 = vsel %vm2464_vm2, %v7143_v43, -inf  ;;  %v2585_v18 = vsel %vm2464_vm2, %v7152_v19, -inf }
 0x1b8   :  { %v2798_v6 = vsel %vm2464_vm2, %v7272_v4, 0.0 }
 0x1b9   :  { %v2695_v57 = vmul.f32 1.442695, %v2628_v5  ;;  %v2693_v49 = vmul.f32 1.442695, %v2627_v28 }
 0x1bb   :  { %2799 = vadd.xlane.f32.xlu1 %v2798_v6  ;;  %6302 = vpow2.f32 %v2693_v49  ;;  %2580 = vmax.xlane.f32.xlu0 %v2579_v62 }
 0x1bc   :  { %6304 = vpow2.f32 %v2695_v57 }
 0x1bd   :  { %v7284_v9 = vpop.eup %6298 }
 0x1be   :  { %v2530_v7 = vpop.xlane.xlu1 %2529  ;;  %v2527_v25 = vpop.xlane.xlu0 %2526  ;;  %v2801_v15 = vsel %vm2464_vm2, %v7284_v9, 0.0 }
 0x1bf   :  { %v7286_v47 = vpop.eup %6300  ;;  %v2630_v24 = vsub.f32 %v7096_v22, %v2530_v7  ;;  %v2629_v34 = vsub.f32 %v7094_v21, %v2527_v25  ;;  %2583 = vmax.xlane.f32.xlu1 %v2582_v10  ;;  %2802 = vadd.xlane.f32.xlu0 %v2801_v15  ;;  %v2588_v22 = vsel %vm2464_vm2, %v7154_v20, -inf  ;;  %v2591_v7 = vsel %vm2464_vm2, %v7170_v38, -inf }
 0x1c0   :  { %v2804_v48 = vsel %vm2464_vm2, %v7286_v47, 0.0  ;;  %v2597_v15 = vsel %vm2464_vm2, %v7190_v50, -inf }
 0x1c1   :  { %v2699_v14 = vmul.f32 1.442695, %v2630_v24  ;;  %v2697_v61 = vmul.f32 1.442695, %v2629_v34 }
 0x1c3   :  { %2805 = vadd.xlane.f32.xlu1 %v2804_v48  ;;  %6306 = vpow2.f32 %v2697_v61  ;;  %2586 = vmax.xlane.f32.xlu0 %v2585_v18  ;;  %v2600_v61 = vsel %vm2464_vm2, %v7192_v53, -inf }
 0x1c4   :  { %6308 = vpow2.f32 %v2699_v14 }
 0x1c5   :  { %v7298_v21 = vpop.eup %6302 }
 0x1c6   :  { %v2536_v5 = vpop.xlane.xlu1 %2535  ;;  %v2533_v28 = vpop.xlane.xlu0 %2532  ;;  %v2807_v62 = vsel %vm2464_vm2, %v7298_v21, 0.0 }
 0x1c7   :  { %v7300_v39 = vpop.eup %6304  ;;  %v2632_v57 = vsub.f32 %v7104_v36, %v2536_v5  ;;  %v2631_v49 = vsub.f32 %v7102_v33, %v2533_v28  ;;  %2589 = vmax.xlane.f32.xlu1 %v2588_v22  ;;  %2808 = vadd.xlane.f32.xlu0 %v2807_v62  ;;  %v2594_v36 = vsel %vm2464_vm2, %v7172_v2, -inf  ;;  %v2603_v5 = vsel %vm2464_vm2, %v7211_v37, -inf }
 0x1c8   :  { %v2810_v25 = vsel %vm2464_vm2, %v7300_v39, 0.0 }
 0x1c9   :  { %v2703_v6 = vmul.f32 1.442695, %v2632_v57  ;;  %v2701_v10 = vmul.f32 1.442695, %v2631_v49  ;;  %v2606_v57 = vsel %vm2464_vm2, %v7213_v44, -inf }
 0x1cb   :  { %2811 = vadd.xlane.f32.xlu1 %v2810_v25  ;;  %6310 = vpow2.f32 %v2701_v10  ;;  %2592 = vmax.xlane.f32.xlu0 %v2591_v7  ;;  %v3043_v25 = vld [vmem:[%s8066_s2 + $0x4] sm:$0x3] }
 0x1cc   :  { %6312 = vpow2.f32 %v2703_v6 }
 0x1cd   :  { %v7312_v33 = vpop.eup %6306 }
 0x1ce   :  { %v7314_v24 = vpop.eup %6308  ;;  %v2813_v34 = vsel %vm2464_vm2, %v7312_v33, 0.0 }
 0x1cf   :  { %2595 = vmax.xlane.f32.xlu1 %v2594_v36  ;;  %2814 = vadd.xlane.f32.xlu0 %v2813_v34  ;;  %v2816_v14 = vsel %vm2464_vm2, %v7314_v24, 0.0 }
 0x1d3   :  { %2817 = vadd.xlane.f32.xlu1 %v2816_v14  ;;  %2598 = vmax.xlane.f32.xlu0 %v2597_v15  ;;  %v3091_v14 = vpack.c.bf16 %v3043_v25, %v3043_v25 }
 0x1d5   :  { %v7324_v18 = vpop.eup %6310 }
 0x1d6   :  { %v7326_v48 = vpop.eup %6312  ;;  %v2819_v22 = vsel %vm2464_vm2, %v7324_v18, 0.0 }
 0x1d7   :  { %2601 = vmax.xlane.f32.xlu1 %v2600_v61  ;;  %2820 = vadd.xlane.f32.xlu0 %v2819_v22  ;;  %v2822_v28 = vsel %vm2464_vm2, %v7326_v48, 0.0 }
 0x1db   :  { %2823 = vadd.xlane.f32.xlu1 %v2822_v28  ;;  %2604 = vmax.xlane.f32.xlu0 %v2603_v5  ;;  %v3044_v5 = vld [vmem:[%s8066_s2 + $0x6] sm:$0x3] }
 0x1df   :  { %2607 = vmax.xlane.f32.xlu1 %v2606_v57 }
 0x20c   :  { %v2755_v49 = vpop.xlane.xlu0 %2754 }
 0x20d   :  { %6314 = vrcp.f32 %v2755_v49 }
 0x210   :  { %v2758_v62 = vpop.xlane.xlu1 %2757  ;;  %v2539_v6 = vpop.xlane.xlu0 %2538 }
 0x211   :  { %6316 = vrcp.f32 %v2758_v62  ;;  %v2633_v10 = vsub.f32 %v7110_v51, %v2539_v6  ;;  %v3092_v6 = vpack.c.bf16 %v3044_v5, %v3044_v5  ;;  %v3046_v5 = vld [vmem:[%s8066_s2 + $0xa] sm:$0x3] }
 0x213   :  { %v2705_v7 = vmul.f32 1.442695, %v2633_v10 }
 0x214   :  { %v2542_v36 = vpop.xlane.xlu1 %2541  ;;  %v2761_v34 = vpop.xlane.xlu0 %2760 }
 0x215   :  { %6318 = vpow2.f32 %v2705_v7  ;;  %v2634_v15 = vsub.f32 %v7112_v52, %v2542_v36  ;;  %v3235_v52 = vsel %vm3141_vm3, %v3091_v14, 0  ;;  %v3281_v14 = vsel %vm3141_vm3, %v3092_v6, 0 }
 0x216   :  { %6320 = vrcp.f32 %v2761_v34 }
 0x217   :  { %v6315_v61 = vpop.eup %6314  ;;  %v2707_v22 = vmul.f32 1.442695, %v2634_v15 }
 0x218   :  { %v2945_v51 = vmul.f32 %v6315_v61, %v7146_v3  ;;  %v2764_v28 = vpop.xlane.xlu1 %2763  ;;  %v2545_v57 = vpop.xlane.xlu0 %2544  ;;  %v3045_v3 = vld [vmem:[%s8066_s2 + $0x8] sm:$0x3] }
 0x219   :  { %6322 = vpow2.f32 %v2707_v22  ;;  %v2635_v49 = vsub.f32 %v7114_v63, %v2545_v57  ;;  %v3093_v22 = vpack.c.bf16 %v3045_v3, %v3045_v3 }
 0x21a   :  { %6324 = vrcp.f32 %v2764_v28  ;;  %v2993_v62 = vpack.c.bf16 %v2945_v51, %v2945_v51 }
 0x21b   :  { %v6317_v10 = vpop.eup %6316  ;;  %v2709_v7 = vmul.f32 1.442695, %v2635_v49 }
 0x21c   :  { %v2946_v25 = vmul.f32 %v6317_v10, %v7158_v29  ;;  %v2548_v36 = vpop.xlane.xlu1 %2547  ;;  %5979 = vmatmul.mubr.msk.bf16.vlgmr.msra.gmra.mrb[96].mxu0 %vm3137_vm4, %v2993_v62  ;;  %v2767_v34 = vpop.xlane.xlu0 %2766 }
 0x21d   :  { %6326 = vpow2.f32 %v2709_v7  ;;  %v2636_v63 = vsub.f32 %v7116_v1, %v2548_v36  ;;  %5989 = vmatpush3.bf16.msra.mxu0 %v3235_v52  ;;  %5990 = vmatprep.mubr.msk.bf16.mxu0 %vm6459_vm1, %v6458_v0  ;;  %v3094_v52 = vpack.c.bf16 %v3046_v5, %v3046_v5  ;;  %v3327_v7 = vsel %vm3141_vm3, %v3093_v22, 0 }
 0x21e   :  { %6328 = vrcp.f32 %v2767_v34  ;;  %v2994_v15 = vpack.c.bf16 %v2946_v25, %v2946_v25  ;;  %6000 = vmatprep.subr.bf16.mxu0 %v6458_v0 }
 0x21f   :  { %v7357_v29 = vpop.eup %6318  ;;  %v2711_v61 = vmul.f32 1.442695, %v2636_v63 }
 0x220   :  { %v6321_v1 = vpop.eup %6320  ;;  %5985 = vmatmul.mubr.msk.bf16.vlgmr.msra.gmra.mrb[96].mxu1 %vm3137_vm4, %v2994_v15  ;;  %v2770_v51 = vpop.xlane.xlu1 %2769  ;;  %v2825_v28 = vsel %vm2464_vm2, %v7357_v29, 0.0 }
 0x221   :  { %v2947_v57 = vmul.f32 %v6321_v1, %v7164_v45  ;;  %6330 = vpow2.f32 %v2711_v61  ;;  %v2551_v49 = vpop.xlane.xlu0 %2550  ;;  %2826 = vadd.xlane.f32.xlu0 %v2825_v28  ;;  %5995 = vmatpush3.bf16.msra.mxu1 %v3281_v14  ;;  %v3373_v14 = vsel %vm3141_vm3, %v3094_v52, 0  ;;  %v3048_v28 = vld [vmem:[%s8066_s2 + $0xe] sm:$0x3] }
 0x222   :  { %6332 = vrcp.f32 %v2770_v51  ;;  %v2637_v62 = vsub.f32 %v7118_v12, %v2551_v49  ;;  %5996 = vmatprep.mubr.msk.bf16.mxu1 %vm6459_vm1, %v6458_v0  ;;  %6006 = vmatprep.subr.bf16.mxu1 %v6458_v0  ;;  %v3047_v12 = vld [vmem:[%s8066_s2 + $0xc] sm:$0x3] }
 0x223   :  { %v7370_v6 = vpop.eup %6322  ;;  %v2995_v10 = vpack.c.bf16 %v2947_v57, %v2947_v57 }
 0x224   :  { %v6325_v25 = vpop.eup %6324  ;;  %v2713_v45 = vmul.f32 1.442695, %v2637_v62  ;;  %v2554_v36 = vpop.xlane.xlu1 %2553  ;;  %v2828_v3 = vsel %vm2464_vm2, %v7370_v6, 0.0 }
 0x225   :  { %v2948_v63 = vmul.f32 %v6325_v25, %v7176_v8  ;;  %v2638_v34 = vsub.f32 %v7120_v13, %v2554_v36  ;;  %5991 = vmatmul.mubr.msk.bf16.vlgmr.msra.gmra.mrb[100].mxu0 %vm3137_vm4, %v2995_v10  ;;  %v2773_v15 = vpop.xlane.xlu0 %2772  ;;  %2829 = vadd.xlane.f32.xlu1 %v2828_v3  ;;  %v3095_v8 = vpack.c.bf16 %v3047_v12, %v3047_v12 }
 0x226   :  { %6334 = vpow2.f32 %v2713_v45  ;;  %6001 = vmatpush3.bf16.msra.mxu0 %v3327_v7  ;;  %6002 = vmatprep.mubr.msk.bf16.mxu0 %vm6459_vm1, %v6458_v0 }
 0x227   :  { %v7384_v61 = vpop.eup %6326  ;;  %v2715_v22 = vmul.f32 1.442695, %v2638_v34  ;;  %6336 = vrcp.f32 %v2773_v15  ;;  %v2996_v5 = vpack.c.bf16 %v2948_v63, %v2948_v63  ;;  %6012 = vmatprep.subr.bf16.mxu0 %v6458_v0  ;;  %v3419_v7 = vsel %vm3141_vm3, %v3095_v8, 0  ;;  %v3049_v34 = vld [vmem:[%s8066_s2 + $0x10] sm:$0x3] }
 0x228   :  { %v6329_v13 = vpop.eup %6328  ;;  %v2776_v1 = vpop.xlane.xlu1 %2775  ;;  %v2831_v51 = vsel %vm2464_vm2, %v7384_v61, 0.0  ;;  %v3050_v8 = vld [vmem:[%s8066_s2 + $0x12] sm:$0x3] }
 0x229   :  { %v2949_v57 = vmul.f32 %v6329_v13, %v7182_v31  ;;  %6338 = vpow2.f32 %v2715_v22  ;;  %5997 = vmatmul.mubr.msk.bf16.vlgmr.msra.gmra.mrb[100].mxu1 %vm3137_vm4, %v2996_v5  ;;  %v2557_v49 = vpop.xlane.xlu0 %2556  ;;  %2832 = vadd.xlane.f32.xlu0 %v2831_v51  ;;  %v3096_v31 = vpack.c.bf16 %v3048_v28, %v3048_v28  ;;  %v3097_v5 = vpack.c.bf16 %v3049_v34, %v3049_v34 }
 0x22a   :  { %6340 = vrcp.f32 %v2776_v1  ;;  %v2639_v62 = vsub.f32 %v7122_v26, %v2557_v49  ;;  %6007 = vmatpush3.bf16.msra.mxu1 %v3373_v14  ;;  %6008 = vmatprep.mubr.msk.bf16.mxu1 %vm6459_vm1, %v6458_v0 }
 0x22b   :  { %v7397_v52 = vpop.eup %6330  ;;  %v2997_v10 = vpack.c.bf16 %v2949_v57, %v2949_v57  ;;  %6018 = vmatprep.subr.bf16.mxu1 %v6458_v0 }
 0x22c   :  { %v6333_v25 = vpop.eup %6332  ;;  %v2717_v45 = vmul.f32 1.442695, %v2639_v62  ;;  %v2560_v36 = vpop.xlane.xlu1 %2559  ;;  %v2834_v3 = vsel %vm2464_vm2, %v7397_v52, 0.0  ;;  %v3098_v62 = vpack.c.bf16 %v3050_v8, %v3050_v8 }
 0x22d   :  { %v2950_v26 = vmul.f32 %v6333_v25, %v7184_v58  ;;  %v2640_v12 = vsub.f32 %v7124_v27, %v2560_v36  ;;  %6003 = vmatmul.mubr.msk.bf16.vlgmr.msra.gmra.mrb[104].mxu0 %vm3137_vm4, %v2997_v10  ;;  %v2779_v63 = vpop.xlane.xlu0 %2778  ;;  %2835 = vadd.xlane.f32.xlu1 %v2834_v3  ;;  %v3465_v58 = vsel %vm3141_vm3, %v3096_v31, 0 }
 0x22e   :  { %6342 = vpow2.f32 %v2717_v45  ;;  %6013 = vmatpush3.bf16.msra.mxu0 %v3419_v7  ;;  %6014 = vmatprep.mubr.msk.bf16.mxu0 %vm6459_vm1, %v6458_v0  ;;  %v3511_v45 = vsel %vm3141_vm3, %v3097_v5, 0 }
 0x22f   :  { %v2719_v15 = vmul.f32 1.442695, %v2640_v12  ;;  %6344 = vrcp.f32 %v2779_v63  ;;  %v2998_v14 = vpack.c.bf16 %v2950_v26, %v2950_v26  ;;  %6024 = vmatprep.subr.bf16.mxu0 %v6458_v0  ;;  %v3051_v26 = vld [vmem:[%s8066_s2 + $0x14] sm:$0x3] }
 0x230   :  { %v7413_v27 = vpop.eup %6334  ;;  %v2782_v22 = vpop.xlane.xlu1 %2781 }
 0x231   :  { %v6337_v13 = vpop.eup %6336  ;;  %6346 = vpow2.f32 %v2719_v15  ;;  %6009 = vmatmul.mubr.msk.bf16.vlgmr.msra.gmra.mrb[104].mxu1 %vm3137_vm4, %v2998_v14  ;;  %v2563_v1 = vpop.xlane.xlu0 %2562  ;;  %v2837_v51 = vsel %vm2464_vm2, %v7413_v27, 0.0  ;;  %v3099_v15 = vpack.c.bf16 %v3051_v26, %v3051_v26  ;;  %v3052_v14 = vld [vmem:[%s8066_s2 + $0x16] sm:$0x3]  ;;  %v3054_v26 = vld [vmem:[%s8066_s2 + $0x1a] sm:$0x3] }
 0x232   :  { %v2951_v28 = vmul.f32 %v6337_v13, %v7200_v23  ;;  %6348 = vrcp.f32 %v2782_v22  ;;  %v2641_v57 = vsub.f32 %v7126_v40, %v2563_v1  ;;  %2838 = vadd.xlane.f32.xlu0 %v2837_v51  ;;  %6019 = vmatpush3.bf16.msra.mxu1 %v3465_v58  ;;  %v3100_v51 = vpack.c.bf16 %v3052_v14, %v3052_v14 }
 0x233   :  { %v7423_v49 = vpop.eup %6338  ;;  %6020 = vmatprep.mubr.msk.bf16.mxu1 %vm6459_vm1, %v6458_v0  ;;  %6030 = vmatprep.subr.bf16.mxu1 %v6458_v0 }
 0x234   :  { %v6341_v10 = vpop.eup %6340  ;;  %v2721_v7 = vmul.f32 1.442695, %v2641_v57  ;;  %v2566_v31 = vpop.xlane.xlu1 %2565  ;;  %v2999_v25 = vpack.c.bf16 %v2951_v28, %v2951_v28  ;;  %v2840_v23 = vsel %vm2464_vm2, %v7423_v49, 0.0 }
 0x235   :  { %v2952_v40 = vmul.f32 %v6341_v10, %v7205_v30  ;;  %v2642_v36 = vsub.f32 %v7128_v41, %v2566_v31  ;;  %v2785_v3 = vpop.xlane.xlu0 %2784  ;;  %2841 = vadd.xlane.f32.xlu1 %v2840_v23  ;;  %v3557_v30 = vsel %vm3141_vm3, %v3098_v62, 0  ;;  %v3053_v23 = vld [vmem:[%s8066_s2 + $0x18] sm:$0x3] }
 0x236   :  { %6350 = vpow2.f32 %v2721_v7  ;;  %6015 = vmatmul.mubr.msk.bf16.vlgmr.msra.gmra.mrb[108].mxu0 %vm3137_vm4, %v2999_v25  ;;  %v3603_v7 = vsel %vm3141_vm3, %v3099_v15, 0 }
 0x237   :  { %v2723_v12 = vmul.f32 1.442695, %v2642_v36  ;;  %6352 = vrcp.f32 %v2785_v3  ;;  %v3000_v63 = vpack.c.bf16 %v2952_v40, %v2952_v40  ;;  %6025 = vmatpush3.bf16.msra.mxu0 %v3511_v45  ;;  %6026 = vmatprep.mubr.msk.bf16.mxu0 %vm6459_vm1, %v6458_v0  ;;  %v3101_v3 = vpack.c.bf16 %v3053_v23, %v3053_v23 }
 0x238   :  { %v7440_v34 = vpop.eup %6342  ;;  %v2788_v41 = vpop.xlane.xlu1 %2787  ;;  %6036 = vmatprep.subr.bf16.mxu0 %v6458_v0 }
 0x239   :  { %v6345_v58 = vpop.eup %6344  ;;  %6354 = vpow2.f32 %v2723_v12  ;;  %6021 = vmatmul.mubr.msk.bf16.vlgmr.msra.gmra.mrb[108].mxu1 %vm3137_vm4, %v3000_v63  ;;  %v2569_v22 = vpop.xlane.xlu0 %2568  ;;  %v2843_v5 = vsel %vm2464_vm2, %v7440_v34, 0.0 }
 0x23a   :  { %v2953_v8 = vmul.f32 %v6345_v58, %v7227_v32  ;;  %6356 = vrcp.f32 %v2788_v41  ;;  %v2643_v13 = vsub.f32 %v7130_v54, %v2569_v22  ;;  %2844 = vadd.xlane.f32.xlu0 %v2843_v5  ;;  %6031 = vmatpush3.bf16.msra.mxu1 %v3557_v30  ;;  %v3102_v58 = vpack.c.bf16 %v3054_v26, %v3054_v26 }
 0x23b   :  { %v7451_v1 = vpop.eup %6346  ;;  %6032 = vmatprep.mubr.msk.bf16.mxu1 %vm6459_vm1, %v6458_v0  ;;  %6042 = vmatprep.subr.bf16.mxu1 %v6458_v0 }
 0x23c   :  { %v6349_v28 = vpop.eup %6348  ;;  %v2725_v57 = vmul.f32 1.442695, %v2643_v13  ;;  %v2572_v62 = vpop.xlane.xlu1 %2571  ;;  %v3001_v10 = vpack.c.bf16 %v2953_v8, %v2953_v8  ;;  %v2846_v32 = vsel %vm2464_vm2, %v7451_v1, 0.0 }
 0x23d   :  { %v2954_v54 = vmul.f32 %v6349_v28, %v7229_v56  ;;  %v2644_v31 = vsub.f32 %v7132_v55, %v2572_v62  ;;  %v2791_v25 = vpop.xlane.xlu0 %2790  ;;  %2847 = vadd.xlane.f32.xlu1 %v2846_v32  ;;  %v3649_v56 = vsel %vm3141_vm3, %v3100_v51, 0  ;;  %v3695_v51 = vsel %vm3141_vm3, %v3101_v3, 0  ;;  %v3055_v62 = vld [vmem:[%s8066_s2 + $0x1c] sm:$0x3] }
 0x23e   :  { %6358 = vpow2.f32 %v2725_v57  ;;  %6027 = vmatmul.mubr.msk.bf16.vlgmr.msra.gmra.mrb[112].mxu0 %vm3137_vm4, %v3001_v10 }
 0x23f   :  { %v2727_v45 = vmul.f32 1.442695, %v2644_v31  ;;  %6360 = vrcp.f32 %v2791_v25  ;;  %v3002_v40 = vpack.c.bf16 %v2954_v54, %v2954_v54  ;;  %6037 = vmatpush3.bf16.msra.mxu0 %v3603_v7  ;;  %6038 = vmatprep.mubr.msk.bf16.mxu0 %vm6459_vm1, %v6458_v0  ;;  %v3103_v54 = vpack.c.bf16 %v3055_v62, %v3055_v62  ;;  %v3056_v31 = vld [vmem:[%s8066_s2 + $0x1e] sm:$0x3] }
 0x240   :  { %v7468_v36 = vpop.eup %6350  ;;  %v2794_v55 = vpop.xlane.xlu1 %2793  ;;  %6048 = vmatprep.subr.bf16.mxu0 %v6458_v0  ;;  %v3104_v3 = vpack.c.bf16 %v3056_v31, %v3056_v31 }
 0x241   :  { %v6353_v12 = vpop.eup %6352  ;;  %6362 = vpow2.f32 %v2727_v45  ;;  %6033 = vmatmul.mubr.msk.bf16.vlgmr.msra.gmra.mrb[112].mxu1 %vm3137_vm4, %v3002_v40  ;;  %v2575_v63 = vpop.xlane.xlu0 %2574  ;;  %v2849_v30 = vsel %vm2464_vm2, %v7468_v36, 0.0 }
 0x242   :  { %v2955_v41 = vmul.f32 %v6353_v12, %v7242_v35  ;;  %6364 = vrcp.f32 %v2794_v55  ;;  %v2645_v15 = vsub.f32 %v7135_v11, %v2575_v63  ;;  %2850 = vadd.xlane.f32.xlu0 %v2849_v30  ;;  %6043 = vmatpush3.bf16.msra.mxu1 %v3649_v56 }
 0x243   :  { %v7479_v14 = vpop.eup %6354  ;;  %6044 = vmatprep.mubr.msk.bf16.mxu1 %vm6459_vm1, %v6458_v0  ;;  %6054 = vmatprep.subr.bf16.mxu1 %v6458_v0 }
 0x244   :  { %v6357_v22 = vpop.eup %6356  ;;  %v2729_v5 = vmul.f32 1.442695, %v2645_v15  ;;  %v2578_v8 = vpop.xlane.xlu1 %2577  ;;  %v3003_v13 = vpack.c.bf16 %v2955_v41, %v2955_v41  ;;  %v2852_v35 = vsel %vm2464_vm2, %v7479_v14, 0.0  ;;  %v3787_v41 = vsel %vm3141_vm3, %v3103_v54, 0 }
 0x245   :  { %v2956_v11 = vmul.f32 %v6357_v22, %v7244_v17  ;;  %v2646_v28 = vsub.f32 %v7137_v16, %v2578_v8  ;;  %v2797_v57 = vpop.xlane.xlu0 %2796  ;;  %2853 = vadd.xlane.f32.xlu1 %v2852_v35  ;;  %v3741_v17 = vsel %vm3141_vm3, %v3102_v58, 0  ;;  %v3057_v22 = vld [vmem:[%s8066_s2 + $0x20] sm:$0x3] }
 0x246   :  { %6366 = vpow2.f32 %v2729_v5  ;;  %6039 = vmatmul.mubr.msk.bf16.vlgmr.msra.gmra.mrb[116].mxu0 %vm3137_vm4, %v3003_v13  ;;  %v3105_v35 = vpack.c.bf16 %v3057_v22, %v3057_v22 }
 0x247   :  { %v2731_v10 = vmul.f32 1.442695, %v2646_v28  ;;  %6368 = vrcp.f32 %v2797_v57  ;;  %v3004_v32 = vpack.c.bf16 %v2956_v11, %v2956_v11  ;;  %6049 = vmatpush3.bf16.msra.mxu0 %v3695_v51  ;;  %6050 = vmatprep.mubr.msk.bf16.mxu0 %vm6459_vm1, %v6458_v0  ;;  %v3058_v51 = vld [vmem:[%s8066_s2 + $0x22] sm:$0x3] }
 0x248   :  { %v7496_v7 = vpop.eup %6358  ;;  %v2800_v16 = vpop.xlane.xlu1 %2799  ;;  %6060 = vmatprep.subr.bf16.mxu0 %v6458_v0 }
 0x249   :  { %v6361_v25 = vpop.eup %6360  ;;  %6370 = vpow2.f32 %v2731_v10  ;;  %6045 = vmatmul.mubr.msk.bf16.vlgmr.msra.gmra.mrb[116].mxu1 %vm3137_vm4, %v3004_v32  ;;  %v2581_v23 = vpop.xlane.xlu0 %2580  ;;  %v2855_v45 = vsel %vm2464_vm2, %v7496_v7, 0.0 }
 0x24a   :  { %v2957_v40 = vmul.f32 %v6361_v25, %v7256_v46  ;;  %6372 = vrcp.f32 %v2800_v16  ;;  %v2647_v56 = vsub.f32 %v7141_v42, %v2581_v23  ;;  %2856 = vadd.xlane.f32.xlu0 %v2855_v45  ;;  %6055 = vmatpush3.bf16.msra.mxu1 %v3741_v17  ;;  %v3106_v17 = vpack.c.bf16 %v3058_v51, %v3058_v51 }
 0x24b   :  { %v7507_v55 = vpop.eup %6362  ;;  %6056 = vmatprep.mubr.msk.bf16.mxu1 %vm6459_vm1, %v6458_v0  ;;  %6066 = vmatprep.subr.bf16.mxu1 %v6458_v0  ;;  %v3879_v23 = vsel %vm3141_vm3, %v3105_v35, 0 }
 0x24c   :  { %v6365_v26 = vpop.eup %6364  ;;  %v2733_v12 = vmul.f32 1.442695, %v2647_v56  ;;  %v2584_v63 = vpop.xlane.xlu1 %2583  ;;  %v3005_v30 = vpack.c.bf16 %v2957_v40, %v2957_v40  ;;  %v2858_v46 = vsel %vm2464_vm2, %v7507_v55, 0.0  ;;  %v3059_v56 = vld [vmem:[%s8066_s2 + $0x24] sm:$0x3] }
 0x24d   :  { %v2958_v42 = vmul.f32 %v6365_v26, %v7258_v59  ;;  %v2648_v15 = vsub.f32 %v7143_v43, %v2584_v63  ;;  %v2803_v58 = vpop.xlane.xlu0 %2802  ;;  %2859 = vadd.xlane.f32.xlu1 %v2858_v46  ;;  %v3833_v59 = vsel %vm3141_vm3, %v3104_v3, 0  ;;  %v3107_v63 = vpack.c.bf16 %v3059_v56, %v3059_v56 }
 0x24e   :  { %6374 = vpow2.f32 %v2733_v12  ;;  %6051 = vmatmul.mubr.msk.bf16.vlgmr.msra.gmra.mrb[120].mxu0 %vm3137_vm4, %v3005_v30  ;;  %v3060_v30 = vld [vmem:[%s8066_s2 + $0x26] sm:$0x3] }
 0x24f   :  { %v2735_v5 = vmul.f32 1.442695, %v2648_v15  ;;  %6376 = vrcp.f32 %v2803_v58  ;;  %v3006_v8 = vpack.c.bf16 %v2958_v42, %v2958_v42  ;;  %6061 = vmatpush3.bf16.msra.mxu0 %v3787_v41  ;;  %6062 = vmatprep.mubr.msk.bf16.mxu0 %vm6459_vm1, %v6458_v0  ;;  %v3971_v51 = vsel %vm3141_vm3, %v3107_v63, 0 }
 0x250   :  { %v7524_v13 = vpop.eup %6366  ;;  %v2806_v43 = vpop.xlane.xlu1 %2805  ;;  %6072 = vmatprep.subr.bf16.mxu0 %v6458_v0 }
 0x251   :  { %v6369_v11 = vpop.eup %6368  ;;  %6378 = vpow2.f32 %v2735_v5  ;;  %6057 = vmatmul.mubr.msk.bf16.vlgmr.msra.gmra.mrb[120].mxu1 %vm3137_vm4, %v3006_v8  ;;  %v2587_v28 = vpop.xlane.xlu0 %2586  ;;  %v2861_v57 = vsel %vm2464_vm2, %v7524_v13, 0.0  ;;  %v3108_v5 = vpack.c.bf16 %v3060_v30, %v3060_v30 }
 0x252   :  { %v2959_v62 = vmul.f32 %v6369_v11, %v7270_v60  ;;  %6380 = vrcp.f32 %v2806_v43  ;;  %v2649_v10 = vsub.f32 %v7152_v19, %v2587_v28  ;;  %2862 = vadd.xlane.f32.xlu0 %v2861_v57  ;;  %6067 = vmatpush3.bf16.msra.mxu1 %v3833_v59  ;;  %v3061_v57 = vld [vmem:[%s8066_s2 + $0x28] sm:$0x3] }
 0x253   :  { %v7535_v32 = vpop.eup %6370  ;;  %6068 = vmatprep.mubr.msk.bf16.mxu1 %vm6459_vm1, %v6458_v0  ;;  %6078 = vmatprep.subr.bf16.mxu1 %v6458_v0 }
 0x254   :  { %v6373_v16 = vpop.eup %6372  ;;  %v2737_v54 = vmul.f32 1.442695, %v2649_v10  ;;  %v2590_v31 = vpop.xlane.xlu1 %2589  ;;  %v3007_v25 = vpack.c.bf16 %v2959_v62, %v2959_v62  ;;  %v2864_v60 = vsel %vm2464_vm2, %v7535_v32, 0.0 }
 0x255   :  { %v2960_v19 = vmul.f32 %v6373_v16, %v7272_v4  ;;  %v2650_v45 = vsub.f32 %v7154_v20, %v2590_v31  ;;  %v2809_v40 = vpop.xlane.xlu0 %2808  ;;  %2865 = vadd.xlane.f32.xlu1 %v2864_v60  ;;  %v3925_v4 = vsel %vm3141_vm3, %v3106_v17, 0  ;;  %v3109_v16 = vpack.c.bf16 %v3061_v57, %v3061_v57 }
 0x256   :  { %6382 = vpow2.f32 %v2737_v54  ;;  %6063 = vmatmul.mubr.msk.bf16.vlgmr.msra.gmra.mrb[124].mxu0 %vm3137_vm4, %v3007_v25  ;;  %v3062_v54 = vld [vmem:[%s8066_s2 + $0x2a] sm:$0x3] }
 0x257   :  { %v2739_v3 = vmul.f32 1.442695, %v2650_v45  ;;  %6384 = vrcp.f32 %v2809_v40  ;;  %v3008_v26 = vpack.c.bf16 %v2960_v19, %v2960_v19  ;;  %6073 = vmatpush3.bf16.msra.mxu0 %v3879_v23  ;;  %6074 = vmatprep.mubr.msk.bf16.mxu0 %vm6459_vm1, %v6458_v0  ;;  %v3110_v40 = vpack.c.bf16 %v3062_v54, %v3062_v54 }
 0x258   :  { %v7552_v12 = vpop.eup %6374  ;;  %v2812_v20 = vpop.xlane.xlu1 %2811  ;;  %6084 = vmatprep.subr.bf16.mxu0 %v6458_v0 }
 0x259   :  { %v6377_v46 = vpop.eup %6376  ;;  %6386 = vpow2.f32 %v2739_v3  ;;  %6069 = vmatmul.mubr.msk.bf16.vlgmr.msra.gmra.mrb[124].mxu1 %vm3137_vm4, %v3008_v26  ;;  %v2593_v41 = vpop.xlane.xlu0 %2592  ;;  %v2867_v42 = vsel %vm2464_vm2, %v7552_v12, 0.0 }
 0x25a   :  { %v2961_v15 = vmul.f32 %v6377_v46, %v7284_v9  ;;  %6388 = vrcp.f32 %v2812_v20  ;;  %v2651_v58 = vsub.f32 %v7170_v38, %v2593_v41  ;;  %2868 = vadd.xlane.f32.xlu0 %v2867_v42  ;;  %6079 = vmatpush3.bf16.msra.mxu1 %v3925_v4  ;;  %v4063_v20 = vsel %vm3141_vm3, %v3109_v16, 0  ;;  %v3063_v46 = vld [vmem:[%s8066_s2 + $0x2c] sm:$0x3] }
 0x25b   :  { %v7563_v22 = vpop.eup %6378  ;;  %6080 = vmatprep.mubr.msk.bf16.mxu1 %vm6459_vm1, %v6458_v0  ;;  %6090 = vmatprep.subr.bf16.mxu1 %v6458_v0 }
 0x25c   :  { %v6381_v8 = vpop.eup %6380  ;;  %v2741_v59 = vmul.f32 1.442695, %v2651_v58  ;;  %v2596_v43 = vpop.xlane.xlu1 %2595  ;;  %v3009_v35 = vpack.c.bf16 %v2961_v15, %v2961_v15  ;;  %v2870_v9 = vsel %vm2464_vm2, %v7563_v22, 0.0  ;;  %v3111_v58 = vpack.c.bf16 %v3063_v46, %v3063_v46 }
 0x25d   :  { %v2962_v38 = vmul.f32 %v6381_v8, %v7286_v47  ;;  %v2652_v11 = vsub.f32 %v7172_v2, %v2596_v43  ;;  %v2815_v28 = vpop.xlane.xlu0 %2814  ;;  %2871 = vadd.xlane.f32.xlu1 %v2870_v9  ;;  %v4017_v47 = vsel %vm3141_vm3, %v3108_v5, 0  ;;  %v3064_v5 = vld [vmem:[%s8066_s2 + $0x2e] sm:$0x3] }
 0x25e   :  { %6390 = vpow2.f32 %v2741_v59  ;;  %6075 = vmatmul.mubr.msk.bf16.vlgmr.msra.gmra.mrb[128].mxu0 %vm3137_vm4, %v3009_v35 }
 0x25f   :  { %v2743_v62 = vmul.f32 1.442695, %v2652_v11  ;;  %6392 = vrcp.f32 %v2815_v28  ;;  %v3010_v10 = vpack.c.bf16 %v2962_v38, %v2962_v38  ;;  %6085 = vmatpush3.bf16.msra.mxu0 %v3971_v51  ;;  %6086 = vmatprep.mubr.msk.bf16.mxu0 %vm6459_vm1, %v6458_v0  ;;  %v3112_v38 = vpack.c.bf16 %v3064_v5, %v3064_v5 }
 0x260   :  { %v7580_v17 = vpop.eup %6382  ;;  %v2818_v2 = vpop.xlane.xlu1 %2817  ;;  %6096 = vmatprep.subr.bf16.mxu0 %v6458_v0 }
 0x261   :  { %v6385_v31 = vpop.eup %6384  ;;  %6394 = vpow2.f32 %v2743_v62  ;;  %6081 = vmatmul.mubr.msk.bf16.vlgmr.msra.gmra.mrb[128].mxu1 %vm3137_vm4, %v3010_v10  ;;  %v2599_v25 = vpop.xlane.xlu0 %2598  ;;  %v2873_v60 = vsel %vm2464_vm2, %v7580_v17, 0.0  ;;  %v4155_v10 = vsel %vm3141_vm3, %v3111_v58, 0 }
 0x262   :  { %v2963_v23 = vmul.f32 %v6385_v31, %v7298_v21  ;;  %6396 = vrcp.f32 %v2818_v2  ;;  %v2653_v19 = vsub.f32 %v7190_v50, %v2599_v25  ;;  %2874 = vadd.xlane.f32.xlu0 %v2873_v60  ;;  %6091 = vmatpush3.bf16.msra.mxu1 %v4017_v47  ;;  %v3065_v2 = vld [vmem:[%s8066_s2 + $0x30] sm:$0x3]  ;;  %v4201_v31 = vsel %vm3141_vm3, %v3112_v38, 0 }
 0x263   :  { %v7591_v45 = vpop.eup %6386  ;;  %6092 = vmatprep.mubr.msk.bf16.mxu1 %vm6459_vm1, %v6458_v0  ;;  %6102 = vmatprep.subr.bf16.mxu1 %v6458_v0 }
 0x264   :  { %v6389_v56 = vpop.eup %6388  ;;  %v2745_v3 = vmul.f32 1.442695, %v2653_v19  ;;  %v2602_v26 = vpop.xlane.xlu1 %2601  ;;  %v3011_v4 = vpack.c.bf16 %v2963_v23, %v2963_v23  ;;  %v2876_v21 = vsel %vm2464_vm2, %v7591_v45, 0.0 }
 0x265   :  { %v2964_v50 = vmul.f32 %v6389_v56, %v7300_v39  ;;  %v2654_v63 = vsub.f32 %v7192_v53, %v2602_v26  ;;  %v2821_v30 = vpop.xlane.xlu0 %2820  ;;  %2877 = vadd.xlane.f32.xlu1 %v2876_v21  ;;  %v4109_v39 = vsel %vm3141_vm3, %v3110_v40, 0 }
 0x266   :  { %6398 = vpow2.f32 %v2745_v3  ;;  %6087 = vmatmul.mubr.msk.bf16.vlgmr.msra.gmra.mrb[132].mxu0 %vm3137_vm4, %v3011_v4 }
 0x267   :  { %v2747_v41 = vmul.f32 1.442695, %v2654_v63  ;;  %6400 = vrcp.f32 %v2821_v30  ;;  %v3012_v42 = vpack.c.bf16 %v2964_v50, %v2964_v50  ;;  %6097 = vmatpush3.bf16.msra.mxu0 %v4063_v20  ;;  %6098 = vmatprep.mubr.msk.bf16.mxu0 %vm6459_vm1, %v6458_v0 }
 0x268   :  { %v7608_v15 = vpop.eup %6390  ;;  %v2824_v53 = vpop.xlane.xlu1 %2823  ;;  %6108 = vmatprep.subr.bf16.mxu0 %v6458_v0 }
 0x269   :  { %v6393_v8 = vpop.eup %6392  ;;  %6402 = vpow2.f32 %v2747_v41  ;;  %6093 = vmatmul.mubr.msk.bf16.vlgmr.msra.gmra.mrb[132].mxu1 %vm3137_vm4, %v3012_v42  ;;  %v2605_v59 = vpop.xlane.xlu0 %2604  ;;  %v2879_v43 = vsel %vm2464_vm2, %v7608_v15, 0.0 }
 0x26a   :  { %v2965_v35 = vmul.f32 %v6393_v8, %v7312_v33  ;;  %6404 = vrcp.f32 %v2824_v53  ;;  %v2655_v9 = vsub.f32 %v7211_v37, %v2605_v59  ;;  %2880 = vadd.xlane.f32.xlu0 %v2879_v43  ;;  %6103 = vmatpush3.bf16.msra.mxu1 %v4109_v39  ;;  %v3067_v39 = vld [vmem:[%s8066_s2 + $0x34] sm:$0x3]  ;;  %v3068_v8 = vld [vmem:[%s8066_s2 + $0x36] sm:$0x3] }
 0x26b   :  { %v7619_v51 = vpop.eup %6394  ;;  %6104 = vmatprep.mubr.msk.bf16.mxu1 %vm6459_vm1, %v6458_v0  ;;  %6114 = vmatprep.subr.bf16.mxu1 %v6458_v0  ;;  %v3115_v58 = vpack.c.bf16 %v3067_v39, %v3067_v39  ;;  %v3116_v38 = vpack.c.bf16 %v3068_v8, %v3068_v8 }
 0x26c   :  { %v6397_v11 = vpop.eup %6396  ;;  %v2749_v28 = vmul.f32 1.442695, %v2655_v9  ;;  %v2608_v57 = vpop.xlane.xlu1 %2607  ;;  %v3013_v62 = vpack.c.bf16 %v2965_v35, %v2965_v35  ;;  %v2882_v33 = vsel %vm2464_vm2, %v7619_v51, 0.0 }
 0x26d   :  { %v2966_v37 = vmul.f32 %v6397_v11, %v7314_v24  ;;  %v2656_v47 = vsub.f32 %v7213_v44, %v2608_v57  ;;  %2883 = vadd.xlane.f32.xlu1 %v2882_v33  ;;  %v3113_v44 = vpack.c.bf16 %v3065_v2, %v3065_v2  ;;  %v3066_v24 = vld [vmem:[%s8066_s2 + $0x32] sm:$0x3]  ;;  %v4339_v9 = vsel %vm3141_vm3, %v3115_v58, 0 }
 0x26e   :  { %6406 = vpow2.f32 %v2749_v28  ;;  %6099 = vmatmul.mubr.msk.bf16.vlgmr.msra.gmra.mrb[136].mxu0 %vm3137_vm4, %v3013_v62  ;;  %v3114_v56 = vpack.c.bf16 %v3066_v24, %v3066_v24  ;;  %v3069_v28 = vld [vmem:[%s8066_s2 + $0x38] sm:$0x3]  ;;  %v4385_v33 = vsel %vm3141_vm3, %v3116_v38, 0  ;;  %v3075_v38 = vld [vmem:[%s8066_s2 + $0x44] sm:$0x3] }
 0x26f   :  { %v2751_v16 = vmul.f32 1.442695, %v2656_v47  ;;  %v3014_v54 = vpack.c.bf16 %v2966_v37, %v2966_v37  ;;  %6109 = vmatpush3.bf16.msra.mxu0 %v4155_v10  ;;  %6110 = vmatprep.mubr.msk.bf16.mxu0 %vm6459_vm1, %v6458_v0  ;;  %v4247_v21 = vsel %vm3141_vm3, %v3113_v44, 0  ;;  %v3117_v10 = vpack.c.bf16 %v3069_v28, %v3069_v28  ;;  %v3070_v47 = vld [vmem:[%s8066_s2 + $0x3a] sm:$0x3] }
 0x270   :  { %v7636_v25 = vpop.eup %6398  ;;  %6120 = vmatprep.subr.bf16.mxu0 %v6458_v0  ;;  %v4293_v50 = vsel %vm3141_vm3, %v3114_v56, 0 }
 0x271   :  { %v6401_v60 = vpop.eup %6400  ;;  %6408 = vpow2.f32 %v2751_v16  ;;  %6105 = vmatmul.mubr.msk.bf16.vlgmr.msra.gmra.mrb[136].mxu1 %vm3137_vm4, %v3014_v54  ;;  %v2885_v23 = vsel %vm2464_vm2, %v7636_v25, 0.0  ;;  %v4431_v54 = vsel %vm3141_vm3, %v3117_v10, 0 }
 0x272   :  { %v2967_v19 = vmul.f32 %v6401_v60, %v7324_v18  ;;  %2886 = vadd.xlane.f32.xlu0 %v2885_v23  ;;  %6115 = vmatpush3.bf16.msra.mxu1 %v4201_v31  ;;  %v3118_v31 = vpack.c.bf16 %v3070_v47, %v3070_v47 }
 0x273   :  { %v7646_v40 = vpop.eup %6402  ;;  %6116 = vmatprep.mubr.msk.bf16.mxu1 %vm6459_vm1, %v6458_v0  ;;  %6126 = vmatprep.subr.bf16.mxu1 %v6458_v0 }
 0x274   :  { %v6405_v3 = vpop.eup %6404  ;;  %v3015_v26 = vpack.c.bf16 %v2967_v19, %v2967_v19  ;;  %v2888_v4 = vsel %vm2464_vm2, %v7646_v40, 0.0  ;;  %v4477_v19 = vsel %vm3141_vm3, %v3118_v31, 0 }
 0x275   :  { %v2968_v20 = vmul.f32 %v6405_v3, %v7326_v48  ;;  %2889 = vadd.xlane.f32.xlu1 %v2888_v4 }
 0x276   :  { %6111 = vmatmul.mubr.msk.bf16.vlgmr.msra.gmra.mrb[140].mxu0 %vm3137_vm4, %v3015_v26 }
 0x277   :  { %v3016_v18 = vpack.c.bf16 %v2968_v20, %v2968_v20  ;;  %6121 = vmatpush3.bf16.msra.mxu0 %v4247_v21  ;;  %6122 = vmatprep.mubr.msk.bf16.mxu0 %vm6459_vm1, %v6458_v0 }
 0x278   :  { %v7659_v63 = vpop.eup %6406  ;;  %6132 = vmatprep.subr.bf16.mxu0 %v6458_v0 }
 0x279   :  { %6117 = vmatmul.mubr.msk.bf16.vlgmr.msra.gmra.mrb[140].mxu1 %vm3137_vm4, %v3016_v18  ;;  %v2891_v30 = vsel %vm2464_vm2, %v7659_v63, 0.0 }
 0x27a   :  { %2892 = vadd.xlane.f32.xlu0 %v2891_v30  ;;  %6127 = vmatpush3.bf16.msra.mxu1 %v4293_v50 }
 0x27b   :  { %v7665_v48 = vpop.eup %6408  ;;  %6128 = vmatprep.mubr.msk.bf16.mxu1 %vm6459_vm1, %v6458_v0  ;;  %6138 = vmatprep.subr.bf16.mxu1 %v6458_v0 }
 0x27c   :  { %v2894_v46 = vsel %vm2464_vm2, %v7665_v48, 0.0 }
 0x27d   :  { %2895 = vadd.xlane.f32.xlu1 %v2894_v46  ;;  %v3073_v46 = vld [vmem:[%s8066_s2 + $0x40] sm:$0x3] }
 0x27e   :  { %v3121_v39 = vpack.c.bf16 %v3073_v46, %v3073_v46 }
 0x2ae   :  { %v2827_v41 = vpop.xlane.xlu0 %2826 }
 0x2af   :  { %6410 = vrcp.f32 %v2827_v41 }
 0x2b2   :  { %v2830_v42 = vpop.xlane.xlu1 %2829 }
 0x2b3   :  { %6412 = vrcp.f32 %v2830_v42 }
 0x2b6   :  { %v2833_v53 = vpop.xlane.xlu0 %2832 }
 0x2b7   :  { %6414 = vrcp.f32 %v2833_v53 }
 0x2b9   :  { %v6411_v5 = vpop.eup %6410 }
 0x2ba   :  { %v2969_v59 = vmul.f32 %v6411_v5, %v7357_v29  ;;  %v2836_v43 = vpop.xlane.xlu1 %2835 }
 0x2bb   :  { %6416 = vrcp.f32 %v2836_v43 }
 0x2bc   :  { %v3017_v35 = vpack.c.bf16 %v2969_v59, %v2969_v59 }
 0x2bd   :  { %v6413_v11 = vpop.eup %6412 }
 0x2be   :  { %v2970_v57 = vmul.f32 %v6413_v11, %v7370_v6  ;;  %6123 = vmatmul.mubr.msk.bf16.vlgmr.msra.gmra.mrb[144].mxu0 %vm3137_vm4, %v3017_v35  ;;  %v4615_v35 = vsel %vm3141_vm3, %v3121_v39, 0 }
 0x2bf   :  { %v2839_v62 = vpop.xlane.xlu0 %2838  ;;  %6133 = vmatpush3.bf16.msra.mxu0 %v4339_v9  ;;  %6134 = vmatprep.mubr.msk.bf16.mxu0 %vm6459_vm1, %v6458_v0 }
 0x2c0   :  { %6418 = vrcp.f32 %v2839_v62  ;;  %v3018_v29 = vpack.c.bf16 %v2970_v57, %v2970_v57  ;;  %6144 = vmatprep.subr.bf16.mxu0 %v6458_v0  ;;  %v3123_v57 = vpack.c.bf16 %v3075_v38, %v3075_v38 }
 0x2c1   :  { %v6415_v37 = vpop.eup %6414 }
 0x2c2   :  { %v2971_v6 = vmul.f32 %v6415_v37, %v7384_v61  ;;  %6129 = vmatmul.mubr.msk.bf16.vlgmr.msra.gmra.mrb[144].mxu1 %vm3137_vm4, %v3018_v29  ;;  %v2842_v2 = vpop.xlane.xlu1 %2841  ;;  %v3071_v61 = vld [vmem:[%s8066_s2 + $0x3c] sm:$0x3] }
 0x2c3   :  { %6420 = vrcp.f32 %v2842_v2  ;;  %6139 = vmatpush3.bf16.msra.mxu1 %v4385_v33  ;;  %6140 = vmatprep.mubr.msk.bf16.mxu1 %vm6459_vm1, %v6458_v0  ;;  %v3119_v56 = vpack.c.bf16 %v3071_v61, %v3071_v61 }
 0x2c4   :  { %v3019_v16 = vpack.c.bf16 %v2971_v6, %v2971_v6  ;;  %6150 = vmatprep.subr.bf16.mxu1 %v6458_v0  ;;  %v4707_v6 = vsel %vm3141_vm3, %v3123_v57, 0 }
 0x2c5   :  { %v6417_v44 = vpop.eup %6416  ;;  %v4523_v50 = vsel %vm3141_vm3, %v3119_v56, 0 }
 0x2c6   :  { %v2972_v24 = vmul.f32 %v6417_v44, %v7397_v52  ;;  %6135 = vmatmul.mubr.msk.bf16.vlgmr.msra.gmra.mrb[148].mxu0 %vm3137_vm4, %v3019_v16  ;;  %v3072_v52 = vld [vmem:[%s8066_s2 + $0x3e] sm:$0x3]  ;;  %v3077_v16 = vld [vmem:[%s8066_s2 + $0x48] sm:$0x3] }
 0x2c7   :  { %v2845_v60 = vpop.xlane.xlu0 %2844  ;;  %6145 = vmatpush3.bf16.msra.mxu0 %v4431_v54  ;;  %6146 = vmatprep.mubr.msk.bf16.mxu0 %vm6459_vm1, %v6458_v0  ;;  %v3120_v21 = vpack.c.bf16 %v3072_v52, %v3072_v52  ;;  %v3125_v44 = vpack.c.bf16 %v3077_v16, %v3077_v16 }
 0x2c8   :  { %6422 = vrcp.f32 %v2845_v60  ;;  %v3020_v23 = vpack.c.bf16 %v2972_v24, %v2972_v24  ;;  %6156 = vmatprep.subr.bf16.mxu0 %v6458_v0 }
 0x2c9   :  { %v4569_v42 = vsel %vm3141_vm3, %v3120_v21, 0  ;;  %v4799_v52 = vsel %vm3141_vm3, %v3125_v44, 0 }
 0x2ca   :  { %v6419_v3 = vpop.eup %6418  ;;  %6141 = vmatmul.mubr.msk.bf16.vlgmr.msra.gmra.mrb[148].mxu1 %vm3137_vm4, %v3020_v23  ;;  %v2848_v26 = vpop.xlane.xlu1 %2847 }
 0x2cb   :  { %v2973_v4 = vmul.f32 %v6419_v3, %v7413_v27  ;;  %6424 = vrcp.f32 %v2848_v26  ;;  %6151 = vmatpush3.bf16.msra.mxu1 %v4477_v19  ;;  %6152 = vmatprep.mubr.msk.bf16.mxu1 %vm6459_vm1, %v6458_v0  ;;  %v3079_v26 = vld [vmem:[%s8066_s2 + $0x4c] sm:$0x3] }
 0x2cc   :  { %6162 = vmatprep.subr.bf16.mxu1 %v6458_v0 }
 0x2cd   :  { %v6421_v20 = vpop.eup %6420  ;;  %v3021_v18 = vpack.c.bf16 %v2973_v4, %v2973_v4 }
 0x2ce   :  { %v2974_v30 = vmul.f32 %v6421_v20, %v7423_v49  ;;  %v3074_v49 = vld [vmem:[%s8066_s2 + $0x42] sm:$0x3]  ;;  %v3127_v20 = vpack.c.bf16 %v3079_v26, %v3079_v26 }
 0x2cf   :  { %6147 = vmatmul.mubr.msk.bf16.vlgmr.msra.gmra.mrb[152].mxu0 %vm3137_vm4, %v3021_v18  ;;  %v2851_v27 = vpop.xlane.xlu0 %2850  ;;  %v3122_v8 = vpack.c.bf16 %v3074_v49, %v3074_v49  ;;  %v3081_v49 = vld [vmem:[%s8066_s2 + $0x50] sm:$0x3] }
 0x2d0   :  { %6426 = vrcp.f32 %v2851_v27  ;;  %v3022_v41 = vpack.c.bf16 %v2974_v30, %v2974_v30  ;;  %6157 = vmatpush3.bf16.msra.mxu0 %v4523_v50  ;;  %6158 = vmatprep.mubr.msk.bf16.mxu0 %vm6459_vm1, %v6458_v0 }
 0x2d1   :  { %6168 = vmatprep.subr.bf16.mxu0 %v6458_v0  ;;  %v4661_v28 = vsel %vm3141_vm3, %v3122_v8, 0 }
 0x2d2   :  { %v6423_v53 = vpop.eup %6422  ;;  %6153 = vmatmul.mubr.msk.bf16.vlgmr.msra.gmra.mrb[152].mxu1 %vm3137_vm4, %v3022_v41  ;;  %v2854_v58 = vpop.xlane.xlu1 %2853 }
 0x2d3   :  { %v2975_v5 = vmul.f32 %v6423_v53, %v7440_v34  ;;  %6428 = vrcp.f32 %v2854_v58  ;;  %6163 = vmatpush3.bf16.msra.mxu1 %v4569_v42  ;;  %6164 = vmatprep.mubr.msk.bf16.mxu1 %vm6459_vm1, %v6458_v0  ;;  %v4891_v42 = vsel %vm3141_vm3, %v3127_v20, 0 }
 0x2d4   :  { %6174 = vmatprep.subr.bf16.mxu1 %v6458_v0 }
 0x2d5   :  { %v6425_v59 = vpop.eup %6424  ;;  %v3023_v43 = vpack.c.bf16 %v2975_v5, %v2975_v5 }
 0x2d6   :  { %v2976_v9 = vmul.f32 %v6425_v59, %v7451_v1  ;;  %v3076_v1 = vld [vmem:[%s8066_s2 + $0x46] sm:$0x3]  ;;  %v3129_v59 = vpack.c.bf16 %v3081_v49, %v3081_v49 }
 0x2d7   :  { %6159 = vmatmul.mubr.msk.bf16.vlgmr.msra.gmra.mrb[156].mxu0 %vm3137_vm4, %v3023_v43  ;;  %v2857_v34 = vpop.xlane.xlu0 %2856  ;;  %v3124_v10 = vpack.c.bf16 %v3076_v1, %v3076_v1  ;;  %v3082_v43 = vld [vmem:[%s8066_s2 + $0x52] sm:$0x3] }
 0x2d8   :  { %6430 = vrcp.f32 %v2857_v34  ;;  %v3024_v11 = vpack.c.bf16 %v2976_v9, %v2976_v9  ;;  %6169 = vmatpush3.bf16.msra.mxu0 %v4615_v35  ;;  %6170 = vmatprep.mubr.msk.bf16.mxu0 %vm6459_vm1, %v6458_v0  ;;  %v3130_v57 = vpack.c.bf16 %v3082_v43, %v3082_v43 }
 0x2d9   :  { %6180 = vmatprep.subr.bf16.mxu0 %v6458_v0  ;;  %v4753_v31 = vsel %vm3141_vm3, %v3124_v10, 0 }
 0x2da   :  { %v6427_v62 = vpop.eup %6426  ;;  %6165 = vmatmul.mubr.msk.bf16.vlgmr.msra.gmra.mrb[156].mxu1 %vm3137_vm4, %v3024_v11  ;;  %v2860_v29 = vpop.xlane.xlu1 %2859  ;;  %v5029_v16 = vsel %vm3141_vm3, %v3130_v57, 0 }
 0x2db   :  { %v2977_v33 = vmul.f32 %v6427_v62, %v7468_v36  ;;  %6432 = vrcp.f32 %v2860_v29  ;;  %6175 = vmatpush3.bf16.msra.mxu1 %v4661_v28  ;;  %6176 = vmatprep.mubr.msk.bf16.mxu1 %vm6459_vm1, %v6458_v0 }
 0x2dc   :  { %6186 = vmatprep.subr.bf16.mxu1 %v6458_v0 }
 0x2dd   :  { %v6429_v37 = vpop.eup %6428  ;;  %v3025_v47 = vpack.c.bf16 %v2977_v33, %v2977_v33 }
 0x2de   :  { %v2978_v2 = vmul.f32 %v6429_v37, %v7479_v14  ;;  %v3078_v14 = vld [vmem:[%s8066_s2 + $0x4a] sm:$0x3]  ;;  %v3083_v37 = vld [vmem:[%s8066_s2 + $0x54] sm:$0x3] }
 0x2df   :  { %6171 = vmatmul.mubr.msk.bf16.vlgmr.msra.gmra.mrb[160].mxu0 %vm3137_vm4, %v3025_v47  ;;  %v2863_v36 = vpop.xlane.xlu0 %2862  ;;  %v3126_v23 = vpack.c.bf16 %v3078_v14, %v3078_v14 }
 0x2e0   :  { %6434 = vrcp.f32 %v2863_v36  ;;  %v3026_v54 = vpack.c.bf16 %v2978_v2, %v2978_v2  ;;  %6181 = vmatpush3.bf16.msra.mxu0 %v4707_v6  ;;  %6182 = vmatprep.mubr.msk.bf16.mxu0 %vm6459_vm1, %v6458_v0  ;;  %v3131_v36 = vpack.c.bf16 %v3083_v37, %v3083_v37 }
 0x2e1   :  { %6192 = vmatprep.subr.bf16.mxu0 %v6458_v0  ;;  %v4845_v21 = vsel %vm3141_vm3, %v3126_v23, 0 }
 0x2e2   :  { %v6431_v24 = vpop.eup %6430  ;;  %6177 = vmatmul.mubr.msk.bf16.vlgmr.msra.gmra.mrb[160].mxu1 %vm3137_vm4, %v3026_v54  ;;  %v2866_v61 = vpop.xlane.xlu1 %2865  ;;  %v3084_v54 = vld [vmem:[%s8066_s2 + $0x56] sm:$0x3] }
 0x2e3   :  { %v2979_v60 = vmul.f32 %v6431_v24, %v7496_v7  ;;  %6436 = vrcp.f32 %v2866_v61  ;;  %6187 = vmatpush3.bf16.msra.mxu1 %v4753_v31  ;;  %6188 = vmatprep.mubr.msk.bf16.mxu1 %vm6459_vm1, %v6458_v0  ;;  %v3132_v23 = vpack.c.bf16 %v3084_v54, %v3084_v54 }
 0x2e4   :  { %6198 = vmatprep.subr.bf16.mxu1 %v6458_v0 }
 0x2e5   :  { %v6433_v19 = vpop.eup %6432  ;;  %v3027_v56 = vpack.c.bf16 %v2979_v60, %v2979_v60 }
 0x2e6   :  { %v2980_v3 = vmul.f32 %v6433_v19, %v7507_v55  ;;  %v3080_v55 = vld [vmem:[%s8066_s2 + $0x4e] sm:$0x3] }
 0x2e7   :  { %6183 = vmatmul.mubr.msk.bf16.vlgmr.msra.gmra.mrb[164].mxu0 %vm3137_vm4, %v3027_v56  ;;  %v2869_v7 = vpop.xlane.xlu0 %2868  ;;  %v3128_v46 = vpack.c.bf16 %v3080_v55, %v3080_v55 }
 0x2e8   :  { %6438 = vrcp.f32 %v2869_v7  ;;  %v3028_v4 = vpack.c.bf16 %v2980_v3, %v2980_v3  ;;  %6193 = vmatpush3.bf16.msra.mxu0 %v4799_v52  ;;  %6194 = vmatprep.mubr.msk.bf16.mxu0 %vm6459_vm1, %v6458_v0  ;;  %v3085_v7 = vld [vmem:[%s8066_s2 + $0x58] sm:$0x3] }
 0x2e9   :  { %6204 = vmatprep.subr.bf16.mxu0 %v6458_v0  ;;  %v4937_v8 = vsel %vm3141_vm3, %v3128_v46, 0 }
 0x2ea   :  { %v6435_v18 = vpop.eup %6434  ;;  %6189 = vmatmul.mubr.msk.bf16.vlgmr.msra.gmra.mrb[164].mxu1 %vm3137_vm4, %v3028_v4  ;;  %v2872_v50 = vpop.xlane.xlu1 %2871 }
 0x2eb   :  { %v2981_v30 = vmul.f32 %v6435_v18, %v7524_v13  ;;  %6440 = vrcp.f32 %v2872_v50  ;;  %6199 = vmatpush3.bf16.msra.mxu1 %v4845_v21  ;;  %6200 = vmatprep.mubr.msk.bf16.mxu1 %vm6459_vm1, %v6458_v0  ;;  %v5121_v18 = vsel %vm3141_vm3, %v3132_v23, 0  ;;  %v3133_v50 = vpack.c.bf16 %v3085_v7, %v3085_v7 }
 0x2ec   :  { %6210 = vmatprep.subr.bf16.mxu1 %v6458_v0 }
 0x2ed   :  { %v6437_v27 = vpop.eup %6436  ;;  %v3029_v41 = vpack.c.bf16 %v2981_v30, %v2981_v30  ;;  %v3086_v30 = vld [vmem:[%s8066_s2 + $0x5a] sm:$0x3] }
 0x2ee   :  { %v2982_v39 = vmul.f32 %v6437_v27, %v7535_v32 }
 0x2ef   :  { %6195 = vmatmul.mubr.msk.bf16.vlgmr.msra.gmra.mrb[168].mxu0 %vm3137_vm4, %v3029_v41  ;;  %v2875_v13 = vpop.xlane.xlu0 %2874  ;;  %v3179_v53 = vpop.f32.mrb[96].mxu0 }
 0x2f0   :  { %6442 = vrcp.f32 %v2875_v13  ;;  %5348 = vst.msk [vmem:[%s8067_s3] sm:$0x3] %vm5347_vm5, %v3179_v53  ;;  %v5980_v58 = vpop.f32.mrb[97].mxu0  ;;  %v3030_v5 = vpack.c.bf16 %v2982_v39, %v2982_v39  ;;  %6205 = vmatpush3.bf16.msra.mxu0 %v4891_v42  ;;  %6206 = vmatprep.mubr.msk.bf16.mxu0 %vm6459_vm1, %v6458_v0  ;;  %v3134_v13 = vpack.c.bf16 %v3086_v30, %v3086_v30 }
 0x2f1   :  { %v3182_v32 = vpop.f32.mrb[98].mxu0  ;;  %6216 = vmatprep.subr.bf16.mxu0 %v6458_v0 }
 0x2f2   :  { %v6439_v35 = vpop.eup %6438  ;;  %6201 = vmatmul.mubr.msk.bf16.vlgmr.msra.gmra.mrb[168].mxu1 %vm3137_vm4, %v3030_v5  ;;  %v2878_v9 = vpop.xlane.xlu1 %2877 }
 0x2f3   :  { %v5981_v38 = vpop.f32.mrb[99].mxu0  ;;  %v2983_v34 = vmul.f32 %v6439_v35, %v7552_v12  ;;  %6444 = vrcp.f32 %v2878_v9  ;;  %v3225_v11 = vpop.f32.mrb[96].mxu1  ;;  %6211 = vmatpush3.bf16.msra.mxu1 %v4937_v8  ;;  %6212 = vmatprep.mubr.msk.bf16.mxu1 %vm6459_vm1, %v6458_v0  ;;  %v4983_v12 = vsel %vm3141_vm3, %v3129_v59, 0  ;;  %v3087_v59 = vld [vmem:[%s8066_s2 + $0x5c] sm:$0x3] }
 0x2f4   :  { %5349 = vst.msk [vmem:[%s8067_s3 + $0x2] sm:$0x3] %vm5347_vm5, %v3225_v11  ;;  %v5986_v28 = vpop.f32.mrb[97].mxu1  ;;  %6222 = vmatprep.subr.bf16.mxu1 %v6458_v0  ;;  %v5213_v38 = vsel %vm3141_vm3, %v3134_v13, 0  ;;  %v3088_v11 = vld [vmem:[%s8066_s2 + $0x5e] sm:$0x3] }
 0x2f5   :  { %v6441_v1 = vpop.eup %6440  ;;  %v3228_v62 = vpop.f32.mrb[98].mxu1  ;;  %v3031_v29 = vpack.c.bf16 %v2983_v34, %v2983_v34 }
 0x2f6   :  { %v2984_v33 = vmul.f32 %v6441_v1, %v7563_v22  ;;  %v5987_v10 = vpop.f32.mrb[99].mxu1 }
 0x2f7   :  { %6207 = vmatmul.mubr.msk.bf16.vlgmr.msra.gmra.mrb[172].mxu0 %vm3137_vm4, %v3031_v29  ;;  %v2881_v47 = vpop.xlane.xlu0 %2880  ;;  %v3136_v10 = vpack.c.bf16 %v3088_v11, %v3088_v11 }
 0x2f8   :  { %6446 = vrcp.f32 %v2881_v47  ;;  %v3271_v6 = vpop.f32.mrb[100].mxu0  ;;  %v3032_v2 = vpack.c.bf16 %v2984_v33, %v2984_v33  ;;  %6217 = vmatpush3.bf16.msra.mxu0 %v4983_v12  ;;  %6218 = vmatprep.mubr.msk.bf16.mxu0 %vm6459_vm1, %v6458_v0 }
 0x2f9   :  { %5350 = vst.msk [vmem:[%s8067_s3 + $0x4] sm:$0x3] %vm5347_vm5, %v3271_v6  ;;  %v5992_v22 = vpop.f32.mrb[101].mxu0  ;;  %6228 = vmatprep.subr.bf16.mxu0 %v6458_v0  ;;  %v5305_v54 = vsel %vm3141_vm3, %v3136_v10, 0 }
 0x2fa   :  { %v6443_v31 = vpop.eup %6442  ;;  %v3274_v44 = vpop.f32.mrb[102].mxu0  ;;  %6213 = vmatmul.mubr.msk.bf16.vlgmr.msra.gmra.mrb[172].mxu1 %vm3137_vm4, %v3032_v2 }
 0x2fb   :  { %v2884_v14 = vpop.xlane.xlu1 %2883  ;;  %v2985_v24 = vmul.f32 %v6443_v31, %v7580_v17  ;;  %v5993_v61 = vpop.f32.mrb[103].mxu0  ;;  %6223 = vmatpush3.bf16.msra.mxu1 %v5029_v16  ;;  %6224 = vmatprep.mubr.msk.bf16.mxu1 %vm6459_vm1, %v6458_v0  ;;  %v5075_v17 = vsel %vm3141_vm3, %v3131_v36, 0 }
 0x2fc   :  { %6448 = vrcp.f32 %v2884_v14  ;;  %v3317_v60 = vpop.f32.mrb[100].mxu1  ;;  %6234 = vmatprep.subr.bf16.mxu1 %v6458_v0 }
 0x2fd   :  { %v6445_v19 = vpop.eup %6444  ;;  %5351 = vst.msk [vmem:[%s8067_s3 + $0x6] sm:$0x3] %vm5347_vm5, %v3317_v60  ;;  %v5998_v56 = vpop.f32.mrb[101].mxu1  ;;  %v3033_v52 = vpack.c.bf16 %v2985_v24, %v2985_v24 }
 0x2fe   :  { %v2986_v3 = vmul.f32 %v6445_v19, %v7591_v45  ;;  %v3320_v26 = vpop.f32.mrb[102].mxu1 }
 0x2ff   :  { %v5999_v4 = vpop.f32.mrb[103].mxu1  ;;  %6219 = vmatmul.mubr.msk.bf16.vlgmr.msra.gmra.mrb[176].mxu0 %vm3137_vm4, %v3033_v52  ;;  %v2887_v21 = vpop.xlane.xlu0 %2886 }
 0x300   :  { %6450 = vrcp.f32 %v2887_v21  ;;  %v3363_v20 = vpop.f32.mrb[104].mxu0  ;;  %v3034_v55 = vpack.c.bf16 %v2986_v3, %v2986_v3  ;;  %6229 = vmatpush3.bf16.msra.mxu0 %v5075_v17  ;;  %6230 = vmatprep.mubr.msk.bf16.mxu0 %vm6459_vm1, %v6458_v0 }
 0x301   :  { %5352 = vst.msk [vmem:[%s8067_s3 + $0x8] sm:$0x3] %vm5347_vm5, %v3363_v20  ;;  %v6004_v45 = vpop.f32.mrb[105].mxu0  ;;  %6240 = vmatprep.subr.bf16.mxu0 %v6458_v0 }
 0x302   :  { %v6447_v46 = vpop.eup %6446  ;;  %v3366_v27 = vpop.f32.mrb[106].mxu0  ;;  %6225 = vmatmul.mubr.msk.bf16.vlgmr.msra.gmra.mrb[176].mxu1 %vm3137_vm4, %v3034_v55 }
 0x303   :  { %v2890_v41 = vpop.xlane.xlu1 %2889  ;;  %v2987_v42 = vmul.f32 %v6447_v46, %v7608_v15  ;;  %v6005_v39 = vpop.f32.mrb[107].mxu0  ;;  %6235 = vmatpush3.bf16.msra.mxu1 %v5121_v18  ;;  %6236 = vmatprep.mubr.msk.bf16.mxu1 %vm6459_vm1, %v6458_v0  ;;  %v5167_v15 = vsel %vm3141_vm3, %v3133_v50, 0 }
 0x304   :  { %6452 = vrcp.f32 %v2890_v41  ;;  %v3409_v49 = vpop.f32.mrb[104].mxu1  ;;  %6246 = vmatprep.subr.bf16.mxu1 %v6458_v0 }
 0x305   :  { %5353 = vst.msk [vmem:[%s8067_s3 + $0xa] sm:$0x3] %vm5347_vm5, %v3409_v49  ;;  %v6010_v58 = vpop.f32.mrb[105].mxu1  ;;  %v3035_v5 = vpack.c.bf16 %v2987_v42, %v2987_v42 }
 0x306   :  { %v6449_v53 = vpop.eup %6448  ;;  %v3412_v32 = vpop.f32.mrb[106].mxu1 }
 0x307   :  { %v2988_v8 = vmul.f32 %v6449_v53, %v7619_v51  ;;  %v6011_v43 = vpop.f32.mrb[107].mxu1  ;;  %6231 = vmatmul.mubr.msk.bf16.vlgmr.msra.gmra.mrb[180].mxu0 %vm3137_vm4, %v3035_v5  ;;  %v2893_v35 = vpop.xlane.xlu0 %2892  ;;  %v3135_v51 = vpack.c.bf16 %v3087_v59, %v3087_v59 }
 0x308   :  { %6454 = vrcp.f32 %v2893_v35  ;;  %6241 = vmatpush3.bf16.msra.mxu0 %v5167_v15  ;;  %6242 = vmatprep.mubr.msk.bf16.mxu0 %vm6459_vm1, %v6458_v0 }
 0x309   :  { %v3036_v9 = vpack.c.bf16 %v2988_v8, %v2988_v8  ;;  %v3455_v34 = vpop.f32.mrb[108].mxu0  ;;  %6252 = vmatprep.subr.bf16.mxu0 %v6458_v0 }
 0x30a   :  { %v6451_v28 = vpop.eup %6450  ;;  %5354 = vst.msk [vmem:[%s8067_s3 + $0xc] sm:$0x3] %vm5347_vm5, %v3455_v34  ;;  %v6016_v57 = vpop.f32.mrb[109].mxu0 }
 0x30b   :  { %6237 = vmatmul.mubr.msk.bf16.vlgmr.msra.gmra.mrb[180].mxu1 %vm3137_vm4, %v3036_v9  ;;  %v2896_v1 = vpop.xlane.xlu1 %2895  ;;  %v2989_v62 = vmul.f32 %v6451_v28, %v7636_v25  ;;  %v3458_v29 = vpop.f32.mrb[110].mxu0  ;;  %v5259_v25 = vsel %vm3141_vm3, %v3135_v51, 0 }
 0x30c   :  { %6456 = vrcp.f32 %v2896_v1  ;;  %6247 = vmatpush3.bf16.msra.mxu1 %v5213_v38  ;;  %6248 = vmatprep.mubr.msk.bf16.mxu1 %vm6459_vm1, %v6458_v0  ;;  %v6017_v12 = vpop.f32.mrb[111].mxu0  ;;  %v3501_v33 = vpop.f32.mrb[108].mxu1 }
 0x30d   :  { %6258 = vmatprep.subr.bf16.mxu1 %v6458_v0  ;;  %5355 = vst.msk [vmem:[%s8067_s3 + $0xe] sm:$0x3] %vm5347_vm5, %v3501_v33  ;;  %v6022_v47 = vpop.f32.mrb[109].mxu1  ;;  %v3037_v6 = vpack.c.bf16 %v2989_v62, %v2989_v62 }
 0x30e   :  { %v6453_v37 = vpop.eup %6452  ;;  %v3504_v16 = vpop.f32.mrb[110].mxu1 }
 0x30f   :  { %v2990_v2 = vmul.f32 %v6453_v37, %v7646_v40  ;;  %v6023_v22 = vpop.f32.mrb[111].mxu1  ;;  %6243 = vmatmul.mubr.msk.bf16.vlgmr.msra.gmra.mrb[184].mxu0 %vm3137_vm4, %v3037_v6 }
 0x310   :  { %6253 = vmatpush3.bf16.msra.mxu0 %v5259_v25  ;;  %6254 = vmatprep.mubr.msk.bf16.mxu0 %vm6459_vm1, %v6458_v0 }
 0x311   :  { %v3038_v36 = vpack.c.bf16 %v2990_v2, %v2990_v2  ;;  %v3547_v31 = vpop.f32.mrb[112].mxu0 }
 0x312   :  { %v6455_v44 = vpop.eup %6454  ;;  %5356 = vst.msk [vmem:[%s8067_s3 + $0x10] sm:$0x3] %vm5347_vm5, %v3547_v31  ;;  %v6028_v14 = vpop.f32.mrb[113].mxu0 }
 0x313   :  { %6249 = vmatmul.mubr.msk.bf16.vlgmr.msra.gmra.mrb[184].mxu1 %vm3137_vm4, %v3038_v36  ;;  %v2991_v40 = vmul.f32 %v6455_v44, %v7659_v63  ;;  %v3550_v24 = vpop.f32.mrb[114].mxu0 }
 0x314   :  { %6259 = vmatpush3.bf16.msra.mxu1 %v5305_v54  ;;  %6260 = vmatprep.mubr.msk.bf16.mxu1 %vm6459_vm1, %v6458_v0  ;;  %v6029_v61 = vpop.f32.mrb[115].mxu0  ;;  %v3593_v60 = vpop.f32.mrb[112].mxu1 }
 0x315   :  { %v3039_v19 = vpack.c.bf16 %v2991_v40, %v2991_v40  ;;  %5357 = vst.msk [vmem:[%s8067_s3 + $0x12] sm:$0x3] %vm5347_vm5, %v3593_v60  ;;  %v6034_v56 = vpop.f32.mrb[113].mxu1 }
 0x316   :  { %v6457_v23 = vpop.eup %6456  ;;  %v3596_v17 = vpop.f32.mrb[114].mxu1 }
 0x317   :  { %v2992_v52 = vmul.f32 %v6457_v23, %v7665_v48  ;;  %v6035_v3 = vpop.f32.mrb[115].mxu1  ;;  %6255 = vmatmul.mubr.msk.bf16.vlgmr.msra.gmra.mrb[188].mxu0 %vm3137_vm4, %v3039_v19 }
 0x319   :  { %v3040_v63 = vpack.c.bf16 %v2992_v52, %v2992_v52  ;;  %v3639_v26 = vpop.f32.mrb[116].mxu0 }
 0x31a   :  { %5358 = vst.msk [vmem:[%s8067_s3 + $0x14] sm:$0x3] %vm5347_vm5, %v3639_v26  ;;  %v6040_v0 = vpop.f32.mrb[117].mxu0 }
 0x31b   :  { %6261 = vmatmul.mubr.msk.bf16.vlgmr.msra.gmra.mrb[188].mxu1 %vm3137_vm4, %v3040_v63  ;;  %v3642_v7 = vpop.f32.mrb[118].mxu0 }
 0x31c   :  { %v6041_v4 = vpop.f32.mrb[119].mxu0  ;;  %v3685_v21 = vpop.f32.mrb[116].mxu1 }
 0x31d   :  { %5359 = vst.msk [vmem:[%s8067_s3 + $0x16] sm:$0x3] %vm5347_vm5, %v3685_v21  ;;  %v6046_v48 = vpop.f32.mrb[117].mxu1 }
 0x31e   :  { %v3688_v20 = vpop.f32.mrb[118].mxu1 }
 0x31f   :  { %v6047_v55 = vpop.f32.mrb[119].mxu1 }
 0x321   :  { %v3731_v18 = vpop.f32.mrb[120].mxu0 }
 0x322   :  { %5360 = vst.msk [vmem:[%s8067_s3 + $0x18] sm:$0x3] %vm5347_vm5, %v3731_v18  ;;  %v6052_v45 = vpop.f32.mrb[121].mxu0 }
 0x323   :  { %v3734_v50 = vpop.f32.mrb[122].mxu0 }
 0x324   :  { %v6053_v30 = vpop.f32.mrb[123].mxu0  ;;  %v3777_v46 = vpop.f32.mrb[120].mxu1 }
 0x325   :  { %5361 = vst.msk [vmem:[%s8067_s3 + $0x1a] sm:$0x3] %vm5347_vm5, %v3777_v46  ;;  %v6058_v27 = vpop.f32.mrb[121].mxu1 }
 0x326   :  { %v3780_v41 = vpop.f32.mrb[122].mxu1 }
 0x327   :  { %v6059_v42 = vpop.f32.mrb[123].mxu1 }
 0x329   :  { %v3823_v39 = vpop.f32.mrb[124].mxu0 }
 0x32a   :  { %5362 = vst.msk [vmem:[%s8067_s3 + $0x1c] sm:$0x3] %vm5347_vm5, %v3823_v39  ;;  %v6064_v49 = vpop.f32.mrb[125].mxu0 }
 0x32b   :  { %v3826_v13 = vpop.f32.mrb[126].mxu0 }
 0x32c   :  { %v6065_v53 = vpop.f32.mrb[127].mxu0  ;;  %v3869_v58 = vpop.f32.mrb[124].mxu1 }
 0x32d   :  { %5363 = vst.msk [vmem:[%s8067_s3 + $0x1e] sm:$0x3] %vm5347_vm5, %v3869_v58  ;;  %v6070_v5 = vpop.f32.mrb[125].mxu1 }
 0x32e   :  { %v3872_v15 = vpop.f32.mrb[126].mxu1 }
 0x32f   :  { %v6071_v8 = vpop.f32.mrb[127].mxu1 }
 0x331   :  { %v3915_v32 = vpop.f32.mrb[128].mxu0 }
 0x332   :  { %5364 = vst.msk [vmem:[%s8067_s3 + $0x20] sm:$0x3] %vm5347_vm5, %v3915_v32  ;;  %v6076_v59 = vpop.f32.mrb[129].mxu0 }
 0x333   :  { %v3918_v43 = vpop.f32.mrb[130].mxu0 }
 0x334   :  { %v6077_v35 = vpop.f32.mrb[131].mxu0  ;;  %v3961_v9 = vpop.f32.mrb[128].mxu1 }
 0x335   :  { %5365 = vst.msk [vmem:[%s8067_s3 + $0x22] sm:$0x3] %vm5347_vm5, %v3961_v9  ;;  %v6082_v38 = vpop.f32.mrb[129].mxu1 }
 0x336   :  { %v3964_v34 = vpop.f32.mrb[130].mxu1 }
 0x337   :  { %v6083_v51 = vpop.f32.mrb[131].mxu1 }
 0x339   :  { %v4007_v11 = vpop.f32.mrb[132].mxu0 }
 0x33a   :  { %5366 = vst.msk [vmem:[%s8067_s3 + $0x24] sm:$0x3] %vm5347_vm5, %v4007_v11  ;;  %v6088_v28 = vpop.f32.mrb[133].mxu0 }
 0x33b   :  { %v4010_v57 = vpop.f32.mrb[134].mxu0 }
 0x33c   :  { %v6089_v1 = vpop.f32.mrb[135].mxu0  ;;  %v4053_v62 = vpop.f32.mrb[132].mxu1 }
 0x33d   :  { %5367 = vst.msk [vmem:[%s8067_s3 + $0x26] sm:$0x3] %vm5347_vm5, %v4053_v62  ;;  %v6094_v29 = vpop.f32.mrb[133].mxu1 }
 0x33e   :  { %v4056_v12 = vpop.f32.mrb[134].mxu1 }
 0x33f   :  { %v6095_v33 = vpop.f32.mrb[135].mxu1 }
 0x341   :  { %v4099_v10 = vpop.f32.mrb[136].mxu0 }
 0x342   :  { %5368 = vst.msk [vmem:[%s8067_s3 + $0x28] sm:$0x3] %vm5347_vm5, %v4099_v10  ;;  %v6100_v37 = vpop.f32.mrb[137].mxu0 }
 0x343   :  { %v4102_v47 = vpop.f32.mrb[138].mxu0 }
 0x344   :  { %v6101_v6 = vpop.f32.mrb[139].mxu0  ;;  %v4145_v25 = vpop.f32.mrb[136].mxu1 }
 0x345   :  { %5369 = vst.msk [vmem:[%s8067_s3 + $0x2a] sm:$0x3] %vm5347_vm5, %v4145_v25  ;;  %v6106_v2 = vpop.f32.mrb[137].mxu1 }
 0x346   :  { %v4148_v16 = vpop.f32.mrb[138].mxu1 }
 0x347   :  { %v6107_v22 = vpop.f32.mrb[139].mxu1 }
 0x349   :  { %v4191_v36 = vpop.f32.mrb[140].mxu0 }
 0x34a   :  { %5370 = vst.msk [vmem:[%s8067_s3 + $0x2c] sm:$0x3] %vm5347_vm5, %v4191_v36  ;;  %v6112_v54 = vpop.f32.mrb[141].mxu0 }
 0x34b   :  { %v4194_v31 = vpop.f32.mrb[142].mxu0 }
 0x34c   :  { %v6113_v44 = vpop.f32.mrb[143].mxu0  ;;  %v4237_v14 = vpop.f32.mrb[140].mxu1 }
 0x34d   :  { %5371 = vst.msk [vmem:[%s8067_s3 + $0x2e] sm:$0x3] %vm5347_vm5, %v4237_v14  ;;  %v6118_v40 = vpop.f32.mrb[141].mxu1 }
 0x34e   :  { %v4240_v24 = vpop.f32.mrb[142].mxu1 }
 0x34f   :  { %v6119_v61 = vpop.f32.mrb[143].mxu1 }
 0x391   :  { %v4283_v60 = vpop.f32.mrb[144].mxu0 }
 0x392   :  { %5372 = vst.msk [vmem:[%s8067_s3 + $0x30] sm:$0x3] %vm5347_vm5, %v4283_v60  ;;  %v6124_v23 = vpop.f32.mrb[145].mxu0 }
 0x393   :  { %v4286_v19 = vpop.f32.mrb[146].mxu0 }
 0x394   :  { %v6125_v56 = vpop.f32.mrb[147].mxu0 }
 0x395   :  { %v4329_v52 = vpop.f32.mrb[144].mxu1 }
 0x396   :  { %5373 = vst.msk [vmem:[%s8067_s3 + $0x32] sm:$0x3] %vm5347_vm5, %v4329_v52  ;;  %v6130_v17 = vpop.f32.mrb[145].mxu1 }
 0x397   :  { %v4332_v3 = vpop.f32.mrb[146].mxu1 }
 0x398   :  { %v6131_v63 = vpop.f32.mrb[147].mxu1 }
 0x399   :  { %v4375_v26 = vpop.f32.mrb[148].mxu0 }
 0x39a   :  { %5374 = vst.msk [vmem:[%s8067_s3 + $0x34] sm:$0x3] %vm5347_vm5, %v4375_v26  ;;  %v6136_v0 = vpop.f32.mrb[149].mxu0 }
 0x39b   :  { %v4378_v7 = vpop.f32.mrb[150].mxu0 }
 0x39c   :  { %v6137_v4 = vpop.f32.mrb[151].mxu0 }
 0x39d   :  { %v4421_v21 = vpop.f32.mrb[148].mxu1 }
 0x39e   :  { %5375 = vst.msk [vmem:[%s8067_s3 + $0x36] sm:$0x3] %vm5347_vm5, %v4421_v21  ;;  %v6142_v48 = vpop.f32.mrb[149].mxu1 }
 0x39f   :  { %v4424_v20 = vpop.f32.mrb[150].mxu1 }
 0x3a0   :  { %v6143_v55 = vpop.f32.mrb[151].mxu1 }
 0x3a2   :  { %v4467_v18 = vpop.f32.mrb[152].mxu0 }
 0x3a3   :  { %5376 = vst.msk [vmem:[%s8067_s3 + $0x38] sm:$0x3] %vm5347_vm5, %v4467_v18  ;;  %v6148_v45 = vpop.f32.mrb[153].mxu0 }
 0x3a4   :  { %v4470_v50 = vpop.f32.mrb[154].mxu0 }
 0x3a5   :  { %v6149_v30 = vpop.f32.mrb[155].mxu0  ;;  %v4513_v46 = vpop.f32.mrb[152].mxu1 }
 0x3a6   :  { %5377 = vst.msk [vmem:[%s8067_s3 + $0x3a] sm:$0x3] %vm5347_vm5, %v4513_v46  ;;  %v6154_v27 = vpop.f32.mrb[153].mxu1 }
 0x3a7   :  { %v4516_v41 = vpop.f32.mrb[154].mxu1 }
 0x3a8   :  { %v6155_v42 = vpop.f32.mrb[155].mxu1 }
 0x3aa   :  { %v4559_v39 = vpop.f32.mrb[156].mxu0 }
 0x3ab   :  { %5378 = vst.msk [vmem:[%s8067_s3 + $0x3c] sm:$0x3] %vm5347_vm5, %v4559_v39  ;;  %v6160_v49 = vpop.f32.mrb[157].mxu0 }
 0x3ac   :  { %v4562_v13 = vpop.f32.mrb[158].mxu0 }
 0x3ad   :  { %v6161_v53 = vpop.f32.mrb[159].mxu0  ;;  %v4605_v58 = vpop.f32.mrb[156].mxu1 }
 0x3ae   :  { %5379 = vst.msk [vmem:[%s8067_s3 + $0x3e] sm:$0x3] %vm5347_vm5, %v4605_v58  ;;  %v6166_v5 = vpop.f32.mrb[157].mxu1 }
 0x3af   :  { %v4608_v15 = vpop.f32.mrb[158].mxu1 }
 0x3b0   :  { %v6167_v8 = vpop.f32.mrb[159].mxu1 }
 0x3b2   :  { %v4651_v32 = vpop.f32.mrb[160].mxu0 }
 0x3b3   :  { %5380 = vst.msk [vmem:[%s8067_s3 + $0x40] sm:$0x3] %vm5347_vm5, %v4651_v32  ;;  %v6172_v59 = vpop.f32.mrb[161].mxu0 }
 0x3b4   :  { %v4654_v43 = vpop.f32.mrb[162].mxu0 }
 0x3b5   :  { %v6173_v35 = vpop.f32.mrb[163].mxu0  ;;  %v4697_v9 = vpop.f32.mrb[160].mxu1 }
 0x3b6   :  { %5381 = vst.msk [vmem:[%s8067_s3 + $0x42] sm:$0x3] %vm5347_vm5, %v4697_v9  ;;  %v6178_v38 = vpop.f32.mrb[161].mxu1 }
 0x3b7   :  { %v4700_v34 = vpop.f32.mrb[162].mxu1 }
 0x3b8   :  { %v6179_v51 = vpop.f32.mrb[163].mxu1 }
 0x3ba   :  { %v4743_v11 = vpop.f32.mrb[164].mxu0 }
 0x3bb   :  { %5382 = vst.msk [vmem:[%s8067_s3 + $0x44] sm:$0x3] %vm5347_vm5, %v4743_v11  ;;  %v6184_v28 = vpop.f32.mrb[165].mxu0 }
 0x3bc   :  { %v4746_v57 = vpop.f32.mrb[166].mxu0 }
 0x3bd   :  { %v6185_v1 = vpop.f32.mrb[167].mxu0  ;;  %v4789_v62 = vpop.f32.mrb[164].mxu1 }
 0x3be   :  { %5383 = vst.msk [vmem:[%s8067_s3 + $0x46] sm:$0x3] %vm5347_vm5, %v4789_v62  ;;  %v6190_v29 = vpop.f32.mrb[165].mxu1 }
 0x3bf   :  { %v4792_v12 = vpop.f32.mrb[166].mxu1 }
 0x3c0   :  { %v6191_v33 = vpop.f32.mrb[167].mxu1 }
 0x3c2   :  { %v4835_v10 = vpop.f32.mrb[168].mxu0 }
 0x3c3   :  { %5384 = vst.msk [vmem:[%s8067_s3 + $0x48] sm:$0x3] %vm5347_vm5, %v4835_v10  ;;  %v6196_v37 = vpop.f32.mrb[169].mxu0 }
 0x3c4   :  { %v4838_v47 = vpop.f32.mrb[170].mxu0 }
 0x3c5   :  { %v6197_v6 = vpop.f32.mrb[171].mxu0  ;;  %v4881_v25 = vpop.f32.mrb[168].mxu1 }
 0x3c6   :  { %5385 = vst.msk [vmem:[%s8067_s3 + $0x4a] sm:$0x3] %vm5347_vm5, %v4881_v25  ;;  %v6202_v2 = vpop.f32.mrb[169].mxu1 }
 0x3c7   :  { %v4884_v16 = vpop.f32.mrb[170].mxu1 }
 0x3c8   :  { %v6203_v22 = vpop.f32.mrb[171].mxu1 }
 0x3ca   :  { %v4927_v36 = vpop.f32.mrb[172].mxu0 }
 0x3cb   :  { %5386 = vst.msk [vmem:[%s8067_s3 + $0x4c] sm:$0x3] %vm5347_vm5, %v4927_v36  ;;  %v6208_v54 = vpop.f32.mrb[173].mxu0 }
 0x3cc   :  { %v4930_v31 = vpop.f32.mrb[174].mxu0 }
 0x3cd   :  { %v6209_v44 = vpop.f32.mrb[175].mxu0  ;;  %v4973_v14 = vpop.f32.mrb[172].mxu1 }
 0x3ce   :  { %5387 = vst.msk [vmem:[%s8067_s3 + $0x4e] sm:$0x3] %vm5347_vm5, %v4973_v14  ;;  %v6214_v40 = vpop.f32.mrb[173].mxu1 }
 0x3cf   :  { %v4976_v24 = vpop.f32.mrb[174].mxu1 }
 0x3d0   :  { %v6215_v61 = vpop.f32.mrb[175].mxu1 }
 0x3d2   :  { %v5019_v60 = vpop.f32.mrb[176].mxu0 }
 0x3d3   :  { %5388 = vst.msk [vmem:[%s8067_s3 + $0x50] sm:$0x3] %vm5347_vm5, %v5019_v60  ;;  %v6220_v23 = vpop.f32.mrb[177].mxu0 }
 0x3d4   :  { %v5022_v19 = vpop.f32.mrb[178].mxu0 }
 0x3d5   :  { %v6221_v56 = vpop.f32.mrb[179].mxu0  ;;  %v5065_v52 = vpop.f32.mrb[176].mxu1 }
 0x3d6   :  { %5389 = vst.msk [vmem:[%s8067_s3 + $0x52] sm:$0x3] %vm5347_vm5, %v5065_v52  ;;  %v6226_v17 = vpop.f32.mrb[177].mxu1 }
 0x3d7   :  { %v5068_v3 = vpop.f32.mrb[178].mxu1 }
 0x3d8   :  { %v6227_v63 = vpop.f32.mrb[179].mxu1 }
 0x3da   :  { %v5111_v26 = vpop.f32.mrb[180].mxu0 }
 0x3db   :  { %5390 = vst.msk [vmem:[%s8067_s3 + $0x54] sm:$0x3] %vm5347_vm5, %v5111_v26  ;;  %v6232_v0 = vpop.f32.mrb[181].mxu0 }
 0x3dc   :  { %v5114_v7 = vpop.f32.mrb[182].mxu0 }
 0x3dd   :  { %v6233_v4 = vpop.f32.mrb[183].mxu0 }
 0x3de   :  { %v5157_v21 = vpop.f32.mrb[180].mxu1 }
 0x3df   :  { %5391 = vst.msk [vmem:[%s8067_s3 + $0x56] sm:$0x3] %vm5347_vm5, %v5157_v21  ;;  %v6238_v48 = vpop.f32.mrb[181].mxu1 }
 0x3e0   :  { %v5160_v20 = vpop.f32.mrb[182].mxu1 }
 0x3e1   :  { %v6239_v55 = vpop.f32.mrb[183].mxu1 }
 0x3e2   :  { %v5203_v18 = vpop.f32.mrb[184].mxu0 }
 0x3e3   :  { %5392 = vst.msk [vmem:[%s8067_s3 + $0x58] sm:$0x3] %vm5347_vm5, %v5203_v18  ;;  %v6244_v45 = vpop.f32.mrb[185].mxu0 }
 0x3e4   :  { %v5206_v50 = vpop.f32.mrb[186].mxu0 }
 0x3e5   :  { %v6245_v30 = vpop.f32.mrb[187].mxu0 }
 0x3e6   :  { %v5249_v46 = vpop.f32.mrb[184].mxu1 }
 0x3e7   :  { %5393 = vst.msk [vmem:[%s8067_s3 + $0x5a] sm:$0x3] %vm5347_vm5, %v5249_v46  ;;  %v6250_v27 = vpop.f32.mrb[185].mxu1 }
 0x3e8   :  { %v5252_v41 = vpop.f32.mrb[186].mxu1 }
 0x3e9   :  { %v6251_v42 = vpop.f32.mrb[187].mxu1 }
 0x3ea   :  { %v5295_v39 = vpop.f32.mrb[188].mxu0 }
 0x3eb   :  { %5394 = vst.msk [vmem:[%s8067_s3 + $0x5c] sm:$0x3] %vm5347_vm5, %v5295_v39  ;;  %v6256_v49 = vpop.f32.mrb[189].mxu0 }
 0x3ec   :  { %v5298_v13 = vpop.f32.mrb[190].mxu0 }
 0x3ed   :  { %v6257_v53 = vpop.f32.mrb[191].mxu0 }
 0x3ee   :  { %v5341_v58 = vpop.f32.mrb[188].mxu1 }
 0x3ef   :  { %5395 = vst.msk [vmem:[%s8067_s3 + $0x5e] sm:$0x3] %vm5347_vm5, %v5341_v58  ;;  %v6262_v5 = vpop.f32.mrb[189].mxu1 }
 0x3f0   :  { %v5344_v15 = vpop.f32.mrb[190].mxu1 }
 0x3f1   :  { %v6263_v8 = vpop.f32.mrb[191].mxu1 }

</bundles_post_ra>
